<compile_context>
chip_gen: v7x
topology: tpu7x:2x2x1
jax: 0.10.0
libtpu: 0.0.40
codegen_flags: <defaults>
</compile_context>

<pallas_src>
import functools

import jax
import jax.numpy as jnp
from jax import lax
from jax.experimental import pallas as pl
from jax.experimental.pallas import tpu as pltpu

IN_FEATURES = 196608   # fixed by the module's __init__ (3 * 256 * 256)
OUT_FEATURES = 10


def _num_tensorcores():
    """2 TensorCores per chip on v7x; 1 on v5e/v6e. Safe fallback: 1."""
    try:
        kind = jax.devices()[0].device_kind.lower()
        if "v7" in kind:
            return 2
    except Exception:
        pass
    return 1


def _linear_kernel(x_ref, w_ref, b_ref, o_ref):
    """One grid step: accumulate a K-tile of x @ W.T into the resident output.

    x_ref: (B, tile_k)       f32
    w_ref: (N_out, tile_k)   f32   (native PyTorch layout, lane-dense in K)
    b_ref: (1, N_out)        f32
    o_ref: (B, N_out)        f32   (resident across the reduction axis)
    """
    p = pl.program_id(0)   # split-K / core axis
    k = pl.program_id(1)   # reduction axis

    @pl.when(k == 0)
    def _():
        o_ref[...] = jnp.zeros_like(o_ref)

    # Contract the last dim of both operands: (B, tk) x (N, tk) -> (B, N).
    o_ref[...] += lax.dot_general(
        x_ref[...],
        w_ref[...],
        dimension_numbers=(((1,), (1,)), ((), ())),
        preferred_element_type=jnp.float32,
    )

    # Bias folded into the epilogue: only on the last K step, and only on
    # split 0 (for k_splits > 1 the splits are summed in the wrapper).
    @pl.when(jnp.logical_and(k == pl.num_programs(1) - 1, p == 0))
    def _():
        o_ref[...] += b_ref[...]


@functools.partial(jax.jit, static_argnames=("tile_k", "k_splits"))
def _net_linear_forward(x, w, b, *, tile_k, k_splits):
    """y = x @ w.T + b  (PyTorch nn.Linear semantics)."""
    B, K = x.shape
    N, K_w = w.shape
    assert K == K_w, "weight / input feature mismatch"
    assert K % tile_k == 0, "tile_k must divide K (K = 3 * 2**16)"
    n_k = K // tile_k
    assert n_k % k_splits == 0, "k_splits must divide the number of K tiles"
    kpp = n_k // k_splits  # K tiles per parallel split

    b2 = b.reshape(1, N)

    if k_splits == 1:
        out_shape = jax.ShapeDtypeStruct((B, N), jnp.float32)
        out_specs = pl.BlockSpec((B, N), lambda p, k: (0, 0))
    else:
        out_shape = jax.ShapeDtypeStruct((k_splits, B, N), jnp.float32)
        out_specs = pl.BlockSpec((None, B, N), lambda p, k: (p, 0, 0))

    out = pl.pallas_call(
        _linear_kernel,
        out_shape=out_shape,
        grid_spec=pltpu.PrefetchScalarGridSpec(
            num_scalar_prefetch=0,
            grid=(k_splits, kpp),
            in_specs=[
                # x K-tile, lane-dense (tile_k on lanes).
                pl.BlockSpec((B, tile_k), lambda p, k: (0, p * kpp + k)),
                # weight K-tile in native (N_out, K) layout, lane-dense.
                pl.BlockSpec((N, tile_k), lambda p, k: (0, p * kpp + k)),
                # bias, tiny, same block every step.
                pl.BlockSpec((1, N), lambda p, k: (0, 0)),
            ],
            out_specs=out_specs,
        ),
        compiler_params=pltpu.CompilerParams(
            dimension_semantics=("parallel", "arbitrary"),
            vmem_limit_bytes=32 * 1024 * 1024,
        ),
    )(x, w, b2)

    if k_splits == 1:
        return out
    # Combine the per-core partial sums (bias already added on split 0).
    return out.sum(axis=0)


def net_linear_forward(x, w, b, *, tile_k=None, k_splits=None):
    """Resolve per-chip defaults, then run the jitted kernel.

    v5e / v6e (1 TC): k_splits=1, tile_k=65536  -> 3 grid steps, no epilogue.
    v7x       (2 TC): k_splits=2, tile_k=49152  -> 4 grid steps, 2 per core.
    """
    if k_splits is None:
        k_splits = _num_tensorcores()
    if tile_k is None:
        tile_k = 49152 if k_splits > 1 else 65536
    return _net_linear_forward(x, w, b, tile_k=tile_k, k_splits=k_splits)


def init_params(key):
    """Deterministic init mimicking nn.Linear's default U(-1/sqrt(K), 1/sqrt(K))."""
    k_w, k_b = jax.random.split(key)
    bound = 1.0 / jnp.sqrt(jnp.float32(IN_FEATURES))
    # Native PyTorch weight layout: (out_features, in_features).
    w = jax.random.uniform(
        k_w, (OUT_FEATURES, IN_FEATURES), jnp.float32, -bound, bound
    )
    b = jax.random.uniform(k_b, (OUT_FEATURES,), jnp.float32, -bound, bound)
    return w, b


if __name__ == "__main__":
    key = jax.random.PRNGKey(0)
    k_x, k_p = jax.random.split(key)

    batch = 2
    x = jax.random.normal(k_x, (batch, IN_FEATURES), jnp.float32)
    w, b = init_params(k_p)

    y = net_linear_forward(x, w, b)
    jax.block_until_ready(y)

    # sanity check against plain-JAX reference
    y_ref = x @ w.T + b
    assert y.shape == (batch, OUT_FEATURES)
    assert jnp.allclose(y, y_ref, atol=1e-3, rtol=1e-3)

    print("KERNEL_OK")
</pallas_src>

<mosaic_0001>
module attributes {stable_mosaic.version = 11 : i64} {
  func.func @_linear_kernel(%arg0: i32, %arg1: i32, %arg2: memref<2x65536xf32, #tpu.memory_space<vmem>>, %arg3: memref<10x65536xf32, #tpu.memory_space<vmem>>, %arg4: memref<1x10xf32, #tpu.memory_space<vmem>>, %arg5: memref<2x10xf32, #tpu.memory_space<vmem>>) attributes {dimension_semantics = [#tpu.dimension_semantics<parallel>, #tpu.dimension_semantics<arbitrary>], iteration_bounds = array<i64: 1, 3>, scalar_prefetch = 0 : i64, scratch_operands = 0 : i64, tpu.core_type = #tpu.core_type<tc>, window_params = [{transform_indices = @transform_0, window_bounds = array<i64: 2, 65536>}, {transform_indices = @transform_1, window_bounds = array<i64: 10, 65536>}, {pipeline_mode = #tpu.pipeline_mode<synchronous>, transform_indices = @transform_2, window_bounds = array<i64: 1, 10>}, {pipeline_mode = #tpu.pipeline_mode<synchronous>, transform_indices = @transform_3, window_bounds = array<i64: 2, 10>}]} {
    %c0_i32 = arith.constant 0 : i32
    %0 = arith.cmpi eq, %arg1, %c0_i32 : i32
    %1 = arith.extui %0 : i1 to i32
    %c0_i32_0 = arith.constant 0 : i32
    %2 = arith.cmpi ne, %1, %c0_i32_0 : i32
    scf.if %2 {
      %cst_10 = arith.constant 0.000000e+00 : f32
      %14 = vector.broadcast %cst_10 : f32 to vector<2x10xf32>
      %c0_11 = arith.constant 0 : index
      %c0_12 = arith.constant 0 : index
      %15 = vector.load %arg5[%c0_11, %c0_12] : memref<2x10xf32, #tpu.memory_space<vmem>>, vector<2x10xf32>
      tpu.vector_store %arg5[%c0_11, %c0_12], %14 {strides = array<i32>} : memref<2x10xf32, #tpu.memory_space<vmem>>, vector<2x10xf32>,
    } else {
    }
    %c0 = arith.constant 0 : index
    %c0_1 = arith.constant 0 : index
    %3 = vector.load %arg5[%c0, %c0_1] : memref<2x10xf32, #tpu.memory_space<vmem>>, vector<2x10xf32>
    %c0_2 = arith.constant 0 : index
    %c0_3 = arith.constant 0 : index
    %4 = vector.load %arg2[%c0_2, %c0_3] : memref<2x65536xf32, #tpu.memory_space<vmem>>, vector<2x65536xf32>
    %c0_4 = arith.constant 0 : index
    %c0_5 = arith.constant 0 : index
    %5 = vector.load %arg3[%c0_4, %c0_5] : memref<10x65536xf32, #tpu.memory_space<vmem>>, vector<10x65536xf32>
    %cst = arith.constant dense<0.000000e+00> : vector<2x10xf32>
    %6 = tpu.matmul %4, %5, %cst {dimension_numbers = #tpu.dot_dimension_numbers<[1], [1], [0], [0], [0, 0, 1, 0], [], []>} : vector<2x65536xf32>, vector<10x65536xf32>, vector<2x10xf32> -> vector<2x10xf32>
    %7 = arith.addf %3, %6 : vector<2x10xf32>
    %c0_6 = arith.constant 0 : index
    %c0_7 = arith.constant 0 : index
    %8 = vector.load %arg5[%c0_6, %c0_7] : memref<2x10xf32, #tpu.memory_space<vmem>>, vector<2x10xf32>
    tpu.vector_store %arg5[%c0_6, %c0_7], %7 {strides = array<i32>} : memref<2x10xf32, #tpu.memory_space<vmem>>, vector<2x10xf32>,
    %c2_i32 = arith.constant 2 : i32
    %9 = arith.cmpi eq, %arg1, %c2_i32 : i32
    %c0_i32_8 = arith.constant 0 : i32
    %10 = arith.cmpi eq, %arg0, %c0_i32_8 : i32
    %11 = arith.andi %9, %10 : i1
    %12 = arith.extui %11 : i1 to i32
    %c0_i32_9 = arith.constant 0 : i32
    %13 = arith.cmpi ne, %12, %c0_i32_9 : i32
    scf.if %13 {
      %c0_10 = arith.constant 0 : index
      %c0_11 = arith.constant 0 : index
      %14 = vector.load %arg5[%c0_10, %c0_11] : memref<2x10xf32, #tpu.memory_space<vmem>>, vector<2x10xf32>
      %c0_12 = arith.constant 0 : index
      %c0_13 = arith.constant 0 : index
      %15 = vector.load %arg4[%c0_12, %c0_13] : memref<1x10xf32, #tpu.memory_space<vmem>>, vector<1x10xf32>
      %16 = vector.broadcast %15 : vector<1x10xf32> to vector<2x10xf32>
      %17 = arith.addf %14, %16 : vector<2x10xf32>
      %c0_14 = arith.constant 0 : index
      %c0_15 = arith.constant 0 : index
      %18 = vector.load %arg5[%c0_14, %c0_15] : memref<2x10xf32, #tpu.memory_space<vmem>>, vector<2x10xf32>
      tpu.vector_store %arg5[%c0_14, %c0_15], %17 {strides = array<i32>} : memref<2x10xf32, #tpu.memory_space<vmem>>, vector<2x10xf32>,
    } else {
    }
    return
  }
  func.func @transform_0(%arg0: i32, %arg1: i32) -> (i32, i32) {
    %c3_i32 = arith.constant 3 : i32
    %0 = arith.muli %arg0, %c3_i32 : i32
    %1 = arith.addi %0, %arg1 : i32
    %c0_i32 = arith.constant 0 : i32
    %c0_i32_0 = arith.constant 0 : i32
    return %c0_i32, %1 : i32, i32
  }
  func.func @transform_1(%arg0: i32, %arg1: i32) -> (i32, i32) {
    %c3_i32 = arith.constant 3 : i32
    %0 = arith.muli %arg0, %c3_i32 : i32
    %1 = arith.addi %0, %arg1 : i32
    %c0_i32 = arith.constant 0 : i32
    %c0_i32_0 = arith.constant 0 : i32
    return %c0_i32, %1 : i32, i32
  }
  func.func @transform_2(%arg0: i32, %arg1: i32) -> (i32, i32) {
    %c0_i32 = arith.constant 0 : i32
    %c0_i32_0 = arith.constant 0 : i32
    %c0_i32_1 = arith.constant 0 : i32
    return %c0_i32, %c0_i32_0 : i32, i32
  }
  func.func @transform_3(%arg0: i32, %arg1: i32) -> (i32, i32) {
    %c0_i32 = arith.constant 0 : i32
    %c0_i32_0 = arith.constant 0 : i32
    %c0_i32_1 = arith.constant 0 : i32
    return %c0_i32, %c0_i32_0 : i32, i32
  }
}

</mosaic_0001>

<bundles_post_ra>
// kernel: _net_linear_forward.1
= control target key start
LH: loop header
LB: loop body
LE: loop exit
PB: predicated region body
PF: predicated region fallthrough
CT: control target
= control target key end

     0   :  { %8 = vsyncpa [#allocation3], 0  ;;  %s25395_s0 = inlined_call_operand.hbm [shape: f32[2,196608], index: 0, kind: input, shape index: {}]   ;;  %s25396_s1 = inlined_call_operand.hbm [shape: f32[10,196608], index: 1, kind: input, shape index: {}]   ;;  %s25397_s2 = inlined_call_operand.hbm [shape: f32[1,10], index: 2, kind: input, shape index: {}]   ;;  %s25398_s3 = inlined_call_operand.hbm [shape: f32[2,10], index: 3, kind: output, shape index: {}]  }
   0x1   :  { %10 = vsyncpa [#allocation3 + $0x1], 0 }
   0x2   :  { %11 = vsyncpa [#allocation6], 0 }
   0x3   :  { %13 = vsyncpa [#allocation6 + $0x1], 0 }
   0x4   :  { %14 = vsyncpa [#allocation4], 0  ;;  %s23739_s12 = smov 0   ;;  %s23741_s13 = smov 0  }
   0x5   :  { %s23743_s14 = smov 0   ;;  %s23745_s15 = smov 0  }
   0x6   :  { %s23747_s16 = smov 0   ;;  %s23749_s17 = smov 0  }
   0x7 LB: > { %s23768_s18 = sadd.s32 4294967295, %s23708_s17   ;;  %s43_s19 = sadd.s32 1, %s23696_s14  ;;  %s23708_s17 = sphi %s23749_s17, %s20_s17   ;;  %s23704_s16 = sphi %s23747_s16, %s25419_s16   ;;  %s23700_s15 = sphi %s23745_s15, %s25418_s15   ;;  %s23696_s14 = sphi %s23743_s14, %s25417_s14   ;;  %s23692_s13 = sphi %s23741_s13, %s25416_s13   ;;  %s23688_s12 = sphi %s23739_s12, %s25415_s12  }
   0x8   : > { %p50_p0 = scmp.ne.s32.totalorder %s23696_s14, %s23692_s13  ;;  %p56_p1 = scmp.ne.s32.totalorder %s23692_s13, %s23688_s12 }
   0x9   : > { %p25399_p2 = scmp.eq.s32.totalorder %s23768_s18, 0  ;;  %p22274_p3 = scmp.ge.s32.totalorder %s23708_s17, 1 }
   0xa   : > { %p139_p4 = scmp.lt.s32.totalorder %s23708_s17, 4  ;;  %s23710_s22 = smov [#allocation7]  }
   0xb   : > { %p23779_p5 = por %p25399_p2, %p56_p1  ;;  %s152_s23 = sshll.u32 %s23710_s22, 4  ;;  %s153_s23 = int_to_ptr.vmem [resolvable:$true] %s152_s23 }
   0xc   : > { %p23783_p6 = pnand %p22274_p3, %p139_p4  ;;  %p51_p8 = scmp.eq.s32.totalorder %s23708_s17, 0 }
   0xd   : > { %s25402_s20 = scalar_select %p23779_p5, 1, 0 }
   0xe   : > { %s25403_s21 = scalar_select %p23783_p6, 1, 0 }
   0xf   : > { %p23333_p7 = pneg %p23783_p6  ;;  %s29_s25 = sadd.s32 1, %s23704_s16 }
  0x10   : > { %p23797_p10 = scmp.ge.s32.totalorder %s29_s25, 3  ;;  %p23804_p11 = por %p51_p8, %p50_p0 }
  0x11   : > { %p23792_p9 = pnand %p23333_p7, %p25399_p2  ;;  %s23532_s30 = scalar_lea.hbm %s25397_s2, 16 }
  0x12   : > { %s25405_s26 = scalar_select %p23797_p10, 1, 0 }
  0x13   : > { %s25406_s27 = scalar_select %p23804_p11, 1, 0 }
  0x14   : > { %p23533_p13 = scmp.ne.s32.totalorder %s25397_s2, %s23532_s30  ;;  %p23534_p1 = pneg %p23792_p9 }
  0x15   : > { %p23539_p0 = scmp.lt.u32.totalorder %s23532_s30, %s25397_s2 }
  0x16   : > { %p23535_p3 = pnand %p23534_p1, %p23533_p13 }
  0x18   : > { %p23536_p4 = pneg %p23535_p3 }
  0x1a   : > { %p23541_p7 = pnand %p23539_p0, %p23536_p4 }
  0x1c   : > { %23544 = shalt.err (!%p23541_p7)
}
  0x1d   : > { %s23545_s8 = scalar_lea.vmem %s153_s23, 16  ;;  %s23552_s9 = scalar_lea.vmem %s153_s23, 32 }
  0x1e   : > { %p23546_p8 = scmp.ne.s32.totalorder %s153_s23, %s23545_s8  ;;  %p23553_p5 = scmp.lt.s32.totalorder %s153_s23, %s153_s23 }
  0x1f   : > { %p23554_p6 = scmp.lt.s32.totalorder %s23552_s9, %s23545_s8 }
  0x20   : > { %p23548_p2 = pnand %p23546_p8, %p23534_p1 }
  0x21   : > { %p23555_p11 = por %p23554_p6, %p23553_p5 }
  0x22   : > { %p23549_p12 = pneg %p23548_p2 }
  0x24   : > { %p23556_p10 = pnand %p23555_p11, %p23549_p12 }
  0x26   : > { %23559 = shalt.err (!%p23556_p10)
}
  0x27   : > { %23336 = dma.hbm_to_vmem [thread:$0]  (!%p23792_p9), %s25397_s2, 16, %s153_s23, [#allocation6]  }
  0x28   : > { %p25407_p2 = scmp.ne.s32.totalorder %s25405_s26, 0  ;;  %s23830_s12 = sand.u32 1, %s23696_s14  }
  0x29   : > { %s22294_s22 = sshll.u32 %s23704_s16, 14  ;;  %s22277_s28 = sshll.u32 %s23830_s12, 10 }
  0x2a   : > { %s25421_s25 = smov (%p25407_p2, %s29_s25), 0  ;;  %s23839_s4 = scalar_lea.hbm %s25395_s0, %s22294_s22 }
  0x2b   : > { %s40_s24 = ssub.s32 %s23704_s16, %s25421_s25  ;;  %s167_s26 = scalar_lea.vmem [#allocation2], %s22277_s28 }
  0x2c   : > { %p41_p5 = scmp.eq.s32.totalorder %s40_s24, 0  ;;  %s177_s5 = sshll.u32 %s167_s26, 4  ;;  %s23854_s5 = int_to_ptr.vmem [resolvable:$true] %s177_s5 }
  0x2d   : > { %p25408_p6 = scmp.ne.s32.totalorder %s25406_s27, 0  ;;  %p25409_p9 = scmp.lt.s32.totalorder %s23708_s17, 3 }
  0x2e   : > { %s23844_s23 = scalar_select %p41_p5, %s23696_s14, %s43_s19  }
  0x2f   : > { %p23850_p10 = pnand %p25409_p9, %p25408_p6  ;;  %s22280_s7 = sshll.u32 %s23830_s12, 13 }
  0x30   : > { %s164_s8 = scalar_lea.sflag [#allocation3], %s23830_s12  ;;  %s23560_s9 = scalar_lea.hbm %s23839_s4, 16384 }
  0x31   : > { %p23561_p11 = scmp.ne.s32.totalorder %s23839_s4, %s23560_s9  ;;  %p23562_p12 = pneg %p23850_p10 }
  0x32   : > { %s23565_s10 = scalar_lea.hbm %s25395_s0, 49152  ;;  %p23566_p3 = scmp.lt.u32.totalorder %s23839_s4, %s25395_s0 }
  0x33   : > { %p23563_p13 = pnand %p23562_p12, %p23561_p11  ;;  %p23567_p4 = scmp.lt.u32.totalorder %s23565_s10, %s23560_s9 }
  0x34   : > { %p23569_p7 = scmp.lt.u32.totalorder %s23560_s9, %s23839_s4 }
  0x35   : > { %p23564_p1 = pneg %p23563_p13  ;;  %p23568_p0 = por %p23567_p4, %p23566_p3 }
  0x37   : > { %p23570_p8 = por %p23569_p7, %p23568_p0 }
  0x39   : > { %p23571_p2 = pnand %p23570_p8, %p23564_p1 }
  0x3b   : > { %23574 = shalt.err (!%p23571_p2)
}
  0x3c   : > { %s23575_s24 = scalar_lea.vmem %s23854_s5, 16384  ;;  %s23711_s28 = smov [#allocation2]  }
  0x3d   : > { %p23576_p5 = scmp.ne.s32.totalorder %s23854_s5, %s23575_s24  ;;  %s23580_s29 = sshll.u32 %s23711_s28, 4  ;;  %s23581_s29 = int_to_ptr.vmem [resolvable:$false] %s23580_s29 }
  0x3e   : > { %s23582_s30 = scalar_lea.vmem %s23581_s29, 32768  ;;  %p23583_p11 = scmp.lt.s32.totalorder %s23854_s5, %s23581_s29 }
  0x3f   : > { %p23578_p6 = pnand %p23576_p5, %p23562_p12  ;;  %p23584_p13 = scmp.lt.s32.totalorder %s23582_s30, %s23575_s24 }
  0x41   : > { %p23579_p9 = pneg %p23578_p6  ;;  %p23585_p3 = por %p23584_p13, %p23583_p11 }
  0x43   : > { %p23586_p4 = pnand %p23585_p3, %p23579_p9 }
  0x45   : > { %23589 = shalt.err (!%p23586_p4)
}
  0x46   : > { %23340 = dma.hbm_to_vmem [thread:$0]  (!%p23850_p10), %s23839_s4, 16384, %s23854_s5, %s164_s8  }
  0x47   : > { %s22295_s26 = sshll.u32 %s23704_s16, 16  ;;  %s188_s9 = scalar_lea.vmem [#allocation5], %s22280_s7 }
  0x48   : > { %s197_s19 = sshll.u32 %s188_s9, 4  ;;  %s23889_s11 = scalar_lea.hbm %s25396_s1, %s22295_s26  ;;  %s23891_s19 = int_to_ptr.vmem [resolvable:$true] %s197_s19 }
  0x49   : > { %s184_s22 = sand.u32 1, %s23708_s17   ;;  %s23590_s28 = scalar_lea.hbm %s23889_s11, 131072 }
  0x4a   : > { %s23894_s24 = scalar_lea.sflag [#allocation6], %s184_s22  ;;  %p23591_p1 = scmp.ne.s32.totalorder %s23889_s11, %s23590_s28 }
  0x4b   : > { %s23595_s5 = scalar_lea.hbm %s25396_s1, 393216  ;;  %p23596_p8 = scmp.lt.u32.totalorder %s23889_s11, %s25396_s1 }
  0x4c   : > { %p23593_p0 = pnand %p23591_p1, %p23562_p12  ;;  %p23597_p2 = scmp.lt.u32.totalorder %s23595_s5, %s23590_s28 }
  0x4d   : > { %p23599_p6 = scmp.lt.u32.totalorder %s23590_s28, %s23889_s11 }
  0x4e   : > { %p23594_p7 = pneg %p23593_p0  ;;  %p23598_p5 = por %p23597_p2, %p23596_p8 }
  0x50   : > { %p23600_p9 = por %p23599_p6, %p23598_p5 }
  0x52   : > { %p23601_p11 = pnand %p23600_p9, %p23594_p7 }
  0x54   : > { %23604 = shalt.err (!%p23601_p11)
}
  0x55   : > { %s23605_s29 = scalar_lea.vmem %s23891_s19, 131072  ;;  %s23712_s30 = smov [#allocation5]  }
  0x56   : > { %p23606_p13 = scmp.ne.s32.totalorder %s23891_s19, %s23605_s29  ;;  %s23610_s26 = sshll.u32 %s23712_s30, 4  ;;  %s23611_s26 = int_to_ptr.vmem [resolvable:$false] %s23610_s26 }
  0x57   : > { %s23612_s9 = scalar_lea.vmem %s23611_s26, 262144  ;;  %p23613_p1 = scmp.lt.s32.totalorder %s23891_s19, %s23611_s26 }
  0x58   : > { %p23608_p3 = pnand %p23606_p13, %p23562_p12  ;;  %p23614_p0 = scmp.lt.s32.totalorder %s23612_s9, %s23605_s29 }
  0x5a   : > { %p23609_p4 = pneg %p23608_p3  ;;  %p23615_p8 = por %p23614_p0, %p23613_p1 }
  0x5c   : > { %p23616_p2 = pnand %p23615_p8, %p23609_p4 }
  0x5e   : > { %23619 = shalt.err (!%p23616_p2)
}
  0x5f   : > { %s23713_s27 = smov 196608   ;;  %s23714_s10 = smov 65536  }
  0x60   : > { %s23715_s22 = smov 4096   ;;  %p25411_p12 = scmp.ne.s32.totalorder %s25403_s21, 0 }
  0x61   : > { %23343 = dma.hbm_to_vmem [thread:$0]  (!%p23850_p10), %s23889_s11, 131072, %s23891_s19, %s23894_s24, %s23713_s27, %s23714_s10, %s23715_s22  }
  0x62   : > { %209 = sbr.rel (%p25411_p12) target bundleno = 1403 (0x57b), region = 32  ;;  %s211_s28 = sand.u32 (!%p25411_p12), 1, %s23692_s13  }
  0x63   : > { %s22284_s12 = sshll.u32 (!%p25411_p12), %s211_s28, 10  ;;  %s212_s4 = scalar_lea.sflag (!%p25411_p12), [#allocation3], %s211_s28 }
  0x64   : > { %s23923_s5 = scalar_lea.vmem (!%p25411_p12), [#allocation2], %s22284_s12  ;;  %p25412_p7 = scmp.ne.s32.totalorder (!%p25411_p12), %s25402_s20, 0 }
  0x69   : > { %23671 = dma.done.wait (%p25412_p7), %s212_s4, 16384  }
  0x6a   : > { %23673 = vsyncadd (%p25412_p7), %s212_s4, 4294950912  ;;  %s220_s7 = sand.u32 1, %s23768_s18   ;;  %s22285_s6 = sshll.u32 %s211_s28, 13 }
  0x6b   : > { %s221_s19 = scalar_lea.sflag [#allocation6], %s220_s7  ;;  %s23930_s11 = scalar_lea.vmem [#allocation5], %s22285_s6 }
  0x6c   : > { %23675 = dma.done.wait (%p25412_p7), %s221_s19, 131072  }
  0x6d   : > { %23677 = vsyncadd (%p25412_p7), %s221_s19, 4294836224  ;;  %p25413_p10 = scmp.eq.s32.totalorder %s23768_s18, 0 }
  0x6f   : > { %23679 = dma.done.wait (%p25413_p10), [#allocation6], 16   ;;  %p25414_p5 = pmov %p25413_p10 }
  0x70   : > { %p22287_p6 = scmp.ne.s32.totalorder %s23700_s15, 0 }
  0x71   : > { %23681 = vsyncadd (%p25414_p5), [#allocation6], 4294967280  ;;  %vm261_vm0 = vcmask (!%p22287_p6), 74752   ;;  %v23716_v0 = vmov (!%p22287_p6), 0.0  }
  0x72   : > { %260 = sbr.rel (%p22287_p6) target bundleno = 121 (0x79), region = 48  ;;  %262 = vst.msk [vmem:[#allocation8] sm:$0x3] (!%p22287_p6), %vm261_vm0, %v23716_v0 }
  0x79 PF: > { %v393_v1 = vld [vmem:[%s23930_s11 + $0x8] sm:$0xff]  ;;  %v392_v3 = vld [vmem:[%s23930_s11] sm:$0xff]  ;;  %v1548_v4 = vlaneseq  ;;  %v395_v7 = vld [vmem:[%s23930_s11 + $0x18] sm:$0xff]  ;;  %v23717_v9 = vmov 1983009808   ;;  %p22155_p9 = scmp.eq.s32.totalorder %s23700_s15, 2 }
  0x7a   : > { %v905_v2 = vld [vmem:[%s23930_s11 + $0x1008] sm:$0x3]  ;;  %v904_v6 = vld [vmem:[%s23930_s11 + $0x1000] sm:$0x3]  ;;  %v907_v8 = vld [vmem:[%s23930_s11 + $0x1018] sm:$0x3]  ;;  %v1546_v10 = vunpack.c.l.s4 %v23717_v9 }
  0x7b   : > { %v22297_v5 = vpack.c.bf16 %v905_v2, %v393_v1  ;;  %v22299_v11 = vpack.c.bf16 %v904_v6, %v392_v3  ;;  %v22301_v12 = vpack.c.bf16 %v907_v8, %v395_v7  ;;  %v394_v13 = vld [vmem:[%s23930_s11 + $0x10] sm:$0xff]  ;;  %v264_v15 = vld [vmem:[%s23923_s5] sm:$0xff]  ;;  %v1549_v16 = vshrl.u32 %v1548_v4, 7  ;;  %v397_v20 = vld [vmem:[%s23930_s11 + $0x28] sm:$0xff] }
  0x7c   : > { %v906_v14 = vld [vmem:[%s23930_s11 + $0x1010] sm:$0x3]  ;;  %v1547_v18 = vunpack.c.0.s8 %v1546_v10  ;;  %v1544_v19 = vcombine.high %v264_v15, %v264_v15  ;;  %v909_v21 = vld [vmem:[%s23930_s11 + $0x1028] sm:$0x3]  ;;  %v399_v23 = vld [vmem:[%s23930_s11 + $0x38] sm:$0xff]  ;;  %vm22153_vm1 = vcmask 74752  }
  0x7d   : > { %22298 = vmatprep.subr.bf16.mxu0 %v22297_v5  ;;  %v22303_v17 = vpack.c.bf16 %v906_v14, %v394_v13  ;;  %22302 = vmatprep.subr.bf16.mxu1 %v22301_v12  ;;  %v22305_v22 = vpack.c.bf16 %v909_v21, %v397_v20  ;;  %v911_v24 = vld [vmem:[%s23930_s11 + $0x1038] sm:$0x3]  ;;  %v396_v26 = vld [vmem:[%s23930_s11 + $0x20] sm:$0xff]  ;;  %v265_v28 = vld [vmem:[%s23923_s5 + $0x8] sm:$0xff] }
  0x7e   : > { %22300 = vmatpush1.bf16.xpose.msra.mxu0 %v22299_v11  ;;  %v23954_v25 = vsub.s32 %v1547_v18, %v1549_v16  ;;  %v22309_v27 = vpack.c.bf16 %v911_v24, %v399_v23  ;;  %v908_v29 = vld [vmem:[%s23930_s11 + $0x1020] sm:$0x3]  ;;  %v398_v30 = vld [vmem:[%s23930_s11 + $0x30] sm:$0xff]  ;;  %v1561_v32 = vcombine.high %v265_v28, %v265_v28  ;;  %v401_v36 = vld [vmem:[%s23930_s11 + $0x48] sm:$0xff] }
  0x7f   : > { %22304 = vmatpush1.bf16.xpose.msra.mxu1 %v22303_v17  ;;  %22306 = vmatprep.subr.bf16.mxu0 %v22305_v22  ;;  %v910_v31 = vld [vmem:[%s23930_s11 + $0x1030] sm:$0x3]  ;;  %v913_v37 = vld [vmem:[%s23930_s11 + $0x1048] sm:$0x3]  ;;  %v403_v39 = vld [vmem:[%s23930_s11 + $0x58] sm:$0xff]  ;;  %v22307_v44 = vpack.c.bf16 %v908_v29, %v396_v26 }
  0x80   : > { %v1551_v33 = vrot.slane %v264_v15, %v23954_v25  ;;  %v1558_v34 = vrot.slane %v1544_v19, %v23954_v25  ;;  %22310 = vmatprep.subr.bf16.mxu1 %v22309_v27  ;;  %v1568_v35 = vrot.slane %v265_v28, %v23954_v25  ;;  %v1575_v38 = vrot.slane %v1561_v32, %v23954_v25  ;;  %v915_v40 = vld [vmem:[%s23930_s11 + $0x1058] sm:$0x3]  ;;  %v266_v41 = vld [vmem:[%s23923_s5 + $0x10] sm:$0xff]  ;;  %v400_v51 = vld [vmem:[%s23930_s11 + $0x40] sm:$0xff] }
  0x81   : > { %v22311_v45 = vpack.c.bf16 %v910_v31, %v398_v30  ;;  %v22313_v47 = vpack.c.bf16 %v913_v37, %v401_v36  ;;  %v22317_v49 = vpack.c.bf16 %v915_v40, %v403_v39  ;;  %v1578_v50 = vcombine.high %v266_v41, %v266_v41  ;;  %v912_v52 = vld [vmem:[%s23930_s11 + $0x1040] sm:$0x3]  ;;  %v402_v53 = vld [vmem:[%s23930_s11 + $0x50] sm:$0xff]  ;;  %v405_v56 = vld [vmem:[%s23930_s11 + $0x68] sm:$0xff] }
  0x82   : > { %v1559_v42 = vcombine.high %v1551_v33, %v1551_v33  ;;  %v1560_v43 = vcombine.high %v1558_v34, %v1558_v34  ;;  %v1576_v46 = vcombine.high %v1568_v35, %v1568_v35  ;;  %v1577_v48 = vcombine.high %v1575_v38, %v1575_v38  ;;  %v914_v54 = vld [vmem:[%s23930_s11 + $0x1050] sm:$0x3]  ;;  %v917_v57 = vld [vmem:[%s23930_s11 + $0x1068] sm:$0x3]  ;;  %v407_v59 = vld [vmem:[%s23930_s11 + $0x78] sm:$0xff] }
  0x83   : > { %v1585_v55 = vrot.slane %v266_v41, %v23954_v25  ;;  %v1592_v58 = vrot.slane %v1578_v50, %v23954_v25  ;;  %v919_v60 = vld [vmem:[%s23930_s11 + $0x1078] sm:$0x3]  ;;  %v22315_v62 = vpack.c.bf16 %v912_v52, %v400_v51  ;;  %v22319_v63 = vpack.c.bf16 %v914_v54, %v402_v53  ;;  %v404_v5 = vld [vmem:[%s23930_s11 + $0x60] sm:$0xff]  ;;  %v406_v7 = vld [vmem:[%s23930_s11 + $0x70] sm:$0xff] }
  0x84   : > { %4296 = vmatprep.mubr.f32.mxu0 %v1559_v42  ;;  %4366 = vmatprep.mubr.f32.mxu1 %v1560_v43  ;;  %v267_v61 = vld [vmem:[%s23923_s5 + $0x18] sm:$0xff]  ;;  %v22321_v1 = vpack.c.bf16 %v917_v57, %v405_v56  ;;  %v22325_v3 = vpack.c.bf16 %v919_v60, %v407_v59  ;;  %v916_v6 = vld [vmem:[%s23930_s11 + $0x1060] sm:$0x3]  ;;  %v918_v8 = vld [vmem:[%s23930_s11 + $0x1070] sm:$0x3] }
  0x85   : > { %4297 = vmatmul.mubr.f32.vlgmr.msra.gmra.mrb[0].mxu0 %v1551_v33  ;;  %v1593_v0 = vcombine.high %v1585_v55, %v1585_v55  ;;  %v1594_v2 = vcombine.high %v1592_v58, %v1592_v58  ;;  %v1595_v4 = vcombine.high %v267_v61, %v267_v61  ;;  %v1602_v9 = vrot.slane %v267_v61, %v23954_v25  ;;  %v409_v10 = vld [vmem:[%s23930_s11 + $0x88] sm:$0xff]  ;;  %v411_v13 = vld [vmem:[%s23930_s11 + $0x98] sm:$0xff]  ;;  %v268_v15 = vld [vmem:[%s23923_s5 + $0x20] sm:$0xff] }
  0x86   : > { %4367 = vmatmul.mubr.f32.vlgmr.msra.gmra.mrb[0].mxu1 %v1558_v34  ;;  %22308 = vmatpush1.bf16.xpose.msra.mxu0 %v22307_v44  ;;  %v921_v11 = vld [vmem:[%s23930_s11 + $0x1088] sm:$0x3]  ;;  %v923_v14 = vld [vmem:[%s23930_s11 + $0x1098] sm:$0x3]  ;;  %v22323_v16 = vpack.c.bf16 %v916_v6, %v404_v5  ;;  %v22327_v17 = vpack.c.bf16 %v918_v8, %v406_v7  ;;  %v1612_v22 = vcombine.high %v268_v15, %v268_v15  ;;  %v408_v23 = vld [vmem:[%s23930_s11 + $0x80] sm:$0xff] }
  0x87   : > { %22312 = vmatpush1.bf16.xpose.msra.mxu1 %v22311_v45  ;;  %4436 = vmatprep.mubr.f32.mxu0 %v1576_v46  ;;  %v1609_v12 = vrot.slane %v1595_v4, %v23954_v25  ;;  %v1610_v18 = vcombine.high %v1602_v9, %v1602_v9  ;;  %v22329_v19 = vpack.c.bf16 %v921_v11, %v409_v10  ;;  %v920_v24 = vld [vmem:[%s23930_s11 + $0x1080] sm:$0x3]  ;;  %v410_v26 = vld [vmem:[%s23930_s11 + $0x90] sm:$0xff]  ;;  %v413_v29 = vld [vmem:[%s23930_s11 + $0xa8] sm:$0xff] }
  0x88   : > { %22314 = vmatprep.subr.bf16.mxu0 %v22313_v47  ;;  %4506 = vmatprep.mubr.f32.mxu1 %v1577_v48  ;;  %v22333_v21 = vpack.c.bf16 %v923_v14, %v411_v13  ;;  %v922_v27 = vld [vmem:[%s23930_s11 + $0x1090] sm:$0x3]  ;;  %v1619_v28 = vrot.slane %v268_v15, %v23954_v25  ;;  %v925_v30 = vld [vmem:[%s23930_s11 + $0x10a8] sm:$0x3]  ;;  %v1626_v31 = vrot.slane %v1612_v22, %v23954_v25  ;;  %v415_v32 = vld [vmem:[%s23930_s11 + $0xb8] sm:$0xff] }
  0x89   : > { %22318 = vmatprep.subr.bf16.mxu1 %v22317_v49  ;;  %v1611_v20 = vcombine.high %v1609_v12, %v1609_v12  ;;  %v927_v33 = vld [vmem:[%s23930_s11 + $0x10b8] sm:$0x3]  ;;  %v269_v34 = vld [vmem:[%s23923_s5 + $0x28] sm:$0xff]  ;;  %v22335_v36 = vpack.c.bf16 %v922_v27, %v410_v26  ;;  %v412_v42 = vld [vmem:[%s23930_s11 + $0xa0] sm:$0xff] }
  0x8a   : > { %v1627_v37 = vcombine.high %v1619_v28, %v1619_v28  ;;  %v1628_v39 = vcombine.high %v1626_v31, %v1626_v31  ;;  %v22341_v40 = vpack.c.bf16 %v927_v33, %v415_v32  ;;  %v1629_v41 = vcombine.high %v269_v34, %v269_v34  ;;  %v924_v43 = vld [vmem:[%s23930_s11 + $0x10a0] sm:$0x3]  ;;  %v414_v44 = vld [vmem:[%s23930_s11 + $0xb0] sm:$0xff]  ;;  %v417_v47 = vld [vmem:[%s23930_s11 + $0xc8] sm:$0xff] }
  0x8b   : > { %v926_v45 = vld [vmem:[%s23930_s11 + $0x10b0] sm:$0x3]  ;;  %v1636_v46 = vrot.slane %v269_v34, %v23954_v25  ;;  %v929_v48 = vld [vmem:[%s23930_s11 + $0x10c8] sm:$0x3]  ;;  %v419_v50 = vld [vmem:[%s23930_s11 + $0xd8] sm:$0xff]  ;;  %v22339_v53 = vpack.c.bf16 %v924_v43, %v412_v42 }
  0x8c   : > { %v1643_v49 = vrot.slane %v1629_v41, %v23954_v25  ;;  %v931_v51 = vld [vmem:[%s23930_s11 + $0x10d8] sm:$0x3]  ;;  %v270_v52 = vld [vmem:[%s23923_s5 + $0x30] sm:$0xff]  ;;  %v22343_v54 = vpack.c.bf16 %v926_v45, %v414_v44  ;;  %v22345_v56 = vpack.c.bf16 %v929_v48, %v417_v47  ;;  %v416_v60 = vld [vmem:[%s23930_s11 + $0xc0] sm:$0xff] }
  0x8d   : > { %4437 = vmatmul.mubr.f32.vlgmr.msra.gmra.mrb[2].mxu0 %v1568_v35  ;;  %v22331_v35 = vpack.c.bf16 %v920_v24, %v408_v23  ;;  %v1646_v59 = vcombine.high %v270_v52, %v270_v52  ;;  %v928_v61 = vld [vmem:[%s23930_s11 + $0x10c0] sm:$0x3]  ;;  %v423_v4 = vld [vmem:[%s23930_s11 + $0xf8] sm:$0xff]  ;;  %v273_v43 = vld [vmem:[%s23923_s5 + $0x48] sm:$0xff] }
  0x8e   : > { %4507 = vmatmul.mubr.f32.vlgmr.msra.gmra.mrb[2].mxu1 %v1575_v38  ;;  %22316 = vmatpush1.bf16.xpose.msra.mxu0 %v22315_v62  ;;  %v22337_v38 = vpack.c.bf16 %v925_v30, %v413_v29  ;;  %v1645_v57 = vcombine.high %v1643_v49, %v1643_v49  ;;  %v418_v62 = vld [vmem:[%s23930_s11 + $0xd0] sm:$0xff]  ;;  %v935_v5 = vld [vmem:[%s23930_s11 + $0x10f8] sm:$0x3]  ;;  %v22347_v7 = vpack.c.bf16 %v928_v61, %v416_v60  ;;  %v420_v14 = vld [vmem:[%s23930_s11 + $0xe0] sm:$0xff] }
  0x8f   : > { %22320 = vmatpush1.bf16.xpose.msra.mxu1 %v22319_v63  ;;  %4576 = vmatprep.mubr.f32.mxu0 %v1593_v0  ;;  %v930_v63 = vld [vmem:[%s23930_s11 + $0x10d0] sm:$0x3]  ;;  %v1653_v0 = vrot.slane %v270_v52, %v23954_v25  ;;  %v271_v6 = vld [vmem:[%s23923_s5 + $0x38] sm:$0xff]  ;;  %v932_v15 = vld [vmem:[%s23930_s11 + $0x10e0] sm:$0x3] }
  0x90   : > { %22322 = vmatprep.subr.bf16.mxu0 %v22321_v1  ;;  %4646 = vmatprep.mubr.f32.mxu1 %v1594_v2  ;;  %v421_v1 = vld [vmem:[%s23930_s11 + $0xe8] sm:$0xff]  ;;  %v22351_v8 = vpack.c.bf16 %v930_v63, %v418_v62  ;;  %v1663_v13 = vcombine.high %v271_v6, %v271_v6  ;;  %v427_v22 = vld [vmem:[%s23930_s11 + $0x118] sm:$0xff]  ;;  %v272_v24 = vld [vmem:[%s23923_s5 + $0x40] sm:$0xff]  ;;  %v22355_v26 = vpack.c.bf16 %v932_v15, %v420_v14 }
  0x91   : > { %22326 = vmatprep.subr.bf16.mxu1 %v22325_v3  ;;  %v933_v2 = vld [vmem:[%s23930_s11 + $0x10e8] sm:$0x3]  ;;  %v1660_v3 = vrot.slane %v1646_v59, %v23954_v25  ;;  %v939_v23 = vld [vmem:[%s23930_s11 + $0x1118] sm:$0x3]  ;;  %v1680_v32 = vcombine.high %v272_v24, %v272_v24  ;;  %v424_v33 = vld [vmem:[%s23930_s11 + $0x100] sm:$0xff] }
  0x92   : > { %v22353_v10 = vpack.c.bf16 %v933_v2, %v421_v1  ;;  %v936_v34 = vld [vmem:[%s23930_s11 + $0x1100] sm:$0x3]  ;;  %v431_v41 = vld [vmem:[%s23930_s11 + $0x138] sm:$0xff]  ;;  %v274_v61 = vld [vmem:[%s23923_s5 + $0x50] sm:$0xff] }
  0x93   : > { %v1662_v11 = vcombine.high %v1660_v3, %v1660_v3  ;;  %v943_v42 = vld [vmem:[%s23930_s11 + $0x1138] sm:$0x3]  ;;  %v22363_v44 = vpack.c.bf16 %v936_v34, %v424_v33  ;;  %v940_v52 = vld [vmem:[%s23930_s11 + $0x1120] sm:$0x3] }
  0x94   : > { %v435_v59 = vld [vmem:[%s23930_s11 + $0x158] sm:$0xff]  ;;  %v276_v34 = vld [vmem:[%s23923_s5 + $0x60] sm:$0xff] }
  0x95   : > { %4577 = vmatmul.mubr.f32.vlgmr.msra.gmra.mrb[4].mxu0 %v1585_v55  ;;  %v1644_v55 = vcombine.high %v1636_v46, %v1636_v46  ;;  %v947_v60 = vld [vmem:[%s23930_s11 + $0x1158] sm:$0x3] }
  0x96   : > { %4647 = vmatmul.mubr.f32.vlgmr.msra.gmra.mrb[4].mxu1 %v1592_v58  ;;  %22324 = vmatpush1.bf16.xpose.msra.mxu0 %v22323_v16  ;;  %v22349_v58 = vpack.c.bf16 %v931_v51, %v419_v50  ;;  %v422_v16 = vld [vmem:[%s23930_s11 + $0xf0] sm:$0xff]  ;;  %v1697_v50 = vcombine.high %v273_v43, %v273_v43  ;;  %v428_v51 = vld [vmem:[%s23930_s11 + $0x120] sm:$0xff]  ;;  %v951_v14 = vld [vmem:[%s23930_s11 + $0x1178] sm:$0x3] }
  0x97   : > { %22328 = vmatpush1.bf16.xpose.msra.mxu1 %v22327_v17  ;;  %4716 = vmatprep.mubr.f32.mxu0 %v1610_v18  ;;  %v934_v17 = vld [vmem:[%s23930_s11 + $0x10f0] sm:$0x3]  ;;  %v1670_v18 = vrot.slane %v271_v6, %v23954_v25  ;;  %v22371_v62 = vpack.c.bf16 %v940_v52, %v428_v51  ;;  %v944_v6 = vld [vmem:[%s23930_s11 + $0x1140] sm:$0x3]  ;;  %v275_v15 = vld [vmem:[%s23923_s5 + $0x58] sm:$0xff] }
  0x98   : > { %22330 = vmatprep.subr.bf16.mxu0 %v22329_v19  ;;  %4786 = vmatprep.mubr.f32.mxu1 %v1611_v20  ;;  %v425_v19 = vld [vmem:[%s23930_s11 + $0x108] sm:$0xff]  ;;  %v22359_v27 = vpack.c.bf16 %v934_v17, %v422_v16  ;;  %v955_v33 = vld [vmem:[%s23930_s11 + $0x1198] sm:$0x3] }
  0x99   : > { %22334 = vmatprep.subr.bf16.mxu1 %v22333_v21  ;;  %v937_v20 = vld [vmem:[%s23930_s11 + $0x1108] sm:$0x3]  ;;  %v1677_v21 = vrot.slane %v1663_v13, %v23954_v25  ;;  %v439_v13 = vld [vmem:[%s23930_s11 + $0x178] sm:$0xff] }
  0x9a   : > { %v22361_v29 = vpack.c.bf16 %v937_v20, %v425_v19  ;;  %v959_v51 = vld [vmem:[%s23930_s11 + $0x11b8] sm:$0x3]  ;;  %v277_v52 = vld [vmem:[%s23923_s5 + $0x68] sm:$0xff] }
  0x9b   : > { %v1679_v30 = vcombine.high %v1677_v21, %v1677_v21 }
  0x9d   : > { %4717 = vmatmul.mubr.f32.vlgmr.msra.gmra.mrb[6].mxu0 %v1602_v9  ;;  %v1661_v9 = vcombine.high %v1653_v0, %v1653_v0 }
  0x9e   : > { %4787 = vmatmul.mubr.f32.vlgmr.msra.gmra.mrb[6].mxu1 %v1609_v12  ;;  %22332 = vmatpush1.bf16.xpose.msra.mxu0 %v22331_v35  ;;  %v22357_v12 = vpack.c.bf16 %v935_v5, %v423_v4  ;;  %v426_v35 = vld [vmem:[%s23930_s11 + $0x110] sm:$0xff]  ;;  %v1714_v4 = vcombine.high %v274_v61, %v274_v61  ;;  %v432_v5 = vld [vmem:[%s23930_s11 + $0x140] sm:$0xff] }
  0x9f   : > { %22336 = vmatpush1.bf16.xpose.msra.mxu1 %v22335_v36  ;;  %4856 = vmatprep.mubr.f32.mxu0 %v1627_v37  ;;  %v938_v36 = vld [vmem:[%s23930_s11 + $0x1110] sm:$0x3]  ;;  %v1687_v37 = vrot.slane %v272_v24, %v23954_v25  ;;  %v22379_v16 = vpack.c.bf16 %v944_v6, %v432_v5  ;;  %v948_v24 = vld [vmem:[%s23930_s11 + $0x1160] sm:$0x3]  ;;  %v963_v5 = vld [vmem:[%s23930_s11 + $0x11d8] sm:$0x3] }
  0xa0   : > { %22338 = vmatprep.subr.bf16.mxu0 %v22337_v38  ;;  %4926 = vmatprep.mubr.f32.mxu1 %v1628_v39  ;;  %v429_v38 = vld [vmem:[%s23930_s11 + $0x128] sm:$0xff]  ;;  %v22367_v45 = vpack.c.bf16 %v938_v36, %v426_v35  ;;  %v278_v6 = vld [vmem:[%s23923_s5 + $0x70] sm:$0xff] }
  0xa1   : > { %22342 = vmatprep.subr.bf16.mxu1 %v22341_v40  ;;  %v941_v39 = vld [vmem:[%s23930_s11 + $0x1128] sm:$0x3]  ;;  %v1694_v40 = vrot.slane %v1680_v32, %v23954_v25  ;;  %v443_v32 = vld [vmem:[%s23930_s11 + $0x198] sm:$0xff] }
  0xa2   : > { %v22369_v47 = vpack.c.bf16 %v941_v39, %v429_v38 }
  0xa3   : > { %v1696_v48 = vcombine.high %v1694_v40, %v1694_v40 }
  0xa5   : > { %4857 = vmatmul.mubr.f32.vlgmr.msra.gmra.mrb[8].mxu0 %v1619_v28  ;;  %v1678_v28 = vcombine.high %v1670_v18, %v1670_v18 }
  0xa6   : > { %4927 = vmatmul.mubr.f32.vlgmr.msra.gmra.mrb[8].mxu1 %v1626_v31  ;;  %22340 = vmatpush1.bf16.xpose.msra.mxu0 %v22339_v53  ;;  %v22365_v31 = vpack.c.bf16 %v939_v23, %v427_v22  ;;  %v430_v53 = vld [vmem:[%s23930_s11 + $0x130] sm:$0xff]  ;;  %v1731_v22 = vcombine.high %v275_v15, %v275_v15  ;;  %v436_v23 = vld [vmem:[%s23930_s11 + $0x160] sm:$0xff] }
  0xa7   : > { %22344 = vmatpush1.bf16.xpose.msra.mxu1 %v22343_v54  ;;  %4996 = vmatprep.mubr.f32.mxu0 %v1644_v55  ;;  %v942_v54 = vld [vmem:[%s23930_s11 + $0x1130] sm:$0x3]  ;;  %v1704_v55 = vrot.slane %v273_v43, %v23954_v25  ;;  %v22387_v35 = vpack.c.bf16 %v948_v24, %v436_v23  ;;  %v952_v43 = vld [vmem:[%s23930_s11 + $0x1180] sm:$0x3]  ;;  %v967_v23 = vld [vmem:[%s23930_s11 + $0x11f8] sm:$0x3] }
  0xa8   : > { %22346 = vmatprep.subr.bf16.mxu0 %v22345_v56  ;;  %5066 = vmatprep.mubr.f32.mxu1 %v1645_v57  ;;  %v433_v56 = vld [vmem:[%s23930_s11 + $0x148] sm:$0xff]  ;;  %v22375_v63 = vpack.c.bf16 %v942_v54, %v430_v53  ;;  %v279_v24 = vld [vmem:[%s23923_s5 + $0x78] sm:$0xff] }
  0xa9   : > { %22350 = vmatprep.subr.bf16.mxu1 %v22349_v58  ;;  %v945_v57 = vld [vmem:[%s23930_s11 + $0x1148] sm:$0x3]  ;;  %v1711_v58 = vrot.slane %v1697_v50, %v23954_v25  ;;  %v447_v50 = vld [vmem:[%s23930_s11 + $0x1b8] sm:$0xff] }
  0xaa   : > { %v22377_v1 = vpack.c.bf16 %v945_v57, %v433_v56 }
  0xab   : > { %v1713_v2 = vcombine.high %v1711_v58, %v1711_v58 }
  0xad   : > { %4997 = vmatmul.mubr.f32.vlgmr.msra.gmra.mrb[10].mxu0 %v1636_v46  ;;  %v1695_v46 = vcombine.high %v1687_v37, %v1687_v37 }
  0xae   : > { %5067 = vmatmul.mubr.f32.vlgmr.msra.gmra.mrb[10].mxu1 %v1643_v49  ;;  %22348 = vmatpush1.bf16.xpose.msra.mxu0 %v22347_v7  ;;  %v22373_v49 = vpack.c.bf16 %v943_v42, %v431_v41  ;;  %v434_v7 = vld [vmem:[%s23930_s11 + $0x150] sm:$0xff]  ;;  %v1748_v41 = vcombine.high %v276_v34, %v276_v34  ;;  %v440_v42 = vld [vmem:[%s23930_s11 + $0x180] sm:$0xff] }
  0xaf   : > { %22352 = vmatpush1.bf16.xpose.msra.mxu1 %v22351_v8  ;;  %5136 = vmatprep.mubr.f32.mxu0 %v1661_v9  ;;  %v946_v8 = vld [vmem:[%s23930_s11 + $0x1150] sm:$0x3]  ;;  %v1721_v9 = vrot.slane %v274_v61, %v23954_v25  ;;  %v22395_v53 = vpack.c.bf16 %v952_v43, %v440_v42  ;;  %v956_v61 = vld [vmem:[%s23930_s11 + $0x11a0] sm:$0x3]  ;;  %v971_v42 = vld [vmem:[%s23930_s11 + $0x1218] sm:$0x3] }
  0xb0   : > { %22354 = vmatprep.subr.bf16.mxu0 %v22353_v10  ;;  %5206 = vmatprep.mubr.f32.mxu1 %v1662_v11  ;;  %v437_v10 = vld [vmem:[%s23930_s11 + $0x168] sm:$0xff]  ;;  %v22383_v17 = vpack.c.bf16 %v946_v8, %v434_v7  ;;  %v280_v43 = vld [vmem:[%s23923_s5 + $0x80] sm:$0xff] }
  0xb1   : > { %22358 = vmatprep.subr.bf16.mxu1 %v22357_v12  ;;  %v949_v11 = vld [vmem:[%s23930_s11 + $0x1168] sm:$0x3]  ;;  %v1728_v12 = vrot.slane %v1714_v4, %v23954_v25  ;;  %v451_v4 = vld [vmem:[%s23930_s11 + $0x1d8] sm:$0xff] }
  0xb2   : > { %v22385_v19 = vpack.c.bf16 %v949_v11, %v437_v10 }
  0xb3   : > { %v1730_v20 = vcombine.high %v1728_v12, %v1728_v12 }
  0xb5   : > { %5137 = vmatmul.mubr.f32.vlgmr.msra.gmra.mrb[12].mxu0 %v1653_v0  ;;  %v1712_v0 = vcombine.high %v1704_v55, %v1704_v55 }
  0xb6   : > { %5207 = vmatmul.mubr.f32.vlgmr.msra.gmra.mrb[12].mxu1 %v1660_v3  ;;  %22356 = vmatpush1.bf16.xpose.msra.mxu0 %v22355_v26  ;;  %v22381_v3 = vpack.c.bf16 %v947_v60, %v435_v59  ;;  %v438_v26 = vld [vmem:[%s23930_s11 + $0x170] sm:$0xff]  ;;  %v1765_v59 = vcombine.high %v277_v52, %v277_v52  ;;  %v444_v60 = vld [vmem:[%s23930_s11 + $0x1a0] sm:$0xff] }
  0xb7   : > { %22360 = vmatpush1.bf16.xpose.msra.mxu1 %v22359_v27  ;;  %5276 = vmatprep.mubr.f32.mxu0 %v1678_v28  ;;  %v950_v27 = vld [vmem:[%s23930_s11 + $0x1170] sm:$0x3]  ;;  %v1738_v28 = vrot.slane %v275_v15, %v23954_v25  ;;  %v22403_v7 = vpack.c.bf16 %v956_v61, %v444_v60  ;;  %v960_v15 = vld [vmem:[%s23930_s11 + $0x11c0] sm:$0x3]  ;;  %v975_v60 = vld [vmem:[%s23930_s11 + $0x1238] sm:$0x3] }
  0xb8   : > { %22362 = vmatprep.subr.bf16.mxu0 %v22361_v29  ;;  %5346 = vmatprep.mubr.f32.mxu1 %v1679_v30  ;;  %v441_v29 = vld [vmem:[%s23930_s11 + $0x188] sm:$0xff]  ;;  %v22391_v36 = vpack.c.bf16 %v950_v27, %v438_v26 }
  0xb9   : > { %22366 = vmatprep.subr.bf16.mxu1 %v22365_v31  ;;  %v953_v30 = vld [vmem:[%s23930_s11 + $0x1188] sm:$0x3]  ;;  %v1745_v31 = vrot.slane %v1731_v22, %v23954_v25  ;;  %v455_v22 = vld [vmem:[%s23930_s11 + $0x1f8] sm:$0xff] }
  0xba   : > { %v22393_v38 = vpack.c.bf16 %v953_v30, %v441_v29  ;;  %v281_v61 = vld [vmem:[%s23923_s5 + $0x88] sm:$0xff] }
  0xbb   : > { %v1747_v39 = vcombine.high %v1745_v31, %v1745_v31 }
  0xbd   : > { %5277 = vmatmul.mubr.f32.vlgmr.msra.gmra.mrb[14].mxu0 %v1670_v18  ;;  %v1729_v18 = vcombine.high %v1721_v9, %v1721_v9 }
  0xbe   : > { %5347 = vmatmul.mubr.f32.vlgmr.msra.gmra.mrb[14].mxu1 %v1677_v21  ;;  %22364 = vmatpush1.bf16.xpose.msra.mxu0 %v22363_v44  ;;  %v22389_v21 = vpack.c.bf16 %v951_v14, %v439_v13  ;;  %v442_v44 = vld [vmem:[%s23930_s11 + $0x190] sm:$0xff]  ;;  %v1782_v13 = vcombine.high %v278_v6, %v278_v6  ;;  %v448_v14 = vld [vmem:[%s23930_s11 + $0x1c0] sm:$0xff] }
  0xbf   : > { %22368 = vmatpush1.bf16.xpose.msra.mxu1 %v22367_v45  ;;  %5416 = vmatprep.mubr.f32.mxu0 %v1695_v46  ;;  %v954_v45 = vld [vmem:[%s23930_s11 + $0x1190] sm:$0x3]  ;;  %v1755_v46 = vrot.slane %v276_v34, %v23954_v25  ;;  %v22411_v26 = vpack.c.bf16 %v960_v15, %v448_v14  ;;  %v964_v34 = vld [vmem:[%s23930_s11 + $0x11e0] sm:$0x3]  ;;  %v979_v14 = vld [vmem:[%s23930_s11 + $0x1258] sm:$0x3] }
  0xc0   : > { %22370 = vmatprep.subr.bf16.mxu0 %v22369_v47  ;;  %5486 = vmatprep.mubr.f32.mxu1 %v1696_v48  ;;  %v445_v47 = vld [vmem:[%s23930_s11 + $0x1a8] sm:$0xff]  ;;  %v22399_v54 = vpack.c.bf16 %v954_v45, %v442_v44  ;;  %v282_v15 = vld [vmem:[%s23923_s5 + $0x90] sm:$0xff] }
  0xc1   : > { %22374 = vmatprep.subr.bf16.mxu1 %v22373_v49  ;;  %v957_v48 = vld [vmem:[%s23930_s11 + $0x11a8] sm:$0x3]  ;;  %v1762_v49 = vrot.slane %v1748_v41, %v23954_v25  ;;  %v459_v41 = vld [vmem:[%s23930_s11 + $0x218] sm:$0xff] }
  0xc2   : > { %v22401_v56 = vpack.c.bf16 %v957_v48, %v445_v47 }
  0xc3   : > { %v1764_v57 = vcombine.high %v1762_v49, %v1762_v49 }
  0xc5   : > { %5417 = vmatmul.mubr.f32.vlgmr.msra.gmra.mrb[16].mxu0 %v1687_v37  ;;  %v1746_v37 = vcombine.high %v1738_v28, %v1738_v28 }
  0xc6   : > { %5487 = vmatmul.mubr.f32.vlgmr.msra.gmra.mrb[16].mxu1 %v1694_v40  ;;  %22372 = vmatpush1.bf16.xpose.msra.mxu0 %v22371_v62  ;;  %v22397_v40 = vpack.c.bf16 %v955_v33, %v443_v32  ;;  %v446_v62 = vld [vmem:[%s23930_s11 + $0x1b0] sm:$0xff]  ;;  %v1799_v32 = vcombine.high %v279_v24, %v279_v24  ;;  %v452_v33 = vld [vmem:[%s23930_s11 + $0x1e0] sm:$0xff] }
  0xc7   : > { %22376 = vmatpush1.bf16.xpose.msra.mxu1 %v22375_v63  ;;  %5556 = vmatprep.mubr.f32.mxu0 %v1712_v0  ;;  %v958_v63 = vld [vmem:[%s23930_s11 + $0x11b0] sm:$0x3]  ;;  %v1772_v0 = vrot.slane %v277_v52, %v23954_v25  ;;  %v22419_v44 = vpack.c.bf16 %v964_v34, %v452_v33  ;;  %v968_v52 = vld [vmem:[%s23930_s11 + $0x1200] sm:$0x3]  ;;  %v983_v33 = vld [vmem:[%s23930_s11 + $0x1278] sm:$0x3] }
  0xc8   : > { %22378 = vmatprep.subr.bf16.mxu0 %v22377_v1  ;;  %5626 = vmatprep.mubr.f32.mxu1 %v1713_v2  ;;  %v449_v1 = vld [vmem:[%s23930_s11 + $0x1c8] sm:$0xff]  ;;  %v22407_v8 = vpack.c.bf16 %v958_v63, %v446_v62  ;;  %v283_v34 = vld [vmem:[%s23923_s5 + $0x98] sm:$0xff] }
  0xc9   : > { %22382 = vmatprep.subr.bf16.mxu1 %v22381_v3  ;;  %v961_v2 = vld [vmem:[%s23930_s11 + $0x11c8] sm:$0x3]  ;;  %v1779_v3 = vrot.slane %v1765_v59, %v23954_v25  ;;  %v463_v59 = vld [vmem:[%s23930_s11 + $0x238] sm:$0xff] }
  0xca   : > { %v22409_v10 = vpack.c.bf16 %v961_v2, %v449_v1 }
  0xcb   : > { %v1781_v11 = vcombine.high %v1779_v3, %v1779_v3 }
  0xcd   : > { %5557 = vmatmul.mubr.f32.vlgmr.msra.gmra.mrb[18].mxu0 %v1704_v55  ;;  %v1763_v55 = vcombine.high %v1755_v46, %v1755_v46 }
  0xce   : > { %5627 = vmatmul.mubr.f32.vlgmr.msra.gmra.mrb[18].mxu1 %v1711_v58  ;;  %22380 = vmatpush1.bf16.xpose.msra.mxu0 %v22379_v16  ;;  %v22405_v58 = vpack.c.bf16 %v959_v51, %v447_v50  ;;  %v450_v16 = vld [vmem:[%s23930_s11 + $0x1d0] sm:$0xff]  ;;  %v1816_v50 = vcombine.high %v280_v43, %v280_v43  ;;  %v456_v51 = vld [vmem:[%s23930_s11 + $0x200] sm:$0xff] }
  0xcf   : > { %22384 = vmatpush1.bf16.xpose.msra.mxu1 %v22383_v17  ;;  %5696 = vmatprep.mubr.f32.mxu0 %v1729_v18  ;;  %v962_v17 = vld [vmem:[%s23930_s11 + $0x11d0] sm:$0x3]  ;;  %v1789_v18 = vrot.slane %v278_v6, %v23954_v25  ;;  %v22427_v62 = vpack.c.bf16 %v968_v52, %v456_v51  ;;  %v972_v6 = vld [vmem:[%s23930_s11 + $0x1220] sm:$0x3]  ;;  %v987_v51 = vld [vmem:[%s23930_s11 + $0x1298] sm:$0x3] }
  0xd0   : > { %22386 = vmatprep.subr.bf16.mxu0 %v22385_v19  ;;  %5766 = vmatprep.mubr.f32.mxu1 %v1730_v20  ;;  %v453_v19 = vld [vmem:[%s23930_s11 + $0x1e8] sm:$0xff]  ;;  %v22415_v27 = vpack.c.bf16 %v962_v17, %v450_v16  ;;  %v284_v52 = vld [vmem:[%s23923_s5 + $0xa0] sm:$0xff] }
  0xd1   : > { %22390 = vmatprep.subr.bf16.mxu1 %v22389_v21  ;;  %v965_v20 = vld [vmem:[%s23930_s11 + $0x11e8] sm:$0x3]  ;;  %v1796_v21 = vrot.slane %v1782_v13, %v23954_v25  ;;  %v467_v13 = vld [vmem:[%s23930_s11 + $0x258] sm:$0xff] }
  0xd2   : > { %v22417_v29 = vpack.c.bf16 %v965_v20, %v453_v19 }
  0xd3   : > { %v1798_v30 = vcombine.high %v1796_v21, %v1796_v21 }
  0xd5   : > { %5697 = vmatmul.mubr.f32.vlgmr.msra.gmra.mrb[20].mxu0 %v1721_v9  ;;  %v1780_v9 = vcombine.high %v1772_v0, %v1772_v0 }
  0xd6   : > { %5767 = vmatmul.mubr.f32.vlgmr.msra.gmra.mrb[20].mxu1 %v1728_v12  ;;  %22388 = vmatpush1.bf16.xpose.msra.mxu0 %v22387_v35  ;;  %v22413_v12 = vpack.c.bf16 %v963_v5, %v451_v4  ;;  %v454_v35 = vld [vmem:[%s23930_s11 + $0x1f0] sm:$0xff]  ;;  %v1833_v4 = vcombine.high %v281_v61, %v281_v61  ;;  %v460_v5 = vld [vmem:[%s23930_s11 + $0x220] sm:$0xff] }
  0xd7   : > { %22392 = vmatpush1.bf16.xpose.msra.mxu1 %v22391_v36  ;;  %5836 = vmatprep.mubr.f32.mxu0 %v1746_v37  ;;  %v966_v36 = vld [vmem:[%s23930_s11 + $0x11f0] sm:$0x3]  ;;  %v1806_v37 = vrot.slane %v279_v24, %v23954_v25  ;;  %v22435_v16 = vpack.c.bf16 %v972_v6, %v460_v5  ;;  %v976_v24 = vld [vmem:[%s23930_s11 + $0x1240] sm:$0x3]  ;;  %v991_v5 = vld [vmem:[%s23930_s11 + $0x12b8] sm:$0x3] }
  0xd8   : > { %22394 = vmatprep.subr.bf16.mxu0 %v22393_v38  ;;  %5906 = vmatprep.mubr.f32.mxu1 %v1747_v39  ;;  %v457_v38 = vld [vmem:[%s23930_s11 + $0x208] sm:$0xff]  ;;  %v22423_v45 = vpack.c.bf16 %v966_v36, %v454_v35 }
  0xd9   : > { %22398 = vmatprep.subr.bf16.mxu1 %v22397_v40  ;;  %v969_v39 = vld [vmem:[%s23930_s11 + $0x1208] sm:$0x3]  ;;  %v1813_v40 = vrot.slane %v1799_v32, %v23954_v25  ;;  %v471_v32 = vld [vmem:[%s23930_s11 + $0x278] sm:$0xff] }
  0xda   : > { %v22425_v47 = vpack.c.bf16 %v969_v39, %v457_v38  ;;  %v285_v6 = vld [vmem:[%s23923_s5 + $0xa8] sm:$0xff] }
  0xdb   : > { %v1815_v48 = vcombine.high %v1813_v40, %v1813_v40 }
  0xdd   : > { %5837 = vmatmul.mubr.f32.vlgmr.msra.gmra.mrb[22].mxu0 %v1738_v28  ;;  %v1797_v28 = vcombine.high %v1789_v18, %v1789_v18 }
  0xde   : > { %5907 = vmatmul.mubr.f32.vlgmr.msra.gmra.mrb[22].mxu1 %v1745_v31  ;;  %22396 = vmatpush1.bf16.xpose.msra.mxu0 %v22395_v53  ;;  %v22421_v31 = vpack.c.bf16 %v967_v23, %v455_v22  ;;  %v458_v53 = vld [vmem:[%s23930_s11 + $0x210] sm:$0xff]  ;;  %v1850_v22 = vcombine.high %v282_v15, %v282_v15  ;;  %v464_v23 = vld [vmem:[%s23930_s11 + $0x240] sm:$0xff] }
  0xdf   : > { %22400 = vmatpush1.bf16.xpose.msra.mxu1 %v22399_v54  ;;  %5976 = vmatprep.mubr.f32.mxu0 %v1763_v55  ;;  %v970_v54 = vld [vmem:[%s23930_s11 + $0x1210] sm:$0x3]  ;;  %v1823_v55 = vrot.slane %v280_v43, %v23954_v25  ;;  %v22443_v35 = vpack.c.bf16 %v976_v24, %v464_v23  ;;  %v980_v43 = vld [vmem:[%s23930_s11 + $0x1260] sm:$0x3]  ;;  %v995_v23 = vld [vmem:[%s23930_s11 + $0x12d8] sm:$0x3] }
  0xe0   : > { %22402 = vmatprep.subr.bf16.mxu0 %v22401_v56  ;;  %6046 = vmatprep.mubr.f32.mxu1 %v1764_v57  ;;  %v461_v56 = vld [vmem:[%s23930_s11 + $0x228] sm:$0xff]  ;;  %v22431_v63 = vpack.c.bf16 %v970_v54, %v458_v53  ;;  %v286_v24 = vld [vmem:[%s23923_s5 + $0xb0] sm:$0xff] }
  0xe1   : > { %22406 = vmatprep.subr.bf16.mxu1 %v22405_v58  ;;  %v973_v57 = vld [vmem:[%s23930_s11 + $0x1228] sm:$0x3]  ;;  %v1830_v58 = vrot.slane %v1816_v50, %v23954_v25  ;;  %v475_v50 = vld [vmem:[%s23930_s11 + $0x298] sm:$0xff] }
  0xe2   : > { %v22433_v1 = vpack.c.bf16 %v973_v57, %v461_v56 }
  0xe3   : > { %v1832_v2 = vcombine.high %v1830_v58, %v1830_v58 }
  0xe5   : > { %5977 = vmatmul.mubr.f32.vlgmr.msra.gmra.mrb[24].mxu0 %v1755_v46  ;;  %v1814_v46 = vcombine.high %v1806_v37, %v1806_v37 }
  0xe6   : > { %6047 = vmatmul.mubr.f32.vlgmr.msra.gmra.mrb[24].mxu1 %v1762_v49  ;;  %22404 = vmatpush1.bf16.xpose.msra.mxu0 %v22403_v7  ;;  %v22429_v49 = vpack.c.bf16 %v971_v42, %v459_v41  ;;  %v462_v7 = vld [vmem:[%s23930_s11 + $0x230] sm:$0xff]  ;;  %v1867_v41 = vcombine.high %v283_v34, %v283_v34  ;;  %v468_v42 = vld [vmem:[%s23930_s11 + $0x260] sm:$0xff] }
  0xe7   : > { %22408 = vmatpush1.bf16.xpose.msra.mxu1 %v22407_v8  ;;  %6116 = vmatprep.mubr.f32.mxu0 %v1780_v9  ;;  %v974_v8 = vld [vmem:[%s23930_s11 + $0x1230] sm:$0x3]  ;;  %v1840_v9 = vrot.slane %v281_v61, %v23954_v25  ;;  %v22451_v53 = vpack.c.bf16 %v980_v43, %v468_v42  ;;  %v984_v61 = vld [vmem:[%s23930_s11 + $0x1280] sm:$0x3]  ;;  %v999_v42 = vld [vmem:[%s23930_s11 + $0x12f8] sm:$0x3] }
  0xe8   : > { %22410 = vmatprep.subr.bf16.mxu0 %v22409_v10  ;;  %6186 = vmatprep.mubr.f32.mxu1 %v1781_v11  ;;  %v465_v10 = vld [vmem:[%s23930_s11 + $0x248] sm:$0xff]  ;;  %v22439_v17 = vpack.c.bf16 %v974_v8, %v462_v7  ;;  %v287_v43 = vld [vmem:[%s23923_s5 + $0xb8] sm:$0xff] }
  0xe9   : > { %22414 = vmatprep.subr.bf16.mxu1 %v22413_v12  ;;  %v977_v11 = vld [vmem:[%s23930_s11 + $0x1248] sm:$0x3]  ;;  %v1847_v12 = vrot.slane %v1833_v4, %v23954_v25  ;;  %v479_v4 = vld [vmem:[%s23930_s11 + $0x2b8] sm:$0xff] }
  0xea   : > { %v22441_v19 = vpack.c.bf16 %v977_v11, %v465_v10 }
  0xeb   : > { %v1849_v20 = vcombine.high %v1847_v12, %v1847_v12 }
  0xed   : > { %6117 = vmatmul.mubr.f32.vlgmr.msra.gmra.mrb[26].mxu0 %v1772_v0  ;;  %v1831_v0 = vcombine.high %v1823_v55, %v1823_v55 }
  0xee   : > { %6187 = vmatmul.mubr.f32.vlgmr.msra.gmra.mrb[26].mxu1 %v1779_v3  ;;  %22412 = vmatpush1.bf16.xpose.msra.mxu0 %v22411_v26  ;;  %v22437_v3 = vpack.c.bf16 %v975_v60, %v463_v59  ;;  %v466_v26 = vld [vmem:[%s23930_s11 + $0x250] sm:$0xff]  ;;  %v1884_v59 = vcombine.high %v284_v52, %v284_v52  ;;  %v472_v60 = vld [vmem:[%s23930_s11 + $0x280] sm:$0xff] }
  0xef   : > { %22416 = vmatpush1.bf16.xpose.msra.mxu1 %v22415_v27  ;;  %6256 = vmatprep.mubr.f32.mxu0 %v1797_v28  ;;  %v978_v27 = vld [vmem:[%s23930_s11 + $0x1250] sm:$0x3]  ;;  %v1857_v28 = vrot.slane %v282_v15, %v23954_v25  ;;  %v22459_v7 = vpack.c.bf16 %v984_v61, %v472_v60  ;;  %v988_v15 = vld [vmem:[%s23930_s11 + $0x12a0] sm:$0x3]  ;;  %v1003_v60 = vld [vmem:[%s23930_s11 + $0x1318] sm:$0x3] }
  0xf0   : > { %22418 = vmatprep.subr.bf16.mxu0 %v22417_v29  ;;  %6326 = vmatprep.mubr.f32.mxu1 %v1798_v30  ;;  %v469_v29 = vld [vmem:[%s23930_s11 + $0x268] sm:$0xff]  ;;  %v22447_v36 = vpack.c.bf16 %v978_v27, %v466_v26  ;;  %v288_v61 = vld [vmem:[%s23923_s5 + $0xc0] sm:$0xff] }
  0xf1   : > { %22422 = vmatprep.subr.bf16.mxu1 %v22421_v31  ;;  %v981_v30 = vld [vmem:[%s23930_s11 + $0x1268] sm:$0x3]  ;;  %v1864_v31 = vrot.slane %v1850_v22, %v23954_v25  ;;  %v483_v22 = vld [vmem:[%s23930_s11 + $0x2d8] sm:$0xff] }
  0xf2   : > { %v22449_v38 = vpack.c.bf16 %v981_v30, %v469_v29 }
  0xf3   : > { %v1866_v39 = vcombine.high %v1864_v31, %v1864_v31 }
  0xf5   : > { %6257 = vmatmul.mubr.f32.vlgmr.msra.gmra.mrb[28].mxu0 %v1789_v18  ;;  %v1848_v18 = vcombine.high %v1840_v9, %v1840_v9 }
  0xf6   : > { %6327 = vmatmul.mubr.f32.vlgmr.msra.gmra.mrb[28].mxu1 %v1796_v21  ;;  %22420 = vmatpush1.bf16.xpose.msra.mxu0 %v22419_v44  ;;  %v22445_v21 = vpack.c.bf16 %v979_v14, %v467_v13  ;;  %v470_v44 = vld [vmem:[%s23930_s11 + $0x270] sm:$0xff]  ;;  %v1901_v13 = vcombine.high %v285_v6, %v285_v6  ;;  %v476_v14 = vld [vmem:[%s23930_s11 + $0x2a0] sm:$0xff] }
  0xf7   : > { %22424 = vmatpush1.bf16.xpose.msra.mxu1 %v22423_v45  ;;  %6396 = vmatprep.mubr.f32.mxu0 %v1814_v46  ;;  %v982_v45 = vld [vmem:[%s23930_s11 + $0x1270] sm:$0x3]  ;;  %v1874_v46 = vrot.slane %v283_v34, %v23954_v25  ;;  %v22467_v26 = vpack.c.bf16 %v988_v15, %v476_v14  ;;  %v992_v34 = vld [vmem:[%s23930_s11 + $0x12c0] sm:$0x3]  ;;  %v1007_v14 = vld [vmem:[%s23930_s11 + $0x1338] sm:$0x3] }
  0xf8   : > { %22426 = vmatprep.subr.bf16.mxu0 %v22425_v47  ;;  %6466 = vmatprep.mubr.f32.mxu1 %v1815_v48  ;;  %v473_v47 = vld [vmem:[%s23930_s11 + $0x288] sm:$0xff]  ;;  %v22455_v54 = vpack.c.bf16 %v982_v45, %v470_v44 }
  0xf9   : > { %22430 = vmatprep.subr.bf16.mxu1 %v22429_v49  ;;  %v985_v48 = vld [vmem:[%s23930_s11 + $0x1288] sm:$0x3]  ;;  %v1881_v49 = vrot.slane %v1867_v41, %v23954_v25  ;;  %v487_v41 = vld [vmem:[%s23930_s11 + $0x2f8] sm:$0xff] }
  0xfa   : > { %v22457_v56 = vpack.c.bf16 %v985_v48, %v473_v47  ;;  %v289_v15 = vld [vmem:[%s23923_s5 + $0xc8] sm:$0xff] }
  0xfb   : > { %v1883_v57 = vcombine.high %v1881_v49, %v1881_v49 }
  0xfd   : > { %6397 = vmatmul.mubr.f32.vlgmr.msra.gmra.mrb[30].mxu0 %v1806_v37  ;;  %v1865_v37 = vcombine.high %v1857_v28, %v1857_v28 }
  0xfe   : > { %6467 = vmatmul.mubr.f32.vlgmr.msra.gmra.mrb[30].mxu1 %v1813_v40  ;;  %22428 = vmatpush1.bf16.xpose.msra.mxu0 %v22427_v62  ;;  %v22453_v40 = vpack.c.bf16 %v983_v33, %v471_v32  ;;  %v474_v62 = vld [vmem:[%s23930_s11 + $0x290] sm:$0xff]  ;;  %v1918_v32 = vcombine.high %v286_v24, %v286_v24  ;;  %v480_v33 = vld [vmem:[%s23930_s11 + $0x2c0] sm:$0xff] }
  0xff   : > { %22432 = vmatpush1.bf16.xpose.msra.mxu1 %v22431_v63  ;;  %6536 = vmatprep.mubr.f32.mxu0 %v1831_v0  ;;  %v986_v63 = vld [vmem:[%s23930_s11 + $0x1290] sm:$0x3]  ;;  %v1891_v0 = vrot.slane %v284_v52, %v23954_v25  ;;  %v22475_v44 = vpack.c.bf16 %v992_v34, %v480_v33  ;;  %v996_v52 = vld [vmem:[%s23930_s11 + $0x12e0] sm:$0x3]  ;;  %v1011_v33 = vld [vmem:[%s23930_s11 + $0x1358] sm:$0x3] }
 0x100   : > { %22434 = vmatprep.subr.bf16.mxu0 %v22433_v1  ;;  %6606 = vmatprep.mubr.f32.mxu1 %v1832_v2  ;;  %v477_v1 = vld [vmem:[%s23930_s11 + $0x2a8] sm:$0xff]  ;;  %v22463_v8 = vpack.c.bf16 %v986_v63, %v474_v62  ;;  %v290_v34 = vld [vmem:[%s23923_s5 + $0xd0] sm:$0xff] }
 0x101   : > { %22438 = vmatprep.subr.bf16.mxu1 %v22437_v3  ;;  %v989_v2 = vld [vmem:[%s23930_s11 + $0x12a8] sm:$0x3]  ;;  %v1898_v3 = vrot.slane %v1884_v59, %v23954_v25  ;;  %v491_v59 = vld [vmem:[%s23930_s11 + $0x318] sm:$0xff] }
 0x102   : > { %v22465_v10 = vpack.c.bf16 %v989_v2, %v477_v1 }
 0x103   : > { %v1900_v11 = vcombine.high %v1898_v3, %v1898_v3 }
 0x105   : > { %6537 = vmatmul.mubr.f32.vlgmr.msra.gmra.mrb[32].mxu0 %v1823_v55  ;;  %v1882_v55 = vcombine.high %v1874_v46, %v1874_v46 }
 0x106   : > { %6607 = vmatmul.mubr.f32.vlgmr.msra.gmra.mrb[32].mxu1 %v1830_v58  ;;  %22436 = vmatpush1.bf16.xpose.msra.mxu0 %v22435_v16  ;;  %v22461_v58 = vpack.c.bf16 %v987_v51, %v475_v50  ;;  %v478_v16 = vld [vmem:[%s23930_s11 + $0x2b0] sm:$0xff]  ;;  %v1935_v50 = vcombine.high %v287_v43, %v287_v43  ;;  %v484_v51 = vld [vmem:[%s23930_s11 + $0x2e0] sm:$0xff] }
 0x107   : > { %22440 = vmatpush1.bf16.xpose.msra.mxu1 %v22439_v17  ;;  %6676 = vmatprep.mubr.f32.mxu0 %v1848_v18  ;;  %v990_v17 = vld [vmem:[%s23930_s11 + $0x12b0] sm:$0x3]  ;;  %v1908_v18 = vrot.slane %v285_v6, %v23954_v25  ;;  %v22483_v62 = vpack.c.bf16 %v996_v52, %v484_v51  ;;  %v1000_v6 = vld [vmem:[%s23930_s11 + $0x1300] sm:$0x3]  ;;  %v1015_v51 = vld [vmem:[%s23930_s11 + $0x1378] sm:$0x3] }
 0x108   : > { %22442 = vmatprep.subr.bf16.mxu0 %v22441_v19  ;;  %6746 = vmatprep.mubr.f32.mxu1 %v1849_v20  ;;  %v481_v19 = vld [vmem:[%s23930_s11 + $0x2c8] sm:$0xff]  ;;  %v22471_v27 = vpack.c.bf16 %v990_v17, %v478_v16  ;;  %v291_v52 = vld [vmem:[%s23923_s5 + $0xd8] sm:$0xff] }
 0x109   : > { %22446 = vmatprep.subr.bf16.mxu1 %v22445_v21  ;;  %v993_v20 = vld [vmem:[%s23930_s11 + $0x12c8] sm:$0x3]  ;;  %v1915_v21 = vrot.slane %v1901_v13, %v23954_v25  ;;  %v495_v13 = vld [vmem:[%s23930_s11 + $0x338] sm:$0xff] }
 0x10a   : > { %v22473_v29 = vpack.c.bf16 %v993_v20, %v481_v19 }
 0x10b   : > { %v1917_v30 = vcombine.high %v1915_v21, %v1915_v21 }
 0x10d   : > { %6677 = vmatmul.mubr.f32.vlgmr.msra.gmra.mrb[34].mxu0 %v1840_v9  ;;  %v1899_v9 = vcombine.high %v1891_v0, %v1891_v0 }
 0x10e   : > { %6747 = vmatmul.mubr.f32.vlgmr.msra.gmra.mrb[34].mxu1 %v1847_v12  ;;  %22444 = vmatpush1.bf16.xpose.msra.mxu0 %v22443_v35  ;;  %v22469_v12 = vpack.c.bf16 %v991_v5, %v479_v4  ;;  %v482_v35 = vld [vmem:[%s23930_s11 + $0x2d0] sm:$0xff]  ;;  %v1952_v4 = vcombine.high %v288_v61, %v288_v61  ;;  %v488_v5 = vld [vmem:[%s23930_s11 + $0x300] sm:$0xff] }
 0x10f   : > { %22448 = vmatpush1.bf16.xpose.msra.mxu1 %v22447_v36  ;;  %6816 = vmatprep.mubr.f32.mxu0 %v1865_v37  ;;  %v994_v36 = vld [vmem:[%s23930_s11 + $0x12d0] sm:$0x3]  ;;  %v1925_v37 = vrot.slane %v286_v24, %v23954_v25  ;;  %v22491_v16 = vpack.c.bf16 %v1000_v6, %v488_v5  ;;  %v1004_v24 = vld [vmem:[%s23930_s11 + $0x1320] sm:$0x3]  ;;  %v1019_v5 = vld [vmem:[%s23930_s11 + $0x1398] sm:$0x3] }
 0x110   : > { %22450 = vmatprep.subr.bf16.mxu0 %v22449_v38  ;;  %6886 = vmatprep.mubr.f32.mxu1 %v1866_v39  ;;  %v485_v38 = vld [vmem:[%s23930_s11 + $0x2e8] sm:$0xff]  ;;  %v22479_v45 = vpack.c.bf16 %v994_v36, %v482_v35  ;;  %v292_v6 = vld [vmem:[%s23923_s5 + $0xe0] sm:$0xff] }
 0x111   : > { %22454 = vmatprep.subr.bf16.mxu1 %v22453_v40  ;;  %v997_v39 = vld [vmem:[%s23930_s11 + $0x12e8] sm:$0x3]  ;;  %v1932_v40 = vrot.slane %v1918_v32, %v23954_v25  ;;  %v499_v32 = vld [vmem:[%s23930_s11 + $0x358] sm:$0xff] }
 0x112   : > { %v22481_v47 = vpack.c.bf16 %v997_v39, %v485_v38 }
 0x113   : > { %v1934_v48 = vcombine.high %v1932_v40, %v1932_v40 }
 0x115   : > { %6817 = vmatmul.mubr.f32.vlgmr.msra.gmra.mrb[36].mxu0 %v1857_v28  ;;  %v1916_v28 = vcombine.high %v1908_v18, %v1908_v18 }
 0x116   : > { %6887 = vmatmul.mubr.f32.vlgmr.msra.gmra.mrb[36].mxu1 %v1864_v31  ;;  %22452 = vmatpush1.bf16.xpose.msra.mxu0 %v22451_v53  ;;  %v22477_v31 = vpack.c.bf16 %v995_v23, %v483_v22  ;;  %v486_v53 = vld [vmem:[%s23930_s11 + $0x2f0] sm:$0xff]  ;;  %v1969_v22 = vcombine.high %v289_v15, %v289_v15  ;;  %v492_v23 = vld [vmem:[%s23930_s11 + $0x320] sm:$0xff] }
 0x117   : > { %22456 = vmatpush1.bf16.xpose.msra.mxu1 %v22455_v54  ;;  %6956 = vmatprep.mubr.f32.mxu0 %v1882_v55  ;;  %v998_v54 = vld [vmem:[%s23930_s11 + $0x12f0] sm:$0x3]  ;;  %v1942_v55 = vrot.slane %v287_v43, %v23954_v25  ;;  %v22499_v35 = vpack.c.bf16 %v1004_v24, %v492_v23  ;;  %v1008_v43 = vld [vmem:[%s23930_s11 + $0x1340] sm:$0x3] }
 0x118   : > { %22458 = vmatprep.subr.bf16.mxu0 %v22457_v56  ;;  %7026 = vmatprep.mubr.f32.mxu1 %v1883_v57  ;;  %v489_v56 = vld [vmem:[%s23930_s11 + $0x308] sm:$0xff]  ;;  %v22487_v63 = vpack.c.bf16 %v998_v54, %v486_v53 }
 0x119   : > { %22462 = vmatprep.subr.bf16.mxu1 %v22461_v58  ;;  %v1001_v57 = vld [vmem:[%s23930_s11 + $0x1308] sm:$0x3]  ;;  %v1949_v58 = vrot.slane %v1935_v50, %v23954_v25  ;;  %v503_v50 = vld [vmem:[%s23930_s11 + $0x378] sm:$0xff] }
 0x11a   : > { %v22489_v1 = vpack.c.bf16 %v1001_v57, %v489_v56 }
 0x11b   : > { %v1951_v2 = vcombine.high %v1949_v58, %v1949_v58 }
 0x11d   : > { %6957 = vmatmul.mubr.f32.vlgmr.msra.gmra.mrb[38].mxu0 %v1874_v46  ;;  %v1933_v46 = vcombine.high %v1925_v37, %v1925_v37 }
 0x11e   : > { %7027 = vmatmul.mubr.f32.vlgmr.msra.gmra.mrb[38].mxu1 %v1881_v49  ;;  %22460 = vmatpush1.bf16.xpose.msra.mxu0 %v22459_v7  ;;  %v22485_v49 = vpack.c.bf16 %v999_v42, %v487_v41  ;;  %v490_v7 = vld [vmem:[%s23930_s11 + $0x310] sm:$0xff]  ;;  %v1986_v41 = vcombine.high %v290_v34, %v290_v34  ;;  %v496_v42 = vld [vmem:[%s23930_s11 + $0x340] sm:$0xff] }
 0x11f   : > { %22464 = vmatpush1.bf16.xpose.msra.mxu1 %v22463_v8  ;;  %7096 = vmatprep.mubr.f32.mxu0 %v1899_v9  ;;  %v1002_v8 = vld [vmem:[%s23930_s11 + $0x1310] sm:$0x3]  ;;  %v1959_v9 = vrot.slane %v288_v61, %v23954_v25  ;;  %v22507_v53 = vpack.c.bf16 %v1008_v43, %v496_v42  ;;  %v1012_v61 = vld [vmem:[%s23930_s11 + $0x1360] sm:$0x3] }
 0x120   : > { %22466 = vmatprep.subr.bf16.mxu0 %v22465_v10  ;;  %7166 = vmatprep.mubr.f32.mxu1 %v1900_v11  ;;  %v493_v10 = vld [vmem:[%s23930_s11 + $0x328] sm:$0xff]  ;;  %v22495_v17 = vpack.c.bf16 %v1002_v8, %v490_v7 }
 0x121   : > { %22470 = vmatprep.subr.bf16.mxu1 %v22469_v12  ;;  %v1005_v11 = vld [vmem:[%s23930_s11 + $0x1328] sm:$0x3]  ;;  %v1966_v12 = vrot.slane %v1952_v4, %v23954_v25  ;;  %v507_v4 = vld [vmem:[%s23930_s11 + $0x398] sm:$0xff] }
 0x122   : > { %v22497_v19 = vpack.c.bf16 %v1005_v11, %v493_v10 }
 0x123   : > { %v1968_v20 = vcombine.high %v1966_v12, %v1966_v12 }
 0x125   : > { %7097 = vmatmul.mubr.f32.vlgmr.msra.gmra.mrb[40].mxu0 %v1891_v0  ;;  %v1950_v0 = vcombine.high %v1942_v55, %v1942_v55 }
 0x126   : > { %7167 = vmatmul.mubr.f32.vlgmr.msra.gmra.mrb[40].mxu1 %v1898_v3  ;;  %22468 = vmatpush1.bf16.xpose.msra.mxu0 %v22467_v26  ;;  %v22493_v3 = vpack.c.bf16 %v1003_v60, %v491_v59  ;;  %v494_v26 = vld [vmem:[%s23930_s11 + $0x330] sm:$0xff]  ;;  %v2003_v59 = vcombine.high %v291_v52, %v291_v52  ;;  %v500_v60 = vld [vmem:[%s23930_s11 + $0x360] sm:$0xff] }
 0x127   : > { %22472 = vmatpush1.bf16.xpose.msra.mxu1 %v22471_v27  ;;  %7236 = vmatprep.mubr.f32.mxu0 %v1916_v28  ;;  %v1006_v27 = vld [vmem:[%s23930_s11 + $0x1330] sm:$0x3]  ;;  %v1976_v28 = vrot.slane %v289_v15, %v23954_v25  ;;  %v22515_v7 = vpack.c.bf16 %v1012_v61, %v500_v60  ;;  %v1016_v15 = vld [vmem:[%s23930_s11 + $0x1380] sm:$0x3] }
 0x128   : > { %22474 = vmatprep.subr.bf16.mxu0 %v22473_v29  ;;  %7306 = vmatprep.mubr.f32.mxu1 %v1917_v30  ;;  %v497_v29 = vld [vmem:[%s23930_s11 + $0x348] sm:$0xff]  ;;  %v22503_v36 = vpack.c.bf16 %v1006_v27, %v494_v26 }
 0x129   : > { %22478 = vmatprep.subr.bf16.mxu1 %v22477_v31  ;;  %v1009_v30 = vld [vmem:[%s23930_s11 + $0x1348] sm:$0x3]  ;;  %v1983_v31 = vrot.slane %v1969_v22, %v23954_v25 }
 0x12a   : > { %v22505_v38 = vpack.c.bf16 %v1009_v30, %v497_v29  ;;  %v1021_v22 = vld [vmem:[%s23930_s11 + $0x13a8] sm:$0x3]  ;;  %v1023_v29 = vld [vmem:[%s23930_s11 + $0x13b8] sm:$0x3] }
 0x12b   : > { %v1985_v39 = vcombine.high %v1983_v31, %v1983_v31  ;;  %v293_v30 = vld [vmem:[%s23923_s5 + $0xe8] sm:$0xff] }
 0x12c   : > { %v2044_v42 = vrot.slane %v293_v30, %v23954_v25 }
 0x12d   : > { %7237 = vmatmul.mubr.f32.vlgmr.msra.gmra.mrb[42].mxu0 %v1908_v18  ;;  %v1967_v18 = vcombine.high %v1959_v9, %v1959_v9 }
 0x12e   : > { %7307 = vmatmul.mubr.f32.vlgmr.msra.gmra.mrb[42].mxu1 %v1915_v21  ;;  %22476 = vmatpush1.bf16.xpose.msra.mxu0 %v22475_v44  ;;  %v22501_v21 = vpack.c.bf16 %v1007_v14, %v495_v13  ;;  %v498_v44 = vld [vmem:[%s23930_s11 + $0x350] sm:$0xff]  ;;  %v2020_v13 = vcombine.high %v292_v6, %v292_v6  ;;  %v504_v14 = vld [vmem:[%s23930_s11 + $0x380] sm:$0xff] }
 0x12f   : > { %22480 = vmatpush1.bf16.xpose.msra.mxu1 %v22479_v45  ;;  %7376 = vmatprep.mubr.f32.mxu0 %v1933_v46  ;;  %v1010_v45 = vld [vmem:[%s23930_s11 + $0x1350] sm:$0x3]  ;;  %v1993_v46 = vrot.slane %v290_v34, %v23954_v25 }
 0x130   : > { %22482 = vmatprep.subr.bf16.mxu0 %v22481_v47  ;;  %7446 = vmatprep.mubr.f32.mxu1 %v1934_v48  ;;  %v501_v47 = vld [vmem:[%s23930_s11 + $0x368] sm:$0xff]  ;;  %v22511_v54 = vpack.c.bf16 %v1010_v45, %v498_v44  ;;  %v2034_v23 = vrot.slane %v2020_v13, %v23954_v25  ;;  %v295_v13 = vld [vmem:[%s23923_s5 + $0xf8] sm:$0xff] }
 0x131   : > { %22486 = vmatprep.subr.bf16.mxu1 %v22485_v49  ;;  %v1013_v48 = vld [vmem:[%s23930_s11 + $0x1368] sm:$0x3]  ;;  %v2000_v49 = vrot.slane %v1986_v41, %v23954_v25  ;;  %v1022_v41 = vld [vmem:[%s23930_s11 + $0x13b0] sm:$0x3] }
 0x132   : > { %v22513_v56 = vpack.c.bf16 %v1013_v48, %v501_v47  ;;  %v513_v45 = vld [vmem:[%s23930_s11 + $0x3c8] sm:$0xff] }
 0x133   : > { %v2002_v57 = vcombine.high %v2000_v49, %v2000_v49 }
 0x135   : > { %7377 = vmatmul.mubr.f32.vlgmr.msra.gmra.mrb[44].mxu0 %v1925_v37  ;;  %v1984_v37 = vcombine.high %v1976_v28, %v1976_v28 }
 0x136   : > { %7447 = vmatmul.mubr.f32.vlgmr.msra.gmra.mrb[44].mxu1 %v1932_v40  ;;  %22484 = vmatpush1.bf16.xpose.msra.mxu0 %v22483_v62  ;;  %v22509_v40 = vpack.c.bf16 %v1011_v33, %v499_v32  ;;  %v502_v62 = vld [vmem:[%s23930_s11 + $0x370] sm:$0xff] }
 0x137   : > { %22488 = vmatpush1.bf16.xpose.msra.mxu1 %v22487_v63  ;;  %7516 = vmatprep.mubr.f32.mxu0 %v1950_v0  ;;  %v1014_v63 = vld [vmem:[%s23930_s11 + $0x1370] sm:$0x3]  ;;  %v2010_v0 = vrot.slane %v291_v52, %v23954_v25  ;;  %v1027_v52 = vld [vmem:[%s23930_s11 + $0x13d8] sm:$0x3] }
 0x138   : > { %22490 = vmatprep.subr.bf16.mxu0 %v22489_v1  ;;  %7586 = vmatprep.mubr.f32.mxu1 %v1951_v2  ;;  %v505_v1 = vld [vmem:[%s23930_s11 + $0x388] sm:$0xff]  ;;  %v22519_v8 = vpack.c.bf16 %v1014_v63, %v502_v62  ;;  %v512_v62 = vld [vmem:[%s23930_s11 + $0x3c0] sm:$0xff] }
 0x139   : > { %22494 = vmatprep.subr.bf16.mxu1 %v22493_v3  ;;  %v1017_v2 = vld [vmem:[%s23930_s11 + $0x1388] sm:$0x3]  ;;  %v2017_v3 = vrot.slane %v2003_v59, %v23954_v25  ;;  %v1024_v63 = vld [vmem:[%s23930_s11 + $0x13c0] sm:$0x3] }
 0x13a   : > { %v22521_v10 = vpack.c.bf16 %v1017_v2, %v505_v1  ;;  %v1026_v1 = vld [vmem:[%s23930_s11 + $0x13d0] sm:$0x3] }
 0x13b   : > { %v2019_v11 = vcombine.high %v2017_v3, %v2017_v3 }
 0x13d   : > { %7517 = vmatmul.mubr.f32.vlgmr.msra.gmra.mrb[46].mxu0 %v1942_v55  ;;  %v2001_v55 = vcombine.high %v1993_v46, %v1993_v46 }
 0x13e   : > { %7587 = vmatmul.mubr.f32.vlgmr.msra.gmra.mrb[46].mxu1 %v1949_v58  ;;  %22492 = vmatpush1.bf16.xpose.msra.mxu0 %v22491_v16  ;;  %v22517_v58 = vpack.c.bf16 %v1015_v51, %v503_v50  ;;  %v506_v16 = vld [vmem:[%s23930_s11 + $0x390] sm:$0xff]  ;;  %v515_v51 = vld [vmem:[%s23930_s11 + $0x3d8] sm:$0xff] }
 0x13f   : > { %22496 = vmatpush1.bf16.xpose.msra.mxu1 %v22495_v17  ;;  %7656 = vmatprep.mubr.f32.mxu0 %v1967_v18  ;;  %v1018_v17 = vld [vmem:[%s23930_s11 + $0x1390] sm:$0x3]  ;;  %v2027_v18 = vrot.slane %v292_v6, %v23954_v25  ;;  %v22541_v60 = vpack.c.bf16 %v1027_v52, %v515_v51  ;;  %v1029_v6 = vld [vmem:[%s23930_s11 + $0x13e8] sm:$0x3] }
 0x140   : > { %22498 = vmatprep.subr.bf16.mxu0 %v22497_v19  ;;  %7726 = vmatprep.mubr.f32.mxu1 %v1968_v20  ;;  %v22527_v32 = vpack.c.bf16 %v1018_v17, %v506_v16 }
 0x141   : > { %22502 = vmatprep.subr.bf16.mxu1 %v22501_v21  ;;  %v509_v21 = vld [vmem:[%s23930_s11 + $0x3a8] sm:$0xff]  ;;  %v2035_v33 = vcombine.high %v2027_v18, %v2027_v18 }
 0x142   : > { %v22529_v34 = vpack.c.bf16 %v1021_v22, %v509_v21  ;;  %v2071_v21 = vcombine.high %v295_v13, %v295_v13  ;;  %v516_v22 = vld [vmem:[%s23930_s11 + $0x3e0] sm:$0xff] }
 0x145   : > { %7657 = vmatmul.mubr.f32.vlgmr.msra.gmra.mrb[48].mxu0 %v1959_v9  ;;  %v2018_v9 = vcombine.high %v2010_v0, %v2010_v0 }
 0x146   : > { %7727 = vmatmul.mubr.f32.vlgmr.msra.gmra.mrb[48].mxu1 %v1966_v12  ;;  %22500 = vmatpush1.bf16.xpose.msra.mxu0 %v22499_v35  ;;  %v22525_v12 = vpack.c.bf16 %v1019_v5, %v507_v4  ;;  %v2036_v35 = vcombine.high %v2034_v23, %v2034_v23  ;;  %v517_v5 = vld [vmem:[%s23930_s11 + $0x3e8] sm:$0xff] }
 0x147   : > { %22504 = vmatpush1.bf16.xpose.msra.mxu1 %v22503_v36  ;;  %7796 = vmatprep.mubr.f32.mxu0 %v1984_v37  ;;  %v2037_v37 = vcombine.high %v293_v30, %v293_v30  ;;  %v521_v30 = vld [vmem:[%s23930_s11 + $0x408] sm:$0xff] }
 0x148   : > { %22506 = vmatprep.subr.bf16.mxu0 %v22505_v38  ;;  %7866 = vmatprep.mubr.f32.mxu1 %v1985_v39  ;;  %v508_v38 = vld [vmem:[%s23930_s11 + $0x3a0] sm:$0xff] }
 0x149   : > { %22510 = vmatprep.subr.bf16.mxu1 %v22509_v40  ;;  %v1020_v39 = vld [vmem:[%s23930_s11 + $0x13a0] sm:$0x3]  ;;  %v510_v40 = vld [vmem:[%s23930_s11 + $0x3b0] sm:$0xff]  ;;  %v2051_v47 = vrot.slane %v2037_v37, %v23954_v25  ;;  %v1035_v37 = vld [vmem:[%s23930_s11 + $0x1418] sm:$0x3] }
 0x14b   : > { %v2053_v59 = vcombine.high %v2051_v47, %v2051_v47 }
 0x14d   : > { %7797 = vmatmul.mubr.f32.vlgmr.msra.gmra.mrb[50].mxu0 %v1976_v28  ;;  %v511_v28 = vld [vmem:[%s23930_s11 + $0x3b8] sm:$0xff] }
 0x14e   : > { %7867 = vmatmul.mubr.f32.vlgmr.msra.gmra.mrb[50].mxu1 %v1983_v31  ;;  %22508 = vmatpush1.bf16.xpose.msra.mxu0 %v22507_v53  ;;  %v22523_v31 = vpack.c.bf16 %v1016_v15, %v504_v14  ;;  %v22533_v36 = vpack.c.bf16 %v1023_v29, %v511_v28  ;;  %v294_v53 = vld [vmem:[%s23923_s5 + $0xf0] sm:$0xff]  ;;  %v22539_v14 = vpack.c.bf16 %v1024_v63, %v512_v62  ;;  %v297_v62 = vld [vmem:[%s23923_s5 + $0x108] sm:$0xff] }
 0x14f   : > { %22512 = vmatpush1.bf16.xpose.msra.mxu1 %v22511_v54  ;;  %7936 = vmatprep.mubr.f32.mxu0 %v2001_v55  ;;  %v22531_v54 = vpack.c.bf16 %v1020_v39, %v508_v38  ;;  %v22535_v55 = vpack.c.bf16 %v1022_v41, %v510_v40  ;;  %v2054_v61 = vcombine.high %v294_v53, %v294_v53  ;;  %v296_v38 = vld [vmem:[%s23923_s5 + $0x100] sm:$0xff] }
 0x150   : > { %22514 = vmatprep.subr.bf16.mxu0 %v22513_v56  ;;  %8006 = vmatprep.mubr.f32.mxu1 %v2002_v57  ;;  %v2052_v57 = vcombine.high %v2044_v42, %v2044_v42  ;;  %v2061_v2 = vrot.slane %v294_v53, %v23954_v25  ;;  %v2095_v51 = vrot.slane %v296_v38, %v23954_v25 }
 0x151   : > { %22518 = vmatprep.subr.bf16.mxu1 %v22517_v58 }
 0x152   : > { %v2069_v17 = vcombine.high %v2061_v2, %v2061_v2 }
 0x155   : > { %7937 = vmatmul.mubr.f32.vlgmr.msra.gmra.mrb[52].mxu0 %v1993_v46  ;;  %v1025_v46 = vld [vmem:[%s23930_s11 + $0x13c8] sm:$0x3] }
 0x156   : > { %8007 = vmatmul.mubr.f32.vlgmr.msra.gmra.mrb[52].mxu1 %v2000_v49  ;;  %22516 = vmatpush1.bf16.xpose.msra.mxu0 %v22515_v7  ;;  %v22537_v58 = vpack.c.bf16 %v1025_v46, %v513_v45  ;;  %v2068_v7 = vrot.slane %v2054_v61, %v23954_v25  ;;  %v2088_v46 = vcombine.high %v296_v38, %v296_v38  ;;  %v1039_v61 = vld [vmem:[%s23930_s11 + $0x1438] sm:$0x3] }
 0x157   : > { %22520 = vmatpush1.bf16.xpose.msra.mxu1 %v22519_v8  ;;  %8076 = vmatprep.mubr.f32.mxu0 %v2018_v9 }
 0x158   : > { %22522 = vmatprep.subr.bf16.mxu0 %v22521_v10  ;;  %v4298_v19 = vpop.f32.mrb[0].mxu0  ;;  %8146 = vmatprep.mubr.f32.mxu1 %v2019_v11  ;;  %v519_v11 = vld [vmem:[%s23930_s11 + $0x3f8] sm:$0xff] }
 0x159   : > { %v4368_v20 = vpop.f32.mrb[0].mxu1  ;;  %22526 = vmatprep.subr.bf16.mxu1 %v22525_v12  ;;  %v4300_v26 = vpop.f32.mrb[1].mxu0  ;;  %v1031_v12 = vld [vmem:[%s23930_s11 + $0x13f8] sm:$0x3] }
 0x15a   : > { %v4369_v24 = vadd.f32 %v4368_v20, %v4298_v19  ;;  %v4370_v27 = vpop.f32.mrb[1].mxu1  ;;  %v2070_v19 = vcombine.high %v2068_v7, %v2068_v7  ;;  %v22549_v20 = vpack.c.bf16 %v1031_v12, %v519_v11  ;;  %v1030_v26 = vld [vmem:[%s23930_s11 + $0x13f0] sm:$0x3]  ;;  %v2112_v11 = vrot.slane %v297_v62, %v23954_v25 }
 0x15b   : > { %v2078_v27 = vrot.slane %v295_v13, %v23954_v25 }
 0x15d   : > { %8077 = vmatmul.mubr.f32.vlgmr.msra.gmra.mrb[54].mxu0 %v2010_v0  ;;  %v514_v0 = vld [vmem:[%s23930_s11 + $0x3d0] sm:$0xff] }
 0x15e   : > { %8147 = vmatmul.mubr.f32.vlgmr.msra.gmra.mrb[54].mxu1 %v2017_v3  ;;  %22524 = vmatpush1.bf16.xpose.msra.mxu0 %v22523_v31  ;;  %v22543_v15 = vpack.c.bf16 %v1026_v1, %v514_v0  ;;  %v1033_v31 = vld [vmem:[%s23930_s11 + $0x1408] sm:$0x3] }
 0x15f   : > { %22528 = vmatpush1.bf16.xpose.msra.mxu1 %v22527_v32  ;;  %8216 = vmatprep.mubr.f32.mxu0 %v2035_v33  ;;  %v2085_v32 = vrot.slane %v2071_v21, %v23954_v25  ;;  %v1043_v21 = vld [vmem:[%s23930_s11 + $0x1458] sm:$0x3] }
 0x160   : > { %22530 = vmatprep.subr.bf16.mxu0 %v22529_v34  ;;  %v4438_v43 = vpop.f32.mrb[2].mxu0  ;;  %8286 = vmatprep.mubr.f32.mxu1 %v2036_v35 }
 0x161   : > { %v4508_v44 = vpop.f32.mrb[2].mxu1  ;;  %22534 = vmatprep.subr.bf16.mxu1 %v22533_v36  ;;  %v4439_v48 = vadd.f32 %v4438_v43, %v4369_v24  ;;  %v4440_v49 = vpop.f32.mrb[3].mxu0  ;;  %v518_v24 = vld [vmem:[%s23930_s11 + $0x3f0] sm:$0xff]  ;;  %v523_v36 = vld [vmem:[%s23930_s11 + $0x418] sm:$0xff]  ;;  %v22553_v43 = vpack.c.bf16 %v1033_v31, %v521_v30 }
 0x162   : > { %v4510_v50 = vpop.f32.mrb[3].mxu1  ;;  %v22551_v40 = vpack.c.bf16 %v1030_v26, %v518_v24  ;;  %v22557_v45 = vpack.c.bf16 %v1035_v37, %v523_v36  ;;  %v522_v49 = vld [vmem:[%s23930_s11 + $0x410] sm:$0xff] }
 0x163   : > { %v4509_v56 = vadd.f32 %v4508_v44, %v4439_v48  ;;  %v2087_v44 = vcombine.high %v2085_v32, %v2085_v32  ;;  %v1032_v48 = vld [vmem:[%s23930_s11 + $0x1400] sm:$0x3]  ;;  %v1034_v50 = vld [vmem:[%s23930_s11 + $0x1410] sm:$0x3] }
 0x164   : > { %v22559_v0 = vpack.c.bf16 %v1034_v50, %v522_v49 }
 0x165   : > { %8217 = vmatmul.mubr.f32.vlgmr.msra.gmra.mrb[56].mxu0 %v2027_v18  ;;  %v22545_v18 = vpack.c.bf16 %v1029_v6, %v517_v5  ;;  %v2105_v6 = vcombine.high %v297_v62, %v297_v62 }
 0x166   : > { %8287 = vmatmul.mubr.f32.vlgmr.msra.gmra.mrb[56].mxu1 %v2034_v23  ;;  %22532 = vmatpush1.bf16.xpose.msra.mxu0 %v22531_v54  ;;  %v1028_v23 = vld [vmem:[%s23930_s11 + $0x13e0] sm:$0x3]  ;;  %v525_v54 = vld [vmem:[%s23930_s11 + $0x428] sm:$0xff] }
 0x167   : > { %22536 = vmatpush1.bf16.xpose.msra.mxu1 %v22535_v55  ;;  %8356 = vmatprep.mubr.f32.mxu0 %v2052_v57  ;;  %v22547_v39 = vpack.c.bf16 %v1028_v23, %v516_v22  ;;  %v1037_v55 = vld [vmem:[%s23930_s11 + $0x1428] sm:$0x3]  ;;  %v298_v22 = vld [vmem:[%s23923_s5 + $0x110] sm:$0xff] }
 0x168   : > { %22538 = vmatprep.subr.bf16.mxu0 %v22537_v58  ;;  %v4578_v3 = vpop.f32.mrb[4].mxu0  ;;  %8426 = vmatprep.mubr.f32.mxu1 %v2053_v59  ;;  %v2122_v31 = vcombine.high %v298_v22, %v298_v22  ;;  %v2129_v36 = vrot.slane %v298_v22, %v23954_v25 }
 0x169   : > { %v4648_v4 = vpop.f32.mrb[4].mxu1  ;;  %22542 = vmatprep.subr.bf16.mxu1 %v22541_v60  ;;  %v4579_v8 = vadd.f32 %v4578_v3, %v4509_v56  ;;  %v4580_v9 = vpop.f32.mrb[5].mxu0  ;;  %v2102_v56 = vrot.slane %v2088_v46, %v23954_v25  ;;  %v527_v60 = vld [vmem:[%s23930_s11 + $0x438] sm:$0xff]  ;;  %v22561_v3 = vpack.c.bf16 %v1037_v55, %v525_v54 }
 0x16a   : > { %v4650_v10 = vpop.f32.mrb[5].mxu1  ;;  %v22565_v5 = vpack.c.bf16 %v1039_v61, %v527_v60  ;;  %v526_v9 = vld [vmem:[%s23930_s11 + $0x430] sm:$0xff]  ;;  %v1047_v46 = vld [vmem:[%s23930_s11 + $0x1478] sm:$0x3] }
 0x16b   : > { %v4649_v16 = vadd.f32 %v4648_v4, %v4579_v8  ;;  %v2104_v4 = vcombine.high %v2102_v56, %v2102_v56  ;;  %v1036_v8 = vld [vmem:[%s23930_s11 + $0x1420] sm:$0x3]  ;;  %v1038_v10 = vld [vmem:[%s23930_s11 + $0x1430] sm:$0x3] }
 0x16c   : > { %v22567_v24 = vpack.c.bf16 %v1038_v10, %v526_v9 }
 0x16d   : > { %8357 = vmatmul.mubr.f32.vlgmr.msra.gmra.mrb[58].mxu0 %v2044_v42  ;;  %v2086_v42 = vcombine.high %v2078_v27, %v2078_v27 }
 0x16e   : > { %8427 = vmatmul.mubr.f32.vlgmr.msra.gmra.mrb[58].mxu1 %v2051_v47  ;;  %22540 = vmatpush1.bf16.xpose.msra.mxu0 %v22539_v14  ;;  %v520_v47 = vld [vmem:[%s23930_s11 + $0x400] sm:$0xff]  ;;  %v529_v14 = vld [vmem:[%s23930_s11 + $0x448] sm:$0xff] }
 0x16f   : > { %22544 = vmatpush1.bf16.xpose.msra.mxu1 %v22543_v15  ;;  %8496 = vmatprep.mubr.f32.mxu0 %v2069_v17  ;;  %v22555_v63 = vpack.c.bf16 %v1032_v48, %v520_v47  ;;  %v1041_v15 = vld [vmem:[%s23930_s11 + $0x1448] sm:$0x3]  ;;  %v299_v47 = vld [vmem:[%s23923_s5 + $0x118] sm:$0xff] }
 0x170   : > { %22546 = vmatprep.subr.bf16.mxu0 %v22545_v18  ;;  %v4718_v28 = vpop.f32.mrb[6].mxu0  ;;  %8566 = vmatprep.mubr.f32.mxu1 %v2070_v19  ;;  %v2139_v55 = vcombine.high %v299_v47, %v299_v47  ;;  %v2146_v60 = vrot.slane %v299_v47, %v23954_v25 }
 0x171   : > { %v4788_v29 = vpop.f32.mrb[6].mxu1  ;;  %22550 = vmatprep.subr.bf16.mxu1 %v22549_v20  ;;  %v4719_v33 = vadd.f32 %v4718_v28, %v4649_v16  ;;  %v4720_v34 = vpop.f32.mrb[7].mxu0  ;;  %v2119_v16 = vrot.slane %v2105_v6, %v23954_v25  ;;  %v531_v20 = vld [vmem:[%s23930_s11 + $0x458] sm:$0xff]  ;;  %v22569_v28 = vpack.c.bf16 %v1041_v15, %v529_v14 }
 0x172   : > { %v4790_v35 = vpop.f32.mrb[7].mxu1  ;;  %v22573_v30 = vpack.c.bf16 %v1043_v21, %v531_v20  ;;  %v530_v34 = vld [vmem:[%s23930_s11 + $0x450] sm:$0xff]  ;;  %v1051_v6 = vld [vmem:[%s23930_s11 + $0x1498] sm:$0x3] }
 0x173   : > { %v4789_v41 = vadd.f32 %v4788_v29, %v4719_v33  ;;  %v2121_v29 = vcombine.high %v2119_v16, %v2119_v16  ;;  %v1040_v33 = vld [vmem:[%s23930_s11 + $0x1440] sm:$0x3]  ;;  %v1042_v35 = vld [vmem:[%s23930_s11 + $0x1450] sm:$0x3] }
 0x174   : > { %v22575_v49 = vpack.c.bf16 %v1042_v35, %v530_v34 }
 0x175   : > { %8497 = vmatmul.mubr.f32.vlgmr.msra.gmra.mrb[60].mxu0 %v2061_v2  ;;  %v2103_v2 = vcombine.high %v2095_v51, %v2095_v51 }
 0x176   : > { %8567 = vmatmul.mubr.f32.vlgmr.msra.gmra.mrb[60].mxu1 %v2068_v7  ;;  %22548 = vmatpush1.bf16.xpose.msra.mxu0 %v22547_v39  ;;  %v524_v7 = vld [vmem:[%s23930_s11 + $0x420] sm:$0xff]  ;;  %v533_v39 = vld [vmem:[%s23930_s11 + $0x468] sm:$0xff] }
 0x177   : > { %22552 = vmatpush1.bf16.xpose.msra.mxu1 %v22551_v40  ;;  %8636 = vmatprep.mubr.f32.mxu0 %v2086_v42  ;;  %v22563_v23 = vpack.c.bf16 %v1036_v8, %v524_v7  ;;  %v1045_v40 = vld [vmem:[%s23930_s11 + $0x1468] sm:$0x3]  ;;  %v300_v7 = vld [vmem:[%s23923_s5 + $0x120] sm:$0xff] }
 0x178   : > { %22554 = vmatprep.subr.bf16.mxu0 %v22553_v43  ;;  %v4858_v52 = vpop.f32.mrb[8].mxu0  ;;  %8706 = vmatprep.mubr.f32.mxu1 %v2087_v44  ;;  %v2156_v15 = vcombine.high %v300_v7, %v300_v7  ;;  %v2163_v20 = vrot.slane %v300_v7, %v23954_v25 }
 0x179   : > { %v4928_v53 = vpop.f32.mrb[8].mxu1  ;;  %22558 = vmatprep.subr.bf16.mxu1 %v22557_v45  ;;  %v4859_v57 = vadd.f32 %v4858_v52, %v4789_v41  ;;  %v4860_v58 = vpop.f32.mrb[9].mxu0  ;;  %v2136_v41 = vrot.slane %v2122_v31, %v23954_v25  ;;  %v535_v45 = vld [vmem:[%s23930_s11 + $0x478] sm:$0xff]  ;;  %v22577_v52 = vpack.c.bf16 %v1045_v40, %v533_v39 }
 0x17a   : > { %v4930_v59 = vpop.f32.mrb[9].mxu1  ;;  %v22581_v54 = vpack.c.bf16 %v1047_v46, %v535_v45  ;;  %v534_v58 = vld [vmem:[%s23930_s11 + $0x470] sm:$0xff]  ;;  %v1055_v31 = vld [vmem:[%s23930_s11 + $0x14b8] sm:$0x3] }
 0x17b   : > { %v4929_v1 = vadd.f32 %v4928_v53, %v4859_v57  ;;  %v2138_v53 = vcombine.high %v2136_v41, %v2136_v41  ;;  %v1044_v57 = vld [vmem:[%s23930_s11 + $0x1460] sm:$0x3]  ;;  %v1046_v59 = vld [vmem:[%s23930_s11 + $0x1470] sm:$0x3] }
 0x17c   : > { %v22583_v9 = vpack.c.bf16 %v1046_v59, %v534_v58 }
 0x17d   : > { %8637 = vmatmul.mubr.f32.vlgmr.msra.gmra.mrb[62].mxu0 %v2078_v27  ;;  %v2120_v27 = vcombine.high %v2112_v11, %v2112_v11 }
 0x17e   : > { %8707 = vmatmul.mubr.f32.vlgmr.msra.gmra.mrb[62].mxu1 %v2085_v32  ;;  %22556 = vmatpush1.bf16.xpose.msra.mxu0 %v22555_v63  ;;  %v528_v32 = vld [vmem:[%s23930_s11 + $0x440] sm:$0xff]  ;;  %v537_v63 = vld [vmem:[%s23930_s11 + $0x488] sm:$0xff] }
 0x17f   : > { %22560 = vmatpush1.bf16.xpose.msra.mxu1 %v22559_v0  ;;  %8776 = vmatprep.mubr.f32.mxu0 %v2103_v2  ;;  %v22571_v48 = vpack.c.bf16 %v1040_v33, %v528_v32  ;;  %v1049_v0 = vld [vmem:[%s23930_s11 + $0x1488] sm:$0x3] }
 0x180   : > { %22562 = vmatprep.subr.bf16.mxu0 %v22561_v3  ;;  %v4998_v12 = vpop.f32.mrb[10].mxu0  ;;  %8846 = vmatprep.mubr.f32.mxu1 %v2104_v4  ;;  %v301_v32 = vld [vmem:[%s23923_s5 + $0x128] sm:$0xff] }
 0x181   : > { %v5068_v13 = vpop.f32.mrb[10].mxu1  ;;  %22566 = vmatprep.subr.bf16.mxu1 %v22565_v5  ;;  %v4999_v17 = vadd.f32 %v4998_v12, %v4929_v1  ;;  %v5000_v18 = vpop.f32.mrb[11].mxu0  ;;  %v2153_v1 = vrot.slane %v2139_v55, %v23954_v25  ;;  %v539_v5 = vld [vmem:[%s23930_s11 + $0x498] sm:$0xff]  ;;  %v22585_v12 = vpack.c.bf16 %v1049_v0, %v537_v63  ;;  %v2173_v40 = vcombine.high %v301_v32, %v301_v32 }
 0x182   : > { %v5070_v19 = vpop.f32.mrb[11].mxu1  ;;  %v22589_v14 = vpack.c.bf16 %v1051_v6, %v539_v5  ;;  %v538_v18 = vld [vmem:[%s23930_s11 + $0x490] sm:$0xff]  ;;  %v2180_v45 = vrot.slane %v301_v32, %v23954_v25  ;;  %v1059_v55 = vld [vmem:[%s23930_s11 + $0x14d8] sm:$0x3] }
 0x183   : > { %v5069_v26 = vadd.f32 %v5068_v13, %v4999_v17  ;;  %v2155_v13 = vcombine.high %v2153_v1, %v2153_v1  ;;  %v1048_v17 = vld [vmem:[%s23930_s11 + $0x1480] sm:$0x3]  ;;  %v1050_v19 = vld [vmem:[%s23930_s11 + $0x1490] sm:$0x3] }
 0x184   : > { %v22591_v34 = vpack.c.bf16 %v1050_v19, %v538_v18 }
 0x185   : > { %8777 = vmatmul.mubr.f32.vlgmr.msra.gmra.mrb[64].mxu0 %v2095_v51  ;;  %v2137_v51 = vcombine.high %v2129_v36, %v2129_v36 }
 0x186   : > { %8847 = vmatmul.mubr.f32.vlgmr.msra.gmra.mrb[64].mxu1 %v2102_v56  ;;  %22564 = vmatpush1.bf16.xpose.msra.mxu0 %v22563_v23  ;;  %v532_v56 = vld [vmem:[%s23930_s11 + $0x460] sm:$0xff]  ;;  %v541_v23 = vld [vmem:[%s23930_s11 + $0x4a8] sm:$0xff] }
 0x187   : > { %22568 = vmatpush1.bf16.xpose.msra.mxu1 %v22567_v24  ;;  %8916 = vmatprep.mubr.f32.mxu0 %v2120_v27  ;;  %v22579_v8 = vpack.c.bf16 %v1044_v57, %v532_v56  ;;  %v1053_v24 = vld [vmem:[%s23930_s11 + $0x14a8] sm:$0x3]  ;;  %v302_v56 = vld [vmem:[%s23923_s5 + $0x130] sm:$0xff] }
 0x188   : > { %22570 = vmatprep.subr.bf16.mxu0 %v22569_v28  ;;  %v5138_v37 = vpop.f32.mrb[12].mxu0  ;;  %8986 = vmatprep.mubr.f32.mxu1 %v2121_v29  ;;  %v2190_v0 = vcombine.high %v302_v56, %v302_v56  ;;  %v2197_v5 = vrot.slane %v302_v56, %v23954_v25 }
 0x189   : > { %v5208_v38 = vpop.f32.mrb[12].mxu1  ;;  %22574 = vmatprep.subr.bf16.mxu1 %v22573_v30  ;;  %v5139_v42 = vadd.f32 %v5138_v37, %v5069_v26  ;;  %v5140_v43 = vpop.f32.mrb[13].mxu0  ;;  %v2170_v26 = vrot.slane %v2156_v15, %v23954_v25  ;;  %v543_v30 = vld [vmem:[%s23930_s11 + $0x4b8] sm:$0xff]  ;;  %v22593_v37 = vpack.c.bf16 %v1053_v24, %v541_v23 }
 0x18a   : > { %v5210_v44 = vpop.f32.mrb[13].mxu1  ;;  %v22597_v39 = vpack.c.bf16 %v1055_v31, %v543_v30  ;;  %v542_v43 = vld [vmem:[%s23930_s11 + $0x4b0] sm:$0xff]  ;;  %v1063_v15 = vld [vmem:[%s23930_s11 + $0x14f8] sm:$0x3] }
 0x18b   : > { %v5209_v50 = vadd.f32 %v5208_v38, %v5139_v42  ;;  %v2172_v38 = vcombine.high %v2170_v26, %v2170_v26  ;;  %v1052_v42 = vld [vmem:[%s23930_s11 + $0x14a0] sm:$0x3]  ;;  %v1054_v44 = vld [vmem:[%s23930_s11 + $0x14b0] sm:$0x3] }
 0x18c   : > { %v22599_v58 = vpack.c.bf16 %v1054_v44, %v542_v43 }
 0x18d   : > { %8917 = vmatmul.mubr.f32.vlgmr.msra.gmra.mrb[66].mxu0 %v2112_v11  ;;  %v2154_v11 = vcombine.high %v2146_v60, %v2146_v60 }
 0x18e   : > { %8987 = vmatmul.mubr.f32.vlgmr.msra.gmra.mrb[66].mxu1 %v2119_v16  ;;  %22572 = vmatpush1.bf16.xpose.msra.mxu0 %v22571_v48  ;;  %v536_v16 = vld [vmem:[%s23930_s11 + $0x480] sm:$0xff]  ;;  %v545_v48 = vld [vmem:[%s23930_s11 + $0x4c8] sm:$0xff] }
 0x18f   : > { %22576 = vmatpush1.bf16.xpose.msra.mxu1 %v22575_v49  ;;  %9056 = vmatprep.mubr.f32.mxu0 %v2137_v51  ;;  %v22587_v33 = vpack.c.bf16 %v1048_v17, %v536_v16  ;;  %v1057_v49 = vld [vmem:[%s23930_s11 + $0x14c8] sm:$0x3]  ;;  %v303_v16 = vld [vmem:[%s23923_s5 + $0x138] sm:$0xff] }
 0x190   : > { %22578 = vmatprep.subr.bf16.mxu0 %v22577_v52  ;;  %v5278_v61 = vpop.f32.mrb[14].mxu0  ;;  %9126 = vmatprep.mubr.f32.mxu1 %v2138_v53  ;;  %v2207_v24 = vcombine.high %v303_v16, %v303_v16  ;;  %v2214_v30 = vrot.slane %v303_v16, %v23954_v25 }
 0x191   : > { %v5348_v62 = vpop.f32.mrb[14].mxu1  ;;  %22582 = vmatprep.subr.bf16.mxu1 %v22581_v54  ;;  %v5279_v2 = vadd.f32 %v5278_v61, %v5209_v50  ;;  %v5280_v3 = vpop.f32.mrb[15].mxu0  ;;  %v2187_v50 = vrot.slane %v2173_v40, %v23954_v25  ;;  %v547_v54 = vld [vmem:[%s23930_s11 + $0x4d8] sm:$0xff]  ;;  %v22601_v61 = vpack.c.bf16 %v1057_v49, %v545_v48 }
 0x192   : > { %v5350_v4 = vpop.f32.mrb[15].mxu1  ;;  %v22605_v63 = vpack.c.bf16 %v1059_v55, %v547_v54  ;;  %v546_v3 = vld [vmem:[%s23930_s11 + $0x4d0] sm:$0xff]  ;;  %v1067_v40 = vld [vmem:[%s23930_s11 + $0x1518] sm:$0x3] }
 0x193   : > { %v5349_v10 = vadd.f32 %v5348_v62, %v5279_v2  ;;  %v2189_v62 = vcombine.high %v2187_v50, %v2187_v50  ;;  %v1056_v2 = vld [vmem:[%s23930_s11 + $0x14c0] sm:$0x3]  ;;  %v1058_v4 = vld [vmem:[%s23930_s11 + $0x14d0] sm:$0x3] }
 0x194   : > { %v22607_v18 = vpack.c.bf16 %v1058_v4, %v546_v3 }
 0x195   : > { %9057 = vmatmul.mubr.f32.vlgmr.msra.gmra.mrb[68].mxu0 %v2129_v36  ;;  %v2171_v36 = vcombine.high %v2163_v20, %v2163_v20 }
 0x196   : > { %9127 = vmatmul.mubr.f32.vlgmr.msra.gmra.mrb[68].mxu1 %v2136_v41  ;;  %22580 = vmatpush1.bf16.xpose.msra.mxu0 %v22579_v8  ;;  %v540_v41 = vld [vmem:[%s23930_s11 + $0x4a0] sm:$0xff]  ;;  %v549_v8 = vld [vmem:[%s23930_s11 + $0x4e8] sm:$0xff] }
 0x197   : > { %22584 = vmatpush1.bf16.xpose.msra.mxu1 %v22583_v9  ;;  %9196 = vmatprep.mubr.f32.mxu0 %v2154_v11  ;;  %v22595_v57 = vpack.c.bf16 %v1052_v42, %v540_v41  ;;  %v1061_v9 = vld [vmem:[%s23930_s11 + $0x14e8] sm:$0x3]  ;;  %v304_v41 = vld [vmem:[%s23923_s5 + $0x140] sm:$0xff] }
 0x198   : > { %22586 = vmatprep.subr.bf16.mxu0 %v22585_v12  ;;  %v5418_v21 = vpop.f32.mrb[16].mxu0  ;;  %9266 = vmatprep.mubr.f32.mxu1 %v2155_v13  ;;  %v2224_v49 = vcombine.high %v304_v41, %v304_v41  ;;  %v2231_v54 = vrot.slane %v304_v41, %v23954_v25 }
 0x199   : > { %v5488_v22 = vpop.f32.mrb[16].mxu1  ;;  %22590 = vmatprep.subr.bf16.mxu1 %v22589_v14  ;;  %v5419_v27 = vadd.f32 %v5418_v21, %v5349_v10  ;;  %v5420_v28 = vpop.f32.mrb[17].mxu0  ;;  %v2204_v10 = vrot.slane %v2190_v0, %v23954_v25  ;;  %v551_v14 = vld [vmem:[%s23930_s11 + $0x4f8] sm:$0xff]  ;;  %v22609_v21 = vpack.c.bf16 %v1061_v9, %v549_v8 }
 0x19a   : > { %v5490_v29 = vpop.f32.mrb[17].mxu1  ;;  %v22613_v23 = vpack.c.bf16 %v1063_v15, %v551_v14  ;;  %v550_v28 = vld [vmem:[%s23930_s11 + $0x4f0] sm:$0xff]  ;;  %v1071_v0 = vld [vmem:[%s23930_s11 + $0x1538] sm:$0x3] }
 0x19b   : > { %v5489_v35 = vadd.f32 %v5488_v22, %v5419_v27  ;;  %v2206_v22 = vcombine.high %v2204_v10, %v2204_v10  ;;  %v1060_v27 = vld [vmem:[%s23930_s11 + $0x14e0] sm:$0x3]  ;;  %v1062_v29 = vld [vmem:[%s23930_s11 + $0x14f0] sm:$0x3] }
 0x19c   : > { %v22615_v43 = vpack.c.bf16 %v1062_v29, %v550_v28 }
 0x19d   : > { %9197 = vmatmul.mubr.f32.vlgmr.msra.gmra.mrb[70].mxu0 %v2146_v60  ;;  %v2188_v60 = vcombine.high %v2180_v45, %v2180_v45 }
 0x19e   : > { %9267 = vmatmul.mubr.f32.vlgmr.msra.gmra.mrb[70].mxu1 %v2153_v1  ;;  %22588 = vmatpush1.bf16.xpose.msra.mxu0 %v22587_v33  ;;  %v544_v1 = vld [vmem:[%s23930_s11 + $0x4c0] sm:$0xff]  ;;  %v553_v33 = vld [vmem:[%s23930_s11 + $0x508] sm:$0xff] }
 0x19f   : > { %22592 = vmatpush1.bf16.xpose.msra.mxu1 %v22591_v34  ;;  %9336 = vmatprep.mubr.f32.mxu0 %v2171_v36  ;;  %v22603_v17 = vpack.c.bf16 %v1056_v2, %v544_v1  ;;  %v1065_v34 = vld [vmem:[%s23930_s11 + $0x1508] sm:$0x3] }
 0x1a0   : > { %22594 = vmatprep.subr.bf16.mxu0 %v22593_v37  ;;  %v5558_v46 = vpop.f32.mrb[18].mxu0  ;;  %9406 = vmatprep.mubr.f32.mxu1 %v2172_v38  ;;  %v305_v1 = vld [vmem:[%s23923_s5 + $0x148] sm:$0xff] }
 0x1a1   : > { %v5628_v47 = vpop.f32.mrb[18].mxu1  ;;  %22598 = vmatprep.subr.bf16.mxu1 %v22597_v39  ;;  %v5559_v51 = vadd.f32 %v5558_v46, %v5489_v35  ;;  %v5560_v52 = vpop.f32.mrb[19].mxu0  ;;  %v2221_v35 = vrot.slane %v2207_v24, %v23954_v25  ;;  %v555_v39 = vld [vmem:[%s23930_s11 + $0x518] sm:$0xff]  ;;  %v22617_v46 = vpack.c.bf16 %v1065_v34, %v553_v33  ;;  %v2241_v9 = vcombine.high %v305_v1, %v305_v1 }
 0x1a2   : > { %v5630_v53 = vpop.f32.mrb[19].mxu1  ;;  %v22621_v48 = vpack.c.bf16 %v1067_v40, %v555_v39  ;;  %v554_v52 = vld [vmem:[%s23930_s11 + $0x510] sm:$0xff]  ;;  %v2248_v14 = vrot.slane %v305_v1, %v23954_v25  ;;  %v1075_v24 = vld [vmem:[%s23930_s11 + $0x1558] sm:$0x3] }
 0x1a3   : > { %v5629_v59 = vadd.f32 %v5628_v47, %v5559_v51  ;;  %v2223_v47 = vcombine.high %v2221_v35, %v2221_v35  ;;  %v1064_v51 = vld [vmem:[%s23930_s11 + $0x1500] sm:$0x3]  ;;  %v1066_v53 = vld [vmem:[%s23930_s11 + $0x1510] sm:$0x3] }
 0x1a4   : > { %v22623_v3 = vpack.c.bf16 %v1066_v53, %v554_v52 }
 0x1a5   : > { %9337 = vmatmul.mubr.f32.vlgmr.msra.gmra.mrb[72].mxu0 %v2163_v20  ;;  %v2205_v20 = vcombine.high %v2197_v5, %v2197_v5 }
 0x1a6   : > { %9407 = vmatmul.mubr.f32.vlgmr.msra.gmra.mrb[72].mxu1 %v2170_v26  ;;  %22596 = vmatpush1.bf16.xpose.msra.mxu0 %v22595_v57  ;;  %v548_v26 = vld [vmem:[%s23930_s11 + $0x4e0] sm:$0xff]  ;;  %v557_v57 = vld [vmem:[%s23930_s11 + $0x528] sm:$0xff] }
 0x1a7   : > { %22600 = vmatpush1.bf16.xpose.msra.mxu1 %v22599_v58  ;;  %9476 = vmatprep.mubr.f32.mxu0 %v2188_v60  ;;  %v22611_v42 = vpack.c.bf16 %v1060_v27, %v548_v26  ;;  %v1069_v58 = vld [vmem:[%s23930_s11 + $0x1528] sm:$0x3]  ;;  %v306_v26 = vld [vmem:[%s23923_s5 + $0x150] sm:$0xff] }
 0x1a8   : > { %22602 = vmatprep.subr.bf16.mxu0 %v22601_v61  ;;  %v5698_v6 = vpop.f32.mrb[20].mxu0  ;;  %9546 = vmatprep.mubr.f32.mxu1 %v2189_v62  ;;  %v2258_v34 = vcombine.high %v306_v26, %v306_v26  ;;  %v2265_v39 = vrot.slane %v306_v26, %v23954_v25 }
 0x1a9   : > { %v5768_v7 = vpop.f32.mrb[20].mxu1  ;;  %22606 = vmatprep.subr.bf16.mxu1 %v22605_v63  ;;  %v5699_v11 = vadd.f32 %v5698_v6, %v5629_v59  ;;  %v5700_v12 = vpop.f32.mrb[21].mxu0  ;;  %v2238_v59 = vrot.slane %v2224_v49, %v23954_v25  ;;  %v559_v63 = vld [vmem:[%s23930_s11 + $0x538] sm:$0xff]  ;;  %v22625_v6 = vpack.c.bf16 %v1069_v58, %v557_v57 }
 0x1aa   : > { %v5770_v13 = vpop.f32.mrb[21].mxu1  ;;  %v22629_v8 = vpack.c.bf16 %v1071_v0, %v559_v63  ;;  %v558_v12 = vld [vmem:[%s23930_s11 + $0x530] sm:$0xff]  ;;  %v1079_v49 = vld [vmem:[%s23930_s11 + $0x1578] sm:$0x3] }
 0x1ab   : > { %v5769_v19 = vadd.f32 %v5768_v7, %v5699_v11  ;;  %v2240_v7 = vcombine.high %v2238_v59, %v2238_v59  ;;  %v1068_v11 = vld [vmem:[%s23930_s11 + $0x1520] sm:$0x3]  ;;  %v1070_v13 = vld [vmem:[%s23930_s11 + $0x1530] sm:$0x3] }
 0x1ac   : > { %v22631_v28 = vpack.c.bf16 %v1070_v13, %v558_v12 }
 0x1ad   : > { %9477 = vmatmul.mubr.f32.vlgmr.msra.gmra.mrb[74].mxu0 %v2180_v45  ;;  %v2222_v45 = vcombine.high %v2214_v30, %v2214_v30 }
 0x1ae   : > { %9547 = vmatmul.mubr.f32.vlgmr.msra.gmra.mrb[74].mxu1 %v2187_v50  ;;  %22604 = vmatpush1.bf16.xpose.msra.mxu0 %v22603_v17  ;;  %v552_v50 = vld [vmem:[%s23930_s11 + $0x500] sm:$0xff]  ;;  %v561_v17 = vld [vmem:[%s23930_s11 + $0x548] sm:$0xff] }
 0x1af   : > { %22608 = vmatpush1.bf16.xpose.msra.mxu1 %v22607_v18  ;;  %9616 = vmatprep.mubr.f32.mxu0 %v2205_v20  ;;  %v22619_v2 = vpack.c.bf16 %v1064_v51, %v552_v50  ;;  %v1073_v18 = vld [vmem:[%s23930_s11 + $0x1548] sm:$0x3]  ;;  %v307_v50 = vld [vmem:[%s23923_s5 + $0x158] sm:$0xff] }
 0x1b0   : > { %22610 = vmatprep.subr.bf16.mxu0 %v22609_v21  ;;  %v5838_v31 = vpop.f32.mrb[22].mxu0  ;;  %9686 = vmatprep.mubr.f32.mxu1 %v2206_v22  ;;  %v2275_v58 = vcombine.high %v307_v50, %v307_v50  ;;  %v2282_v63 = vrot.slane %v307_v50, %v23954_v25 }
 0x1b1   : > { %v5908_v32 = vpop.f32.mrb[22].mxu1  ;;  %22614 = vmatprep.subr.bf16.mxu1 %v22613_v23  ;;  %v5839_v36 = vadd.f32 %v5838_v31, %v5769_v19  ;;  %v5840_v37 = vpop.f32.mrb[23].mxu0  ;;  %v2255_v19 = vrot.slane %v2241_v9, %v23954_v25  ;;  %v563_v23 = vld [vmem:[%s23930_s11 + $0x558] sm:$0xff]  ;;  %v22633_v31 = vpack.c.bf16 %v1073_v18, %v561_v17 }
 0x1b2   : > { %v5910_v38 = vpop.f32.mrb[23].mxu1  ;;  %v22637_v33 = vpack.c.bf16 %v1075_v24, %v563_v23  ;;  %v562_v37 = vld [vmem:[%s23930_s11 + $0x550] sm:$0xff]  ;;  %v1083_v9 = vld [vmem:[%s23930_s11 + $0x1598] sm:$0x3] }
 0x1b3   : > { %v5909_v44 = vadd.f32 %v5908_v32, %v5839_v36  ;;  %v2257_v32 = vcombine.high %v2255_v19, %v2255_v19  ;;  %v1072_v36 = vld [vmem:[%s23930_s11 + $0x1540] sm:$0x3]  ;;  %v1074_v38 = vld [vmem:[%s23930_s11 + $0x1550] sm:$0x3] }
 0x1b4   : > { %v22639_v52 = vpack.c.bf16 %v1074_v38, %v562_v37 }
 0x1b5   : > { %9617 = vmatmul.mubr.f32.vlgmr.msra.gmra.mrb[76].mxu0 %v2197_v5  ;;  %v2239_v5 = vcombine.high %v2231_v54, %v2231_v54 }
 0x1b6   : > { %9687 = vmatmul.mubr.f32.vlgmr.msra.gmra.mrb[76].mxu1 %v2204_v10  ;;  %22612 = vmatpush1.bf16.xpose.msra.mxu0 %v22611_v42  ;;  %v556_v10 = vld [vmem:[%s23930_s11 + $0x520] sm:$0xff]  ;;  %v565_v42 = vld [vmem:[%s23930_s11 + $0x568] sm:$0xff] }
 0x1b7   : > { %22616 = vmatpush1.bf16.xpose.msra.mxu1 %v22615_v43  ;;  %9756 = vmatprep.mubr.f32.mxu0 %v2222_v45  ;;  %v22627_v27 = vpack.c.bf16 %v1068_v11, %v556_v10  ;;  %v1077_v43 = vld [vmem:[%s23930_s11 + $0x1568] sm:$0x3]  ;;  %v308_v10 = vld [vmem:[%s23923_s5 + $0x160] sm:$0xff] }
 0x1b8   : > { %22618 = vmatprep.subr.bf16.mxu0 %v22617_v46  ;;  %v5978_v55 = vpop.f32.mrb[24].mxu0  ;;  %9826 = vmatprep.mubr.f32.mxu1 %v2223_v47  ;;  %v2292_v18 = vcombine.high %v308_v10, %v308_v10  ;;  %v2299_v23 = vrot.slane %v308_v10, %v23954_v25 }
 0x1b9   : > { %v6048_v56 = vpop.f32.mrb[24].mxu1  ;;  %22622 = vmatprep.subr.bf16.mxu1 %v22621_v48  ;;  %v5979_v60 = vadd.f32 %v5978_v55, %v5909_v44  ;;  %v5980_v61 = vpop.f32.mrb[25].mxu0  ;;  %v2272_v44 = vrot.slane %v2258_v34, %v23954_v25  ;;  %v567_v48 = vld [vmem:[%s23930_s11 + $0x578] sm:$0xff]  ;;  %v22641_v55 = vpack.c.bf16 %v1077_v43, %v565_v42 }
 0x1ba   : > { %v6050_v62 = vpop.f32.mrb[25].mxu1  ;;  %v22645_v57 = vpack.c.bf16 %v1079_v49, %v567_v48  ;;  %v566_v61 = vld [vmem:[%s23930_s11 + $0x570] sm:$0xff]  ;;  %v1087_v34 = vld [vmem:[%s23930_s11 + $0x15b8] sm:$0x3] }
 0x1bb   : > { %v6049_v4 = vadd.f32 %v6048_v56, %v5979_v60  ;;  %v2274_v56 = vcombine.high %v2272_v44, %v2272_v44  ;;  %v1076_v60 = vld [vmem:[%s23930_s11 + $0x1560] sm:$0x3]  ;;  %v1078_v62 = vld [vmem:[%s23930_s11 + $0x1570] sm:$0x3] }
 0x1bc   : > { %v22647_v12 = vpack.c.bf16 %v1078_v62, %v566_v61 }
 0x1bd   : > { %9757 = vmatmul.mubr.f32.vlgmr.msra.gmra.mrb[78].mxu0 %v2214_v30  ;;  %v2256_v30 = vcombine.high %v2248_v14, %v2248_v14 }
 0x1be   : > { %9827 = vmatmul.mubr.f32.vlgmr.msra.gmra.mrb[78].mxu1 %v2221_v35  ;;  %22620 = vmatpush1.bf16.xpose.msra.mxu0 %v22619_v2  ;;  %v560_v35 = vld [vmem:[%s23930_s11 + $0x540] sm:$0xff]  ;;  %v569_v2 = vld [vmem:[%s23930_s11 + $0x588] sm:$0xff] }
 0x1bf   : > { %22624 = vmatpush1.bf16.xpose.msra.mxu1 %v22623_v3  ;;  %9896 = vmatprep.mubr.f32.mxu0 %v2239_v5  ;;  %v22635_v51 = vpack.c.bf16 %v1072_v36, %v560_v35  ;;  %v1081_v3 = vld [vmem:[%s23930_s11 + $0x1588] sm:$0x3] }
 0x1c0   : > { %22626 = vmatprep.subr.bf16.mxu0 %v22625_v6  ;;  %v6118_v15 = vpop.f32.mrb[26].mxu0  ;;  %9966 = vmatprep.mubr.f32.mxu1 %v2240_v7  ;;  %v309_v35 = vld [vmem:[%s23923_s5 + $0x168] sm:$0xff] }
 0x1c1   : > { %v6188_v16 = vpop.f32.mrb[26].mxu1  ;;  %22630 = vmatprep.subr.bf16.mxu1 %v22629_v8  ;;  %v6119_v20 = vadd.f32 %v6118_v15, %v6049_v4  ;;  %v6120_v21 = vpop.f32.mrb[27].mxu0  ;;  %v2289_v4 = vrot.slane %v2275_v58, %v23954_v25  ;;  %v571_v8 = vld [vmem:[%s23930_s11 + $0x598] sm:$0xff]  ;;  %v22649_v15 = vpack.c.bf16 %v1081_v3, %v569_v2  ;;  %v2309_v43 = vcombine.high %v309_v35, %v309_v35 }
 0x1c2   : > { %v6190_v22 = vpop.f32.mrb[27].mxu1  ;;  %v22653_v17 = vpack.c.bf16 %v1083_v9, %v571_v8  ;;  %v570_v21 = vld [vmem:[%s23930_s11 + $0x590] sm:$0xff]  ;;  %v2316_v48 = vrot.slane %v309_v35, %v23954_v25  ;;  %v1091_v58 = vld [vmem:[%s23930_s11 + $0x15d8] sm:$0x3] }
 0x1c3   : > { %v6189_v29 = vadd.f32 %v6188_v16, %v6119_v20  ;;  %v2291_v16 = vcombine.high %v2289_v4, %v2289_v4  ;;  %v1080_v20 = vld [vmem:[%s23930_s11 + $0x1580] sm:$0x3]  ;;  %v1082_v22 = vld [vmem:[%s23930_s11 + $0x1590] sm:$0x3] }
 0x1c4   : > { %v22655_v37 = vpack.c.bf16 %v1082_v22, %v570_v21 }
 0x1c5   : > { %9897 = vmatmul.mubr.f32.vlgmr.msra.gmra.mrb[80].mxu0 %v2231_v54  ;;  %v2273_v54 = vcombine.high %v2265_v39, %v2265_v39 }
 0x1c6   : > { %9967 = vmatmul.mubr.f32.vlgmr.msra.gmra.mrb[80].mxu1 %v2238_v59  ;;  %22628 = vmatpush1.bf16.xpose.msra.mxu0 %v22627_v27  ;;  %v564_v59 = vld [vmem:[%s23930_s11 + $0x560] sm:$0xff]  ;;  %v573_v27 = vld [vmem:[%s23930_s11 + $0x5a8] sm:$0xff] }
 0x1c7   : > { %22632 = vmatpush1.bf16.xpose.msra.mxu1 %v22631_v28  ;;  %10036 = vmatprep.mubr.f32.mxu0 %v2256_v30  ;;  %v22643_v11 = vpack.c.bf16 %v1076_v60, %v564_v59  ;;  %v1085_v28 = vld [vmem:[%s23930_s11 + $0x15a8] sm:$0x3]  ;;  %v310_v59 = vld [vmem:[%s23923_s5 + $0x170] sm:$0xff] }
 0x1c8   : > { %22634 = vmatprep.subr.bf16.mxu0 %v22633_v31  ;;  %v6258_v40 = vpop.f32.mrb[28].mxu0  ;;  %10106 = vmatprep.mubr.f32.mxu1 %v2257_v32  ;;  %v2326_v3 = vcombine.high %v310_v59, %v310_v59  ;;  %v2333_v8 = vrot.slane %v310_v59, %v23954_v25 }
 0x1c9   : > { %v6328_v41 = vpop.f32.mrb[28].mxu1  ;;  %22638 = vmatprep.subr.bf16.mxu1 %v22637_v33  ;;  %v6259_v45 = vadd.f32 %v6258_v40, %v6189_v29  ;;  %v6260_v46 = vpop.f32.mrb[29].mxu0  ;;  %v2306_v29 = vrot.slane %v2292_v18, %v23954_v25  ;;  %v575_v33 = vld [vmem:[%s23930_s11 + $0x5b8] sm:$0xff]  ;;  %v22657_v40 = vpack.c.bf16 %v1085_v28, %v573_v27 }
 0x1ca   : > { %v6330_v47 = vpop.f32.mrb[29].mxu1  ;;  %v22661_v42 = vpack.c.bf16 %v1087_v34, %v575_v33  ;;  %v574_v46 = vld [vmem:[%s23930_s11 + $0x5b0] sm:$0xff]  ;;  %v1095_v18 = vld [vmem:[%s23930_s11 + $0x15f8] sm:$0x3] }
 0x1cb   : > { %v6329_v53 = vadd.f32 %v6328_v41, %v6259_v45  ;;  %v2308_v41 = vcombine.high %v2306_v29, %v2306_v29  ;;  %v1084_v45 = vld [vmem:[%s23930_s11 + $0x15a0] sm:$0x3]  ;;  %v1086_v47 = vld [vmem:[%s23930_s11 + $0x15b0] sm:$0x3] }
 0x1cc   : > { %v22663_v61 = vpack.c.bf16 %v1086_v47, %v574_v46 }
 0x1cd   : > { %10037 = vmatmul.mubr.f32.vlgmr.msra.gmra.mrb[82].mxu0 %v2248_v14  ;;  %v2290_v14 = vcombine.high %v2282_v63, %v2282_v63 }
 0x1ce   : > { %10107 = vmatmul.mubr.f32.vlgmr.msra.gmra.mrb[82].mxu1 %v2255_v19  ;;  %22636 = vmatpush1.bf16.xpose.msra.mxu0 %v22635_v51  ;;  %v568_v19 = vld [vmem:[%s23930_s11 + $0x580] sm:$0xff]  ;;  %v577_v51 = vld [vmem:[%s23930_s11 + $0x5c8] sm:$0xff] }
 0x1cf   : > { %22640 = vmatpush1.bf16.xpose.msra.mxu1 %v22639_v52  ;;  %10176 = vmatprep.mubr.f32.mxu0 %v2273_v54  ;;  %v22651_v36 = vpack.c.bf16 %v1080_v20, %v568_v19  ;;  %v1089_v52 = vld [vmem:[%s23930_s11 + $0x15c8] sm:$0x3]  ;;  %v311_v19 = vld [vmem:[%s23923_s5 + $0x178] sm:$0xff] }
 0x1d0   : > { %22642 = vmatprep.subr.bf16.mxu0 %v22641_v55  ;;  %v6398_v0 = vpop.f32.mrb[30].mxu0  ;;  %10246 = vmatprep.mubr.f32.mxu1 %v2274_v56  ;;  %v2343_v28 = vcombine.high %v311_v19, %v311_v19  ;;  %v2350_v33 = vrot.slane %v311_v19, %v23954_v25 }
 0x1d1   : > { %v6468_v1 = vpop.f32.mrb[30].mxu1  ;;  %22646 = vmatprep.subr.bf16.mxu1 %v22645_v57  ;;  %v6399_v5 = vadd.f32 %v6398_v0, %v6329_v53  ;;  %v6400_v6 = vpop.f32.mrb[31].mxu0  ;;  %v2323_v53 = vrot.slane %v2309_v43, %v23954_v25  ;;  %v579_v57 = vld [vmem:[%s23930_s11 + $0x5d8] sm:$0xff]  ;;  %v22665_v0 = vpack.c.bf16 %v1089_v52, %v577_v51 }
 0x1d2   : > { %v6470_v7 = vpop.f32.mrb[31].mxu1  ;;  %v22669_v2 = vpack.c.bf16 %v1091_v58, %v579_v57  ;;  %v578_v6 = vld [vmem:[%s23930_s11 + $0x5d0] sm:$0xff]  ;;  %v1099_v43 = vld [vmem:[%s23930_s11 + $0x1618] sm:$0x3] }
 0x1d3   : > { %v6469_v13 = vadd.f32 %v6468_v1, %v6399_v5  ;;  %v2325_v1 = vcombine.high %v2323_v53, %v2323_v53  ;;  %v1088_v5 = vld [vmem:[%s23930_s11 + $0x15c0] sm:$0x3]  ;;  %v1090_v7 = vld [vmem:[%s23930_s11 + $0x15d0] sm:$0x3] }
 0x1d4   : > { %v22671_v21 = vpack.c.bf16 %v1090_v7, %v578_v6 }
 0x1d5   : > { %10177 = vmatmul.mubr.f32.vlgmr.msra.gmra.mrb[84].mxu0 %v2265_v39  ;;  %v2307_v39 = vcombine.high %v2299_v23, %v2299_v23 }
 0x1d6   : > { %10247 = vmatmul.mubr.f32.vlgmr.msra.gmra.mrb[84].mxu1 %v2272_v44  ;;  %22644 = vmatpush1.bf16.xpose.msra.mxu0 %v22643_v11  ;;  %v572_v44 = vld [vmem:[%s23930_s11 + $0x5a0] sm:$0xff]  ;;  %v581_v11 = vld [vmem:[%s23930_s11 + $0x5e8] sm:$0xff] }
 0x1d7   : > { %22648 = vmatpush1.bf16.xpose.msra.mxu1 %v22647_v12  ;;  %10316 = vmatprep.mubr.f32.mxu0 %v2290_v14  ;;  %v22659_v60 = vpack.c.bf16 %v1084_v45, %v572_v44  ;;  %v1093_v12 = vld [vmem:[%s23930_s11 + $0x15e8] sm:$0x3]  ;;  %v312_v44 = vld [vmem:[%s23923_s5 + $0x180] sm:$0xff] }
 0x1d8   : > { %22650 = vmatprep.subr.bf16.mxu0 %v22649_v15  ;;  %v6538_v24 = vpop.f32.mrb[32].mxu0  ;;  %10386 = vmatprep.mubr.f32.mxu1 %v2291_v16  ;;  %v2360_v52 = vcombine.high %v312_v44, %v312_v44  ;;  %v2367_v57 = vrot.slane %v312_v44, %v23954_v25 }
 0x1d9   : > { %v6608_v26 = vpop.f32.mrb[32].mxu1  ;;  %22654 = vmatprep.subr.bf16.mxu1 %v22653_v17  ;;  %v6539_v30 = vadd.f32 %v6538_v24, %v6469_v13  ;;  %v6540_v31 = vpop.f32.mrb[33].mxu0  ;;  %v2340_v13 = vrot.slane %v2326_v3, %v23954_v25  ;;  %v583_v17 = vld [vmem:[%s23930_s11 + $0x5f8] sm:$0xff]  ;;  %v22673_v24 = vpack.c.bf16 %v1093_v12, %v581_v11 }
 0x1da   : > { %v6610_v32 = vpop.f32.mrb[33].mxu1  ;;  %v22677_v27 = vpack.c.bf16 %v1095_v18, %v583_v17  ;;  %v582_v31 = vld [vmem:[%s23930_s11 + $0x5f0] sm:$0xff]  ;;  %v1103_v3 = vld [vmem:[%s23930_s11 + $0x1638] sm:$0x3] }
 0x1db   : > { %v6609_v38 = vadd.f32 %v6608_v26, %v6539_v30  ;;  %v2342_v26 = vcombine.high %v2340_v13, %v2340_v13  ;;  %v1092_v30 = vld [vmem:[%s23930_s11 + $0x15e0] sm:$0x3]  ;;  %v1094_v32 = vld [vmem:[%s23930_s11 + $0x15f0] sm:$0x3] }
 0x1dc   : > { %v22679_v46 = vpack.c.bf16 %v1094_v32, %v582_v31 }
 0x1dd   : > { %10317 = vmatmul.mubr.f32.vlgmr.msra.gmra.mrb[86].mxu0 %v2282_v63  ;;  %v2324_v63 = vcombine.high %v2316_v48, %v2316_v48 }
 0x1de   : > { %10387 = vmatmul.mubr.f32.vlgmr.msra.gmra.mrb[86].mxu1 %v2289_v4  ;;  %22652 = vmatpush1.bf16.xpose.msra.mxu0 %v22651_v36  ;;  %v576_v4 = vld [vmem:[%s23930_s11 + $0x5c0] sm:$0xff]  ;;  %v585_v36 = vld [vmem:[%s23930_s11 + $0x608] sm:$0xff] }
 0x1df   : > { %22656 = vmatpush1.bf16.xpose.msra.mxu1 %v22655_v37  ;;  %10456 = vmatprep.mubr.f32.mxu0 %v2307_v39  ;;  %v22667_v20 = vpack.c.bf16 %v1088_v5, %v576_v4  ;;  %v1097_v37 = vld [vmem:[%s23930_s11 + $0x1608] sm:$0x3] }
 0x1e0   : > { %22658 = vmatprep.subr.bf16.mxu0 %v22657_v40  ;;  %v6678_v49 = vpop.f32.mrb[34].mxu0  ;;  %10526 = vmatprep.mubr.f32.mxu1 %v2308_v41  ;;  %v313_v4 = vld [vmem:[%s23923_s5 + $0x188] sm:$0xff] }
 0x1e1   : > { %v6748_v50 = vpop.f32.mrb[34].mxu1  ;;  %22662 = vmatprep.subr.bf16.mxu1 %v22661_v42  ;;  %v6679_v54 = vadd.f32 %v6678_v49, %v6609_v38  ;;  %v6680_v55 = vpop.f32.mrb[35].mxu0  ;;  %v2357_v38 = vrot.slane %v2343_v28, %v23954_v25  ;;  %v587_v42 = vld [vmem:[%s23930_s11 + $0x618] sm:$0xff]  ;;  %v22681_v49 = vpack.c.bf16 %v1097_v37, %v585_v36  ;;  %v2377_v12 = vcombine.high %v313_v4, %v313_v4 }
 0x1e2   : > { %v6750_v56 = vpop.f32.mrb[35].mxu1  ;;  %v22685_v51 = vpack.c.bf16 %v1099_v43, %v587_v42  ;;  %v586_v55 = vld [vmem:[%s23930_s11 + $0x610] sm:$0xff]  ;;  %v2384_v17 = vrot.slane %v313_v4, %v23954_v25  ;;  %v1107_v28 = vld [vmem:[%s23930_s11 + $0x1658] sm:$0x3] }
 0x1e3   : > { %v6749_v62 = vadd.f32 %v6748_v50, %v6679_v54  ;;  %v2359_v50 = vcombine.high %v2357_v38, %v2357_v38  ;;  %v1096_v54 = vld [vmem:[%s23930_s11 + $0x1600] sm:$0x3]  ;;  %v1098_v56 = vld [vmem:[%s23930_s11 + $0x1610] sm:$0x3] }
 0x1e4   : > { %v22687_v6 = vpack.c.bf16 %v1098_v56, %v586_v55 }
 0x1e5   : > { %10457 = vmatmul.mubr.f32.vlgmr.msra.gmra.mrb[88].mxu0 %v2299_v23  ;;  %v2341_v23 = vcombine.high %v2333_v8, %v2333_v8 }
 0x1e6   : > { %10527 = vmatmul.mubr.f32.vlgmr.msra.gmra.mrb[88].mxu1 %v2306_v29  ;;  %22660 = vmatpush1.bf16.xpose.msra.mxu0 %v22659_v60  ;;  %v580_v29 = vld [vmem:[%s23930_s11 + $0x5e0] sm:$0xff]  ;;  %v589_v60 = vld [vmem:[%s23930_s11 + $0x628] sm:$0xff] }
 0x1e7   : > { %22664 = vmatpush1.bf16.xpose.msra.mxu1 %v22663_v61  ;;  %10596 = vmatprep.mubr.f32.mxu0 %v2324_v63  ;;  %v22675_v45 = vpack.c.bf16 %v1092_v30, %v580_v29  ;;  %v1101_v61 = vld [vmem:[%s23930_s11 + $0x1628] sm:$0x3]  ;;  %v314_v29 = vld [vmem:[%s23923_s5 + $0x190] sm:$0xff] }
 0x1e8   : > { %22666 = vmatprep.subr.bf16.mxu0 %v22665_v0  ;;  %v6818_v9 = vpop.f32.mrb[36].mxu0  ;;  %10666 = vmatprep.mubr.f32.mxu1 %v2325_v1  ;;  %v2394_v37 = vcombine.high %v314_v29, %v314_v29  ;;  %v2401_v42 = vrot.slane %v314_v29, %v23954_v25 }
 0x1e9   : > { %v6888_v10 = vpop.f32.mrb[36].mxu1  ;;  %22670 = vmatprep.subr.bf16.mxu1 %v22669_v2  ;;  %v6819_v14 = vadd.f32 %v6818_v9, %v6749_v62  ;;  %v6820_v15 = vpop.f32.mrb[37].mxu0  ;;  %v2374_v62 = vrot.slane %v2360_v52, %v23954_v25  ;;  %v591_v2 = vld [vmem:[%s23930_s11 + $0x638] sm:$0xff]  ;;  %v22689_v9 = vpack.c.bf16 %v1101_v61, %v589_v60 }
 0x1ea   : > { %v6890_v16 = vpop.f32.mrb[37].mxu1  ;;  %v22693_v11 = vpack.c.bf16 %v1103_v3, %v591_v2  ;;  %v590_v15 = vld [vmem:[%s23930_s11 + $0x630] sm:$0xff]  ;;  %v1111_v52 = vld [vmem:[%s23930_s11 + $0x1678] sm:$0x3] }
 0x1eb   : > { %v6889_v22 = vadd.f32 %v6888_v10, %v6819_v14  ;;  %v2376_v10 = vcombine.high %v2374_v62, %v2374_v62  ;;  %v1100_v14 = vld [vmem:[%s23930_s11 + $0x1620] sm:$0x3]  ;;  %v1102_v16 = vld [vmem:[%s23930_s11 + $0x1630] sm:$0x3] }
 0x1ec   : > { %v22695_v31 = vpack.c.bf16 %v1102_v16, %v590_v15 }
 0x1ed   : > { %10597 = vmatmul.mubr.f32.vlgmr.msra.gmra.mrb[90].mxu0 %v2316_v48  ;;  %v2358_v48 = vcombine.high %v2350_v33, %v2350_v33 }
 0x1ee   : > { %10667 = vmatmul.mubr.f32.vlgmr.msra.gmra.mrb[90].mxu1 %v2323_v53  ;;  %22668 = vmatpush1.bf16.xpose.msra.mxu0 %v22667_v20  ;;  %v584_v53 = vld [vmem:[%s23930_s11 + $0x600] sm:$0xff]  ;;  %v593_v20 = vld [vmem:[%s23930_s11 + $0x648] sm:$0xff] }
 0x1ef   : > { %22672 = vmatpush1.bf16.xpose.msra.mxu1 %v22671_v21  ;;  %10736 = vmatprep.mubr.f32.mxu0 %v2341_v23  ;;  %v22683_v5 = vpack.c.bf16 %v1096_v54, %v584_v53  ;;  %v1105_v21 = vld [vmem:[%s23930_s11 + $0x1648] sm:$0x3]  ;;  %v315_v53 = vld [vmem:[%s23923_s5 + $0x198] sm:$0xff] }
 0x1f0   : > { %22674 = vmatprep.subr.bf16.mxu0 %v22673_v24  ;;  %v6958_v34 = vpop.f32.mrb[38].mxu0  ;;  %10806 = vmatprep.mubr.f32.mxu1 %v2342_v26  ;;  %v2411_v61 = vcombine.high %v315_v53, %v315_v53  ;;  %v2418_v2 = vrot.slane %v315_v53, %v23954_v25 }
 0x1f1   : > { %v7028_v35 = vpop.f32.mrb[38].mxu1  ;;  %22678 = vmatprep.subr.bf16.mxu1 %v22677_v27  ;;  %v6959_v39 = vadd.f32 %v6958_v34, %v6889_v22  ;;  %v6960_v40 = vpop.f32.mrb[39].mxu0  ;;  %v2391_v22 = vrot.slane %v2377_v12, %v23954_v25  ;;  %v595_v27 = vld [vmem:[%s23930_s11 + $0x658] sm:$0xff]  ;;  %v22697_v34 = vpack.c.bf16 %v1105_v21, %v593_v20 }
 0x1f2   : > { %v7030_v41 = vpop.f32.mrb[39].mxu1  ;;  %v22701_v36 = vpack.c.bf16 %v1107_v28, %v595_v27  ;;  %v594_v40 = vld [vmem:[%s23930_s11 + $0x650] sm:$0xff]  ;;  %v1115_v12 = vld [vmem:[%s23930_s11 + $0x1698] sm:$0x3] }
 0x1f3   : > { %v7029_v47 = vadd.f32 %v7028_v35, %v6959_v39  ;;  %v2393_v35 = vcombine.high %v2391_v22, %v2391_v22  ;;  %v1104_v39 = vld [vmem:[%s23930_s11 + $0x1640] sm:$0x3]  ;;  %v1106_v41 = vld [vmem:[%s23930_s11 + $0x1650] sm:$0x3] }
 0x1f4   : > { %v22703_v55 = vpack.c.bf16 %v1106_v41, %v594_v40 }
 0x1f5   : > { %10737 = vmatmul.mubr.f32.vlgmr.msra.gmra.mrb[92].mxu0 %v2333_v8  ;;  %v2375_v8 = vcombine.high %v2367_v57, %v2367_v57 }
 0x1f6   : > { %10807 = vmatmul.mubr.f32.vlgmr.msra.gmra.mrb[92].mxu1 %v2340_v13  ;;  %22676 = vmatpush1.bf16.xpose.msra.mxu0 %v22675_v45  ;;  %v588_v13 = vld [vmem:[%s23930_s11 + $0x620] sm:$0xff]  ;;  %v597_v45 = vld [vmem:[%s23930_s11 + $0x668] sm:$0xff] }
 0x1f7   : > { %22680 = vmatpush1.bf16.xpose.msra.mxu1 %v22679_v46  ;;  %10876 = vmatprep.mubr.f32.mxu0 %v2358_v48  ;;  %v22691_v30 = vpack.c.bf16 %v1100_v14, %v588_v13  ;;  %v1109_v46 = vld [vmem:[%s23930_s11 + $0x1668] sm:$0x3]  ;;  %v316_v13 = vld [vmem:[%s23923_s5 + $0x1a0] sm:$0xff] }
 0x1f8   : > { %22682 = vmatprep.subr.bf16.mxu0 %v22681_v49  ;;  %v7098_v58 = vpop.f32.mrb[40].mxu0  ;;  %10946 = vmatprep.mubr.f32.mxu1 %v2359_v50  ;;  %v2428_v21 = vcombine.high %v316_v13, %v316_v13  ;;  %v2435_v27 = vrot.slane %v316_v13, %v23954_v25 }
 0x1f9   : > { %v7168_v59 = vpop.f32.mrb[40].mxu1  ;;  %22686 = vmatprep.subr.bf16.mxu1 %v22685_v51  ;;  %v7099_v63 = vadd.f32 %v7098_v58, %v7029_v47  ;;  %v7100_v0 = vpop.f32.mrb[41].mxu0  ;;  %v2408_v47 = vrot.slane %v2394_v37, %v23954_v25  ;;  %v599_v51 = vld [vmem:[%s23930_s11 + $0x678] sm:$0xff]  ;;  %v22705_v58 = vpack.c.bf16 %v1109_v46, %v597_v45 }
 0x1fa   : > { %v7170_v1 = vpop.f32.mrb[41].mxu1  ;;  %v22709_v60 = vpack.c.bf16 %v1111_v52, %v599_v51  ;;  %v598_v0 = vld [vmem:[%s23930_s11 + $0x670] sm:$0xff]  ;;  %v1119_v37 = vld [vmem:[%s23930_s11 + $0x16b8] sm:$0x3] }
 0x1fb   : > { %v7169_v7 = vadd.f32 %v7168_v59, %v7099_v63  ;;  %v2410_v59 = vcombine.high %v2408_v47, %v2408_v47  ;;  %v1108_v63 = vld [vmem:[%s23930_s11 + $0x1660] sm:$0x3]  ;;  %v1110_v1 = vld [vmem:[%s23930_s11 + $0x1670] sm:$0x3] }
 0x1fc   : > { %v22711_v15 = vpack.c.bf16 %v1110_v1, %v598_v0 }
 0x1fd   : > { %10877 = vmatmul.mubr.f32.vlgmr.msra.gmra.mrb[94].mxu0 %v2350_v33  ;;  %v2392_v33 = vcombine.high %v2384_v17, %v2384_v17 }
 0x1fe   : > { %10947 = vmatmul.mubr.f32.vlgmr.msra.gmra.mrb[94].mxu1 %v2357_v38  ;;  %22684 = vmatpush1.bf16.xpose.msra.mxu0 %v22683_v5  ;;  %v592_v38 = vld [vmem:[%s23930_s11 + $0x640] sm:$0xff]  ;;  %v601_v5 = vld [vmem:[%s23930_s11 + $0x688] sm:$0xff] }
 0x1ff   : > { %22688 = vmatpush1.bf16.xpose.msra.mxu1 %v22687_v6  ;;  %11016 = vmatprep.mubr.f32.mxu0 %v2375_v8  ;;  %v22699_v54 = vpack.c.bf16 %v1104_v39, %v592_v38  ;;  %v1113_v6 = vld [vmem:[%s23930_s11 + $0x1688] sm:$0x3] }
 0x200   : > { %22690 = vmatprep.subr.bf16.mxu0 %v22689_v9  ;;  %v7238_v18 = vpop.f32.mrb[42].mxu0  ;;  %11086 = vmatprep.mubr.f32.mxu1 %v2376_v10  ;;  %v317_v38 = vld [vmem:[%s23923_s5 + $0x1a8] sm:$0xff] }
 0x201   : > { %v7308_v19 = vpop.f32.mrb[42].mxu1  ;;  %22694 = vmatprep.subr.bf16.mxu1 %v22693_v11  ;;  %v7239_v23 = vadd.f32 %v7238_v18, %v7169_v7  ;;  %v7240_v24 = vpop.f32.mrb[43].mxu0  ;;  %v2425_v7 = vrot.slane %v2411_v61, %v23954_v25  ;;  %v603_v11 = vld [vmem:[%s23930_s11 + $0x698] sm:$0xff]  ;;  %v22713_v18 = vpack.c.bf16 %v1113_v6, %v601_v5  ;;  %v2445_v46 = vcombine.high %v317_v38, %v317_v38 }
 0x202   : > { %v7310_v26 = vpop.f32.mrb[43].mxu1  ;;  %v22717_v20 = vpack.c.bf16 %v1115_v12, %v603_v11  ;;  %v602_v24 = vld [vmem:[%s23930_s11 + $0x690] sm:$0xff]  ;;  %v2452_v51 = vrot.slane %v317_v38, %v23954_v25  ;;  %v1123_v61 = vld [vmem:[%s23930_s11 + $0x16d8] sm:$0x3] }
 0x203   : > { %v7309_v32 = vadd.f32 %v7308_v19, %v7239_v23  ;;  %v2427_v19 = vcombine.high %v2425_v7, %v2425_v7  ;;  %v1112_v23 = vld [vmem:[%s23930_s11 + $0x1680] sm:$0x3]  ;;  %v1114_v26 = vld [vmem:[%s23930_s11 + $0x1690] sm:$0x3] }
 0x204   : > { %v22719_v40 = vpack.c.bf16 %v1114_v26, %v602_v24 }
 0x205   : > { %11017 = vmatmul.mubr.f32.vlgmr.msra.gmra.mrb[96].mxu0 %v2367_v57  ;;  %v2409_v57 = vcombine.high %v2401_v42, %v2401_v42 }
 0x206   : > { %11087 = vmatmul.mubr.f32.vlgmr.msra.gmra.mrb[96].mxu1 %v2374_v62  ;;  %22692 = vmatpush1.bf16.xpose.msra.mxu0 %v22691_v30  ;;  %v596_v62 = vld [vmem:[%s23930_s11 + $0x660] sm:$0xff]  ;;  %v605_v30 = vld [vmem:[%s23930_s11 + $0x6a8] sm:$0xff] }
 0x207   : > { %22696 = vmatpush1.bf16.xpose.msra.mxu1 %v22695_v31  ;;  %11156 = vmatprep.mubr.f32.mxu0 %v2392_v33  ;;  %v22707_v14 = vpack.c.bf16 %v1108_v63, %v596_v62  ;;  %v1117_v31 = vld [vmem:[%s23930_s11 + $0x16a8] sm:$0x3]  ;;  %v318_v62 = vld [vmem:[%s23923_s5 + $0x1b0] sm:$0xff] }
 0x208   : > { %22698 = vmatprep.subr.bf16.mxu0 %v22697_v34  ;;  %v7378_v43 = vpop.f32.mrb[44].mxu0  ;;  %11226 = vmatprep.mubr.f32.mxu1 %v2393_v35  ;;  %v2462_v6 = vcombine.high %v318_v62, %v318_v62  ;;  %v2469_v11 = vrot.slane %v318_v62, %v23954_v25 }
 0x209   : > { %v7448_v44 = vpop.f32.mrb[44].mxu1  ;;  %22702 = vmatprep.subr.bf16.mxu1 %v22701_v36  ;;  %v7379_v48 = vadd.f32 %v7378_v43, %v7309_v32  ;;  %v7380_v49 = vpop.f32.mrb[45].mxu0  ;;  %v2442_v32 = vrot.slane %v2428_v21, %v23954_v25  ;;  %v607_v36 = vld [vmem:[%s23930_s11 + $0x6b8] sm:$0xff]  ;;  %v22721_v43 = vpack.c.bf16 %v1117_v31, %v605_v30 }
 0x20a   : > { %v7450_v50 = vpop.f32.mrb[45].mxu1  ;;  %v22725_v45 = vpack.c.bf16 %v1119_v37, %v607_v36  ;;  %v606_v49 = vld [vmem:[%s23930_s11 + $0x6b0] sm:$0xff]  ;;  %v1127_v21 = vld [vmem:[%s23930_s11 + $0x16f8] sm:$0x3] }
 0x20b   : > { %v7449_v56 = vadd.f32 %v7448_v44, %v7379_v48  ;;  %v2444_v44 = vcombine.high %v2442_v32, %v2442_v32  ;;  %v1116_v48 = vld [vmem:[%s23930_s11 + $0x16a0] sm:$0x3]  ;;  %v1118_v50 = vld [vmem:[%s23930_s11 + $0x16b0] sm:$0x3] }
 0x20c   : > { %v22727_v0 = vpack.c.bf16 %v1118_v50, %v606_v49 }
 0x20d   : > { %11157 = vmatmul.mubr.f32.vlgmr.msra.gmra.mrb[98].mxu0 %v2384_v17  ;;  %v2426_v17 = vcombine.high %v2418_v2, %v2418_v2 }
 0x20e   : > { %11227 = vmatmul.mubr.f32.vlgmr.msra.gmra.mrb[98].mxu1 %v2391_v22  ;;  %22700 = vmatpush1.bf16.xpose.msra.mxu0 %v22699_v54  ;;  %v600_v22 = vld [vmem:[%s23930_s11 + $0x680] sm:$0xff]  ;;  %v609_v54 = vld [vmem:[%s23930_s11 + $0x6c8] sm:$0xff] }
 0x20f   : > { %22704 = vmatpush1.bf16.xpose.msra.mxu1 %v22703_v55  ;;  %11296 = vmatprep.mubr.f32.mxu0 %v2409_v57  ;;  %v22715_v39 = vpack.c.bf16 %v1112_v23, %v600_v22  ;;  %v1121_v55 = vld [vmem:[%s23930_s11 + $0x16c8] sm:$0x3]  ;;  %v319_v22 = vld [vmem:[%s23923_s5 + $0x1b8] sm:$0xff] }
 0x210   : > { %22706 = vmatprep.subr.bf16.mxu0 %v22705_v58  ;;  %v7518_v3 = vpop.f32.mrb[46].mxu0  ;;  %11366 = vmatprep.mubr.f32.mxu1 %v2410_v59  ;;  %v2479_v31 = vcombine.high %v319_v22, %v319_v22  ;;  %v2486_v36 = vrot.slane %v319_v22, %v23954_v25 }
 0x211   : > { %v7588_v4 = vpop.f32.mrb[46].mxu1  ;;  %22710 = vmatprep.subr.bf16.mxu1 %v22709_v60  ;;  %v7519_v8 = vadd.f32 %v7518_v3, %v7449_v56  ;;  %v7520_v9 = vpop.f32.mrb[47].mxu0  ;;  %v2459_v56 = vrot.slane %v2445_v46, %v23954_v25  ;;  %v611_v60 = vld [vmem:[%s23930_s11 + $0x6d8] sm:$0xff]  ;;  %v22729_v3 = vpack.c.bf16 %v1121_v55, %v609_v54 }
 0x212   : > { %v7590_v10 = vpop.f32.mrb[47].mxu1  ;;  %v22733_v5 = vpack.c.bf16 %v1123_v61, %v611_v60  ;;  %v610_v9 = vld [vmem:[%s23930_s11 + $0x6d0] sm:$0xff]  ;;  %v1131_v46 = vld [vmem:[%s23930_s11 + $0x1718] sm:$0x3] }
 0x213   : > { %v7589_v16 = vadd.f32 %v7588_v4, %v7519_v8  ;;  %v2461_v4 = vcombine.high %v2459_v56, %v2459_v56  ;;  %v1120_v8 = vld [vmem:[%s23930_s11 + $0x16c0] sm:$0x3]  ;;  %v1122_v10 = vld [vmem:[%s23930_s11 + $0x16d0] sm:$0x3] }
 0x214   : > { %v22735_v24 = vpack.c.bf16 %v1122_v10, %v610_v9 }
 0x215   : > { %11297 = vmatmul.mubr.f32.vlgmr.msra.gmra.mrb[100].mxu0 %v2401_v42  ;;  %v2443_v42 = vcombine.high %v2435_v27, %v2435_v27 }
 0x216   : > { %11367 = vmatmul.mubr.f32.vlgmr.msra.gmra.mrb[100].mxu1 %v2408_v47  ;;  %22708 = vmatpush1.bf16.xpose.msra.mxu0 %v22707_v14  ;;  %v604_v47 = vld [vmem:[%s23930_s11 + $0x6a0] sm:$0xff]  ;;  %v613_v14 = vld [vmem:[%s23930_s11 + $0x6e8] sm:$0xff] }
 0x217   : > { %22712 = vmatpush1.bf16.xpose.msra.mxu1 %v22711_v15  ;;  %11436 = vmatprep.mubr.f32.mxu0 %v2426_v17  ;;  %v22723_v63 = vpack.c.bf16 %v1116_v48, %v604_v47  ;;  %v1125_v15 = vld [vmem:[%s23930_s11 + $0x16e8] sm:$0x3]  ;;  %v320_v47 = vld [vmem:[%s23923_s5 + $0x1c0] sm:$0xff] }
 0x218   : > { %22714 = vmatprep.subr.bf16.mxu0 %v22713_v18  ;;  %v7658_v28 = vpop.f32.mrb[48].mxu0  ;;  %11506 = vmatprep.mubr.f32.mxu1 %v2427_v19  ;;  %v2496_v55 = vcombine.high %v320_v47, %v320_v47  ;;  %v2503_v60 = vrot.slane %v320_v47, %v23954_v25 }
 0x219   : > { %v7728_v29 = vpop.f32.mrb[48].mxu1  ;;  %22718 = vmatprep.subr.bf16.mxu1 %v22717_v20  ;;  %v7659_v33 = vadd.f32 %v7658_v28, %v7589_v16  ;;  %v7660_v34 = vpop.f32.mrb[49].mxu0  ;;  %v2476_v16 = vrot.slane %v2462_v6, %v23954_v25  ;;  %v615_v20 = vld [vmem:[%s23930_s11 + $0x6f8] sm:$0xff]  ;;  %v22737_v28 = vpack.c.bf16 %v1125_v15, %v613_v14 }
 0x21a   : > { %v7730_v35 = vpop.f32.mrb[49].mxu1  ;;  %v22741_v30 = vpack.c.bf16 %v1127_v21, %v615_v20  ;;  %v614_v34 = vld [vmem:[%s23930_s11 + $0x6f0] sm:$0xff]  ;;  %v1135_v6 = vld [vmem:[%s23930_s11 + $0x1738] sm:$0x3] }
 0x21b   : > { %v7729_v41 = vadd.f32 %v7728_v29, %v7659_v33  ;;  %v2478_v29 = vcombine.high %v2476_v16, %v2476_v16  ;;  %v1124_v33 = vld [vmem:[%s23930_s11 + $0x16e0] sm:$0x3]  ;;  %v1126_v35 = vld [vmem:[%s23930_s11 + $0x16f0] sm:$0x3] }
 0x21c   : > { %v22743_v49 = vpack.c.bf16 %v1126_v35, %v614_v34 }
 0x21d   : > { %11437 = vmatmul.mubr.f32.vlgmr.msra.gmra.mrb[102].mxu0 %v2418_v2  ;;  %v2460_v2 = vcombine.high %v2452_v51, %v2452_v51 }
 0x21e   : > { %11507 = vmatmul.mubr.f32.vlgmr.msra.gmra.mrb[102].mxu1 %v2425_v7  ;;  %22716 = vmatpush1.bf16.xpose.msra.mxu0 %v22715_v39  ;;  %v608_v7 = vld [vmem:[%s23930_s11 + $0x6c0] sm:$0xff]  ;;  %v617_v39 = vld [vmem:[%s23930_s11 + $0x708] sm:$0xff] }
 0x21f   : > { %22720 = vmatpush1.bf16.xpose.msra.mxu1 %v22719_v40  ;;  %11576 = vmatprep.mubr.f32.mxu0 %v2443_v42  ;;  %v22731_v23 = vpack.c.bf16 %v1120_v8, %v608_v7  ;;  %v1129_v40 = vld [vmem:[%s23930_s11 + $0x1708] sm:$0x3] }
 0x220   : > { %22722 = vmatprep.subr.bf16.mxu0 %v22721_v43  ;;  %v7798_v52 = vpop.f32.mrb[50].mxu0  ;;  %11646 = vmatprep.mubr.f32.mxu1 %v2444_v44  ;;  %v321_v7 = vld [vmem:[%s23923_s5 + $0x1c8] sm:$0xff] }
 0x221   : > { %v7868_v53 = vpop.f32.mrb[50].mxu1  ;;  %22726 = vmatprep.subr.bf16.mxu1 %v22725_v45  ;;  %v7799_v57 = vadd.f32 %v7798_v52, %v7729_v41  ;;  %v7800_v58 = vpop.f32.mrb[51].mxu0  ;;  %v2493_v41 = vrot.slane %v2479_v31, %v23954_v25  ;;  %v619_v45 = vld [vmem:[%s23930_s11 + $0x718] sm:$0xff]  ;;  %v22745_v52 = vpack.c.bf16 %v1129_v40, %v617_v39  ;;  %v2513_v15 = vcombine.high %v321_v7, %v321_v7 }
 0x222   : > { %v7870_v59 = vpop.f32.mrb[51].mxu1  ;;  %v22749_v54 = vpack.c.bf16 %v1131_v46, %v619_v45  ;;  %v618_v58 = vld [vmem:[%s23930_s11 + $0x710] sm:$0xff]  ;;  %v2520_v20 = vrot.slane %v321_v7, %v23954_v25  ;;  %v1139_v31 = vld [vmem:[%s23930_s11 + $0x1758] sm:$0x3] }
 0x223   : > { %v7869_v1 = vadd.f32 %v7868_v53, %v7799_v57  ;;  %v2495_v53 = vcombine.high %v2493_v41, %v2493_v41  ;;  %v1128_v57 = vld [vmem:[%s23930_s11 + $0x1700] sm:$0x3]  ;;  %v1130_v59 = vld [vmem:[%s23930_s11 + $0x1710] sm:$0x3] }
 0x224   : > { %v22751_v9 = vpack.c.bf16 %v1130_v59, %v618_v58 }
 0x225   : > { %11577 = vmatmul.mubr.f32.vlgmr.msra.gmra.mrb[104].mxu0 %v2435_v27  ;;  %v2477_v27 = vcombine.high %v2469_v11, %v2469_v11 }
 0x226   : > { %11647 = vmatmul.mubr.f32.vlgmr.msra.gmra.mrb[104].mxu1 %v2442_v32  ;;  %22724 = vmatpush1.bf16.xpose.msra.mxu0 %v22723_v63  ;;  %v612_v32 = vld [vmem:[%s23930_s11 + $0x6e0] sm:$0xff]  ;;  %v621_v63 = vld [vmem:[%s23930_s11 + $0x728] sm:$0xff] }
 0x227   : > { %22728 = vmatpush1.bf16.xpose.msra.mxu1 %v22727_v0  ;;  %11716 = vmatprep.mubr.f32.mxu0 %v2460_v2  ;;  %v22739_v48 = vpack.c.bf16 %v1124_v33, %v612_v32  ;;  %v1133_v0 = vld [vmem:[%s23930_s11 + $0x1728] sm:$0x3]  ;;  %v322_v32 = vld [vmem:[%s23923_s5 + $0x1d0] sm:$0xff] }
 0x228   : > { %22730 = vmatprep.subr.bf16.mxu0 %v22729_v3  ;;  %v7938_v12 = vpop.f32.mrb[52].mxu0  ;;  %11786 = vmatprep.mubr.f32.mxu1 %v2461_v4  ;;  %v2530_v40 = vcombine.high %v322_v32, %v322_v32  ;;  %v2537_v45 = vrot.slane %v322_v32, %v23954_v25 }
 0x229   : > { %v8008_v13 = vpop.f32.mrb[52].mxu1  ;;  %22734 = vmatprep.subr.bf16.mxu1 %v22733_v5  ;;  %v7939_v17 = vadd.f32 %v7938_v12, %v7869_v1  ;;  %v7940_v18 = vpop.f32.mrb[53].mxu0  ;;  %v2510_v1 = vrot.slane %v2496_v55, %v23954_v25  ;;  %v623_v5 = vld [vmem:[%s23930_s11 + $0x738] sm:$0xff]  ;;  %v22753_v12 = vpack.c.bf16 %v1133_v0, %v621_v63 }
 0x22a   : > { %v8010_v19 = vpop.f32.mrb[53].mxu1  ;;  %v22757_v14 = vpack.c.bf16 %v1135_v6, %v623_v5  ;;  %v622_v18 = vld [vmem:[%s23930_s11 + $0x730] sm:$0xff]  ;;  %v1143_v55 = vld [vmem:[%s23930_s11 + $0x1778] sm:$0x3] }
 0x22b   : > { %v8009_v26 = vadd.f32 %v8008_v13, %v7939_v17  ;;  %v2512_v13 = vcombine.high %v2510_v1, %v2510_v1  ;;  %v1132_v17 = vld [vmem:[%s23930_s11 + $0x1720] sm:$0x3]  ;;  %v1134_v19 = vld [vmem:[%s23930_s11 + $0x1730] sm:$0x3] }
 0x22c   : > { %v22759_v34 = vpack.c.bf16 %v1134_v19, %v622_v18 }
 0x22d   : > { %11717 = vmatmul.mubr.f32.vlgmr.msra.gmra.mrb[106].mxu0 %v2452_v51  ;;  %v2494_v51 = vcombine.high %v2486_v36, %v2486_v36 }
 0x22e   : > { %11787 = vmatmul.mubr.f32.vlgmr.msra.gmra.mrb[106].mxu1 %v2459_v56  ;;  %22732 = vmatpush1.bf16.xpose.msra.mxu0 %v22731_v23  ;;  %v616_v56 = vld [vmem:[%s23930_s11 + $0x700] sm:$0xff]  ;;  %v625_v23 = vld [vmem:[%s23930_s11 + $0x748] sm:$0xff] }
 0x22f   : > { %22736 = vmatpush1.bf16.xpose.msra.mxu1 %v22735_v24  ;;  %11856 = vmatprep.mubr.f32.mxu0 %v2477_v27  ;;  %v22747_v8 = vpack.c.bf16 %v1128_v57, %v616_v56  ;;  %v1137_v24 = vld [vmem:[%s23930_s11 + $0x1748] sm:$0x3]  ;;  %v323_v56 = vld [vmem:[%s23923_s5 + $0x1d8] sm:$0xff] }
 0x230   : > { %22738 = vmatprep.subr.bf16.mxu0 %v22737_v28  ;;  %v8078_v37 = vpop.f32.mrb[54].mxu0  ;;  %11926 = vmatprep.mubr.f32.mxu1 %v2478_v29  ;;  %v2547_v0 = vcombine.high %v323_v56, %v323_v56  ;;  %v2554_v5 = vrot.slane %v323_v56, %v23954_v25 }
 0x231   : > { %v8148_v38 = vpop.f32.mrb[54].mxu1  ;;  %22742 = vmatprep.subr.bf16.mxu1 %v22741_v30  ;;  %v8079_v42 = vadd.f32 %v8078_v37, %v8009_v26  ;;  %v8080_v43 = vpop.f32.mrb[55].mxu0  ;;  %v2527_v26 = vrot.slane %v2513_v15, %v23954_v25  ;;  %v627_v30 = vld [vmem:[%s23930_s11 + $0x758] sm:$0xff]  ;;  %v22761_v37 = vpack.c.bf16 %v1137_v24, %v625_v23 }
 0x232   : > { %v8150_v44 = vpop.f32.mrb[55].mxu1  ;;  %v22765_v39 = vpack.c.bf16 %v1139_v31, %v627_v30  ;;  %v626_v43 = vld [vmem:[%s23930_s11 + $0x750] sm:$0xff]  ;;  %v1147_v15 = vld [vmem:[%s23930_s11 + $0x1798] sm:$0x3] }
 0x233   : > { %v8149_v50 = vadd.f32 %v8148_v38, %v8079_v42  ;;  %v2529_v38 = vcombine.high %v2527_v26, %v2527_v26  ;;  %v1136_v42 = vld [vmem:[%s23930_s11 + $0x1740] sm:$0x3]  ;;  %v1138_v44 = vld [vmem:[%s23930_s11 + $0x1750] sm:$0x3] }
 0x234   : > { %v22767_v58 = vpack.c.bf16 %v1138_v44, %v626_v43 }
 0x235   : > { %11857 = vmatmul.mubr.f32.vlgmr.msra.gmra.mrb[108].mxu0 %v2469_v11  ;;  %v2511_v11 = vcombine.high %v2503_v60, %v2503_v60 }
 0x236   : > { %11927 = vmatmul.mubr.f32.vlgmr.msra.gmra.mrb[108].mxu1 %v2476_v16  ;;  %22740 = vmatpush1.bf16.xpose.msra.mxu0 %v22739_v48  ;;  %v620_v16 = vld [vmem:[%s23930_s11 + $0x720] sm:$0xff]  ;;  %v629_v48 = vld [vmem:[%s23930_s11 + $0x768] sm:$0xff] }
 0x237   : > { %22744 = vmatpush1.bf16.xpose.msra.mxu1 %v22743_v49  ;;  %11996 = vmatprep.mubr.f32.mxu0 %v2494_v51  ;;  %v22755_v33 = vpack.c.bf16 %v1132_v17, %v620_v16  ;;  %v1141_v49 = vld [vmem:[%s23930_s11 + $0x1768] sm:$0x3]  ;;  %v324_v16 = vld [vmem:[%s23923_s5 + $0x1e0] sm:$0xff] }
 0x238   : > { %22746 = vmatprep.subr.bf16.mxu0 %v22745_v52  ;;  %v8218_v61 = vpop.f32.mrb[56].mxu0  ;;  %12066 = vmatprep.mubr.f32.mxu1 %v2495_v53  ;;  %v2564_v24 = vcombine.high %v324_v16, %v324_v16  ;;  %v2571_v30 = vrot.slane %v324_v16, %v23954_v25 }
 0x239   : > { %v8288_v62 = vpop.f32.mrb[56].mxu1  ;;  %22750 = vmatprep.subr.bf16.mxu1 %v22749_v54  ;;  %v8219_v2 = vadd.f32 %v8218_v61, %v8149_v50  ;;  %v8220_v3 = vpop.f32.mrb[57].mxu0  ;;  %v2544_v50 = vrot.slane %v2530_v40, %v23954_v25  ;;  %v631_v54 = vld [vmem:[%s23930_s11 + $0x778] sm:$0xff]  ;;  %v22769_v61 = vpack.c.bf16 %v1141_v49, %v629_v48 }
 0x23a   : > { %v8290_v4 = vpop.f32.mrb[57].mxu1  ;;  %v22773_v63 = vpack.c.bf16 %v1143_v55, %v631_v54  ;;  %v630_v3 = vld [vmem:[%s23930_s11 + $0x770] sm:$0xff]  ;;  %v1151_v40 = vld [vmem:[%s23930_s11 + $0x17b8] sm:$0x3] }
 0x23b   : > { %v8289_v10 = vadd.f32 %v8288_v62, %v8219_v2  ;;  %v2546_v62 = vcombine.high %v2544_v50, %v2544_v50  ;;  %v1140_v2 = vld [vmem:[%s23930_s11 + $0x1760] sm:$0x3]  ;;  %v1142_v4 = vld [vmem:[%s23930_s11 + $0x1770] sm:$0x3] }
 0x23c   : > { %v22775_v18 = vpack.c.bf16 %v1142_v4, %v630_v3 }
 0x23d   : > { %11997 = vmatmul.mubr.f32.vlgmr.msra.gmra.mrb[110].mxu0 %v2486_v36  ;;  %v2528_v36 = vcombine.high %v2520_v20, %v2520_v20 }
 0x23e   : > { %12067 = vmatmul.mubr.f32.vlgmr.msra.gmra.mrb[110].mxu1 %v2493_v41  ;;  %22748 = vmatpush1.bf16.xpose.msra.mxu0 %v22747_v8  ;;  %v624_v41 = vld [vmem:[%s23930_s11 + $0x740] sm:$0xff]  ;;  %v633_v8 = vld [vmem:[%s23930_s11 + $0x788] sm:$0xff] }
 0x23f   : > { %22752 = vmatpush1.bf16.xpose.msra.mxu1 %v22751_v9  ;;  %12136 = vmatprep.mubr.f32.mxu0 %v2511_v11  ;;  %v22763_v57 = vpack.c.bf16 %v1136_v42, %v624_v41  ;;  %v1145_v9 = vld [vmem:[%s23930_s11 + $0x1788] sm:$0x3] }
 0x240   : > { %22754 = vmatprep.subr.bf16.mxu0 %v22753_v12  ;;  %v8358_v21 = vpop.f32.mrb[58].mxu0  ;;  %12206 = vmatprep.mubr.f32.mxu1 %v2512_v13  ;;  %v325_v41 = vld [vmem:[%s23923_s5 + $0x1e8] sm:$0xff] }
 0x241   : > { %v8428_v22 = vpop.f32.mrb[58].mxu1  ;;  %22758 = vmatprep.subr.bf16.mxu1 %v22757_v14  ;;  %v8359_v27 = vadd.f32 %v8358_v21, %v8289_v10  ;;  %v8360_v28 = vpop.f32.mrb[59].mxu0  ;;  %v2561_v10 = vrot.slane %v2547_v0, %v23954_v25  ;;  %v635_v14 = vld [vmem:[%s23930_s11 + $0x798] sm:$0xff]  ;;  %v22777_v21 = vpack.c.bf16 %v1145_v9, %v633_v8  ;;  %v2581_v49 = vcombine.high %v325_v41, %v325_v41 }
 0x242   : > { %v8430_v29 = vpop.f32.mrb[59].mxu1  ;;  %v22781_v23 = vpack.c.bf16 %v1147_v15, %v635_v14  ;;  %v634_v28 = vld [vmem:[%s23930_s11 + $0x790] sm:$0xff]  ;;  %v2588_v54 = vrot.slane %v325_v41, %v23954_v25  ;;  %v1155_v0 = vld [vmem:[%s23930_s11 + $0x17d8] sm:$0x3] }
 0x243   : > { %v8429_v35 = vadd.f32 %v8428_v22, %v8359_v27  ;;  %v2563_v22 = vcombine.high %v2561_v10, %v2561_v10  ;;  %v1144_v27 = vld [vmem:[%s23930_s11 + $0x1780] sm:$0x3]  ;;  %v1146_v29 = vld [vmem:[%s23930_s11 + $0x1790] sm:$0x3] }
 0x244   : > { %v22783_v43 = vpack.c.bf16 %v1146_v29, %v634_v28 }
 0x245   : > { %12137 = vmatmul.mubr.f32.vlgmr.msra.gmra.mrb[112].mxu0 %v2503_v60  ;;  %v2545_v60 = vcombine.high %v2537_v45, %v2537_v45 }
 0x246   : > { %12207 = vmatmul.mubr.f32.vlgmr.msra.gmra.mrb[112].mxu1 %v2510_v1  ;;  %22756 = vmatpush1.bf16.xpose.msra.mxu0 %v22755_v33  ;;  %v628_v1 = vld [vmem:[%s23930_s11 + $0x760] sm:$0xff]  ;;  %v637_v33 = vld [vmem:[%s23930_s11 + $0x7a8] sm:$0xff] }
 0x247   : > { %22760 = vmatpush1.bf16.xpose.msra.mxu1 %v22759_v34  ;;  %12276 = vmatprep.mubr.f32.mxu0 %v2528_v36  ;;  %v22771_v17 = vpack.c.bf16 %v1140_v2, %v628_v1  ;;  %v1149_v34 = vld [vmem:[%s23930_s11 + $0x17a8] sm:$0x3]  ;;  %v326_v1 = vld [vmem:[%s23923_s5 + $0x1f0] sm:$0xff] }
 0x248   : > { %22762 = vmatprep.subr.bf16.mxu0 %v22761_v37  ;;  %v8498_v46 = vpop.f32.mrb[60].mxu0  ;;  %12346 = vmatprep.mubr.f32.mxu1 %v2529_v38  ;;  %v2598_v9 = vcombine.high %v326_v1, %v326_v1  ;;  %v2605_v14 = vrot.slane %v326_v1, %v23954_v25 }
 0x249   : > { %v8568_v47 = vpop.f32.mrb[60].mxu1  ;;  %22766 = vmatprep.subr.bf16.mxu1 %v22765_v39  ;;  %v8499_v51 = vadd.f32 %v8498_v46, %v8429_v35  ;;  %v8500_v52 = vpop.f32.mrb[61].mxu0  ;;  %v2578_v35 = vrot.slane %v2564_v24, %v23954_v25  ;;  %v639_v39 = vld [vmem:[%s23930_s11 + $0x7b8] sm:$0xff]  ;;  %v22785_v46 = vpack.c.bf16 %v1149_v34, %v637_v33 }
 0x24a   : > { %v8570_v53 = vpop.f32.mrb[61].mxu1  ;;  %v22789_v48 = vpack.c.bf16 %v1151_v40, %v639_v39  ;;  %v638_v52 = vld [vmem:[%s23930_s11 + $0x7b0] sm:$0xff]  ;;  %v1159_v24 = vld [vmem:[%s23930_s11 + $0x17f8] sm:$0x3] }
 0x24b   : > { %v8569_v59 = vadd.f32 %v8568_v47, %v8499_v51  ;;  %v2580_v47 = vcombine.high %v2578_v35, %v2578_v35  ;;  %v1148_v51 = vld [vmem:[%s23930_s11 + $0x17a0] sm:$0x3]  ;;  %v1150_v53 = vld [vmem:[%s23930_s11 + $0x17b0] sm:$0x3] }
 0x24c   : > { %v22791_v3 = vpack.c.bf16 %v1150_v53, %v638_v52 }
 0x24d   : > { %12277 = vmatmul.mubr.f32.vlgmr.msra.gmra.mrb[114].mxu0 %v2520_v20  ;;  %v2562_v20 = vcombine.high %v2554_v5, %v2554_v5 }
 0x24e   : > { %12347 = vmatmul.mubr.f32.vlgmr.msra.gmra.mrb[114].mxu1 %v2527_v26  ;;  %22764 = vmatpush1.bf16.xpose.msra.mxu0 %v22763_v57  ;;  %v632_v26 = vld [vmem:[%s23930_s11 + $0x780] sm:$0xff]  ;;  %v641_v57 = vld [vmem:[%s23930_s11 + $0x7c8] sm:$0xff] }
 0x24f   : > { %22768 = vmatpush1.bf16.xpose.msra.mxu1 %v22767_v58  ;;  %12416 = vmatprep.mubr.f32.mxu0 %v2545_v60  ;;  %v22779_v42 = vpack.c.bf16 %v1144_v27, %v632_v26  ;;  %v1153_v58 = vld [vmem:[%s23930_s11 + $0x17c8] sm:$0x3]  ;;  %v327_v26 = vld [vmem:[%s23923_s5 + $0x1f8] sm:$0xff] }
 0x250   : > { %22770 = vmatprep.subr.bf16.mxu0 %v22769_v61  ;;  %v8638_v6 = vpop.f32.mrb[62].mxu0  ;;  %12486 = vmatprep.mubr.f32.mxu1 %v2546_v62  ;;  %v2615_v34 = vcombine.high %v327_v26, %v327_v26  ;;  %v2622_v39 = vrot.slane %v327_v26, %v23954_v25 }
 0x251   : > { %v8708_v7 = vpop.f32.mrb[62].mxu1  ;;  %22774 = vmatprep.subr.bf16.mxu1 %v22773_v63  ;;  %v8639_v11 = vadd.f32 %v8638_v6, %v8569_v59  ;;  %v8640_v12 = vpop.f32.mrb[63].mxu0  ;;  %v2595_v59 = vrot.slane %v2581_v49, %v23954_v25  ;;  %v643_v63 = vld [vmem:[%s23930_s11 + $0x7d8] sm:$0xff]  ;;  %v22793_v6 = vpack.c.bf16 %v1153_v58, %v641_v57 }
 0x252   : > { %v8710_v13 = vpop.f32.mrb[63].mxu1  ;;  %v22797_v8 = vpack.c.bf16 %v1155_v0, %v643_v63  ;;  %v642_v12 = vld [vmem:[%s23930_s11 + $0x7d0] sm:$0xff]  ;;  %v1163_v49 = vld [vmem:[%s23930_s11 + $0x1818] sm:$0x3] }
 0x253   : > { %v8709_v19 = vadd.f32 %v8708_v7, %v8639_v11  ;;  %v2597_v7 = vcombine.high %v2595_v59, %v2595_v59  ;;  %v1152_v11 = vld [vmem:[%s23930_s11 + $0x17c0] sm:$0x3]  ;;  %v1154_v13 = vld [vmem:[%s23930_s11 + $0x17d0] sm:$0x3] }
 0x254   : > { %v22799_v28 = vpack.c.bf16 %v1154_v13, %v642_v12 }
 0x255   : > { %12417 = vmatmul.mubr.f32.vlgmr.msra.gmra.mrb[116].mxu0 %v2537_v45  ;;  %v2579_v45 = vcombine.high %v2571_v30, %v2571_v30 }
 0x256   : > { %12487 = vmatmul.mubr.f32.vlgmr.msra.gmra.mrb[116].mxu1 %v2544_v50  ;;  %22772 = vmatpush1.bf16.xpose.msra.mxu0 %v22771_v17  ;;  %v636_v50 = vld [vmem:[%s23930_s11 + $0x7a0] sm:$0xff]  ;;  %v645_v17 = vld [vmem:[%s23930_s11 + $0x7e8] sm:$0xff] }
 0x257   : > { %22776 = vmatpush1.bf16.xpose.msra.mxu1 %v22775_v18  ;;  %12556 = vmatprep.mubr.f32.mxu0 %v2562_v20  ;;  %v22787_v2 = vpack.c.bf16 %v1148_v51, %v636_v50  ;;  %v1157_v18 = vld [vmem:[%s23930_s11 + $0x17e8] sm:$0x3]  ;;  %v328_v50 = vld [vmem:[%s23923_s5 + $0x200] sm:$0xff] }
 0x258   : > { %22778 = vmatprep.subr.bf16.mxu0 %v22777_v21  ;;  %v8778_v31 = vpop.f32.mrb[64].mxu0  ;;  %12626 = vmatprep.mubr.f32.mxu1 %v2563_v22  ;;  %v2632_v58 = vcombine.high %v328_v50, %v328_v50  ;;  %v2639_v63 = vrot.slane %v328_v50, %v23954_v25 }
 0x259   : > { %v8848_v32 = vpop.f32.mrb[64].mxu1  ;;  %22782 = vmatprep.subr.bf16.mxu1 %v22781_v23  ;;  %v8779_v36 = vadd.f32 %v8778_v31, %v8709_v19  ;;  %v8780_v37 = vpop.f32.mrb[65].mxu0  ;;  %v2612_v19 = vrot.slane %v2598_v9, %v23954_v25  ;;  %v647_v23 = vld [vmem:[%s23930_s11 + $0x7f8] sm:$0xff]  ;;  %v22801_v31 = vpack.c.bf16 %v1157_v18, %v645_v17 }
 0x25a   : > { %v8850_v38 = vpop.f32.mrb[65].mxu1  ;;  %v22805_v33 = vpack.c.bf16 %v1159_v24, %v647_v23  ;;  %v646_v37 = vld [vmem:[%s23930_s11 + $0x7f0] sm:$0xff]  ;;  %v1167_v9 = vld [vmem:[%s23930_s11 + $0x1838] sm:$0x3] }
 0x25b   : > { %v8849_v44 = vadd.f32 %v8848_v32, %v8779_v36  ;;  %v2614_v32 = vcombine.high %v2612_v19, %v2612_v19  ;;  %v1156_v36 = vld [vmem:[%s23930_s11 + $0x17e0] sm:$0x3]  ;;  %v1158_v38 = vld [vmem:[%s23930_s11 + $0x17f0] sm:$0x3] }
 0x25c   : > { %v22807_v52 = vpack.c.bf16 %v1158_v38, %v646_v37 }
 0x25d   : > { %12557 = vmatmul.mubr.f32.vlgmr.msra.gmra.mrb[118].mxu0 %v2554_v5  ;;  %v2596_v5 = vcombine.high %v2588_v54, %v2588_v54 }
 0x25e   : > { %12627 = vmatmul.mubr.f32.vlgmr.msra.gmra.mrb[118].mxu1 %v2561_v10  ;;  %22780 = vmatpush1.bf16.xpose.msra.mxu0 %v22779_v42  ;;  %v640_v10 = vld [vmem:[%s23930_s11 + $0x7c0] sm:$0xff]  ;;  %v649_v42 = vld [vmem:[%s23930_s11 + $0x808] sm:$0xff] }
 0x25f   : > { %22784 = vmatpush1.bf16.xpose.msra.mxu1 %v22783_v43  ;;  %12696 = vmatprep.mubr.f32.mxu0 %v2579_v45  ;;  %v22795_v27 = vpack.c.bf16 %v1152_v11, %v640_v10  ;;  %v1161_v43 = vld [vmem:[%s23930_s11 + $0x1808] sm:$0x3] }
 0x260   : > { %22786 = vmatprep.subr.bf16.mxu0 %v22785_v46  ;;  %v8918_v55 = vpop.f32.mrb[66].mxu0  ;;  %12766 = vmatprep.mubr.f32.mxu1 %v2580_v47  ;;  %v329_v10 = vld [vmem:[%s23923_s5 + $0x208] sm:$0xff] }
 0x261   : > { %v8988_v56 = vpop.f32.mrb[66].mxu1  ;;  %22790 = vmatprep.subr.bf16.mxu1 %v22789_v48  ;;  %v8919_v60 = vadd.f32 %v8918_v55, %v8849_v44  ;;  %v8920_v61 = vpop.f32.mrb[67].mxu0  ;;  %v2629_v44 = vrot.slane %v2615_v34, %v23954_v25  ;;  %v651_v48 = vld [vmem:[%s23930_s11 + $0x818] sm:$0xff]  ;;  %v22809_v55 = vpack.c.bf16 %v1161_v43, %v649_v42  ;;  %v2649_v18 = vcombine.high %v329_v10, %v329_v10 }
 0x262   : > { %v8990_v62 = vpop.f32.mrb[67].mxu1  ;;  %v22813_v57 = vpack.c.bf16 %v1163_v49, %v651_v48  ;;  %v650_v61 = vld [vmem:[%s23930_s11 + $0x810] sm:$0xff]  ;;  %v2656_v23 = vrot.slane %v329_v10, %v23954_v25  ;;  %v1171_v34 = vld [vmem:[%s23930_s11 + $0x1858] sm:$0x3] }
 0x263   : > { %v8989_v4 = vadd.f32 %v8988_v56, %v8919_v60  ;;  %v2631_v56 = vcombine.high %v2629_v44, %v2629_v44  ;;  %v1160_v60 = vld [vmem:[%s23930_s11 + $0x1800] sm:$0x3]  ;;  %v1162_v62 = vld [vmem:[%s23930_s11 + $0x1810] sm:$0x3] }
 0x264   : > { %v22815_v12 = vpack.c.bf16 %v1162_v62, %v650_v61 }
 0x265   : > { %12697 = vmatmul.mubr.f32.vlgmr.msra.gmra.mrb[120].mxu0 %v2571_v30  ;;  %v2613_v30 = vcombine.high %v2605_v14, %v2605_v14 }
 0x266   : > { %12767 = vmatmul.mubr.f32.vlgmr.msra.gmra.mrb[120].mxu1 %v2578_v35  ;;  %22788 = vmatpush1.bf16.xpose.msra.mxu0 %v22787_v2  ;;  %v644_v35 = vld [vmem:[%s23930_s11 + $0x7e0] sm:$0xff]  ;;  %v653_v2 = vld [vmem:[%s23930_s11 + $0x828] sm:$0xff] }
 0x267   : > { %22792 = vmatpush1.bf16.xpose.msra.mxu1 %v22791_v3  ;;  %12836 = vmatprep.mubr.f32.mxu0 %v2596_v5  ;;  %v22803_v51 = vpack.c.bf16 %v1156_v36, %v644_v35  ;;  %v1165_v3 = vld [vmem:[%s23930_s11 + $0x1828] sm:$0x3]  ;;  %v330_v35 = vld [vmem:[%s23923_s5 + $0x210] sm:$0xff] }
 0x268   : > { %22794 = vmatprep.subr.bf16.mxu0 %v22793_v6  ;;  %v9058_v15 = vpop.f32.mrb[68].mxu0  ;;  %12906 = vmatprep.mubr.f32.mxu1 %v2597_v7  ;;  %v2666_v43 = vcombine.high %v330_v35, %v330_v35  ;;  %v2673_v48 = vrot.slane %v330_v35, %v23954_v25 }
 0x269   : > { %v9128_v16 = vpop.f32.mrb[68].mxu1  ;;  %22798 = vmatprep.subr.bf16.mxu1 %v22797_v8  ;;  %v9059_v20 = vadd.f32 %v9058_v15, %v8989_v4  ;;  %v9060_v21 = vpop.f32.mrb[69].mxu0  ;;  %v2646_v4 = vrot.slane %v2632_v58, %v23954_v25  ;;  %v655_v8 = vld [vmem:[%s23930_s11 + $0x838] sm:$0xff]  ;;  %v22817_v15 = vpack.c.bf16 %v1165_v3, %v653_v2 }
 0x26a   : > { %v9130_v22 = vpop.f32.mrb[69].mxu1  ;;  %v22821_v17 = vpack.c.bf16 %v1167_v9, %v655_v8  ;;  %v654_v21 = vld [vmem:[%s23930_s11 + $0x830] sm:$0xff]  ;;  %v1175_v58 = vld [vmem:[%s23930_s11 + $0x1878] sm:$0x3] }
 0x26b   : > { %v9129_v29 = vadd.f32 %v9128_v16, %v9059_v20  ;;  %v2648_v16 = vcombine.high %v2646_v4, %v2646_v4  ;;  %v1164_v20 = vld [vmem:[%s23930_s11 + $0x1820] sm:$0x3]  ;;  %v1166_v22 = vld [vmem:[%s23930_s11 + $0x1830] sm:$0x3] }
 0x26c   : > { %v22823_v37 = vpack.c.bf16 %v1166_v22, %v654_v21 }
 0x26d   : > { %12837 = vmatmul.mubr.f32.vlgmr.msra.gmra.mrb[122].mxu0 %v2588_v54  ;;  %v2630_v54 = vcombine.high %v2622_v39, %v2622_v39 }
 0x26e   : > { %12907 = vmatmul.mubr.f32.vlgmr.msra.gmra.mrb[122].mxu1 %v2595_v59  ;;  %22796 = vmatpush1.bf16.xpose.msra.mxu0 %v22795_v27  ;;  %v648_v59 = vld [vmem:[%s23930_s11 + $0x800] sm:$0xff]  ;;  %v657_v27 = vld [vmem:[%s23930_s11 + $0x848] sm:$0xff] }
 0x26f   : > { %22800 = vmatpush1.bf16.xpose.msra.mxu1 %v22799_v28  ;;  %12976 = vmatprep.mubr.f32.mxu0 %v2613_v30  ;;  %v22811_v11 = vpack.c.bf16 %v1160_v60, %v648_v59  ;;  %v1169_v28 = vld [vmem:[%s23930_s11 + $0x1848] sm:$0x3]  ;;  %v331_v59 = vld [vmem:[%s23923_s5 + $0x218] sm:$0xff] }
 0x270   : > { %22802 = vmatprep.subr.bf16.mxu0 %v22801_v31  ;;  %v9198_v40 = vpop.f32.mrb[70].mxu0  ;;  %13046 = vmatprep.mubr.f32.mxu1 %v2614_v32  ;;  %v2683_v3 = vcombine.high %v331_v59, %v331_v59  ;;  %v2690_v8 = vrot.slane %v331_v59, %v23954_v25 }
 0x271   : > { %v9268_v41 = vpop.f32.mrb[70].mxu1  ;;  %22806 = vmatprep.subr.bf16.mxu1 %v22805_v33  ;;  %v9199_v45 = vadd.f32 %v9198_v40, %v9129_v29  ;;  %v9200_v46 = vpop.f32.mrb[71].mxu0  ;;  %v2663_v29 = vrot.slane %v2649_v18, %v23954_v25  ;;  %v659_v33 = vld [vmem:[%s23930_s11 + $0x858] sm:$0xff]  ;;  %v22825_v40 = vpack.c.bf16 %v1169_v28, %v657_v27 }
 0x272   : > { %v9270_v47 = vpop.f32.mrb[71].mxu1  ;;  %v22829_v42 = vpack.c.bf16 %v1171_v34, %v659_v33  ;;  %v658_v46 = vld [vmem:[%s23930_s11 + $0x850] sm:$0xff]  ;;  %v1179_v18 = vld [vmem:[%s23930_s11 + $0x1898] sm:$0x3] }
 0x273   : > { %v9269_v53 = vadd.f32 %v9268_v41, %v9199_v45  ;;  %v2665_v41 = vcombine.high %v2663_v29, %v2663_v29  ;;  %v1168_v45 = vld [vmem:[%s23930_s11 + $0x1840] sm:$0x3]  ;;  %v1170_v47 = vld [vmem:[%s23930_s11 + $0x1850] sm:$0x3] }
 0x274   : > { %v22831_v61 = vpack.c.bf16 %v1170_v47, %v658_v46 }
 0x275   : > { %12977 = vmatmul.mubr.f32.vlgmr.msra.gmra.mrb[124].mxu0 %v2605_v14  ;;  %v2647_v14 = vcombine.high %v2639_v63, %v2639_v63 }
 0x276   : > { %13047 = vmatmul.mubr.f32.vlgmr.msra.gmra.mrb[124].mxu1 %v2612_v19  ;;  %22804 = vmatpush1.bf16.xpose.msra.mxu0 %v22803_v51  ;;  %v652_v19 = vld [vmem:[%s23930_s11 + $0x820] sm:$0xff]  ;;  %v661_v51 = vld [vmem:[%s23930_s11 + $0x868] sm:$0xff] }
 0x277   : > { %22808 = vmatpush1.bf16.xpose.msra.mxu1 %v22807_v52  ;;  %13116 = vmatprep.mubr.f32.mxu0 %v2630_v54  ;;  %v22819_v36 = vpack.c.bf16 %v1164_v20, %v652_v19  ;;  %v1173_v52 = vld [vmem:[%s23930_s11 + $0x1868] sm:$0x3]  ;;  %v332_v19 = vld [vmem:[%s23923_s5 + $0x220] sm:$0xff] }
 0x278   : > { %22810 = vmatprep.subr.bf16.mxu0 %v22809_v55  ;;  %v9338_v0 = vpop.f32.mrb[72].mxu0  ;;  %13186 = vmatprep.mubr.f32.mxu1 %v2631_v56  ;;  %v2700_v28 = vcombine.high %v332_v19, %v332_v19  ;;  %v2707_v33 = vrot.slane %v332_v19, %v23954_v25 }
 0x279   : > { %v9408_v1 = vpop.f32.mrb[72].mxu1  ;;  %22814 = vmatprep.subr.bf16.mxu1 %v22813_v57  ;;  %v9339_v5 = vadd.f32 %v9338_v0, %v9269_v53  ;;  %v9340_v6 = vpop.f32.mrb[73].mxu0  ;;  %v2680_v53 = vrot.slane %v2666_v43, %v23954_v25  ;;  %v663_v57 = vld [vmem:[%s23930_s11 + $0x878] sm:$0xff]  ;;  %v22833_v0 = vpack.c.bf16 %v1173_v52, %v661_v51 }
 0x27a   : > { %v9410_v7 = vpop.f32.mrb[73].mxu1  ;;  %v22837_v2 = vpack.c.bf16 %v1175_v58, %v663_v57  ;;  %v662_v6 = vld [vmem:[%s23930_s11 + $0x870] sm:$0xff]  ;;  %v1183_v43 = vld [vmem:[%s23930_s11 + $0x18b8] sm:$0x3] }
 0x27b   : > { %v9409_v13 = vadd.f32 %v9408_v1, %v9339_v5  ;;  %v2682_v1 = vcombine.high %v2680_v53, %v2680_v53  ;;  %v1172_v5 = vld [vmem:[%s23930_s11 + $0x1860] sm:$0x3]  ;;  %v1174_v7 = vld [vmem:[%s23930_s11 + $0x1870] sm:$0x3] }
 0x27c   : > { %v22839_v21 = vpack.c.bf16 %v1174_v7, %v662_v6 }
 0x27d   : > { %13117 = vmatmul.mubr.f32.vlgmr.msra.gmra.mrb[126].mxu0 %v2622_v39  ;;  %v2664_v39 = vcombine.high %v2656_v23, %v2656_v23 }
 0x27e   : > { %13187 = vmatmul.mubr.f32.vlgmr.msra.gmra.mrb[126].mxu1 %v2629_v44  ;;  %22812 = vmatpush1.bf16.xpose.msra.mxu0 %v22811_v11  ;;  %v656_v44 = vld [vmem:[%s23930_s11 + $0x840] sm:$0xff]  ;;  %v665_v11 = vld [vmem:[%s23930_s11 + $0x888] sm:$0xff] }
 0x27f   : > { %22816 = vmatpush1.bf16.xpose.msra.mxu1 %v22815_v12  ;;  %13256 = vmatprep.mubr.f32.mxu0 %v2647_v14  ;;  %v22827_v60 = vpack.c.bf16 %v1168_v45, %v656_v44  ;;  %v1177_v12 = vld [vmem:[%s23930_s11 + $0x1888] sm:$0x3] }
 0x280   : > { %22818 = vmatprep.subr.bf16.mxu0 %v22817_v15  ;;  %v9478_v24 = vpop.f32.mrb[74].mxu0  ;;  %13326 = vmatprep.mubr.f32.mxu1 %v2648_v16  ;;  %v333_v44 = vld [vmem:[%s23923_s5 + $0x228] sm:$0xff] }
 0x281   : > { %v9548_v26 = vpop.f32.mrb[74].mxu1  ;;  %22822 = vmatprep.subr.bf16.mxu1 %v22821_v17  ;;  %v9479_v30 = vadd.f32 %v9478_v24, %v9409_v13  ;;  %v9480_v31 = vpop.f32.mrb[75].mxu0  ;;  %v2697_v13 = vrot.slane %v2683_v3, %v23954_v25  ;;  %v667_v17 = vld [vmem:[%s23930_s11 + $0x898] sm:$0xff]  ;;  %v22841_v24 = vpack.c.bf16 %v1177_v12, %v665_v11  ;;  %v2717_v52 = vcombine.high %v333_v44, %v333_v44 }
 0x282   : > { %v9550_v32 = vpop.f32.mrb[75].mxu1  ;;  %v22845_v27 = vpack.c.bf16 %v1179_v18, %v667_v17  ;;  %v666_v31 = vld [vmem:[%s23930_s11 + $0x890] sm:$0xff]  ;;  %v2724_v57 = vrot.slane %v333_v44, %v23954_v25  ;;  %v1187_v3 = vld [vmem:[%s23930_s11 + $0x18d8] sm:$0x3] }
 0x283   : > { %v9549_v38 = vadd.f32 %v9548_v26, %v9479_v30  ;;  %v2699_v26 = vcombine.high %v2697_v13, %v2697_v13  ;;  %v1176_v30 = vld [vmem:[%s23930_s11 + $0x1880] sm:$0x3]  ;;  %v1178_v32 = vld [vmem:[%s23930_s11 + $0x1890] sm:$0x3] }
 0x284   : > { %v22847_v46 = vpack.c.bf16 %v1178_v32, %v666_v31 }
 0x285   : > { %13257 = vmatmul.mubr.f32.vlgmr.msra.gmra.mrb[128].mxu0 %v2639_v63  ;;  %v2681_v63 = vcombine.high %v2673_v48, %v2673_v48 }
 0x286   : > { %13327 = vmatmul.mubr.f32.vlgmr.msra.gmra.mrb[128].mxu1 %v2646_v4  ;;  %22820 = vmatpush1.bf16.xpose.msra.mxu0 %v22819_v36  ;;  %v660_v4 = vld [vmem:[%s23930_s11 + $0x860] sm:$0xff]  ;;  %v669_v36 = vld [vmem:[%s23930_s11 + $0x8a8] sm:$0xff] }
 0x287   : > { %22824 = vmatpush1.bf16.xpose.msra.mxu1 %v22823_v37  ;;  %13396 = vmatprep.mubr.f32.mxu0 %v2664_v39  ;;  %v22835_v20 = vpack.c.bf16 %v1172_v5, %v660_v4  ;;  %v1181_v37 = vld [vmem:[%s23930_s11 + $0x18a8] sm:$0x3]  ;;  %v334_v4 = vld [vmem:[%s23923_s5 + $0x230] sm:$0xff] }
 0x288   : > { %22826 = vmatprep.subr.bf16.mxu0 %v22825_v40  ;;  %v9618_v49 = vpop.f32.mrb[76].mxu0  ;;  %13466 = vmatprep.mubr.f32.mxu1 %v2665_v41  ;;  %v2734_v12 = vcombine.high %v334_v4, %v334_v4  ;;  %v2741_v17 = vrot.slane %v334_v4, %v23954_v25 }
 0x289   : > { %v9688_v50 = vpop.f32.mrb[76].mxu1  ;;  %22830 = vmatprep.subr.bf16.mxu1 %v22829_v42  ;;  %v9619_v54 = vadd.f32 %v9618_v49, %v9549_v38  ;;  %v9620_v55 = vpop.f32.mrb[77].mxu0  ;;  %v2714_v38 = vrot.slane %v2700_v28, %v23954_v25  ;;  %v671_v42 = vld [vmem:[%s23930_s11 + $0x8b8] sm:$0xff]  ;;  %v22849_v49 = vpack.c.bf16 %v1181_v37, %v669_v36 }
 0x28a   : > { %v9690_v56 = vpop.f32.mrb[77].mxu1  ;;  %v22853_v51 = vpack.c.bf16 %v1183_v43, %v671_v42  ;;  %v670_v55 = vld [vmem:[%s23930_s11 + $0x8b0] sm:$0xff]  ;;  %v1191_v28 = vld [vmem:[%s23930_s11 + $0x18f8] sm:$0x3] }
 0x28b   : > { %v9689_v62 = vadd.f32 %v9688_v50, %v9619_v54  ;;  %v2716_v50 = vcombine.high %v2714_v38, %v2714_v38  ;;  %v1180_v54 = vld [vmem:[%s23930_s11 + $0x18a0] sm:$0x3]  ;;  %v1182_v56 = vld [vmem:[%s23930_s11 + $0x18b0] sm:$0x3] }
 0x28c   : > { %v22855_v6 = vpack.c.bf16 %v1182_v56, %v670_v55 }
 0x28d   : > { %13397 = vmatmul.mubr.f32.vlgmr.msra.gmra.mrb[130].mxu0 %v2656_v23  ;;  %v2698_v23 = vcombine.high %v2690_v8, %v2690_v8 }
 0x28e   : > { %13467 = vmatmul.mubr.f32.vlgmr.msra.gmra.mrb[130].mxu1 %v2663_v29  ;;  %22828 = vmatpush1.bf16.xpose.msra.mxu0 %v22827_v60  ;;  %v664_v29 = vld [vmem:[%s23930_s11 + $0x880] sm:$0xff]  ;;  %v673_v60 = vld [vmem:[%s23930_s11 + $0x8c8] sm:$0xff] }
 0x28f   : > { %22832 = vmatpush1.bf16.xpose.msra.mxu1 %v22831_v61  ;;  %13536 = vmatprep.mubr.f32.mxu0 %v2681_v63  ;;  %v22843_v45 = vpack.c.bf16 %v1176_v30, %v664_v29  ;;  %v1185_v61 = vld [vmem:[%s23930_s11 + $0x18c8] sm:$0x3]  ;;  %v335_v29 = vld [vmem:[%s23923_s5 + $0x238] sm:$0xff] }
 0x290   : > { %22834 = vmatprep.subr.bf16.mxu0 %v22833_v0  ;;  %v9758_v9 = vpop.f32.mrb[78].mxu0  ;;  %13606 = vmatprep.mubr.f32.mxu1 %v2682_v1  ;;  %v2751_v37 = vcombine.high %v335_v29, %v335_v29  ;;  %v2758_v42 = vrot.slane %v335_v29, %v23954_v25 }
 0x291   : > { %v9828_v10 = vpop.f32.mrb[78].mxu1  ;;  %22838 = vmatprep.subr.bf16.mxu1 %v22837_v2  ;;  %v9759_v14 = vadd.f32 %v9758_v9, %v9689_v62  ;;  %v9760_v15 = vpop.f32.mrb[79].mxu0  ;;  %v2731_v62 = vrot.slane %v2717_v52, %v23954_v25  ;;  %v675_v2 = vld [vmem:[%s23930_s11 + $0x8d8] sm:$0xff]  ;;  %v22857_v9 = vpack.c.bf16 %v1185_v61, %v673_v60 }
 0x292   : > { %v9830_v16 = vpop.f32.mrb[79].mxu1  ;;  %v22861_v11 = vpack.c.bf16 %v1187_v3, %v675_v2  ;;  %v674_v15 = vld [vmem:[%s23930_s11 + $0x8d0] sm:$0xff]  ;;  %v1195_v52 = vld [vmem:[%s23930_s11 + $0x1918] sm:$0x3] }
 0x293   : > { %v9829_v22 = vadd.f32 %v9828_v10, %v9759_v14  ;;  %v2733_v10 = vcombine.high %v2731_v62, %v2731_v62  ;;  %v1184_v14 = vld [vmem:[%s23930_s11 + $0x18c0] sm:$0x3]  ;;  %v1186_v16 = vld [vmem:[%s23930_s11 + $0x18d0] sm:$0x3] }
 0x294   : > { %v22863_v31 = vpack.c.bf16 %v1186_v16, %v674_v15 }
 0x295   : > { %13537 = vmatmul.mubr.f32.vlgmr.msra.gmra.mrb[132].mxu0 %v2673_v48  ;;  %v2715_v48 = vcombine.high %v2707_v33, %v2707_v33 }
 0x296   : > { %13607 = vmatmul.mubr.f32.vlgmr.msra.gmra.mrb[132].mxu1 %v2680_v53  ;;  %22836 = vmatpush1.bf16.xpose.msra.mxu0 %v22835_v20  ;;  %v668_v53 = vld [vmem:[%s23930_s11 + $0x8a0] sm:$0xff]  ;;  %v677_v20 = vld [vmem:[%s23930_s11 + $0x8e8] sm:$0xff] }
 0x297   : > { %22840 = vmatpush1.bf16.xpose.msra.mxu1 %v22839_v21  ;;  %13676 = vmatprep.mubr.f32.mxu0 %v2698_v23  ;;  %v22851_v5 = vpack.c.bf16 %v1180_v54, %v668_v53  ;;  %v1189_v21 = vld [vmem:[%s23930_s11 + $0x18e8] sm:$0x3]  ;;  %v336_v53 = vld [vmem:[%s23923_s5 + $0x240] sm:$0xff] }
 0x298   : > { %22842 = vmatprep.subr.bf16.mxu0 %v22841_v24  ;;  %v9898_v34 = vpop.f32.mrb[80].mxu0  ;;  %13746 = vmatprep.mubr.f32.mxu1 %v2699_v26  ;;  %v2768_v61 = vcombine.high %v336_v53, %v336_v53  ;;  %v2775_v2 = vrot.slane %v336_v53, %v23954_v25 }
 0x299   : > { %v9968_v35 = vpop.f32.mrb[80].mxu1  ;;  %22846 = vmatprep.subr.bf16.mxu1 %v22845_v27  ;;  %v9899_v39 = vadd.f32 %v9898_v34, %v9829_v22  ;;  %v9900_v40 = vpop.f32.mrb[81].mxu0  ;;  %v2748_v22 = vrot.slane %v2734_v12, %v23954_v25  ;;  %v679_v27 = vld [vmem:[%s23930_s11 + $0x8f8] sm:$0xff]  ;;  %v22865_v34 = vpack.c.bf16 %v1189_v21, %v677_v20 }
 0x29a   : > { %v9970_v41 = vpop.f32.mrb[81].mxu1  ;;  %v22869_v36 = vpack.c.bf16 %v1191_v28, %v679_v27  ;;  %v678_v40 = vld [vmem:[%s23930_s11 + $0x8f0] sm:$0xff]  ;;  %v1199_v12 = vld [vmem:[%s23930_s11 + $0x1938] sm:$0x3] }
 0x29b   : > { %v9969_v47 = vadd.f32 %v9968_v35, %v9899_v39  ;;  %v2750_v35 = vcombine.high %v2748_v22, %v2748_v22  ;;  %v1188_v39 = vld [vmem:[%s23930_s11 + $0x18e0] sm:$0x3]  ;;  %v1190_v41 = vld [vmem:[%s23930_s11 + $0x18f0] sm:$0x3] }
 0x29c   : > { %v22871_v55 = vpack.c.bf16 %v1190_v41, %v678_v40 }
 0x29d   : > { %13677 = vmatmul.mubr.f32.vlgmr.msra.gmra.mrb[134].mxu0 %v2690_v8  ;;  %v2732_v8 = vcombine.high %v2724_v57, %v2724_v57 }
 0x29e   : > { %13747 = vmatmul.mubr.f32.vlgmr.msra.gmra.mrb[134].mxu1 %v2697_v13  ;;  %22844 = vmatpush1.bf16.xpose.msra.mxu0 %v22843_v45  ;;  %v672_v13 = vld [vmem:[%s23930_s11 + $0x8c0] sm:$0xff]  ;;  %v681_v45 = vld [vmem:[%s23930_s11 + $0x908] sm:$0xff] }
 0x29f   : > { %22848 = vmatpush1.bf16.xpose.msra.mxu1 %v22847_v46  ;;  %13816 = vmatprep.mubr.f32.mxu0 %v2715_v48  ;;  %v22859_v30 = vpack.c.bf16 %v1184_v14, %v672_v13  ;;  %v1193_v46 = vld [vmem:[%s23930_s11 + $0x1908] sm:$0x3] }
 0x2a0   : > { %22850 = vmatprep.subr.bf16.mxu0 %v22849_v49  ;;  %v10038_v58 = vpop.f32.mrb[82].mxu0  ;;  %13886 = vmatprep.mubr.f32.mxu1 %v2716_v50  ;;  %v337_v13 = vld [vmem:[%s23923_s5 + $0x248] sm:$0xff] }
 0x2a1   : > { %v10108_v59 = vpop.f32.mrb[82].mxu1  ;;  %22854 = vmatprep.subr.bf16.mxu1 %v22853_v51  ;;  %v10039_v63 = vadd.f32 %v10038_v58, %v9969_v47  ;;  %v10040_v0 = vpop.f32.mrb[83].mxu0  ;;  %v2765_v47 = vrot.slane %v2751_v37, %v23954_v25  ;;  %v683_v51 = vld [vmem:[%s23930_s11 + $0x918] sm:$0xff]  ;;  %v22873_v58 = vpack.c.bf16 %v1193_v46, %v681_v45  ;;  %v2785_v21 = vcombine.high %v337_v13, %v337_v13 }
 0x2a2   : > { %v10110_v1 = vpop.f32.mrb[83].mxu1  ;;  %v22877_v60 = vpack.c.bf16 %v1195_v52, %v683_v51  ;;  %v682_v0 = vld [vmem:[%s23930_s11 + $0x910] sm:$0xff]  ;;  %v2792_v27 = vrot.slane %v337_v13, %v23954_v25  ;;  %v1203_v37 = vld [vmem:[%s23930_s11 + $0x1958] sm:$0x3] }
 0x2a3   : > { %v10109_v7 = vadd.f32 %v10108_v59, %v10039_v63  ;;  %v2767_v59 = vcombine.high %v2765_v47, %v2765_v47  ;;  %v1192_v63 = vld [vmem:[%s23930_s11 + $0x1900] sm:$0x3]  ;;  %v1194_v1 = vld [vmem:[%s23930_s11 + $0x1910] sm:$0x3] }
 0x2a4   : > { %v22879_v15 = vpack.c.bf16 %v1194_v1, %v682_v0 }
 0x2a5   : > { %13817 = vmatmul.mubr.f32.vlgmr.msra.gmra.mrb[136].mxu0 %v2707_v33  ;;  %v2749_v33 = vcombine.high %v2741_v17, %v2741_v17 }
 0x2a6   : > { %13887 = vmatmul.mubr.f32.vlgmr.msra.gmra.mrb[136].mxu1 %v2714_v38  ;;  %22852 = vmatpush1.bf16.xpose.msra.mxu0 %v22851_v5  ;;  %v676_v38 = vld [vmem:[%s23930_s11 + $0x8e0] sm:$0xff]  ;;  %v685_v5 = vld [vmem:[%s23930_s11 + $0x928] sm:$0xff] }
 0x2a7   : > { %22856 = vmatpush1.bf16.xpose.msra.mxu1 %v22855_v6  ;;  %13956 = vmatprep.mubr.f32.mxu0 %v2732_v8  ;;  %v22867_v54 = vpack.c.bf16 %v1188_v39, %v676_v38  ;;  %v1197_v6 = vld [vmem:[%s23930_s11 + $0x1928] sm:$0x3]  ;;  %v338_v38 = vld [vmem:[%s23923_s5 + $0x250] sm:$0xff] }
 0x2a8   : > { %22858 = vmatprep.subr.bf16.mxu0 %v22857_v9  ;;  %v10178_v18 = vpop.f32.mrb[84].mxu0  ;;  %14026 = vmatprep.mubr.f32.mxu1 %v2733_v10  ;;  %v2802_v46 = vcombine.high %v338_v38, %v338_v38  ;;  %v2809_v51 = vrot.slane %v338_v38, %v23954_v25 }
 0x2a9   : > { %v10248_v19 = vpop.f32.mrb[84].mxu1  ;;  %22862 = vmatprep.subr.bf16.mxu1 %v22861_v11  ;;  %v10179_v23 = vadd.f32 %v10178_v18, %v10109_v7  ;;  %v10180_v24 = vpop.f32.mrb[85].mxu0  ;;  %v2782_v7 = vrot.slane %v2768_v61, %v23954_v25  ;;  %v687_v11 = vld [vmem:[%s23930_s11 + $0x938] sm:$0xff]  ;;  %v22881_v18 = vpack.c.bf16 %v1197_v6, %v685_v5 }
 0x2aa   : > { %v10250_v26 = vpop.f32.mrb[85].mxu1  ;;  %v22885_v20 = vpack.c.bf16 %v1199_v12, %v687_v11  ;;  %v686_v24 = vld [vmem:[%s23930_s11 + $0x930] sm:$0xff]  ;;  %v1207_v61 = vld [vmem:[%s23930_s11 + $0x1978] sm:$0x3] }
 0x2ab   : > { %v10249_v32 = vadd.f32 %v10248_v19, %v10179_v23  ;;  %v2784_v19 = vcombine.high %v2782_v7, %v2782_v7  ;;  %v1196_v23 = vld [vmem:[%s23930_s11 + $0x1920] sm:$0x3]  ;;  %v1198_v26 = vld [vmem:[%s23930_s11 + $0x1930] sm:$0x3] }
 0x2ac   : > { %v22887_v40 = vpack.c.bf16 %v1198_v26, %v686_v24 }
 0x2ad   : > { %13957 = vmatmul.mubr.f32.vlgmr.msra.gmra.mrb[138].mxu0 %v2724_v57  ;;  %v2766_v57 = vcombine.high %v2758_v42, %v2758_v42 }
 0x2ae   : > { %14027 = vmatmul.mubr.f32.vlgmr.msra.gmra.mrb[138].mxu1 %v2731_v62  ;;  %22860 = vmatpush1.bf16.xpose.msra.mxu0 %v22859_v30  ;;  %v680_v62 = vld [vmem:[%s23930_s11 + $0x900] sm:$0xff]  ;;  %v689_v30 = vld [vmem:[%s23930_s11 + $0x948] sm:$0xff] }
 0x2af   : > { %22864 = vmatpush1.bf16.xpose.msra.mxu1 %v22863_v31  ;;  %14096 = vmatprep.mubr.f32.mxu0 %v2749_v33  ;;  %v22875_v14 = vpack.c.bf16 %v1192_v63, %v680_v62  ;;  %v1201_v31 = vld [vmem:[%s23930_s11 + $0x1948] sm:$0x3]  ;;  %v339_v62 = vld [vmem:[%s23923_s5 + $0x258] sm:$0xff] }
 0x2b0   : > { %22866 = vmatprep.subr.bf16.mxu0 %v22865_v34  ;;  %v10318_v43 = vpop.f32.mrb[86].mxu0  ;;  %14166 = vmatprep.mubr.f32.mxu1 %v2750_v35  ;;  %v2819_v6 = vcombine.high %v339_v62, %v339_v62  ;;  %v2826_v11 = vrot.slane %v339_v62, %v23954_v25 }
 0x2b1   : > { %v10388_v44 = vpop.f32.mrb[86].mxu1  ;;  %22870 = vmatprep.subr.bf16.mxu1 %v22869_v36  ;;  %v10319_v48 = vadd.f32 %v10318_v43, %v10249_v32  ;;  %v10320_v49 = vpop.f32.mrb[87].mxu0  ;;  %v2799_v32 = vrot.slane %v2785_v21, %v23954_v25  ;;  %v691_v36 = vld [vmem:[%s23930_s11 + $0x958] sm:$0xff]  ;;  %v22889_v43 = vpack.c.bf16 %v1201_v31, %v689_v30 }
 0x2b2   : > { %v10390_v50 = vpop.f32.mrb[87].mxu1  ;;  %v22893_v45 = vpack.c.bf16 %v1203_v37, %v691_v36  ;;  %v690_v49 = vld [vmem:[%s23930_s11 + $0x950] sm:$0xff]  ;;  %v1211_v21 = vld [vmem:[%s23930_s11 + $0x1998] sm:$0x3] }
 0x2b3   : > { %v10389_v56 = vadd.f32 %v10388_v44, %v10319_v48  ;;  %v2801_v44 = vcombine.high %v2799_v32, %v2799_v32  ;;  %v1200_v48 = vld [vmem:[%s23930_s11 + $0x1940] sm:$0x3]  ;;  %v1202_v50 = vld [vmem:[%s23930_s11 + $0x1950] sm:$0x3] }
 0x2b4   : > { %v22895_v0 = vpack.c.bf16 %v1202_v50, %v690_v49 }
 0x2b5   : > { %14097 = vmatmul.mubr.f32.vlgmr.msra.gmra.mrb[140].mxu0 %v2741_v17  ;;  %v2783_v17 = vcombine.high %v2775_v2, %v2775_v2 }
 0x2b6   : > { %14167 = vmatmul.mubr.f32.vlgmr.msra.gmra.mrb[140].mxu1 %v2748_v22  ;;  %22868 = vmatpush1.bf16.xpose.msra.mxu0 %v22867_v54  ;;  %v684_v22 = vld [vmem:[%s23930_s11 + $0x920] sm:$0xff]  ;;  %v693_v54 = vld [vmem:[%s23930_s11 + $0x968] sm:$0xff] }
 0x2b7   : > { %22872 = vmatpush1.bf16.xpose.msra.mxu1 %v22871_v55  ;;  %14236 = vmatprep.mubr.f32.mxu0 %v2766_v57  ;;  %v22883_v39 = vpack.c.bf16 %v1196_v23, %v684_v22  ;;  %v1205_v55 = vld [vmem:[%s23930_s11 + $0x1968] sm:$0x3]  ;;  %v340_v22 = vld [vmem:[%s23923_s5 + $0x260] sm:$0xff] }
 0x2b8   : > { %22874 = vmatprep.subr.bf16.mxu0 %v22873_v58  ;;  %v10458_v3 = vpop.f32.mrb[88].mxu0  ;;  %14306 = vmatprep.mubr.f32.mxu1 %v2767_v59  ;;  %v2836_v31 = vcombine.high %v340_v22, %v340_v22  ;;  %v2843_v36 = vrot.slane %v340_v22, %v23954_v25 }
 0x2b9   : > { %v10528_v4 = vpop.f32.mrb[88].mxu1  ;;  %22878 = vmatprep.subr.bf16.mxu1 %v22877_v60  ;;  %v10459_v8 = vadd.f32 %v10458_v3, %v10389_v56  ;;  %v10460_v9 = vpop.f32.mrb[89].mxu0  ;;  %v2816_v56 = vrot.slane %v2802_v46, %v23954_v25  ;;  %v695_v60 = vld [vmem:[%s23930_s11 + $0x978] sm:$0xff]  ;;  %v22897_v3 = vpack.c.bf16 %v1205_v55, %v693_v54 }
 0x2ba   : > { %v10530_v10 = vpop.f32.mrb[89].mxu1  ;;  %v22901_v5 = vpack.c.bf16 %v1207_v61, %v695_v60  ;;  %v694_v9 = vld [vmem:[%s23930_s11 + $0x970] sm:$0xff]  ;;  %v1215_v46 = vld [vmem:[%s23930_s11 + $0x19b8] sm:$0x3] }
 0x2bb   : > { %v10529_v16 = vadd.f32 %v10528_v4, %v10459_v8  ;;  %v2818_v4 = vcombine.high %v2816_v56, %v2816_v56  ;;  %v1204_v8 = vld [vmem:[%s23930_s11 + $0x1960] sm:$0x3]  ;;  %v1206_v10 = vld [vmem:[%s23930_s11 + $0x1970] sm:$0x3] }
 0x2bc   : > { %v22903_v24 = vpack.c.bf16 %v1206_v10, %v694_v9 }
 0x2bd   : > { %14237 = vmatmul.mubr.f32.vlgmr.msra.gmra.mrb[142].mxu0 %v2758_v42  ;;  %v2800_v42 = vcombine.high %v2792_v27, %v2792_v27 }
 0x2be   : > { %14307 = vmatmul.mubr.f32.vlgmr.msra.gmra.mrb[142].mxu1 %v2765_v47  ;;  %22876 = vmatpush1.bf16.xpose.msra.mxu0 %v22875_v14  ;;  %v688_v47 = vld [vmem:[%s23930_s11 + $0x940] sm:$0xff]  ;;  %v697_v14 = vld [vmem:[%s23930_s11 + $0x988] sm:$0xff] }
 0x2bf   : > { %22880 = vmatpush1.bf16.xpose.msra.mxu1 %v22879_v15  ;;  %14376 = vmatprep.mubr.f32.mxu0 %v2783_v17  ;;  %v22891_v63 = vpack.c.bf16 %v1200_v48, %v688_v47  ;;  %v1209_v15 = vld [vmem:[%s23930_s11 + $0x1988] sm:$0x3] }
 0x2c0   : > { %22882 = vmatprep.subr.bf16.mxu0 %v22881_v18  ;;  %v10598_v28 = vpop.f32.mrb[90].mxu0  ;;  %14446 = vmatprep.mubr.f32.mxu1 %v2784_v19  ;;  %v341_v47 = vld [vmem:[%s23923_s5 + $0x268] sm:$0xff] }
 0x2c1   : > { %v10668_v29 = vpop.f32.mrb[90].mxu1  ;;  %22886 = vmatprep.subr.bf16.mxu1 %v22885_v20  ;;  %v10599_v33 = vadd.f32 %v10598_v28, %v10529_v16  ;;  %v10600_v34 = vpop.f32.mrb[91].mxu0  ;;  %v2833_v16 = vrot.slane %v2819_v6, %v23954_v25  ;;  %v699_v20 = vld [vmem:[%s23930_s11 + $0x998] sm:$0xff]  ;;  %v22905_v28 = vpack.c.bf16 %v1209_v15, %v697_v14  ;;  %v2853_v55 = vcombine.high %v341_v47, %v341_v47 }
 0x2c2   : > { %v10670_v35 = vpop.f32.mrb[91].mxu1  ;;  %v22909_v30 = vpack.c.bf16 %v1211_v21, %v699_v20  ;;  %v698_v34 = vld [vmem:[%s23930_s11 + $0x990] sm:$0xff]  ;;  %v2860_v60 = vrot.slane %v341_v47, %v23954_v25  ;;  %v1219_v6 = vld [vmem:[%s23930_s11 + $0x19d8] sm:$0x3] }
 0x2c3   : > { %v10669_v41 = vadd.f32 %v10668_v29, %v10599_v33  ;;  %v2835_v29 = vcombine.high %v2833_v16, %v2833_v16  ;;  %v1208_v33 = vld [vmem:[%s23930_s11 + $0x1980] sm:$0x3]  ;;  %v1210_v35 = vld [vmem:[%s23930_s11 + $0x1990] sm:$0x3] }
 0x2c4   : > { %v22911_v49 = vpack.c.bf16 %v1210_v35, %v698_v34 }
 0x2c5   : > { %14377 = vmatmul.mubr.f32.vlgmr.msra.gmra.mrb[144].mxu0 %v2775_v2  ;;  %v2817_v2 = vcombine.high %v2809_v51, %v2809_v51 }
 0x2c6   : > { %14447 = vmatmul.mubr.f32.vlgmr.msra.gmra.mrb[144].mxu1 %v2782_v7  ;;  %22884 = vmatpush1.bf16.xpose.msra.mxu0 %v22883_v39  ;;  %v692_v7 = vld [vmem:[%s23930_s11 + $0x960] sm:$0xff]  ;;  %v701_v39 = vld [vmem:[%s23930_s11 + $0x9a8] sm:$0xff] }
 0x2c7   : > { %22888 = vmatpush1.bf16.xpose.msra.mxu1 %v22887_v40  ;;  %14516 = vmatprep.mubr.f32.mxu0 %v2800_v42  ;;  %v22899_v23 = vpack.c.bf16 %v1204_v8, %v692_v7  ;;  %v1213_v40 = vld [vmem:[%s23930_s11 + $0x19a8] sm:$0x3]  ;;  %v342_v7 = vld [vmem:[%s23923_s5 + $0x270] sm:$0xff] }
 0x2c8   : > { %22890 = vmatprep.subr.bf16.mxu0 %v22889_v43  ;;  %v10738_v52 = vpop.f32.mrb[92].mxu0  ;;  %14586 = vmatprep.mubr.f32.mxu1 %v2801_v44  ;;  %v2870_v15 = vcombine.high %v342_v7, %v342_v7  ;;  %v2877_v20 = vrot.slane %v342_v7, %v23954_v25 }
 0x2c9   : > { %v10808_v53 = vpop.f32.mrb[92].mxu1  ;;  %22894 = vmatprep.subr.bf16.mxu1 %v22893_v45  ;;  %v10739_v57 = vadd.f32 %v10738_v52, %v10669_v41  ;;  %v10740_v58 = vpop.f32.mrb[93].mxu0  ;;  %v2850_v41 = vrot.slane %v2836_v31, %v23954_v25  ;;  %v703_v45 = vld [vmem:[%s23930_s11 + $0x9b8] sm:$0xff]  ;;  %v22913_v52 = vpack.c.bf16 %v1213_v40, %v701_v39 }
 0x2ca   : > { %v10810_v59 = vpop.f32.mrb[93].mxu1  ;;  %v22917_v54 = vpack.c.bf16 %v1215_v46, %v703_v45  ;;  %v702_v58 = vld [vmem:[%s23930_s11 + $0x9b0] sm:$0xff]  ;;  %v1223_v31 = vld [vmem:[%s23930_s11 + $0x19f8] sm:$0x3] }
 0x2cb   : > { %v10809_v1 = vadd.f32 %v10808_v53, %v10739_v57  ;;  %v2852_v53 = vcombine.high %v2850_v41, %v2850_v41  ;;  %v1212_v57 = vld [vmem:[%s23930_s11 + $0x19a0] sm:$0x3]  ;;  %v1214_v59 = vld [vmem:[%s23930_s11 + $0x19b0] sm:$0x3] }
 0x2cc   : > { %v22919_v9 = vpack.c.bf16 %v1214_v59, %v702_v58 }
 0x2cd   : > { %14517 = vmatmul.mubr.f32.vlgmr.msra.gmra.mrb[146].mxu0 %v2792_v27  ;;  %v2834_v27 = vcombine.high %v2826_v11, %v2826_v11 }
 0x2ce   : > { %14587 = vmatmul.mubr.f32.vlgmr.msra.gmra.mrb[146].mxu1 %v2799_v32  ;;  %22892 = vmatpush1.bf16.xpose.msra.mxu0 %v22891_v63  ;;  %v696_v32 = vld [vmem:[%s23930_s11 + $0x980] sm:$0xff]  ;;  %v705_v63 = vld [vmem:[%s23930_s11 + $0x9c8] sm:$0xff] }
 0x2cf   : > { %22896 = vmatpush1.bf16.xpose.msra.mxu1 %v22895_v0  ;;  %14656 = vmatprep.mubr.f32.mxu0 %v2817_v2  ;;  %v22907_v48 = vpack.c.bf16 %v1208_v33, %v696_v32  ;;  %v1217_v0 = vld [vmem:[%s23930_s11 + $0x19c8] sm:$0x3]  ;;  %v343_v32 = vld [vmem:[%s23923_s5 + $0x278] sm:$0xff] }
 0x2d0   : > { %22898 = vmatprep.subr.bf16.mxu0 %v22897_v3  ;;  %v10878_v12 = vpop.f32.mrb[94].mxu0  ;;  %14726 = vmatprep.mubr.f32.mxu1 %v2818_v4  ;;  %v2887_v40 = vcombine.high %v343_v32, %v343_v32  ;;  %v2894_v45 = vrot.slane %v343_v32, %v23954_v25 }
 0x2d1   : > { %v10948_v13 = vpop.f32.mrb[94].mxu1  ;;  %22902 = vmatprep.subr.bf16.mxu1 %v22901_v5  ;;  %v10879_v17 = vadd.f32 %v10878_v12, %v10809_v1  ;;  %v10880_v18 = vpop.f32.mrb[95].mxu0  ;;  %v2867_v1 = vrot.slane %v2853_v55, %v23954_v25  ;;  %v707_v5 = vld [vmem:[%s23930_s11 + $0x9d8] sm:$0xff]  ;;  %v22921_v12 = vpack.c.bf16 %v1217_v0, %v705_v63 }
 0x2d2   : > { %v10950_v19 = vpop.f32.mrb[95].mxu1  ;;  %v22925_v14 = vpack.c.bf16 %v1219_v6, %v707_v5  ;;  %v706_v18 = vld [vmem:[%s23930_s11 + $0x9d0] sm:$0xff]  ;;  %v1227_v55 = vld [vmem:[%s23930_s11 + $0x1a18] sm:$0x3] }
 0x2d3   : > { %v10949_v26 = vadd.f32 %v10948_v13, %v10879_v17  ;;  %v2869_v13 = vcombine.high %v2867_v1, %v2867_v1  ;;  %v1216_v17 = vld [vmem:[%s23930_s11 + $0x19c0] sm:$0x3]  ;;  %v1218_v19 = vld [vmem:[%s23930_s11 + $0x19d0] sm:$0x3] }
 0x2d4   : > { %v22927_v34 = vpack.c.bf16 %v1218_v19, %v706_v18 }
 0x2d5   : > { %14657 = vmatmul.mubr.f32.vlgmr.msra.gmra.mrb[148].mxu0 %v2809_v51  ;;  %v2851_v51 = vcombine.high %v2843_v36, %v2843_v36 }
 0x2d6   : > { %14727 = vmatmul.mubr.f32.vlgmr.msra.gmra.mrb[148].mxu1 %v2816_v56  ;;  %22900 = vmatpush1.bf16.xpose.msra.mxu0 %v22899_v23  ;;  %v700_v56 = vld [vmem:[%s23930_s11 + $0x9a0] sm:$0xff]  ;;  %v709_v23 = vld [vmem:[%s23930_s11 + $0x9e8] sm:$0xff] }
 0x2d7   : > { %22904 = vmatpush1.bf16.xpose.msra.mxu1 %v22903_v24  ;;  %14796 = vmatprep.mubr.f32.mxu0 %v2834_v27  ;;  %v22915_v8 = vpack.c.bf16 %v1212_v57, %v700_v56  ;;  %v1221_v24 = vld [vmem:[%s23930_s11 + $0x19e8] sm:$0x3]  ;;  %v344_v56 = vld [vmem:[%s23923_s5 + $0x280] sm:$0xff] }
 0x2d8   : > { %22906 = vmatprep.subr.bf16.mxu0 %v22905_v28  ;;  %v11018_v37 = vpop.f32.mrb[96].mxu0  ;;  %14866 = vmatprep.mubr.f32.mxu1 %v2835_v29  ;;  %v2904_v0 = vcombine.high %v344_v56, %v344_v56  ;;  %v2911_v5 = vrot.slane %v344_v56, %v23954_v25 }
 0x2d9   : > { %v11088_v38 = vpop.f32.mrb[96].mxu1  ;;  %22910 = vmatprep.subr.bf16.mxu1 %v22909_v30  ;;  %v11019_v42 = vadd.f32 %v11018_v37, %v10949_v26  ;;  %v11020_v43 = vpop.f32.mrb[97].mxu0  ;;  %v2884_v26 = vrot.slane %v2870_v15, %v23954_v25  ;;  %v711_v30 = vld [vmem:[%s23930_s11 + $0x9f8] sm:$0xff]  ;;  %v22929_v37 = vpack.c.bf16 %v1221_v24, %v709_v23 }
 0x2da   : > { %v11090_v44 = vpop.f32.mrb[97].mxu1  ;;  %v22933_v39 = vpack.c.bf16 %v1223_v31, %v711_v30  ;;  %v710_v43 = vld [vmem:[%s23930_s11 + $0x9f0] sm:$0xff]  ;;  %v1231_v15 = vld [vmem:[%s23930_s11 + $0x1a38] sm:$0x3] }
 0x2db   : > { %v11089_v50 = vadd.f32 %v11088_v38, %v11019_v42  ;;  %v2886_v38 = vcombine.high %v2884_v26, %v2884_v26  ;;  %v1220_v42 = vld [vmem:[%s23930_s11 + $0x19e0] sm:$0x3]  ;;  %v1222_v44 = vld [vmem:[%s23930_s11 + $0x19f0] sm:$0x3] }
 0x2dc   : > { %v22935_v58 = vpack.c.bf16 %v1222_v44, %v710_v43 }
 0x2dd   : > { %14797 = vmatmul.mubr.f32.vlgmr.msra.gmra.mrb[150].mxu0 %v2826_v11  ;;  %v2868_v11 = vcombine.high %v2860_v60, %v2860_v60 }
 0x2de   : > { %14867 = vmatmul.mubr.f32.vlgmr.msra.gmra.mrb[150].mxu1 %v2833_v16  ;;  %22908 = vmatpush1.bf16.xpose.msra.mxu0 %v22907_v48  ;;  %v704_v16 = vld [vmem:[%s23930_s11 + $0x9c0] sm:$0xff]  ;;  %v713_v48 = vld [vmem:[%s23930_s11 + $0xa08] sm:$0xff] }
 0x2df   : > { %22912 = vmatpush1.bf16.xpose.msra.mxu1 %v22911_v49  ;;  %14936 = vmatprep.mubr.f32.mxu0 %v2851_v51  ;;  %v22923_v33 = vpack.c.bf16 %v1216_v17, %v704_v16  ;;  %v1225_v49 = vld [vmem:[%s23930_s11 + $0x1a08] sm:$0x3] }
 0x2e0   : > { %22914 = vmatprep.subr.bf16.mxu0 %v22913_v52  ;;  %v11158_v61 = vpop.f32.mrb[98].mxu0  ;;  %15006 = vmatprep.mubr.f32.mxu1 %v2852_v53  ;;  %v345_v16 = vld [vmem:[%s23923_s5 + $0x288] sm:$0xff] }
 0x2e1   : > { %v11228_v62 = vpop.f32.mrb[98].mxu1  ;;  %22918 = vmatprep.subr.bf16.mxu1 %v22917_v54  ;;  %v11159_v2 = vadd.f32 %v11158_v61, %v11089_v50  ;;  %v11160_v3 = vpop.f32.mrb[99].mxu0  ;;  %v2901_v50 = vrot.slane %v2887_v40, %v23954_v25  ;;  %v715_v54 = vld [vmem:[%s23930_s11 + $0xa18] sm:$0xff]  ;;  %v22937_v61 = vpack.c.bf16 %v1225_v49, %v713_v48  ;;  %v2921_v24 = vcombine.high %v345_v16, %v345_v16 }
 0x2e2   : > { %v11230_v4 = vpop.f32.mrb[99].mxu1  ;;  %v22941_v63 = vpack.c.bf16 %v1227_v55, %v715_v54  ;;  %v714_v3 = vld [vmem:[%s23930_s11 + $0xa10] sm:$0xff]  ;;  %v2928_v30 = vrot.slane %v345_v16, %v23954_v25  ;;  %v1235_v40 = vld [vmem:[%s23930_s11 + $0x1a58] sm:$0x3] }
 0x2e3   : > { %v11229_v10 = vadd.f32 %v11228_v62, %v11159_v2  ;;  %v2903_v62 = vcombine.high %v2901_v50, %v2901_v50  ;;  %v1224_v2 = vld [vmem:[%s23930_s11 + $0x1a00] sm:$0x3]  ;;  %v1226_v4 = vld [vmem:[%s23930_s11 + $0x1a10] sm:$0x3] }
 0x2e4   : > { %v22943_v18 = vpack.c.bf16 %v1226_v4, %v714_v3 }
 0x2e5   : > { %14937 = vmatmul.mubr.f32.vlgmr.msra.gmra.mrb[152].mxu0 %v2843_v36  ;;  %v2885_v36 = vcombine.high %v2877_v20, %v2877_v20 }
 0x2e6   : > { %15007 = vmatmul.mubr.f32.vlgmr.msra.gmra.mrb[152].mxu1 %v2850_v41  ;;  %22916 = vmatpush1.bf16.xpose.msra.mxu0 %v22915_v8  ;;  %v708_v41 = vld [vmem:[%s23930_s11 + $0x9e0] sm:$0xff]  ;;  %v717_v8 = vld [vmem:[%s23930_s11 + $0xa28] sm:$0xff] }
 0x2e7   : > { %22920 = vmatpush1.bf16.xpose.msra.mxu1 %v22919_v9  ;;  %15076 = vmatprep.mubr.f32.mxu0 %v2868_v11  ;;  %v22931_v57 = vpack.c.bf16 %v1220_v42, %v708_v41  ;;  %v1229_v9 = vld [vmem:[%s23930_s11 + $0x1a28] sm:$0x3]  ;;  %v346_v41 = vld [vmem:[%s23923_s5 + $0x290] sm:$0xff] }
 0x2e8   : > { %22922 = vmatprep.subr.bf16.mxu0 %v22921_v12  ;;  %v11298_v21 = vpop.f32.mrb[100].mxu0  ;;  %15146 = vmatprep.mubr.f32.mxu1 %v2869_v13  ;;  %v2938_v49 = vcombine.high %v346_v41, %v346_v41  ;;  %v2945_v54 = vrot.slane %v346_v41, %v23954_v25 }
 0x2e9   : > { %v11368_v22 = vpop.f32.mrb[100].mxu1  ;;  %22926 = vmatprep.subr.bf16.mxu1 %v22925_v14  ;;  %v11299_v27 = vadd.f32 %v11298_v21, %v11229_v10  ;;  %v11300_v28 = vpop.f32.mrb[101].mxu0  ;;  %v2918_v10 = vrot.slane %v2904_v0, %v23954_v25  ;;  %v719_v14 = vld [vmem:[%s23930_s11 + $0xa38] sm:$0xff]  ;;  %v22945_v21 = vpack.c.bf16 %v1229_v9, %v717_v8 }
 0x2ea   : > { %v11370_v29 = vpop.f32.mrb[101].mxu1  ;;  %v22949_v23 = vpack.c.bf16 %v1231_v15, %v719_v14  ;;  %v718_v28 = vld [vmem:[%s23930_s11 + $0xa30] sm:$0xff]  ;;  %v1239_v0 = vld [vmem:[%s23930_s11 + $0x1a78] sm:$0x3] }
 0x2eb   : > { %v11369_v35 = vadd.f32 %v11368_v22, %v11299_v27  ;;  %v2920_v22 = vcombine.high %v2918_v10, %v2918_v10  ;;  %v1228_v27 = vld [vmem:[%s23930_s11 + $0x1a20] sm:$0x3]  ;;  %v1230_v29 = vld [vmem:[%s23930_s11 + $0x1a30] sm:$0x3] }
 0x2ec   : > { %v22951_v43 = vpack.c.bf16 %v1230_v29, %v718_v28 }
 0x2ed   : > { %15077 = vmatmul.mubr.f32.vlgmr.msra.gmra.mrb[154].mxu0 %v2860_v60  ;;  %v2902_v60 = vcombine.high %v2894_v45, %v2894_v45 }
 0x2ee   : > { %15147 = vmatmul.mubr.f32.vlgmr.msra.gmra.mrb[154].mxu1 %v2867_v1  ;;  %22924 = vmatpush1.bf16.xpose.msra.mxu0 %v22923_v33  ;;  %v712_v1 = vld [vmem:[%s23930_s11 + $0xa00] sm:$0xff]  ;;  %v721_v33 = vld [vmem:[%s23930_s11 + $0xa48] sm:$0xff] }
 0x2ef   : > { %22928 = vmatpush1.bf16.xpose.msra.mxu1 %v22927_v34  ;;  %15216 = vmatprep.mubr.f32.mxu0 %v2885_v36  ;;  %v22939_v17 = vpack.c.bf16 %v1224_v2, %v712_v1  ;;  %v1233_v34 = vld [vmem:[%s23930_s11 + $0x1a48] sm:$0x3]  ;;  %v347_v1 = vld [vmem:[%s23923_s5 + $0x298] sm:$0xff] }
 0x2f0   : > { %22930 = vmatprep.subr.bf16.mxu0 %v22929_v37  ;;  %v11438_v46 = vpop.f32.mrb[102].mxu0  ;;  %15286 = vmatprep.mubr.f32.mxu1 %v2886_v38  ;;  %v2955_v9 = vcombine.high %v347_v1, %v347_v1  ;;  %v2962_v14 = vrot.slane %v347_v1, %v23954_v25 }
 0x2f1   : > { %v11508_v47 = vpop.f32.mrb[102].mxu1  ;;  %22934 = vmatprep.subr.bf16.mxu1 %v22933_v39  ;;  %v11439_v51 = vadd.f32 %v11438_v46, %v11369_v35  ;;  %v11440_v52 = vpop.f32.mrb[103].mxu0  ;;  %v2935_v35 = vrot.slane %v2921_v24, %v23954_v25  ;;  %v723_v39 = vld [vmem:[%s23930_s11 + $0xa58] sm:$0xff]  ;;  %v22953_v46 = vpack.c.bf16 %v1233_v34, %v721_v33 }
 0x2f2   : > { %v11510_v53 = vpop.f32.mrb[103].mxu1  ;;  %v22957_v48 = vpack.c.bf16 %v1235_v40, %v723_v39  ;;  %v722_v52 = vld [vmem:[%s23930_s11 + $0xa50] sm:$0xff]  ;;  %v1243_v24 = vld [vmem:[%s23930_s11 + $0x1a98] sm:$0x3] }
 0x2f3   : > { %v11509_v59 = vadd.f32 %v11508_v47, %v11439_v51  ;;  %v2937_v47 = vcombine.high %v2935_v35, %v2935_v35  ;;  %v1232_v51 = vld [vmem:[%s23930_s11 + $0x1a40] sm:$0x3]  ;;  %v1234_v53 = vld [vmem:[%s23930_s11 + $0x1a50] sm:$0x3] }
 0x2f4   : > { %v22959_v3 = vpack.c.bf16 %v1234_v53, %v722_v52 }
 0x2f5   : > { %15217 = vmatmul.mubr.f32.vlgmr.msra.gmra.mrb[156].mxu0 %v2877_v20  ;;  %v2919_v20 = vcombine.high %v2911_v5, %v2911_v5 }
 0x2f6   : > { %15287 = vmatmul.mubr.f32.vlgmr.msra.gmra.mrb[156].mxu1 %v2884_v26  ;;  %22932 = vmatpush1.bf16.xpose.msra.mxu0 %v22931_v57  ;;  %v716_v26 = vld [vmem:[%s23930_s11 + $0xa20] sm:$0xff]  ;;  %v725_v57 = vld [vmem:[%s23930_s11 + $0xa68] sm:$0xff] }
 0x2f7   : > { %22936 = vmatpush1.bf16.xpose.msra.mxu1 %v22935_v58  ;;  %15356 = vmatprep.mubr.f32.mxu0 %v2902_v60  ;;  %v22947_v42 = vpack.c.bf16 %v1228_v27, %v716_v26  ;;  %v1237_v58 = vld [vmem:[%s23930_s11 + $0x1a68] sm:$0x3]  ;;  %v348_v26 = vld [vmem:[%s23923_s5 + $0x2a0] sm:$0xff] }
 0x2f8   : > { %22938 = vmatprep.subr.bf16.mxu0 %v22937_v61  ;;  %v11578_v6 = vpop.f32.mrb[104].mxu0  ;;  %15426 = vmatprep.mubr.f32.mxu1 %v2903_v62  ;;  %v2972_v34 = vcombine.high %v348_v26, %v348_v26  ;;  %v2979_v39 = vrot.slane %v348_v26, %v23954_v25 }
 0x2f9   : > { %v11648_v7 = vpop.f32.mrb[104].mxu1  ;;  %22942 = vmatprep.subr.bf16.mxu1 %v22941_v63  ;;  %v11579_v11 = vadd.f32 %v11578_v6, %v11509_v59  ;;  %v11580_v12 = vpop.f32.mrb[105].mxu0  ;;  %v2952_v59 = vrot.slane %v2938_v49, %v23954_v25  ;;  %v727_v63 = vld [vmem:[%s23930_s11 + $0xa78] sm:$0xff]  ;;  %v22961_v6 = vpack.c.bf16 %v1237_v58, %v725_v57 }
 0x2fa   : > { %v11650_v13 = vpop.f32.mrb[105].mxu1  ;;  %v22965_v8 = vpack.c.bf16 %v1239_v0, %v727_v63  ;;  %v726_v12 = vld [vmem:[%s23930_s11 + $0xa70] sm:$0xff]  ;;  %v1247_v49 = vld [vmem:[%s23930_s11 + $0x1ab8] sm:$0x3] }
 0x2fb   : > { %v11649_v19 = vadd.f32 %v11648_v7, %v11579_v11  ;;  %v2954_v7 = vcombine.high %v2952_v59, %v2952_v59  ;;  %v1236_v11 = vld [vmem:[%s23930_s11 + $0x1a60] sm:$0x3]  ;;  %v1238_v13 = vld [vmem:[%s23930_s11 + $0x1a70] sm:$0x3] }
 0x2fc   : > { %v22967_v28 = vpack.c.bf16 %v1238_v13, %v726_v12 }
 0x2fd   : > { %15357 = vmatmul.mubr.f32.vlgmr.msra.gmra.mrb[158].mxu0 %v2894_v45  ;;  %v2936_v45 = vcombine.high %v2928_v30, %v2928_v30 }
 0x2fe   : > { %15427 = vmatmul.mubr.f32.vlgmr.msra.gmra.mrb[158].mxu1 %v2901_v50  ;;  %22940 = vmatpush1.bf16.xpose.msra.mxu0 %v22939_v17  ;;  %v720_v50 = vld [vmem:[%s23930_s11 + $0xa40] sm:$0xff]  ;;  %v729_v17 = vld [vmem:[%s23930_s11 + $0xa88] sm:$0xff] }
 0x2ff   : > { %22944 = vmatpush1.bf16.xpose.msra.mxu1 %v22943_v18  ;;  %15496 = vmatprep.mubr.f32.mxu0 %v2919_v20  ;;  %v22955_v2 = vpack.c.bf16 %v1232_v51, %v720_v50  ;;  %v1241_v18 = vld [vmem:[%s23930_s11 + $0x1a88] sm:$0x3] }
 0x300   : > { %22946 = vmatprep.subr.bf16.mxu0 %v22945_v21  ;;  %v11718_v31 = vpop.f32.mrb[106].mxu0  ;;  %15566 = vmatprep.mubr.f32.mxu1 %v2920_v22  ;;  %v349_v50 = vld [vmem:[%s23923_s5 + $0x2a8] sm:$0xff] }
 0x301   : > { %v11788_v32 = vpop.f32.mrb[106].mxu1  ;;  %22950 = vmatprep.subr.bf16.mxu1 %v22949_v23  ;;  %v11719_v36 = vadd.f32 %v11718_v31, %v11649_v19  ;;  %v11720_v37 = vpop.f32.mrb[107].mxu0  ;;  %v2969_v19 = vrot.slane %v2955_v9, %v23954_v25  ;;  %v731_v23 = vld [vmem:[%s23930_s11 + $0xa98] sm:$0xff]  ;;  %v22969_v31 = vpack.c.bf16 %v1241_v18, %v729_v17  ;;  %v2989_v58 = vcombine.high %v349_v50, %v349_v50 }
 0x302   : > { %v11790_v38 = vpop.f32.mrb[107].mxu1  ;;  %v22973_v33 = vpack.c.bf16 %v1243_v24, %v731_v23  ;;  %v730_v37 = vld [vmem:[%s23930_s11 + $0xa90] sm:$0xff]  ;;  %v2996_v63 = vrot.slane %v349_v50, %v23954_v25  ;;  %v1251_v9 = vld [vmem:[%s23930_s11 + $0x1ad8] sm:$0x3] }
 0x303   : > { %v11789_v44 = vadd.f32 %v11788_v32, %v11719_v36  ;;  %v2971_v32 = vcombine.high %v2969_v19, %v2969_v19  ;;  %v1240_v36 = vld [vmem:[%s23930_s11 + $0x1a80] sm:$0x3]  ;;  %v1242_v38 = vld [vmem:[%s23930_s11 + $0x1a90] sm:$0x3] }
 0x304   : > { %v22975_v52 = vpack.c.bf16 %v1242_v38, %v730_v37 }
 0x305   : > { %15497 = vmatmul.mubr.f32.vlgmr.msra.gmra.mrb[160].mxu0 %v2911_v5  ;;  %v2953_v5 = vcombine.high %v2945_v54, %v2945_v54 }
 0x306   : > { %15567 = vmatmul.mubr.f32.vlgmr.msra.gmra.mrb[160].mxu1 %v2918_v10  ;;  %22948 = vmatpush1.bf16.xpose.msra.mxu0 %v22947_v42  ;;  %v724_v10 = vld [vmem:[%s23930_s11 + $0xa60] sm:$0xff]  ;;  %v733_v42 = vld [vmem:[%s23930_s11 + $0xaa8] sm:$0xff] }
 0x307   : > { %22952 = vmatpush1.bf16.xpose.msra.mxu1 %v22951_v43  ;;  %15636 = vmatprep.mubr.f32.mxu0 %v2936_v45  ;;  %v22963_v27 = vpack.c.bf16 %v1236_v11, %v724_v10  ;;  %v1245_v43 = vld [vmem:[%s23930_s11 + $0x1aa8] sm:$0x3]  ;;  %v350_v10 = vld [vmem:[%s23923_s5 + $0x2b0] sm:$0xff] }
 0x308   : > { %22954 = vmatprep.subr.bf16.mxu0 %v22953_v46  ;;  %v11858_v55 = vpop.f32.mrb[108].mxu0  ;;  %15706 = vmatprep.mubr.f32.mxu1 %v2937_v47  ;;  %v3006_v18 = vcombine.high %v350_v10, %v350_v10  ;;  %v3013_v23 = vrot.slane %v350_v10, %v23954_v25 }
 0x309   : > { %v11928_v56 = vpop.f32.mrb[108].mxu1  ;;  %22958 = vmatprep.subr.bf16.mxu1 %v22957_v48  ;;  %v11859_v60 = vadd.f32 %v11858_v55, %v11789_v44  ;;  %v11860_v61 = vpop.f32.mrb[109].mxu0  ;;  %v2986_v44 = vrot.slane %v2972_v34, %v23954_v25  ;;  %v735_v48 = vld [vmem:[%s23930_s11 + $0xab8] sm:$0xff]  ;;  %v22977_v55 = vpack.c.bf16 %v1245_v43, %v733_v42 }
 0x30a   : > { %v11930_v62 = vpop.f32.mrb[109].mxu1  ;;  %v22981_v57 = vpack.c.bf16 %v1247_v49, %v735_v48  ;;  %v734_v61 = vld [vmem:[%s23930_s11 + $0xab0] sm:$0xff]  ;;  %v1255_v34 = vld [vmem:[%s23930_s11 + $0x1af8] sm:$0x3] }
 0x30b   : > { %v11929_v4 = vadd.f32 %v11928_v56, %v11859_v60  ;;  %v2988_v56 = vcombine.high %v2986_v44, %v2986_v44  ;;  %v1244_v60 = vld [vmem:[%s23930_s11 + $0x1aa0] sm:$0x3]  ;;  %v1246_v62 = vld [vmem:[%s23930_s11 + $0x1ab0] sm:$0x3] }
 0x30c   : > { %v22983_v12 = vpack.c.bf16 %v1246_v62, %v734_v61 }
 0x30d   : > { %15637 = vmatmul.mubr.f32.vlgmr.msra.gmra.mrb[162].mxu0 %v2928_v30  ;;  %v2970_v30 = vcombine.high %v2962_v14, %v2962_v14 }
 0x30e   : > { %15707 = vmatmul.mubr.f32.vlgmr.msra.gmra.mrb[162].mxu1 %v2935_v35  ;;  %22956 = vmatpush1.bf16.xpose.msra.mxu0 %v22955_v2  ;;  %v728_v35 = vld [vmem:[%s23930_s11 + $0xa80] sm:$0xff]  ;;  %v737_v2 = vld [vmem:[%s23930_s11 + $0xac8] sm:$0xff] }
 0x30f   : > { %22960 = vmatpush1.bf16.xpose.msra.mxu1 %v22959_v3  ;;  %15776 = vmatprep.mubr.f32.mxu0 %v2953_v5  ;;  %v22971_v51 = vpack.c.bf16 %v1240_v36, %v728_v35  ;;  %v1249_v3 = vld [vmem:[%s23930_s11 + $0x1ac8] sm:$0x3]  ;;  %v351_v35 = vld [vmem:[%s23923_s5 + $0x2b8] sm:$0xff] }
 0x310   : > { %22962 = vmatprep.subr.bf16.mxu0 %v22961_v6  ;;  %v11998_v15 = vpop.f32.mrb[110].mxu0  ;;  %15846 = vmatprep.mubr.f32.mxu1 %v2954_v7  ;;  %v3023_v43 = vcombine.high %v351_v35, %v351_v35  ;;  %v3030_v48 = vrot.slane %v351_v35, %v23954_v25 }
 0x311   : > { %v12068_v16 = vpop.f32.mrb[110].mxu1  ;;  %22966 = vmatprep.subr.bf16.mxu1 %v22965_v8  ;;  %v11999_v20 = vadd.f32 %v11998_v15, %v11929_v4  ;;  %v12000_v21 = vpop.f32.mrb[111].mxu0  ;;  %v3003_v4 = vrot.slane %v2989_v58, %v23954_v25  ;;  %v739_v8 = vld [vmem:[%s23930_s11 + $0xad8] sm:$0xff]  ;;  %v22985_v15 = vpack.c.bf16 %v1249_v3, %v737_v2 }
 0x312   : > { %v12070_v22 = vpop.f32.mrb[111].mxu1  ;;  %v22989_v17 = vpack.c.bf16 %v1251_v9, %v739_v8  ;;  %v738_v21 = vld [vmem:[%s23930_s11 + $0xad0] sm:$0xff]  ;;  %v1259_v58 = vld [vmem:[%s23930_s11 + $0x1b18] sm:$0x3] }
 0x313   : > { %v12069_v29 = vadd.f32 %v12068_v16, %v11999_v20  ;;  %v3005_v16 = vcombine.high %v3003_v4, %v3003_v4  ;;  %v1248_v20 = vld [vmem:[%s23930_s11 + $0x1ac0] sm:$0x3]  ;;  %v1250_v22 = vld [vmem:[%s23930_s11 + $0x1ad0] sm:$0x3] }
 0x314   : > { %v22991_v37 = vpack.c.bf16 %v1250_v22, %v738_v21 }
 0x315   : > { %15777 = vmatmul.mubr.f32.vlgmr.msra.gmra.mrb[164].mxu0 %v2945_v54  ;;  %v2987_v54 = vcombine.high %v2979_v39, %v2979_v39 }
 0x316   : > { %15847 = vmatmul.mubr.f32.vlgmr.msra.gmra.mrb[164].mxu1 %v2952_v59  ;;  %22964 = vmatpush1.bf16.xpose.msra.mxu0 %v22963_v27  ;;  %v732_v59 = vld [vmem:[%s23930_s11 + $0xaa0] sm:$0xff]  ;;  %v741_v27 = vld [vmem:[%s23930_s11 + $0xae8] sm:$0xff] }
 0x317   : > { %22968 = vmatpush1.bf16.xpose.msra.mxu1 %v22967_v28  ;;  %15916 = vmatprep.mubr.f32.mxu0 %v2970_v30  ;;  %v22979_v11 = vpack.c.bf16 %v1244_v60, %v732_v59  ;;  %v1253_v28 = vld [vmem:[%s23930_s11 + $0x1ae8] sm:$0x3]  ;;  %v352_v59 = vld [vmem:[%s23923_s5 + $0x2c0] sm:$0xff] }
 0x318   : > { %22970 = vmatprep.subr.bf16.mxu0 %v22969_v31  ;;  %v12138_v40 = vpop.f32.mrb[112].mxu0  ;;  %15986 = vmatprep.mubr.f32.mxu1 %v2971_v32  ;;  %v3040_v3 = vcombine.high %v352_v59, %v352_v59  ;;  %v3047_v8 = vrot.slane %v352_v59, %v23954_v25 }
 0x319   : > { %v12208_v41 = vpop.f32.mrb[112].mxu1  ;;  %22974 = vmatprep.subr.bf16.mxu1 %v22973_v33  ;;  %v12139_v45 = vadd.f32 %v12138_v40, %v12069_v29  ;;  %v12140_v46 = vpop.f32.mrb[113].mxu0  ;;  %v3020_v29 = vrot.slane %v3006_v18, %v23954_v25  ;;  %v743_v33 = vld [vmem:[%s23930_s11 + $0xaf8] sm:$0xff]  ;;  %v22993_v40 = vpack.c.bf16 %v1253_v28, %v741_v27 }
 0x31a   : > { %v12210_v47 = vpop.f32.mrb[113].mxu1  ;;  %v22997_v42 = vpack.c.bf16 %v1255_v34, %v743_v33  ;;  %v742_v46 = vld [vmem:[%s23930_s11 + $0xaf0] sm:$0xff]  ;;  %v1263_v18 = vld [vmem:[%s23930_s11 + $0x1b38] sm:$0x3] }
 0x31b   : > { %v12209_v53 = vadd.f32 %v12208_v41, %v12139_v45  ;;  %v3022_v41 = vcombine.high %v3020_v29, %v3020_v29  ;;  %v1252_v45 = vld [vmem:[%s23930_s11 + $0x1ae0] sm:$0x3]  ;;  %v1254_v47 = vld [vmem:[%s23930_s11 + $0x1af0] sm:$0x3] }
 0x31c   : > { %v22999_v61 = vpack.c.bf16 %v1254_v47, %v742_v46 }
 0x31d   : > { %15917 = vmatmul.mubr.f32.vlgmr.msra.gmra.mrb[166].mxu0 %v2962_v14  ;;  %v3004_v14 = vcombine.high %v2996_v63, %v2996_v63 }
 0x31e   : > { %15987 = vmatmul.mubr.f32.vlgmr.msra.gmra.mrb[166].mxu1 %v2969_v19  ;;  %22972 = vmatpush1.bf16.xpose.msra.mxu0 %v22971_v51  ;;  %v736_v19 = vld [vmem:[%s23930_s11 + $0xac0] sm:$0xff]  ;;  %v745_v51 = vld [vmem:[%s23930_s11 + $0xb08] sm:$0xff] }
 0x31f   : > { %22976 = vmatpush1.bf16.xpose.msra.mxu1 %v22975_v52  ;;  %16056 = vmatprep.mubr.f32.mxu0 %v2987_v54  ;;  %v22987_v36 = vpack.c.bf16 %v1248_v20, %v736_v19  ;;  %v1257_v52 = vld [vmem:[%s23930_s11 + $0x1b08] sm:$0x3] }
 0x320   : > { %22978 = vmatprep.subr.bf16.mxu0 %v22977_v55  ;;  %v12278_v0 = vpop.f32.mrb[114].mxu0  ;;  %16126 = vmatprep.mubr.f32.mxu1 %v2988_v56  ;;  %v353_v19 = vld [vmem:[%s23923_s5 + $0x2c8] sm:$0xff] }
 0x321   : > { %v12348_v1 = vpop.f32.mrb[114].mxu1  ;;  %22982 = vmatprep.subr.bf16.mxu1 %v22981_v57  ;;  %v12279_v5 = vadd.f32 %v12278_v0, %v12209_v53  ;;  %v12280_v6 = vpop.f32.mrb[115].mxu0  ;;  %v3037_v53 = vrot.slane %v3023_v43, %v23954_v25  ;;  %v747_v57 = vld [vmem:[%s23930_s11 + $0xb18] sm:$0xff]  ;;  %v23001_v0 = vpack.c.bf16 %v1257_v52, %v745_v51  ;;  %v3057_v28 = vcombine.high %v353_v19, %v353_v19 }
 0x322   : > { %v12350_v7 = vpop.f32.mrb[115].mxu1  ;;  %v23005_v2 = vpack.c.bf16 %v1259_v58, %v747_v57  ;;  %v746_v6 = vld [vmem:[%s23930_s11 + $0xb10] sm:$0xff]  ;;  %v3064_v33 = vrot.slane %v353_v19, %v23954_v25  ;;  %v1267_v43 = vld [vmem:[%s23930_s11 + $0x1b58] sm:$0x3] }
 0x323   : > { %v12349_v13 = vadd.f32 %v12348_v1, %v12279_v5  ;;  %v3039_v1 = vcombine.high %v3037_v53, %v3037_v53  ;;  %v1256_v5 = vld [vmem:[%s23930_s11 + $0x1b00] sm:$0x3]  ;;  %v1258_v7 = vld [vmem:[%s23930_s11 + $0x1b10] sm:$0x3] }
 0x324   : > { %v23007_v21 = vpack.c.bf16 %v1258_v7, %v746_v6 }
 0x325   : > { %16057 = vmatmul.mubr.f32.vlgmr.msra.gmra.mrb[168].mxu0 %v2979_v39  ;;  %v3021_v39 = vcombine.high %v3013_v23, %v3013_v23 }
 0x326   : > { %16127 = vmatmul.mubr.f32.vlgmr.msra.gmra.mrb[168].mxu1 %v2986_v44  ;;  %22980 = vmatpush1.bf16.xpose.msra.mxu0 %v22979_v11  ;;  %v740_v44 = vld [vmem:[%s23930_s11 + $0xae0] sm:$0xff]  ;;  %v749_v11 = vld [vmem:[%s23930_s11 + $0xb28] sm:$0xff] }
 0x327   : > { %22984 = vmatpush1.bf16.xpose.msra.mxu1 %v22983_v12  ;;  %16196 = vmatprep.mubr.f32.mxu0 %v3004_v14  ;;  %v22995_v60 = vpack.c.bf16 %v1252_v45, %v740_v44  ;;  %v1261_v12 = vld [vmem:[%s23930_s11 + $0x1b28] sm:$0x3]  ;;  %v354_v44 = vld [vmem:[%s23923_s5 + $0x2d0] sm:$0xff] }
 0x328   : > { %22986 = vmatprep.subr.bf16.mxu0 %v22985_v15  ;;  %v12418_v24 = vpop.f32.mrb[116].mxu0  ;;  %16266 = vmatprep.mubr.f32.mxu1 %v3005_v16  ;;  %v3074_v52 = vcombine.high %v354_v44, %v354_v44  ;;  %v3081_v57 = vrot.slane %v354_v44, %v23954_v25 }
 0x329   : > { %v12488_v26 = vpop.f32.mrb[116].mxu1  ;;  %22990 = vmatprep.subr.bf16.mxu1 %v22989_v17  ;;  %v12419_v30 = vadd.f32 %v12418_v24, %v12349_v13  ;;  %v12420_v31 = vpop.f32.mrb[117].mxu0  ;;  %v3054_v13 = vrot.slane %v3040_v3, %v23954_v25  ;;  %v751_v17 = vld [vmem:[%s23930_s11 + $0xb38] sm:$0xff]  ;;  %v23009_v24 = vpack.c.bf16 %v1261_v12, %v749_v11 }
 0x32a   : > { %v12490_v32 = vpop.f32.mrb[117].mxu1  ;;  %v23013_v27 = vpack.c.bf16 %v1263_v18, %v751_v17  ;;  %v750_v31 = vld [vmem:[%s23930_s11 + $0xb30] sm:$0xff]  ;;  %v1271_v3 = vld [vmem:[%s23930_s11 + $0x1b78] sm:$0x3] }
 0x32b   : > { %v12489_v38 = vadd.f32 %v12488_v26, %v12419_v30  ;;  %v3056_v26 = vcombine.high %v3054_v13, %v3054_v13  ;;  %v1260_v30 = vld [vmem:[%s23930_s11 + $0x1b20] sm:$0x3]  ;;  %v1262_v32 = vld [vmem:[%s23930_s11 + $0x1b30] sm:$0x3] }
 0x32c   : > { %v23015_v46 = vpack.c.bf16 %v1262_v32, %v750_v31 }
 0x32d   : > { %16197 = vmatmul.mubr.f32.vlgmr.msra.gmra.mrb[170].mxu0 %v2996_v63  ;;  %v3038_v63 = vcombine.high %v3030_v48, %v3030_v48 }
 0x32e   : > { %16267 = vmatmul.mubr.f32.vlgmr.msra.gmra.mrb[170].mxu1 %v3003_v4  ;;  %22988 = vmatpush1.bf16.xpose.msra.mxu0 %v22987_v36  ;;  %v744_v4 = vld [vmem:[%s23930_s11 + $0xb00] sm:$0xff]  ;;  %v753_v36 = vld [vmem:[%s23930_s11 + $0xb48] sm:$0xff] }
 0x32f   : > { %22992 = vmatpush1.bf16.xpose.msra.mxu1 %v22991_v37  ;;  %16336 = vmatprep.mubr.f32.mxu0 %v3021_v39  ;;  %v23003_v20 = vpack.c.bf16 %v1256_v5, %v744_v4  ;;  %v1265_v37 = vld [vmem:[%s23930_s11 + $0x1b48] sm:$0x3]  ;;  %v355_v4 = vld [vmem:[%s23923_s5 + $0x2d8] sm:$0xff] }
 0x330   : > { %22994 = vmatprep.subr.bf16.mxu0 %v22993_v40  ;;  %v12558_v49 = vpop.f32.mrb[118].mxu0  ;;  %16406 = vmatprep.mubr.f32.mxu1 %v3022_v41  ;;  %v3091_v12 = vcombine.high %v355_v4, %v355_v4  ;;  %v3098_v17 = vrot.slane %v355_v4, %v23954_v25 }
 0x331   : > { %v12628_v50 = vpop.f32.mrb[118].mxu1  ;;  %22998 = vmatprep.subr.bf16.mxu1 %v22997_v42  ;;  %v12559_v54 = vadd.f32 %v12558_v49, %v12489_v38  ;;  %v12560_v55 = vpop.f32.mrb[119].mxu0  ;;  %v3071_v38 = vrot.slane %v3057_v28, %v23954_v25  ;;  %v755_v42 = vld [vmem:[%s23930_s11 + $0xb58] sm:$0xff]  ;;  %v23017_v49 = vpack.c.bf16 %v1265_v37, %v753_v36 }
 0x332   : > { %v12630_v56 = vpop.f32.mrb[119].mxu1  ;;  %v23021_v51 = vpack.c.bf16 %v1267_v43, %v755_v42  ;;  %v754_v55 = vld [vmem:[%s23930_s11 + $0xb50] sm:$0xff]  ;;  %v1275_v28 = vld [vmem:[%s23930_s11 + $0x1b98] sm:$0x3] }
 0x333   : > { %v12629_v62 = vadd.f32 %v12628_v50, %v12559_v54  ;;  %v3073_v50 = vcombine.high %v3071_v38, %v3071_v38  ;;  %v1264_v54 = vld [vmem:[%s23930_s11 + $0x1b40] sm:$0x3]  ;;  %v1266_v56 = vld [vmem:[%s23930_s11 + $0x1b50] sm:$0x3] }
 0x334   : > { %v23023_v6 = vpack.c.bf16 %v1266_v56, %v754_v55 }
 0x335   : > { %16337 = vmatmul.mubr.f32.vlgmr.msra.gmra.mrb[172].mxu0 %v3013_v23  ;;  %v3055_v23 = vcombine.high %v3047_v8, %v3047_v8 }
 0x336   : > { %16407 = vmatmul.mubr.f32.vlgmr.msra.gmra.mrb[172].mxu1 %v3020_v29  ;;  %22996 = vmatpush1.bf16.xpose.msra.mxu0 %v22995_v60  ;;  %v748_v29 = vld [vmem:[%s23930_s11 + $0xb20] sm:$0xff]  ;;  %v757_v60 = vld [vmem:[%s23930_s11 + $0xb68] sm:$0xff] }
 0x337   : > { %23000 = vmatpush1.bf16.xpose.msra.mxu1 %v22999_v61  ;;  %16476 = vmatprep.mubr.f32.mxu0 %v3038_v63  ;;  %v23011_v45 = vpack.c.bf16 %v1260_v30, %v748_v29  ;;  %v1269_v61 = vld [vmem:[%s23930_s11 + $0x1b68] sm:$0x3]  ;;  %v356_v29 = vld [vmem:[%s23923_s5 + $0x2e0] sm:$0xff] }
 0x338   : > { %23002 = vmatprep.subr.bf16.mxu0 %v23001_v0  ;;  %v12698_v9 = vpop.f32.mrb[120].mxu0  ;;  %16546 = vmatprep.mubr.f32.mxu1 %v3039_v1  ;;  %v3108_v37 = vcombine.high %v356_v29, %v356_v29  ;;  %v3115_v42 = vrot.slane %v356_v29, %v23954_v25 }
 0x339   : > { %v12768_v10 = vpop.f32.mrb[120].mxu1  ;;  %23006 = vmatprep.subr.bf16.mxu1 %v23005_v2  ;;  %v12699_v14 = vadd.f32 %v12698_v9, %v12629_v62  ;;  %v12700_v15 = vpop.f32.mrb[121].mxu0  ;;  %v3088_v62 = vrot.slane %v3074_v52, %v23954_v25  ;;  %v759_v2 = vld [vmem:[%s23930_s11 + $0xb78] sm:$0xff]  ;;  %v23025_v9 = vpack.c.bf16 %v1269_v61, %v757_v60 }
 0x33a   : > { %v12770_v16 = vpop.f32.mrb[121].mxu1  ;;  %v23029_v11 = vpack.c.bf16 %v1271_v3, %v759_v2  ;;  %v758_v15 = vld [vmem:[%s23930_s11 + $0xb70] sm:$0xff]  ;;  %v1279_v52 = vld [vmem:[%s23930_s11 + $0x1bb8] sm:$0x3] }
 0x33b   : > { %v12769_v22 = vadd.f32 %v12768_v10, %v12699_v14  ;;  %v3090_v10 = vcombine.high %v3088_v62, %v3088_v62  ;;  %v1268_v14 = vld [vmem:[%s23930_s11 + $0x1b60] sm:$0x3]  ;;  %v1270_v16 = vld [vmem:[%s23930_s11 + $0x1b70] sm:$0x3] }
 0x33c   : > { %v23031_v31 = vpack.c.bf16 %v1270_v16, %v758_v15 }
 0x33d   : > { %16477 = vmatmul.mubr.f32.vlgmr.msra.gmra.mrb[174].mxu0 %v3030_v48  ;;  %v3072_v48 = vcombine.high %v3064_v33, %v3064_v33 }
 0x33e   : > { %16547 = vmatmul.mubr.f32.vlgmr.msra.gmra.mrb[174].mxu1 %v3037_v53  ;;  %23004 = vmatpush1.bf16.xpose.msra.mxu0 %v23003_v20  ;;  %v752_v53 = vld [vmem:[%s23930_s11 + $0xb40] sm:$0xff]  ;;  %v761_v20 = vld [vmem:[%s23930_s11 + $0xb88] sm:$0xff] }
 0x33f   : > { %23008 = vmatpush1.bf16.xpose.msra.mxu1 %v23007_v21  ;;  %16616 = vmatprep.mubr.f32.mxu0 %v3055_v23  ;;  %v23019_v5 = vpack.c.bf16 %v1264_v54, %v752_v53  ;;  %v1273_v21 = vld [vmem:[%s23930_s11 + $0x1b88] sm:$0x3] }
 0x340   : > { %23010 = vmatprep.subr.bf16.mxu0 %v23009_v24  ;;  %v12838_v34 = vpop.f32.mrb[122].mxu0  ;;  %16686 = vmatprep.mubr.f32.mxu1 %v3056_v26  ;;  %v357_v53 = vld [vmem:[%s23923_s5 + $0x2e8] sm:$0xff] }
 0x341   : > { %v12908_v35 = vpop.f32.mrb[122].mxu1  ;;  %23014 = vmatprep.subr.bf16.mxu1 %v23013_v27  ;;  %v12839_v39 = vadd.f32 %v12838_v34, %v12769_v22  ;;  %v12840_v40 = vpop.f32.mrb[123].mxu0  ;;  %v3105_v22 = vrot.slane %v3091_v12, %v23954_v25  ;;  %v763_v27 = vld [vmem:[%s23930_s11 + $0xb98] sm:$0xff]  ;;  %v23033_v34 = vpack.c.bf16 %v1273_v21, %v761_v20  ;;  %v3125_v61 = vcombine.high %v357_v53, %v357_v53 }
 0x342   : > { %v12910_v41 = vpop.f32.mrb[123].mxu1  ;;  %v23037_v36 = vpack.c.bf16 %v1275_v28, %v763_v27  ;;  %v762_v40 = vld [vmem:[%s23930_s11 + $0xb90] sm:$0xff]  ;;  %v3132_v2 = vrot.slane %v357_v53, %v23954_v25  ;;  %v1283_v12 = vld [vmem:[%s23930_s11 + $0x1bd8] sm:$0x3] }
 0x343   : > { %v12909_v47 = vadd.f32 %v12908_v35, %v12839_v39  ;;  %v3107_v35 = vcombine.high %v3105_v22, %v3105_v22  ;;  %v1272_v39 = vld [vmem:[%s23930_s11 + $0x1b80] sm:$0x3]  ;;  %v1274_v41 = vld [vmem:[%s23930_s11 + $0x1b90] sm:$0x3] }
 0x344   : > { %v23039_v55 = vpack.c.bf16 %v1274_v41, %v762_v40 }
 0x345   : > { %16617 = vmatmul.mubr.f32.vlgmr.msra.gmra.mrb[176].mxu0 %v3047_v8  ;;  %v3089_v8 = vcombine.high %v3081_v57, %v3081_v57 }
 0x346   : > { %16687 = vmatmul.mubr.f32.vlgmr.msra.gmra.mrb[176].mxu1 %v3054_v13  ;;  %23012 = vmatpush1.bf16.xpose.msra.mxu0 %v23011_v45  ;;  %v756_v13 = vld [vmem:[%s23930_s11 + $0xb60] sm:$0xff]  ;;  %v765_v45 = vld [vmem:[%s23930_s11 + $0xba8] sm:$0xff] }
 0x347   : > { %23016 = vmatpush1.bf16.xpose.msra.mxu1 %v23015_v46  ;;  %16756 = vmatprep.mubr.f32.mxu0 %v3072_v48  ;;  %v23027_v30 = vpack.c.bf16 %v1268_v14, %v756_v13  ;;  %v1277_v46 = vld [vmem:[%s23930_s11 + $0x1ba8] sm:$0x3]  ;;  %v358_v13 = vld [vmem:[%s23923_s5 + $0x2f0] sm:$0xff] }
 0x348   : > { %23018 = vmatprep.subr.bf16.mxu0 %v23017_v49  ;;  %v12978_v58 = vpop.f32.mrb[124].mxu0  ;;  %16826 = vmatprep.mubr.f32.mxu1 %v3073_v50  ;;  %v3142_v21 = vcombine.high %v358_v13, %v358_v13  ;;  %v3149_v27 = vrot.slane %v358_v13, %v23954_v25 }
 0x349   : > { %v13048_v59 = vpop.f32.mrb[124].mxu1  ;;  %23022 = vmatprep.subr.bf16.mxu1 %v23021_v51  ;;  %v12979_v63 = vadd.f32 %v12978_v58, %v12909_v47  ;;  %v12980_v0 = vpop.f32.mrb[125].mxu0  ;;  %v3122_v47 = vrot.slane %v3108_v37, %v23954_v25  ;;  %v767_v51 = vld [vmem:[%s23930_s11 + $0xbb8] sm:$0xff]  ;;  %v23041_v58 = vpack.c.bf16 %v1277_v46, %v765_v45 }
 0x34a   : > { %v13050_v1 = vpop.f32.mrb[125].mxu1  ;;  %v23045_v60 = vpack.c.bf16 %v1279_v52, %v767_v51  ;;  %v766_v0 = vld [vmem:[%s23930_s11 + $0xbb0] sm:$0xff]  ;;  %v1287_v37 = vld [vmem:[%s23930_s11 + $0x1bf8] sm:$0x3] }
 0x34b   : > { %v13049_v7 = vadd.f32 %v13048_v59, %v12979_v63  ;;  %v3124_v59 = vcombine.high %v3122_v47, %v3122_v47  ;;  %v1276_v63 = vld [vmem:[%s23930_s11 + $0x1ba0] sm:$0x3]  ;;  %v1278_v1 = vld [vmem:[%s23930_s11 + $0x1bb0] sm:$0x3] }
 0x34c   : > { %v23047_v15 = vpack.c.bf16 %v1278_v1, %v766_v0 }
 0x34d   : > { %16757 = vmatmul.mubr.f32.vlgmr.msra.gmra.mrb[178].mxu0 %v3064_v33  ;;  %v3106_v33 = vcombine.high %v3098_v17, %v3098_v17 }
 0x34e   : > { %16827 = vmatmul.mubr.f32.vlgmr.msra.gmra.mrb[178].mxu1 %v3071_v38  ;;  %23020 = vmatpush1.bf16.xpose.msra.mxu0 %v23019_v5  ;;  %v760_v38 = vld [vmem:[%s23930_s11 + $0xb80] sm:$0xff]  ;;  %v769_v5 = vld [vmem:[%s23930_s11 + $0xbc8] sm:$0xff] }
 0x34f   : > { %23024 = vmatpush1.bf16.xpose.msra.mxu1 %v23023_v6  ;;  %16896 = vmatprep.mubr.f32.mxu0 %v3089_v8  ;;  %v23035_v54 = vpack.c.bf16 %v1272_v39, %v760_v38  ;;  %v1281_v6 = vld [vmem:[%s23930_s11 + $0x1bc8] sm:$0x3]  ;;  %v359_v38 = vld [vmem:[%s23923_s5 + $0x2f8] sm:$0xff] }
 0x350   : > { %23026 = vmatprep.subr.bf16.mxu0 %v23025_v9  ;;  %v13118_v18 = vpop.f32.mrb[126].mxu0  ;;  %16966 = vmatprep.mubr.f32.mxu1 %v3090_v10  ;;  %v3159_v46 = vcombine.high %v359_v38, %v359_v38  ;;  %v3166_v51 = vrot.slane %v359_v38, %v23954_v25 }
 0x351   : > { %v13188_v19 = vpop.f32.mrb[126].mxu1  ;;  %23030 = vmatprep.subr.bf16.mxu1 %v23029_v11  ;;  %v13119_v23 = vadd.f32 %v13118_v18, %v13049_v7  ;;  %v13120_v24 = vpop.f32.mrb[127].mxu0  ;;  %v3139_v7 = vrot.slane %v3125_v61, %v23954_v25  ;;  %v771_v11 = vld [vmem:[%s23930_s11 + $0xbd8] sm:$0xff]  ;;  %v23049_v18 = vpack.c.bf16 %v1281_v6, %v769_v5 }
 0x352   : > { %v13190_v26 = vpop.f32.mrb[127].mxu1  ;;  %v23053_v20 = vpack.c.bf16 %v1283_v12, %v771_v11  ;;  %v770_v24 = vld [vmem:[%s23930_s11 + $0xbd0] sm:$0xff]  ;;  %v1291_v61 = vld [vmem:[%s23930_s11 + $0x1c18] sm:$0x3] }
 0x353   : > { %v13189_v32 = vadd.f32 %v13188_v19, %v13119_v23  ;;  %v3141_v19 = vcombine.high %v3139_v7, %v3139_v7  ;;  %v1280_v23 = vld [vmem:[%s23930_s11 + $0x1bc0] sm:$0x3]  ;;  %v1282_v26 = vld [vmem:[%s23930_s11 + $0x1bd0] sm:$0x3] }
 0x354   : > { %v23055_v40 = vpack.c.bf16 %v1282_v26, %v770_v24 }
 0x355   : > { %16897 = vmatmul.mubr.f32.vlgmr.msra.gmra.mrb[180].mxu0 %v3081_v57  ;;  %v3123_v57 = vcombine.high %v3115_v42, %v3115_v42 }
 0x356   : > { %16967 = vmatmul.mubr.f32.vlgmr.msra.gmra.mrb[180].mxu1 %v3088_v62  ;;  %23028 = vmatpush1.bf16.xpose.msra.mxu0 %v23027_v30  ;;  %v764_v62 = vld [vmem:[%s23930_s11 + $0xba0] sm:$0xff]  ;;  %v773_v30 = vld [vmem:[%s23930_s11 + $0xbe8] sm:$0xff] }
 0x357   : > { %23032 = vmatpush1.bf16.xpose.msra.mxu1 %v23031_v31  ;;  %17036 = vmatprep.mubr.f32.mxu0 %v3106_v33  ;;  %v23043_v14 = vpack.c.bf16 %v1276_v63, %v764_v62  ;;  %v1285_v31 = vld [vmem:[%s23930_s11 + $0x1be8] sm:$0x3]  ;;  %v360_v62 = vld [vmem:[%s23923_s5 + $0x300] sm:$0xff] }
 0x358   : > { %23034 = vmatprep.subr.bf16.mxu0 %v23033_v34  ;;  %v13258_v43 = vpop.f32.mrb[128].mxu0  ;;  %17106 = vmatprep.mubr.f32.mxu1 %v3107_v35  ;;  %v3176_v6 = vcombine.high %v360_v62, %v360_v62  ;;  %v3183_v11 = vrot.slane %v360_v62, %v23954_v25 }
 0x359   : > { %v13328_v44 = vpop.f32.mrb[128].mxu1  ;;  %23038 = vmatprep.subr.bf16.mxu1 %v23037_v36  ;;  %v13259_v48 = vadd.f32 %v13258_v43, %v13189_v32  ;;  %v13260_v49 = vpop.f32.mrb[129].mxu0  ;;  %v3156_v32 = vrot.slane %v3142_v21, %v23954_v25  ;;  %v775_v36 = vld [vmem:[%s23930_s11 + $0xbf8] sm:$0xff]  ;;  %v23057_v43 = vpack.c.bf16 %v1285_v31, %v773_v30 }
 0x35a   : > { %v13330_v50 = vpop.f32.mrb[129].mxu1  ;;  %v23061_v45 = vpack.c.bf16 %v1287_v37, %v775_v36  ;;  %v774_v49 = vld [vmem:[%s23930_s11 + $0xbf0] sm:$0xff]  ;;  %v1295_v21 = vld [vmem:[%s23930_s11 + $0x1c38] sm:$0x3] }
 0x35b   : > { %v13329_v56 = vadd.f32 %v13328_v44, %v13259_v48  ;;  %v3158_v44 = vcombine.high %v3156_v32, %v3156_v32  ;;  %v1284_v48 = vld [vmem:[%s23930_s11 + $0x1be0] sm:$0x3]  ;;  %v1286_v50 = vld [vmem:[%s23930_s11 + $0x1bf0] sm:$0x3] }
 0x35c   : > { %v23063_v0 = vpack.c.bf16 %v1286_v50, %v774_v49 }
 0x35d   : > { %17037 = vmatmul.mubr.f32.vlgmr.msra.gmra.mrb[182].mxu0 %v3098_v17  ;;  %v3140_v17 = vcombine.high %v3132_v2, %v3132_v2 }
 0x35e   : > { %17107 = vmatmul.mubr.f32.vlgmr.msra.gmra.mrb[182].mxu1 %v3105_v22  ;;  %23036 = vmatpush1.bf16.xpose.msra.mxu0 %v23035_v54  ;;  %v768_v22 = vld [vmem:[%s23930_s11 + $0xbc0] sm:$0xff]  ;;  %v777_v54 = vld [vmem:[%s23930_s11 + $0xc08] sm:$0xff] }
 0x35f   : > { %23040 = vmatpush1.bf16.xpose.msra.mxu1 %v23039_v55  ;;  %17176 = vmatprep.mubr.f32.mxu0 %v3123_v57  ;;  %v23051_v39 = vpack.c.bf16 %v1280_v23, %v768_v22  ;;  %v1289_v55 = vld [vmem:[%s23930_s11 + $0x1c08] sm:$0x3] }
 0x360   : > { %23042 = vmatprep.subr.bf16.mxu0 %v23041_v58  ;;  %v13398_v3 = vpop.f32.mrb[130].mxu0  ;;  %17246 = vmatprep.mubr.f32.mxu1 %v3124_v59  ;;  %v361_v22 = vld [vmem:[%s23923_s5 + $0x308] sm:$0xff] }
 0x361   : > { %v13468_v4 = vpop.f32.mrb[130].mxu1  ;;  %23046 = vmatprep.subr.bf16.mxu1 %v23045_v60  ;;  %v13399_v8 = vadd.f32 %v13398_v3, %v13329_v56  ;;  %v13400_v9 = vpop.f32.mrb[131].mxu0  ;;  %v3173_v56 = vrot.slane %v3159_v46, %v23954_v25  ;;  %v779_v60 = vld [vmem:[%s23930_s11 + $0xc18] sm:$0xff]  ;;  %v23065_v3 = vpack.c.bf16 %v1289_v55, %v777_v54  ;;  %v3193_v31 = vcombine.high %v361_v22, %v361_v22 }
 0x362   : > { %v13470_v10 = vpop.f32.mrb[131].mxu1  ;;  %v23069_v5 = vpack.c.bf16 %v1291_v61, %v779_v60  ;;  %v778_v9 = vld [vmem:[%s23930_s11 + $0xc10] sm:$0xff]  ;;  %v3200_v36 = vrot.slane %v361_v22, %v23954_v25  ;;  %v1299_v46 = vld [vmem:[%s23930_s11 + $0x1c58] sm:$0x3] }
 0x363   : > { %v13469_v16 = vadd.f32 %v13468_v4, %v13399_v8  ;;  %v3175_v4 = vcombine.high %v3173_v56, %v3173_v56  ;;  %v1288_v8 = vld [vmem:[%s23930_s11 + $0x1c00] sm:$0x3]  ;;  %v1290_v10 = vld [vmem:[%s23930_s11 + $0x1c10] sm:$0x3] }
 0x364   : > { %v23071_v24 = vpack.c.bf16 %v1290_v10, %v778_v9 }
 0x365   : > { %17177 = vmatmul.mubr.f32.vlgmr.msra.gmra.mrb[184].mxu0 %v3115_v42  ;;  %v3157_v42 = vcombine.high %v3149_v27, %v3149_v27 }
 0x366   : > { %17247 = vmatmul.mubr.f32.vlgmr.msra.gmra.mrb[184].mxu1 %v3122_v47  ;;  %23044 = vmatpush1.bf16.xpose.msra.mxu0 %v23043_v14  ;;  %v772_v47 = vld [vmem:[%s23930_s11 + $0xbe0] sm:$0xff]  ;;  %v781_v14 = vld [vmem:[%s23930_s11 + $0xc28] sm:$0xff] }
 0x367   : > { %23048 = vmatpush1.bf16.xpose.msra.mxu1 %v23047_v15  ;;  %17316 = vmatprep.mubr.f32.mxu0 %v3140_v17  ;;  %v23059_v63 = vpack.c.bf16 %v1284_v48, %v772_v47  ;;  %v1293_v15 = vld [vmem:[%s23930_s11 + $0x1c28] sm:$0x3]  ;;  %v362_v47 = vld [vmem:[%s23923_s5 + $0x310] sm:$0xff] }
 0x368   : > { %23050 = vmatprep.subr.bf16.mxu0 %v23049_v18  ;;  %v13538_v28 = vpop.f32.mrb[132].mxu0  ;;  %17386 = vmatprep.mubr.f32.mxu1 %v3141_v19  ;;  %v3210_v55 = vcombine.high %v362_v47, %v362_v47  ;;  %v3217_v60 = vrot.slane %v362_v47, %v23954_v25 }
 0x369   : > { %v13608_v29 = vpop.f32.mrb[132].mxu1  ;;  %23054 = vmatprep.subr.bf16.mxu1 %v23053_v20  ;;  %v13539_v33 = vadd.f32 %v13538_v28, %v13469_v16  ;;  %v13540_v34 = vpop.f32.mrb[133].mxu0  ;;  %v3190_v16 = vrot.slane %v3176_v6, %v23954_v25  ;;  %v783_v20 = vld [vmem:[%s23930_s11 + $0xc38] sm:$0xff]  ;;  %v23073_v28 = vpack.c.bf16 %v1293_v15, %v781_v14 }
 0x36a   : > { %v13610_v35 = vpop.f32.mrb[133].mxu1  ;;  %v23077_v30 = vpack.c.bf16 %v1295_v21, %v783_v20  ;;  %v782_v34 = vld [vmem:[%s23930_s11 + $0xc30] sm:$0xff]  ;;  %v1303_v6 = vld [vmem:[%s23930_s11 + $0x1c78] sm:$0x3] }
 0x36b   : > { %v13609_v41 = vadd.f32 %v13608_v29, %v13539_v33  ;;  %v3192_v29 = vcombine.high %v3190_v16, %v3190_v16  ;;  %v1292_v33 = vld [vmem:[%s23930_s11 + $0x1c20] sm:$0x3]  ;;  %v1294_v35 = vld [vmem:[%s23930_s11 + $0x1c30] sm:$0x3] }
 0x36c   : > { %v23079_v49 = vpack.c.bf16 %v1294_v35, %v782_v34 }
 0x36d   : > { %17317 = vmatmul.mubr.f32.vlgmr.msra.gmra.mrb[186].mxu0 %v3132_v2  ;;  %v3174_v2 = vcombine.high %v3166_v51, %v3166_v51 }
 0x36e   : > { %17387 = vmatmul.mubr.f32.vlgmr.msra.gmra.mrb[186].mxu1 %v3139_v7  ;;  %23052 = vmatpush1.bf16.xpose.msra.mxu0 %v23051_v39  ;;  %v776_v7 = vld [vmem:[%s23930_s11 + $0xc00] sm:$0xff]  ;;  %v785_v39 = vld [vmem:[%s23930_s11 + $0xc48] sm:$0xff] }
 0x36f   : > { %23056 = vmatpush1.bf16.xpose.msra.mxu1 %v23055_v40  ;;  %17456 = vmatprep.mubr.f32.mxu0 %v3157_v42  ;;  %v23067_v23 = vpack.c.bf16 %v1288_v8, %v776_v7  ;;  %v1297_v40 = vld [vmem:[%s23930_s11 + $0x1c48] sm:$0x3]  ;;  %v363_v7 = vld [vmem:[%s23923_s5 + $0x318] sm:$0xff] }
 0x370   : > { %23058 = vmatprep.subr.bf16.mxu0 %v23057_v43  ;;  %v13678_v52 = vpop.f32.mrb[134].mxu0  ;;  %17526 = vmatprep.mubr.f32.mxu1 %v3158_v44  ;;  %v3227_v15 = vcombine.high %v363_v7, %v363_v7  ;;  %v3234_v20 = vrot.slane %v363_v7, %v23954_v25 }
 0x371   : > { %v13748_v53 = vpop.f32.mrb[134].mxu1  ;;  %23062 = vmatprep.subr.bf16.mxu1 %v23061_v45  ;;  %v13679_v57 = vadd.f32 %v13678_v52, %v13609_v41  ;;  %v13680_v58 = vpop.f32.mrb[135].mxu0  ;;  %v3207_v41 = vrot.slane %v3193_v31, %v23954_v25  ;;  %v787_v45 = vld [vmem:[%s23930_s11 + $0xc58] sm:$0xff]  ;;  %v23081_v52 = vpack.c.bf16 %v1297_v40, %v785_v39 }
 0x372   : > { %v13750_v59 = vpop.f32.mrb[135].mxu1  ;;  %v23085_v54 = vpack.c.bf16 %v1299_v46, %v787_v45  ;;  %v786_v58 = vld [vmem:[%s23930_s11 + $0xc50] sm:$0xff]  ;;  %v1307_v31 = vld [vmem:[%s23930_s11 + $0x1c98] sm:$0x3] }
 0x373   : > { %v13749_v1 = vadd.f32 %v13748_v53, %v13679_v57  ;;  %v3209_v53 = vcombine.high %v3207_v41, %v3207_v41  ;;  %v1296_v57 = vld [vmem:[%s23930_s11 + $0x1c40] sm:$0x3]  ;;  %v1298_v59 = vld [vmem:[%s23930_s11 + $0x1c50] sm:$0x3] }
 0x374   : > { %v23087_v9 = vpack.c.bf16 %v1298_v59, %v786_v58 }
 0x375   : > { %17457 = vmatmul.mubr.f32.vlgmr.msra.gmra.mrb[188].mxu0 %v3149_v27  ;;  %v3191_v27 = vcombine.high %v3183_v11, %v3183_v11 }
 0x376   : > { %17527 = vmatmul.mubr.f32.vlgmr.msra.gmra.mrb[188].mxu1 %v3156_v32  ;;  %23060 = vmatpush1.bf16.xpose.msra.mxu0 %v23059_v63  ;;  %v780_v32 = vld [vmem:[%s23930_s11 + $0xc20] sm:$0xff]  ;;  %v789_v63 = vld [vmem:[%s23930_s11 + $0xc68] sm:$0xff] }
 0x377   : > { %23064 = vmatpush1.bf16.xpose.msra.mxu1 %v23063_v0  ;;  %17596 = vmatprep.mubr.f32.mxu0 %v3174_v2  ;;  %v23075_v48 = vpack.c.bf16 %v1292_v33, %v780_v32  ;;  %v1301_v0 = vld [vmem:[%s23930_s11 + $0x1c68] sm:$0x3]  ;;  %v364_v32 = vld [vmem:[%s23923_s5 + $0x320] sm:$0xff] }
 0x378   : > { %23066 = vmatprep.subr.bf16.mxu0 %v23065_v3  ;;  %v13818_v12 = vpop.f32.mrb[136].mxu0  ;;  %17666 = vmatprep.mubr.f32.mxu1 %v3175_v4  ;;  %v3244_v40 = vcombine.high %v364_v32, %v364_v32  ;;  %v3251_v45 = vrot.slane %v364_v32, %v23954_v25 }
 0x379   : > { %v13888_v13 = vpop.f32.mrb[136].mxu1  ;;  %23070 = vmatprep.subr.bf16.mxu1 %v23069_v5  ;;  %v13819_v17 = vadd.f32 %v13818_v12, %v13749_v1  ;;  %v13820_v18 = vpop.f32.mrb[137].mxu0  ;;  %v3224_v1 = vrot.slane %v3210_v55, %v23954_v25  ;;  %v791_v5 = vld [vmem:[%s23930_s11 + $0xc78] sm:$0xff]  ;;  %v23089_v12 = vpack.c.bf16 %v1301_v0, %v789_v63 }
 0x37a   : > { %v13890_v19 = vpop.f32.mrb[137].mxu1  ;;  %v23093_v14 = vpack.c.bf16 %v1303_v6, %v791_v5  ;;  %v790_v18 = vld [vmem:[%s23930_s11 + $0xc70] sm:$0xff]  ;;  %v1311_v55 = vld [vmem:[%s23930_s11 + $0x1cb8] sm:$0x3] }
 0x37b   : > { %v13889_v26 = vadd.f32 %v13888_v13, %v13819_v17  ;;  %v3226_v13 = vcombine.high %v3224_v1, %v3224_v1  ;;  %v1300_v17 = vld [vmem:[%s23930_s11 + $0x1c60] sm:$0x3]  ;;  %v1302_v19 = vld [vmem:[%s23930_s11 + $0x1c70] sm:$0x3] }
 0x37c   : > { %v23095_v34 = vpack.c.bf16 %v1302_v19, %v790_v18 }
 0x37d   : > { %17597 = vmatmul.mubr.f32.vlgmr.msra.gmra.mrb[190].mxu0 %v3166_v51  ;;  %v3208_v51 = vcombine.high %v3200_v36, %v3200_v36 }
 0x37e   : > { %17667 = vmatmul.mubr.f32.vlgmr.msra.gmra.mrb[190].mxu1 %v3173_v56  ;;  %23068 = vmatpush1.bf16.xpose.msra.mxu0 %v23067_v23  ;;  %v784_v56 = vld [vmem:[%s23930_s11 + $0xc40] sm:$0xff]  ;;  %v793_v23 = vld [vmem:[%s23930_s11 + $0xc88] sm:$0xff] }
 0x37f   : > { %23072 = vmatpush1.bf16.xpose.msra.mxu1 %v23071_v24  ;;  %17736 = vmatprep.mubr.f32.mxu0 %v3191_v27  ;;  %v23083_v8 = vpack.c.bf16 %v1296_v57, %v784_v56  ;;  %v1305_v24 = vld [vmem:[%s23930_s11 + $0x1c88] sm:$0x3] }
 0x380   : > { %23074 = vmatprep.subr.bf16.mxu0 %v23073_v28  ;;  %v13958_v37 = vpop.f32.mrb[138].mxu0  ;;  %17806 = vmatprep.mubr.f32.mxu1 %v3192_v29  ;;  %v365_v56 = vld [vmem:[%s23923_s5 + $0x328] sm:$0xff] }
 0x381   : > { %v14028_v38 = vpop.f32.mrb[138].mxu1  ;;  %23078 = vmatprep.subr.bf16.mxu1 %v23077_v30  ;;  %v13959_v42 = vadd.f32 %v13958_v37, %v13889_v26  ;;  %v13960_v43 = vpop.f32.mrb[139].mxu0  ;;  %v3241_v26 = vrot.slane %v3227_v15, %v23954_v25  ;;  %v795_v30 = vld [vmem:[%s23930_s11 + $0xc98] sm:$0xff]  ;;  %v23097_v37 = vpack.c.bf16 %v1305_v24, %v793_v23  ;;  %v3261_v0 = vcombine.high %v365_v56, %v365_v56 }
 0x382   : > { %v14030_v44 = vpop.f32.mrb[139].mxu1  ;;  %v23101_v39 = vpack.c.bf16 %v1307_v31, %v795_v30  ;;  %v794_v43 = vld [vmem:[%s23930_s11 + $0xc90] sm:$0xff]  ;;  %v3268_v5 = vrot.slane %v365_v56, %v23954_v25  ;;  %v1315_v15 = vld [vmem:[%s23930_s11 + $0x1cd8] sm:$0x3] }
 0x383   : > { %v14029_v50 = vadd.f32 %v14028_v38, %v13959_v42  ;;  %v3243_v38 = vcombine.high %v3241_v26, %v3241_v26  ;;  %v1304_v42 = vld [vmem:[%s23930_s11 + $0x1c80] sm:$0x3]  ;;  %v1306_v44 = vld [vmem:[%s23930_s11 + $0x1c90] sm:$0x3] }
 0x384   : > { %v23103_v58 = vpack.c.bf16 %v1306_v44, %v794_v43 }
 0x385   : > { %17737 = vmatmul.mubr.f32.vlgmr.msra.gmra.mrb[192].mxu0 %v3183_v11  ;;  %v3225_v11 = vcombine.high %v3217_v60, %v3217_v60 }
 0x386   : > { %17807 = vmatmul.mubr.f32.vlgmr.msra.gmra.mrb[192].mxu1 %v3190_v16  ;;  %23076 = vmatpush1.bf16.xpose.msra.mxu0 %v23075_v48  ;;  %v788_v16 = vld [vmem:[%s23930_s11 + $0xc60] sm:$0xff]  ;;  %v797_v48 = vld [vmem:[%s23930_s11 + $0xca8] sm:$0xff] }
 0x387   : > { %23080 = vmatpush1.bf16.xpose.msra.mxu1 %v23079_v49  ;;  %17876 = vmatprep.mubr.f32.mxu0 %v3208_v51  ;;  %v23091_v33 = vpack.c.bf16 %v1300_v17, %v788_v16  ;;  %v1309_v49 = vld [vmem:[%s23930_s11 + $0x1ca8] sm:$0x3]  ;;  %v366_v16 = vld [vmem:[%s23923_s5 + $0x330] sm:$0xff] }
 0x388   : > { %23082 = vmatprep.subr.bf16.mxu0 %v23081_v52  ;;  %v14098_v61 = vpop.f32.mrb[140].mxu0  ;;  %17946 = vmatprep.mubr.f32.mxu1 %v3209_v53  ;;  %v3278_v24 = vcombine.high %v366_v16, %v366_v16  ;;  %v3285_v30 = vrot.slane %v366_v16, %v23954_v25 }
 0x389   : > { %v14168_v62 = vpop.f32.mrb[140].mxu1  ;;  %23086 = vmatprep.subr.bf16.mxu1 %v23085_v54  ;;  %v14099_v2 = vadd.f32 %v14098_v61, %v14029_v50  ;;  %v14100_v3 = vpop.f32.mrb[141].mxu0  ;;  %v3258_v50 = vrot.slane %v3244_v40, %v23954_v25  ;;  %v799_v54 = vld [vmem:[%s23930_s11 + $0xcb8] sm:$0xff]  ;;  %v23105_v61 = vpack.c.bf16 %v1309_v49, %v797_v48 }
 0x38a   : > { %v14170_v4 = vpop.f32.mrb[141].mxu1  ;;  %v23109_v63 = vpack.c.bf16 %v1311_v55, %v799_v54  ;;  %v798_v3 = vld [vmem:[%s23930_s11 + $0xcb0] sm:$0xff]  ;;  %v1319_v40 = vld [vmem:[%s23930_s11 + $0x1cf8] sm:$0x3] }
 0x38b   : > { %v14169_v10 = vadd.f32 %v14168_v62, %v14099_v2  ;;  %v3260_v62 = vcombine.high %v3258_v50, %v3258_v50  ;;  %v1308_v2 = vld [vmem:[%s23930_s11 + $0x1ca0] sm:$0x3]  ;;  %v1310_v4 = vld [vmem:[%s23930_s11 + $0x1cb0] sm:$0x3] }
 0x38c   : > { %v23111_v18 = vpack.c.bf16 %v1310_v4, %v798_v3 }
 0x38d   : > { %17877 = vmatmul.mubr.f32.vlgmr.msra.gmra.mrb[194].mxu0 %v3200_v36  ;;  %v3242_v36 = vcombine.high %v3234_v20, %v3234_v20 }
 0x38e   : > { %17947 = vmatmul.mubr.f32.vlgmr.msra.gmra.mrb[194].mxu1 %v3207_v41  ;;  %23084 = vmatpush1.bf16.xpose.msra.mxu0 %v23083_v8  ;;  %v792_v41 = vld [vmem:[%s23930_s11 + $0xc80] sm:$0xff]  ;;  %v801_v8 = vld [vmem:[%s23930_s11 + $0xcc8] sm:$0xff] }
 0x38f   : > { %23088 = vmatpush1.bf16.xpose.msra.mxu1 %v23087_v9  ;;  %18016 = vmatprep.mubr.f32.mxu0 %v3225_v11  ;;  %v23099_v57 = vpack.c.bf16 %v1304_v42, %v792_v41  ;;  %v1313_v9 = vld [vmem:[%s23930_s11 + $0x1cc8] sm:$0x3]  ;;  %v367_v41 = vld [vmem:[%s23923_s5 + $0x338] sm:$0xff] }
 0x390   : > { %23090 = vmatprep.subr.bf16.mxu0 %v23089_v12  ;;  %v14238_v21 = vpop.f32.mrb[142].mxu0  ;;  %18086 = vmatprep.mubr.f32.mxu1 %v3226_v13  ;;  %v3295_v49 = vcombine.high %v367_v41, %v367_v41  ;;  %v3302_v54 = vrot.slane %v367_v41, %v23954_v25 }
 0x391   : > { %v14308_v22 = vpop.f32.mrb[142].mxu1  ;;  %23094 = vmatprep.subr.bf16.mxu1 %v23093_v14  ;;  %v14239_v27 = vadd.f32 %v14238_v21, %v14169_v10  ;;  %v14240_v28 = vpop.f32.mrb[143].mxu0  ;;  %v3275_v10 = vrot.slane %v3261_v0, %v23954_v25  ;;  %v803_v14 = vld [vmem:[%s23930_s11 + $0xcd8] sm:$0xff]  ;;  %v23113_v21 = vpack.c.bf16 %v1313_v9, %v801_v8 }
 0x392   : > { %v14310_v29 = vpop.f32.mrb[143].mxu1  ;;  %v23117_v23 = vpack.c.bf16 %v1315_v15, %v803_v14  ;;  %v802_v28 = vld [vmem:[%s23930_s11 + $0xcd0] sm:$0xff]  ;;  %v1323_v0 = vld [vmem:[%s23930_s11 + $0x1d18] sm:$0x3] }
 0x393   : > { %v14309_v35 = vadd.f32 %v14308_v22, %v14239_v27  ;;  %v3277_v22 = vcombine.high %v3275_v10, %v3275_v10  ;;  %v1312_v27 = vld [vmem:[%s23930_s11 + $0x1cc0] sm:$0x3]  ;;  %v1314_v29 = vld [vmem:[%s23930_s11 + $0x1cd0] sm:$0x3] }
 0x394   : > { %v23119_v43 = vpack.c.bf16 %v1314_v29, %v802_v28 }
 0x395   : > { %18017 = vmatmul.mubr.f32.vlgmr.msra.gmra.mrb[196].mxu0 %v3217_v60  ;;  %v3259_v60 = vcombine.high %v3251_v45, %v3251_v45 }
 0x396   : > { %18087 = vmatmul.mubr.f32.vlgmr.msra.gmra.mrb[196].mxu1 %v3224_v1  ;;  %23092 = vmatpush1.bf16.xpose.msra.mxu0 %v23091_v33  ;;  %v796_v1 = vld [vmem:[%s23930_s11 + $0xca0] sm:$0xff]  ;;  %v805_v33 = vld [vmem:[%s23930_s11 + $0xce8] sm:$0xff] }
 0x397   : > { %23096 = vmatpush1.bf16.xpose.msra.mxu1 %v23095_v34  ;;  %18156 = vmatprep.mubr.f32.mxu0 %v3242_v36  ;;  %v23107_v17 = vpack.c.bf16 %v1308_v2, %v796_v1  ;;  %v1317_v34 = vld [vmem:[%s23930_s11 + $0x1ce8] sm:$0x3]  ;;  %v368_v1 = vld [vmem:[%s23923_s5 + $0x340] sm:$0xff] }
 0x398   : > { %23098 = vmatprep.subr.bf16.mxu0 %v23097_v37  ;;  %v14378_v46 = vpop.f32.mrb[144].mxu0  ;;  %18226 = vmatprep.mubr.f32.mxu1 %v3243_v38  ;;  %v3312_v9 = vcombine.high %v368_v1, %v368_v1  ;;  %v3319_v14 = vrot.slane %v368_v1, %v23954_v25 }
 0x399   : > { %v14448_v47 = vpop.f32.mrb[144].mxu1  ;;  %23102 = vmatprep.subr.bf16.mxu1 %v23101_v39  ;;  %v14379_v51 = vadd.f32 %v14378_v46, %v14309_v35  ;;  %v14380_v52 = vpop.f32.mrb[145].mxu0  ;;  %v3292_v35 = vrot.slane %v3278_v24, %v23954_v25  ;;  %v807_v39 = vld [vmem:[%s23930_s11 + $0xcf8] sm:$0xff]  ;;  %v23121_v46 = vpack.c.bf16 %v1317_v34, %v805_v33 }
 0x39a   : > { %v14450_v53 = vpop.f32.mrb[145].mxu1  ;;  %v23125_v48 = vpack.c.bf16 %v1319_v40, %v807_v39  ;;  %v806_v52 = vld [vmem:[%s23930_s11 + $0xcf0] sm:$0xff]  ;;  %v1327_v24 = vld [vmem:[%s23930_s11 + $0x1d38] sm:$0x3] }
 0x39b   : > { %v14449_v59 = vadd.f32 %v14448_v47, %v14379_v51  ;;  %v3294_v47 = vcombine.high %v3292_v35, %v3292_v35  ;;  %v1316_v51 = vld [vmem:[%s23930_s11 + $0x1ce0] sm:$0x3]  ;;  %v1318_v53 = vld [vmem:[%s23930_s11 + $0x1cf0] sm:$0x3] }
 0x39c   : > { %v23127_v3 = vpack.c.bf16 %v1318_v53, %v806_v52 }
 0x39d   : > { %18157 = vmatmul.mubr.f32.vlgmr.msra.gmra.mrb[198].mxu0 %v3234_v20  ;;  %v3276_v20 = vcombine.high %v3268_v5, %v3268_v5 }
 0x39e   : > { %18227 = vmatmul.mubr.f32.vlgmr.msra.gmra.mrb[198].mxu1 %v3241_v26  ;;  %23100 = vmatpush1.bf16.xpose.msra.mxu0 %v23099_v57  ;;  %v800_v26 = vld [vmem:[%s23930_s11 + $0xcc0] sm:$0xff]  ;;  %v809_v57 = vld [vmem:[%s23930_s11 + $0xd08] sm:$0xff] }
 0x39f   : > { %23104 = vmatpush1.bf16.xpose.msra.mxu1 %v23103_v58  ;;  %18296 = vmatprep.mubr.f32.mxu0 %v3259_v60  ;;  %v23115_v42 = vpack.c.bf16 %v1312_v27, %v800_v26  ;;  %v1321_v58 = vld [vmem:[%s23930_s11 + $0x1d08] sm:$0x3] }
 0x3a0   : > { %23106 = vmatprep.subr.bf16.mxu0 %v23105_v61  ;;  %v14518_v6 = vpop.f32.mrb[146].mxu0  ;;  %18366 = vmatprep.mubr.f32.mxu1 %v3260_v62  ;;  %v369_v26 = vld [vmem:[%s23923_s5 + $0x348] sm:$0xff] }
 0x3a1   : > { %v14588_v7 = vpop.f32.mrb[146].mxu1  ;;  %23110 = vmatprep.subr.bf16.mxu1 %v23109_v63  ;;  %v14519_v11 = vadd.f32 %v14518_v6, %v14449_v59  ;;  %v14520_v12 = vpop.f32.mrb[147].mxu0  ;;  %v3309_v59 = vrot.slane %v3295_v49, %v23954_v25  ;;  %v811_v63 = vld [vmem:[%s23930_s11 + $0xd18] sm:$0xff]  ;;  %v23129_v6 = vpack.c.bf16 %v1321_v58, %v809_v57  ;;  %v3329_v34 = vcombine.high %v369_v26, %v369_v26 }
 0x3a2   : > { %v14590_v13 = vpop.f32.mrb[147].mxu1  ;;  %v23133_v8 = vpack.c.bf16 %v1323_v0, %v811_v63  ;;  %v810_v12 = vld [vmem:[%s23930_s11 + $0xd10] sm:$0xff]  ;;  %v3336_v39 = vrot.slane %v369_v26, %v23954_v25  ;;  %v1331_v49 = vld [vmem:[%s23930_s11 + $0x1d58] sm:$0x3] }
 0x3a3   : > { %v14589_v19 = vadd.f32 %v14588_v7, %v14519_v11  ;;  %v3311_v7 = vcombine.high %v3309_v59, %v3309_v59  ;;  %v1320_v11 = vld [vmem:[%s23930_s11 + $0x1d00] sm:$0x3]  ;;  %v1322_v13 = vld [vmem:[%s23930_s11 + $0x1d10] sm:$0x3] }
 0x3a4   : > { %v23135_v28 = vpack.c.bf16 %v1322_v13, %v810_v12 }
 0x3a5   : > { %18297 = vmatmul.mubr.f32.vlgmr.msra.gmra.mrb[200].mxu0 %v3251_v45  ;;  %v3293_v45 = vcombine.high %v3285_v30, %v3285_v30 }
 0x3a6   : > { %18367 = vmatmul.mubr.f32.vlgmr.msra.gmra.mrb[200].mxu1 %v3258_v50  ;;  %23108 = vmatpush1.bf16.xpose.msra.mxu0 %v23107_v17  ;;  %v804_v50 = vld [vmem:[%s23930_s11 + $0xce0] sm:$0xff]  ;;  %v813_v17 = vld [vmem:[%s23930_s11 + $0xd28] sm:$0xff] }
 0x3a7   : > { %23112 = vmatpush1.bf16.xpose.msra.mxu1 %v23111_v18  ;;  %18436 = vmatprep.mubr.f32.mxu0 %v3276_v20  ;;  %v23123_v2 = vpack.c.bf16 %v1316_v51, %v804_v50  ;;  %v1325_v18 = vld [vmem:[%s23930_s11 + $0x1d28] sm:$0x3]  ;;  %v370_v50 = vld [vmem:[%s23923_s5 + $0x350] sm:$0xff] }
 0x3a8   : > { %23114 = vmatprep.subr.bf16.mxu0 %v23113_v21  ;;  %v14658_v31 = vpop.f32.mrb[148].mxu0  ;;  %18506 = vmatprep.mubr.f32.mxu1 %v3277_v22  ;;  %v3346_v58 = vcombine.high %v370_v50, %v370_v50  ;;  %v3353_v63 = vrot.slane %v370_v50, %v23954_v25 }
 0x3a9   : > { %v14728_v32 = vpop.f32.mrb[148].mxu1  ;;  %23118 = vmatprep.subr.bf16.mxu1 %v23117_v23  ;;  %v14659_v36 = vadd.f32 %v14658_v31, %v14589_v19  ;;  %v14660_v37 = vpop.f32.mrb[149].mxu0  ;;  %v3326_v19 = vrot.slane %v3312_v9, %v23954_v25  ;;  %v815_v23 = vld [vmem:[%s23930_s11 + $0xd38] sm:$0xff]  ;;  %v23137_v31 = vpack.c.bf16 %v1325_v18, %v813_v17 }
 0x3aa   : > { %v14730_v38 = vpop.f32.mrb[149].mxu1  ;;  %v23141_v33 = vpack.c.bf16 %v1327_v24, %v815_v23  ;;  %v814_v37 = vld [vmem:[%s23930_s11 + $0xd30] sm:$0xff]  ;;  %v1335_v9 = vld [vmem:[%s23930_s11 + $0x1d78] sm:$0x3] }
 0x3ab   : > { %v14729_v44 = vadd.f32 %v14728_v32, %v14659_v36  ;;  %v3328_v32 = vcombine.high %v3326_v19, %v3326_v19  ;;  %v1324_v36 = vld [vmem:[%s23930_s11 + $0x1d20] sm:$0x3]  ;;  %v1326_v38 = vld [vmem:[%s23930_s11 + $0x1d30] sm:$0x3] }
 0x3ac   : > { %v23143_v52 = vpack.c.bf16 %v1326_v38, %v814_v37 }
 0x3ad   : > { %18437 = vmatmul.mubr.f32.vlgmr.msra.gmra.mrb[202].mxu0 %v3268_v5  ;;  %v3310_v5 = vcombine.high %v3302_v54, %v3302_v54 }
 0x3ae   : > { %18507 = vmatmul.mubr.f32.vlgmr.msra.gmra.mrb[202].mxu1 %v3275_v10  ;;  %23116 = vmatpush1.bf16.xpose.msra.mxu0 %v23115_v42  ;;  %v808_v10 = vld [vmem:[%s23930_s11 + $0xd00] sm:$0xff]  ;;  %v817_v42 = vld [vmem:[%s23930_s11 + $0xd48] sm:$0xff] }
 0x3af   : > { %23120 = vmatpush1.bf16.xpose.msra.mxu1 %v23119_v43  ;;  %18576 = vmatprep.mubr.f32.mxu0 %v3293_v45  ;;  %v23131_v27 = vpack.c.bf16 %v1320_v11, %v808_v10  ;;  %v1329_v43 = vld [vmem:[%s23930_s11 + $0x1d48] sm:$0x3]  ;;  %v371_v10 = vld [vmem:[%s23923_s5 + $0x358] sm:$0xff] }
 0x3b0   : > { %23122 = vmatprep.subr.bf16.mxu0 %v23121_v46  ;;  %v14798_v55 = vpop.f32.mrb[150].mxu0  ;;  %18646 = vmatprep.mubr.f32.mxu1 %v3294_v47  ;;  %v3363_v18 = vcombine.high %v371_v10, %v371_v10  ;;  %v3370_v23 = vrot.slane %v371_v10, %v23954_v25 }
 0x3b1   : > { %v14868_v56 = vpop.f32.mrb[150].mxu1  ;;  %23126 = vmatprep.subr.bf16.mxu1 %v23125_v48  ;;  %v14799_v60 = vadd.f32 %v14798_v55, %v14729_v44  ;;  %v14800_v61 = vpop.f32.mrb[151].mxu0  ;;  %v3343_v44 = vrot.slane %v3329_v34, %v23954_v25  ;;  %v819_v48 = vld [vmem:[%s23930_s11 + $0xd58] sm:$0xff]  ;;  %v23145_v55 = vpack.c.bf16 %v1329_v43, %v817_v42 }
 0x3b2   : > { %v14870_v62 = vpop.f32.mrb[151].mxu1  ;;  %v23149_v57 = vpack.c.bf16 %v1331_v49, %v819_v48  ;;  %v818_v61 = vld [vmem:[%s23930_s11 + $0xd50] sm:$0xff]  ;;  %v1339_v34 = vld [vmem:[%s23930_s11 + $0x1d98] sm:$0x3] }
 0x3b3   : > { %v14869_v4 = vadd.f32 %v14868_v56, %v14799_v60  ;;  %v3345_v56 = vcombine.high %v3343_v44, %v3343_v44  ;;  %v1328_v60 = vld [vmem:[%s23930_s11 + $0x1d40] sm:$0x3]  ;;  %v1330_v62 = vld [vmem:[%s23930_s11 + $0x1d50] sm:$0x3] }
 0x3b4   : > { %v23151_v12 = vpack.c.bf16 %v1330_v62, %v818_v61 }
 0x3b5   : > { %18577 = vmatmul.mubr.f32.vlgmr.msra.gmra.mrb[204].mxu0 %v3285_v30  ;;  %v3327_v30 = vcombine.high %v3319_v14, %v3319_v14 }
 0x3b6   : > { %18647 = vmatmul.mubr.f32.vlgmr.msra.gmra.mrb[204].mxu1 %v3292_v35  ;;  %23124 = vmatpush1.bf16.xpose.msra.mxu0 %v23123_v2  ;;  %v812_v35 = vld [vmem:[%s23930_s11 + $0xd20] sm:$0xff]  ;;  %v821_v2 = vld [vmem:[%s23930_s11 + $0xd68] sm:$0xff] }
 0x3b7   : > { %23128 = vmatpush1.bf16.xpose.msra.mxu1 %v23127_v3  ;;  %18716 = vmatprep.mubr.f32.mxu0 %v3310_v5  ;;  %v23139_v51 = vpack.c.bf16 %v1324_v36, %v812_v35  ;;  %v1333_v3 = vld [vmem:[%s23930_s11 + $0x1d68] sm:$0x3]  ;;  %v372_v35 = vld [vmem:[%s23923_s5 + $0x360] sm:$0xff] }
 0x3b8   : > { %23130 = vmatprep.subr.bf16.mxu0 %v23129_v6  ;;  %v14938_v15 = vpop.f32.mrb[152].mxu0  ;;  %18786 = vmatprep.mubr.f32.mxu1 %v3311_v7  ;;  %v3380_v43 = vcombine.high %v372_v35, %v372_v35  ;;  %v3387_v48 = vrot.slane %v372_v35, %v23954_v25 }
 0x3b9   : > { %v15008_v16 = vpop.f32.mrb[152].mxu1  ;;  %23134 = vmatprep.subr.bf16.mxu1 %v23133_v8  ;;  %v14939_v20 = vadd.f32 %v14938_v15, %v14869_v4  ;;  %v14940_v21 = vpop.f32.mrb[153].mxu0  ;;  %v3360_v4 = vrot.slane %v3346_v58, %v23954_v25  ;;  %v823_v8 = vld [vmem:[%s23930_s11 + $0xd78] sm:$0xff]  ;;  %v23153_v15 = vpack.c.bf16 %v1333_v3, %v821_v2 }
 0x3ba   : > { %v15010_v22 = vpop.f32.mrb[153].mxu1  ;;  %v23157_v17 = vpack.c.bf16 %v1335_v9, %v823_v8  ;;  %v822_v21 = vld [vmem:[%s23930_s11 + $0xd70] sm:$0xff]  ;;  %v1343_v58 = vld [vmem:[%s23930_s11 + $0x1db8] sm:$0x3] }
 0x3bb   : > { %v15009_v29 = vadd.f32 %v15008_v16, %v14939_v20  ;;  %v3362_v16 = vcombine.high %v3360_v4, %v3360_v4  ;;  %v1332_v20 = vld [vmem:[%s23930_s11 + $0x1d60] sm:$0x3]  ;;  %v1334_v22 = vld [vmem:[%s23930_s11 + $0x1d70] sm:$0x3] }
 0x3bc   : > { %v23159_v37 = vpack.c.bf16 %v1334_v22, %v822_v21 }
 0x3bd   : > { %18717 = vmatmul.mubr.f32.vlgmr.msra.gmra.mrb[206].mxu0 %v3302_v54  ;;  %v3344_v54 = vcombine.high %v3336_v39, %v3336_v39 }
 0x3be   : > { %18787 = vmatmul.mubr.f32.vlgmr.msra.gmra.mrb[206].mxu1 %v3309_v59  ;;  %23132 = vmatpush1.bf16.xpose.msra.mxu0 %v23131_v27  ;;  %v816_v59 = vld [vmem:[%s23930_s11 + $0xd40] sm:$0xff]  ;;  %v825_v27 = vld [vmem:[%s23930_s11 + $0xd88] sm:$0xff] }
 0x3bf   : > { %23136 = vmatpush1.bf16.xpose.msra.mxu1 %v23135_v28  ;;  %18856 = vmatprep.mubr.f32.mxu0 %v3327_v30  ;;  %v23147_v11 = vpack.c.bf16 %v1328_v60, %v816_v59  ;;  %v1337_v28 = vld [vmem:[%s23930_s11 + $0x1d88] sm:$0x3] }
 0x3c0   : > { %23138 = vmatprep.subr.bf16.mxu0 %v23137_v31  ;;  %v15078_v40 = vpop.f32.mrb[154].mxu0  ;;  %18926 = vmatprep.mubr.f32.mxu1 %v3328_v32  ;;  %v373_v59 = vld [vmem:[%s23923_s5 + $0x368] sm:$0xff] }
 0x3c1   : > { %v15148_v41 = vpop.f32.mrb[154].mxu1  ;;  %23142 = vmatprep.subr.bf16.mxu1 %v23141_v33  ;;  %v15079_v45 = vadd.f32 %v15078_v40, %v15009_v29  ;;  %v15080_v46 = vpop.f32.mrb[155].mxu0  ;;  %v3377_v29 = vrot.slane %v3363_v18, %v23954_v25  ;;  %v827_v33 = vld [vmem:[%s23930_s11 + $0xd98] sm:$0xff]  ;;  %v23161_v40 = vpack.c.bf16 %v1337_v28, %v825_v27  ;;  %v3397_v3 = vcombine.high %v373_v59, %v373_v59 }
 0x3c2   : > { %v15150_v47 = vpop.f32.mrb[155].mxu1  ;;  %v23165_v42 = vpack.c.bf16 %v1339_v34, %v827_v33  ;;  %v826_v46 = vld [vmem:[%s23930_s11 + $0xd90] sm:$0xff]  ;;  %v3404_v8 = vrot.slane %v373_v59, %v23954_v25  ;;  %v1347_v18 = vld [vmem:[%s23930_s11 + $0x1dd8] sm:$0x3] }
 0x3c3   : > { %v15149_v53 = vadd.f32 %v15148_v41, %v15079_v45  ;;  %v3379_v41 = vcombine.high %v3377_v29, %v3377_v29  ;;  %v1336_v45 = vld [vmem:[%s23930_s11 + $0x1d80] sm:$0x3]  ;;  %v1338_v47 = vld [vmem:[%s23930_s11 + $0x1d90] sm:$0x3] }
 0x3c4   : > { %v23167_v61 = vpack.c.bf16 %v1338_v47, %v826_v46 }
 0x3c5   : > { %18857 = vmatmul.mubr.f32.vlgmr.msra.gmra.mrb[208].mxu0 %v3319_v14  ;;  %v3361_v14 = vcombine.high %v3353_v63, %v3353_v63 }
 0x3c6   : > { %18927 = vmatmul.mubr.f32.vlgmr.msra.gmra.mrb[208].mxu1 %v3326_v19  ;;  %23140 = vmatpush1.bf16.xpose.msra.mxu0 %v23139_v51  ;;  %v820_v19 = vld [vmem:[%s23930_s11 + $0xd60] sm:$0xff]  ;;  %v829_v51 = vld [vmem:[%s23930_s11 + $0xda8] sm:$0xff] }
 0x3c7   : > { %23144 = vmatpush1.bf16.xpose.msra.mxu1 %v23143_v52  ;;  %18996 = vmatprep.mubr.f32.mxu0 %v3344_v54  ;;  %v23155_v36 = vpack.c.bf16 %v1332_v20, %v820_v19  ;;  %v1341_v52 = vld [vmem:[%s23930_s11 + $0x1da8] sm:$0x3]  ;;  %v374_v19 = vld [vmem:[%s23923_s5 + $0x370] sm:$0xff] }
 0x3c8   : > { %23146 = vmatprep.subr.bf16.mxu0 %v23145_v55  ;;  %v15218_v0 = vpop.f32.mrb[156].mxu0  ;;  %19066 = vmatprep.mubr.f32.mxu1 %v3345_v56  ;;  %v3414_v28 = vcombine.high %v374_v19, %v374_v19  ;;  %v3421_v33 = vrot.slane %v374_v19, %v23954_v25 }
 0x3c9   : > { %v15288_v1 = vpop.f32.mrb[156].mxu1  ;;  %23150 = vmatprep.subr.bf16.mxu1 %v23149_v57  ;;  %v15219_v5 = vadd.f32 %v15218_v0, %v15149_v53  ;;  %v15220_v6 = vpop.f32.mrb[157].mxu0  ;;  %v3394_v53 = vrot.slane %v3380_v43, %v23954_v25  ;;  %v831_v57 = vld [vmem:[%s23930_s11 + $0xdb8] sm:$0xff]  ;;  %v23169_v0 = vpack.c.bf16 %v1341_v52, %v829_v51 }
 0x3ca   : > { %v15290_v7 = vpop.f32.mrb[157].mxu1  ;;  %v23173_v2 = vpack.c.bf16 %v1343_v58, %v831_v57  ;;  %v830_v6 = vld [vmem:[%s23930_s11 + $0xdb0] sm:$0xff]  ;;  %v1351_v43 = vld [vmem:[%s23930_s11 + $0x1df8] sm:$0x3] }
 0x3cb   : > { %v15289_v13 = vadd.f32 %v15288_v1, %v15219_v5  ;;  %v3396_v1 = vcombine.high %v3394_v53, %v3394_v53  ;;  %v1340_v5 = vld [vmem:[%s23930_s11 + $0x1da0] sm:$0x3]  ;;  %v1342_v7 = vld [vmem:[%s23930_s11 + $0x1db0] sm:$0x3] }
 0x3cc   : > { %v23175_v21 = vpack.c.bf16 %v1342_v7, %v830_v6 }
 0x3cd   : > { %18997 = vmatmul.mubr.f32.vlgmr.msra.gmra.mrb[210].mxu0 %v3336_v39  ;;  %v3378_v39 = vcombine.high %v3370_v23, %v3370_v23 }
 0x3ce   : > { %19067 = vmatmul.mubr.f32.vlgmr.msra.gmra.mrb[210].mxu1 %v3343_v44  ;;  %23148 = vmatpush1.bf16.xpose.msra.mxu0 %v23147_v11  ;;  %v824_v44 = vld [vmem:[%s23930_s11 + $0xd80] sm:$0xff]  ;;  %v833_v11 = vld [vmem:[%s23930_s11 + $0xdc8] sm:$0xff] }
 0x3cf   : > { %23152 = vmatpush1.bf16.xpose.msra.mxu1 %v23151_v12  ;;  %19136 = vmatprep.mubr.f32.mxu0 %v3361_v14  ;;  %v23163_v60 = vpack.c.bf16 %v1336_v45, %v824_v44  ;;  %v1345_v12 = vld [vmem:[%s23930_s11 + $0x1dc8] sm:$0x3]  ;;  %v375_v44 = vld [vmem:[%s23923_s5 + $0x378] sm:$0xff] }
 0x3d0   : > { %23154 = vmatprep.subr.bf16.mxu0 %v23153_v15  ;;  %v15358_v24 = vpop.f32.mrb[158].mxu0  ;;  %19206 = vmatprep.mubr.f32.mxu1 %v3362_v16  ;;  %v3431_v52 = vcombine.high %v375_v44, %v375_v44  ;;  %v3438_v57 = vrot.slane %v375_v44, %v23954_v25 }
 0x3d1   : > { %v15428_v26 = vpop.f32.mrb[158].mxu1  ;;  %23158 = vmatprep.subr.bf16.mxu1 %v23157_v17  ;;  %v15359_v30 = vadd.f32 %v15358_v24, %v15289_v13  ;;  %v15360_v31 = vpop.f32.mrb[159].mxu0  ;;  %v3411_v13 = vrot.slane %v3397_v3, %v23954_v25  ;;  %v835_v17 = vld [vmem:[%s23930_s11 + $0xdd8] sm:$0xff]  ;;  %v23177_v24 = vpack.c.bf16 %v1345_v12, %v833_v11 }
 0x3d2   : > { %v15430_v32 = vpop.f32.mrb[159].mxu1  ;;  %v23181_v27 = vpack.c.bf16 %v1347_v18, %v835_v17  ;;  %v834_v31 = vld [vmem:[%s23930_s11 + $0xdd0] sm:$0xff]  ;;  %v1355_v3 = vld [vmem:[%s23930_s11 + $0x1e18] sm:$0x3] }
 0x3d3   : > { %v15429_v38 = vadd.f32 %v15428_v26, %v15359_v30  ;;  %v3413_v26 = vcombine.high %v3411_v13, %v3411_v13  ;;  %v1344_v30 = vld [vmem:[%s23930_s11 + $0x1dc0] sm:$0x3]  ;;  %v1346_v32 = vld [vmem:[%s23930_s11 + $0x1dd0] sm:$0x3] }
 0x3d4   : > { %v23183_v46 = vpack.c.bf16 %v1346_v32, %v834_v31 }
 0x3d5   : > { %19137 = vmatmul.mubr.f32.vlgmr.msra.gmra.mrb[212].mxu0 %v3353_v63  ;;  %v3395_v63 = vcombine.high %v3387_v48, %v3387_v48 }
 0x3d6   : > { %19207 = vmatmul.mubr.f32.vlgmr.msra.gmra.mrb[212].mxu1 %v3360_v4  ;;  %23156 = vmatpush1.bf16.xpose.msra.mxu0 %v23155_v36  ;;  %v828_v4 = vld [vmem:[%s23930_s11 + $0xda0] sm:$0xff]  ;;  %v837_v36 = vld [vmem:[%s23930_s11 + $0xde8] sm:$0xff] }
 0x3d7   : > { %23160 = vmatpush1.bf16.xpose.msra.mxu1 %v23159_v37  ;;  %19276 = vmatprep.mubr.f32.mxu0 %v3378_v39  ;;  %v23171_v20 = vpack.c.bf16 %v1340_v5, %v828_v4  ;;  %v1349_v37 = vld [vmem:[%s23930_s11 + $0x1de8] sm:$0x3]  ;;  %v376_v4 = vld [vmem:[%s23923_s5 + $0x380] sm:$0xff] }
 0x3d8   : > { %23162 = vmatprep.subr.bf16.mxu0 %v23161_v40  ;;  %v15498_v49 = vpop.f32.mrb[160].mxu0  ;;  %19346 = vmatprep.mubr.f32.mxu1 %v3379_v41  ;;  %v3448_v12 = vcombine.high %v376_v4, %v376_v4  ;;  %v3455_v17 = vrot.slane %v376_v4, %v23954_v25 }
 0x3d9   : > { %v15568_v50 = vpop.f32.mrb[160].mxu1  ;;  %23166 = vmatprep.subr.bf16.mxu1 %v23165_v42  ;;  %v15499_v54 = vadd.f32 %v15498_v49, %v15429_v38  ;;  %v15500_v55 = vpop.f32.mrb[161].mxu0  ;;  %v3428_v38 = vrot.slane %v3414_v28, %v23954_v25  ;;  %v839_v42 = vld [vmem:[%s23930_s11 + $0xdf8] sm:$0xff]  ;;  %v23185_v49 = vpack.c.bf16 %v1349_v37, %v837_v36 }
 0x3da   : > { %v15570_v56 = vpop.f32.mrb[161].mxu1  ;;  %v23189_v51 = vpack.c.bf16 %v1351_v43, %v839_v42  ;;  %v838_v55 = vld [vmem:[%s23930_s11 + $0xdf0] sm:$0xff]  ;;  %v1359_v28 = vld [vmem:[%s23930_s11 + $0x1e38] sm:$0x3] }
 0x3db   : > { %v15569_v62 = vadd.f32 %v15568_v50, %v15499_v54  ;;  %v3430_v50 = vcombine.high %v3428_v38, %v3428_v38  ;;  %v1348_v54 = vld [vmem:[%s23930_s11 + $0x1de0] sm:$0x3]  ;;  %v1350_v56 = vld [vmem:[%s23930_s11 + $0x1df0] sm:$0x3] }
 0x3dc   : > { %v23191_v6 = vpack.c.bf16 %v1350_v56, %v838_v55 }
 0x3dd   : > { %19277 = vmatmul.mubr.f32.vlgmr.msra.gmra.mrb[214].mxu0 %v3370_v23  ;;  %v3412_v23 = vcombine.high %v3404_v8, %v3404_v8 }
 0x3de   : > { %19347 = vmatmul.mubr.f32.vlgmr.msra.gmra.mrb[214].mxu1 %v3377_v29  ;;  %23164 = vmatpush1.bf16.xpose.msra.mxu0 %v23163_v60  ;;  %v832_v29 = vld [vmem:[%s23930_s11 + $0xdc0] sm:$0xff]  ;;  %v841_v60 = vld [vmem:[%s23930_s11 + $0xe08] sm:$0xff] }
 0x3df   : > { %23168 = vmatpush1.bf16.xpose.msra.mxu1 %v23167_v61  ;;  %19416 = vmatprep.mubr.f32.mxu0 %v3395_v63  ;;  %v23179_v45 = vpack.c.bf16 %v1344_v30, %v832_v29  ;;  %v1353_v61 = vld [vmem:[%s23930_s11 + $0x1e08] sm:$0x3] }
 0x3e0   : > { %23170 = vmatprep.subr.bf16.mxu0 %v23169_v0  ;;  %v15638_v9 = vpop.f32.mrb[162].mxu0  ;;  %19486 = vmatprep.mubr.f32.mxu1 %v3396_v1  ;;  %v377_v29 = vld [vmem:[%s23923_s5 + $0x388] sm:$0xff] }
 0x3e1   : > { %v15708_v10 = vpop.f32.mrb[162].mxu1  ;;  %23174 = vmatprep.subr.bf16.mxu1 %v23173_v2  ;;  %v15639_v14 = vadd.f32 %v15638_v9, %v15569_v62  ;;  %v15640_v15 = vpop.f32.mrb[163].mxu0  ;;  %v3445_v62 = vrot.slane %v3431_v52, %v23954_v25  ;;  %v843_v2 = vld [vmem:[%s23930_s11 + $0xe18] sm:$0xff]  ;;  %v23193_v9 = vpack.c.bf16 %v1353_v61, %v841_v60  ;;  %v3465_v37 = vcombine.high %v377_v29, %v377_v29 }
 0x3e2   : > { %v15710_v16 = vpop.f32.mrb[163].mxu1  ;;  %v23197_v11 = vpack.c.bf16 %v1355_v3, %v843_v2  ;;  %v842_v15 = vld [vmem:[%s23930_s11 + $0xe10] sm:$0xff]  ;;  %v3472_v42 = vrot.slane %v377_v29, %v23954_v25  ;;  %v1363_v52 = vld [vmem:[%s23930_s11 + $0x1e58] sm:$0x3] }
 0x3e3   : > { %v15709_v22 = vadd.f32 %v15708_v10, %v15639_v14  ;;  %v3447_v10 = vcombine.high %v3445_v62, %v3445_v62  ;;  %v1352_v14 = vld [vmem:[%s23930_s11 + $0x1e00] sm:$0x3]  ;;  %v1354_v16 = vld [vmem:[%s23930_s11 + $0x1e10] sm:$0x3] }
 0x3e4   : > { %v23199_v31 = vpack.c.bf16 %v1354_v16, %v842_v15 }
 0x3e5   : > { %19417 = vmatmul.mubr.f32.vlgmr.msra.gmra.mrb[216].mxu0 %v3387_v48  ;;  %v3429_v48 = vcombine.high %v3421_v33, %v3421_v33 }
 0x3e6   : > { %19487 = vmatmul.mubr.f32.vlgmr.msra.gmra.mrb[216].mxu1 %v3394_v53  ;;  %23172 = vmatpush1.bf16.xpose.msra.mxu0 %v23171_v20  ;;  %v836_v53 = vld [vmem:[%s23930_s11 + $0xde0] sm:$0xff]  ;;  %v845_v20 = vld [vmem:[%s23930_s11 + $0xe28] sm:$0xff] }
 0x3e7   : > { %23176 = vmatpush1.bf16.xpose.msra.mxu1 %v23175_v21  ;;  %19556 = vmatprep.mubr.f32.mxu0 %v3412_v23  ;;  %v23187_v5 = vpack.c.bf16 %v1348_v54, %v836_v53  ;;  %v1357_v21 = vld [vmem:[%s23930_s11 + $0x1e28] sm:$0x3]  ;;  %v378_v53 = vld [vmem:[%s23923_s5 + $0x390] sm:$0xff] }
 0x3e8   : > { %23178 = vmatprep.subr.bf16.mxu0 %v23177_v24  ;;  %v15778_v34 = vpop.f32.mrb[164].mxu0  ;;  %19626 = vmatprep.mubr.f32.mxu1 %v3413_v26  ;;  %v3482_v61 = vcombine.high %v378_v53, %v378_v53  ;;  %v3489_v2 = vrot.slane %v378_v53, %v23954_v25 }
 0x3e9   : > { %v15848_v35 = vpop.f32.mrb[164].mxu1  ;;  %23182 = vmatprep.subr.bf16.mxu1 %v23181_v27  ;;  %v15779_v39 = vadd.f32 %v15778_v34, %v15709_v22  ;;  %v15780_v40 = vpop.f32.mrb[165].mxu0  ;;  %v3462_v22 = vrot.slane %v3448_v12, %v23954_v25  ;;  %v847_v27 = vld [vmem:[%s23930_s11 + $0xe38] sm:$0xff]  ;;  %v23201_v34 = vpack.c.bf16 %v1357_v21, %v845_v20 }
 0x3ea   : > { %v15850_v41 = vpop.f32.mrb[165].mxu1  ;;  %v23205_v36 = vpack.c.bf16 %v1359_v28, %v847_v27  ;;  %v846_v40 = vld [vmem:[%s23930_s11 + $0xe30] sm:$0xff]  ;;  %v1367_v12 = vld [vmem:[%s23930_s11 + $0x1e78] sm:$0x3] }
 0x3eb   : > { %v15849_v47 = vadd.f32 %v15848_v35, %v15779_v39  ;;  %v3464_v35 = vcombine.high %v3462_v22, %v3462_v22  ;;  %v1356_v39 = vld [vmem:[%s23930_s11 + $0x1e20] sm:$0x3]  ;;  %v1358_v41 = vld [vmem:[%s23930_s11 + $0x1e30] sm:$0x3] }
 0x3ec   : > { %v23207_v55 = vpack.c.bf16 %v1358_v41, %v846_v40 }
 0x3ed   : > { %19557 = vmatmul.mubr.f32.vlgmr.msra.gmra.mrb[218].mxu0 %v3404_v8  ;;  %v3446_v8 = vcombine.high %v3438_v57, %v3438_v57 }
 0x3ee   : > { %19627 = vmatmul.mubr.f32.vlgmr.msra.gmra.mrb[218].mxu1 %v3411_v13  ;;  %23180 = vmatpush1.bf16.xpose.msra.mxu0 %v23179_v45  ;;  %v840_v13 = vld [vmem:[%s23930_s11 + $0xe00] sm:$0xff]  ;;  %v849_v45 = vld [vmem:[%s23930_s11 + $0xe48] sm:$0xff] }
 0x3ef   : > { %23184 = vmatpush1.bf16.xpose.msra.mxu1 %v23183_v46  ;;  %19696 = vmatprep.mubr.f32.mxu0 %v3429_v48  ;;  %v23195_v30 = vpack.c.bf16 %v1352_v14, %v840_v13  ;;  %v1361_v46 = vld [vmem:[%s23930_s11 + $0x1e48] sm:$0x3]  ;;  %v379_v13 = vld [vmem:[%s23923_s5 + $0x398] sm:$0xff] }
 0x3f0   : > { %23186 = vmatprep.subr.bf16.mxu0 %v23185_v49  ;;  %v15918_v58 = vpop.f32.mrb[166].mxu0  ;;  %19766 = vmatprep.mubr.f32.mxu1 %v3430_v50  ;;  %v3499_v21 = vcombine.high %v379_v13, %v379_v13  ;;  %v3506_v27 = vrot.slane %v379_v13, %v23954_v25 }
 0x3f1   : > { %v15988_v59 = vpop.f32.mrb[166].mxu1  ;;  %23190 = vmatprep.subr.bf16.mxu1 %v23189_v51  ;;  %v15919_v63 = vadd.f32 %v15918_v58, %v15849_v47  ;;  %v15920_v0 = vpop.f32.mrb[167].mxu0  ;;  %v3479_v47 = vrot.slane %v3465_v37, %v23954_v25  ;;  %v851_v51 = vld [vmem:[%s23930_s11 + $0xe58] sm:$0xff]  ;;  %v23209_v58 = vpack.c.bf16 %v1361_v46, %v849_v45 }
 0x3f2   : > { %v15990_v1 = vpop.f32.mrb[167].mxu1  ;;  %v23213_v60 = vpack.c.bf16 %v1363_v52, %v851_v51  ;;  %v850_v0 = vld [vmem:[%s23930_s11 + $0xe50] sm:$0xff]  ;;  %v1371_v37 = vld [vmem:[%s23930_s11 + $0x1e98] sm:$0x3] }
 0x3f3   : > { %v15989_v7 = vadd.f32 %v15988_v59, %v15919_v63  ;;  %v3481_v59 = vcombine.high %v3479_v47, %v3479_v47  ;;  %v1360_v63 = vld [vmem:[%s23930_s11 + $0x1e40] sm:$0x3]  ;;  %v1362_v1 = vld [vmem:[%s23930_s11 + $0x1e50] sm:$0x3] }
 0x3f4   : > { %v23215_v15 = vpack.c.bf16 %v1362_v1, %v850_v0 }
 0x3f5   : > { %19697 = vmatmul.mubr.f32.vlgmr.msra.gmra.mrb[220].mxu0 %v3421_v33  ;;  %v3463_v33 = vcombine.high %v3455_v17, %v3455_v17 }
 0x3f6   : > { %19767 = vmatmul.mubr.f32.vlgmr.msra.gmra.mrb[220].mxu1 %v3428_v38  ;;  %23188 = vmatpush1.bf16.xpose.msra.mxu0 %v23187_v5  ;;  %v844_v38 = vld [vmem:[%s23930_s11 + $0xe20] sm:$0xff]  ;;  %v853_v5 = vld [vmem:[%s23930_s11 + $0xe68] sm:$0xff] }
 0x3f7   : > { %23192 = vmatpush1.bf16.xpose.msra.mxu1 %v23191_v6  ;;  %19836 = vmatprep.mubr.f32.mxu0 %v3446_v8  ;;  %v23203_v54 = vpack.c.bf16 %v1356_v39, %v844_v38  ;;  %v1365_v6 = vld [vmem:[%s23930_s11 + $0x1e68] sm:$0x3]  ;;  %v380_v38 = vld [vmem:[%s23923_s5 + $0x3a0] sm:$0xff] }
 0x3f8   : > { %23194 = vmatprep.subr.bf16.mxu0 %v23193_v9  ;;  %v16058_v18 = vpop.f32.mrb[168].mxu0  ;;  %19906 = vmatprep.mubr.f32.mxu1 %v3447_v10  ;;  %v3516_v46 = vcombine.high %v380_v38, %v380_v38  ;;  %v3523_v51 = vrot.slane %v380_v38, %v23954_v25 }
 0x3f9   : > { %v16128_v19 = vpop.f32.mrb[168].mxu1  ;;  %23198 = vmatprep.subr.bf16.mxu1 %v23197_v11  ;;  %v16059_v23 = vadd.f32 %v16058_v18, %v15989_v7  ;;  %v16060_v24 = vpop.f32.mrb[169].mxu0  ;;  %v3496_v7 = vrot.slane %v3482_v61, %v23954_v25  ;;  %v855_v11 = vld [vmem:[%s23930_s11 + $0xe78] sm:$0xff]  ;;  %v23217_v18 = vpack.c.bf16 %v1365_v6, %v853_v5 }
 0x3fa   : > { %v16130_v26 = vpop.f32.mrb[169].mxu1  ;;  %v23221_v20 = vpack.c.bf16 %v1367_v12, %v855_v11  ;;  %v854_v24 = vld [vmem:[%s23930_s11 + $0xe70] sm:$0xff]  ;;  %v1375_v61 = vld [vmem:[%s23930_s11 + $0x1eb8] sm:$0x3] }
 0x3fb   : > { %v16129_v32 = vadd.f32 %v16128_v19, %v16059_v23  ;;  %v3498_v19 = vcombine.high %v3496_v7, %v3496_v7  ;;  %v1364_v23 = vld [vmem:[%s23930_s11 + $0x1e60] sm:$0x3]  ;;  %v1366_v26 = vld [vmem:[%s23930_s11 + $0x1e70] sm:$0x3] }
 0x3fc   : > { %v23223_v40 = vpack.c.bf16 %v1366_v26, %v854_v24 }
 0x3fd   : > { %19837 = vmatmul.mubr.f32.vlgmr.msra.gmra.mrb[222].mxu0 %v3438_v57  ;;  %v3480_v57 = vcombine.high %v3472_v42, %v3472_v42 }
 0x3fe   : > { %19907 = vmatmul.mubr.f32.vlgmr.msra.gmra.mrb[222].mxu1 %v3445_v62  ;;  %23196 = vmatpush1.bf16.xpose.msra.mxu0 %v23195_v30  ;;  %v848_v62 = vld [vmem:[%s23930_s11 + $0xe40] sm:$0xff]  ;;  %v857_v30 = vld [vmem:[%s23930_s11 + $0xe88] sm:$0xff] }
 0x3ff   : > { %23200 = vmatpush1.bf16.xpose.msra.mxu1 %v23199_v31  ;;  %19976 = vmatprep.mubr.f32.mxu0 %v3463_v33  ;;  %v23211_v14 = vpack.c.bf16 %v1360_v63, %v848_v62  ;;  %v1369_v31 = vld [vmem:[%s23930_s11 + $0x1e88] sm:$0x3] }
 0x400   : > { %23202 = vmatprep.subr.bf16.mxu0 %v23201_v34  ;;  %v16198_v43 = vpop.f32.mrb[170].mxu0  ;;  %20046 = vmatprep.mubr.f32.mxu1 %v3464_v35  ;;  %v381_v62 = vld [vmem:[%s23923_s5 + $0x3a8] sm:$0xff] }
 0x401   : > { %v16268_v44 = vpop.f32.mrb[170].mxu1  ;;  %23206 = vmatprep.subr.bf16.mxu1 %v23205_v36  ;;  %v16199_v48 = vadd.f32 %v16198_v43, %v16129_v32  ;;  %v16200_v49 = vpop.f32.mrb[171].mxu0  ;;  %v3513_v32 = vrot.slane %v3499_v21, %v23954_v25  ;;  %v859_v36 = vld [vmem:[%s23930_s11 + $0xe98] sm:$0xff]  ;;  %v23225_v43 = vpack.c.bf16 %v1369_v31, %v857_v30  ;;  %v3533_v6 = vcombine.high %v381_v62, %v381_v62 }
 0x402   : > { %v16270_v50 = vpop.f32.mrb[171].mxu1  ;;  %v23229_v45 = vpack.c.bf16 %v1371_v37, %v859_v36  ;;  %v858_v49 = vld [vmem:[%s23930_s11 + $0xe90] sm:$0xff]  ;;  %v3540_v11 = vrot.slane %v381_v62, %v23954_v25  ;;  %v1379_v21 = vld [vmem:[%s23930_s11 + $0x1ed8] sm:$0x3] }
 0x403   : > { %v16269_v56 = vadd.f32 %v16268_v44, %v16199_v48  ;;  %v3515_v44 = vcombine.high %v3513_v32, %v3513_v32  ;;  %v1368_v48 = vld [vmem:[%s23930_s11 + $0x1e80] sm:$0x3]  ;;  %v1370_v50 = vld [vmem:[%s23930_s11 + $0x1e90] sm:$0x3] }
 0x404   : > { %v23231_v0 = vpack.c.bf16 %v1370_v50, %v858_v49 }
 0x405   : > { %19977 = vmatmul.mubr.f32.vlgmr.msra.gmra.mrb[224].mxu0 %v3455_v17  ;;  %v3497_v17 = vcombine.high %v3489_v2, %v3489_v2 }
 0x406   : > { %20047 = vmatmul.mubr.f32.vlgmr.msra.gmra.mrb[224].mxu1 %v3462_v22  ;;  %23204 = vmatpush1.bf16.xpose.msra.mxu0 %v23203_v54  ;;  %v852_v22 = vld [vmem:[%s23930_s11 + $0xe60] sm:$0xff]  ;;  %v861_v54 = vld [vmem:[%s23930_s11 + $0xea8] sm:$0xff] }
 0x407   : > { %23208 = vmatpush1.bf16.xpose.msra.mxu1 %v23207_v55  ;;  %20116 = vmatprep.mubr.f32.mxu0 %v3480_v57  ;;  %v23219_v39 = vpack.c.bf16 %v1364_v23, %v852_v22  ;;  %v1373_v55 = vld [vmem:[%s23930_s11 + $0x1ea8] sm:$0x3]  ;;  %v382_v22 = vld [vmem:[%s23923_s5 + $0x3b0] sm:$0xff] }
 0x408   : > { %23210 = vmatprep.subr.bf16.mxu0 %v23209_v58  ;;  %v16338_v3 = vpop.f32.mrb[172].mxu0  ;;  %20186 = vmatprep.mubr.f32.mxu1 %v3481_v59  ;;  %v3550_v31 = vcombine.high %v382_v22, %v382_v22  ;;  %v3557_v36 = vrot.slane %v382_v22, %v23954_v25 }
 0x409   : > { %v16408_v4 = vpop.f32.mrb[172].mxu1  ;;  %23214 = vmatprep.subr.bf16.mxu1 %v23213_v60  ;;  %v16339_v8 = vadd.f32 %v16338_v3, %v16269_v56  ;;  %v16340_v9 = vpop.f32.mrb[173].mxu0  ;;  %v3530_v56 = vrot.slane %v3516_v46, %v23954_v25  ;;  %v863_v60 = vld [vmem:[%s23930_s11 + $0xeb8] sm:$0xff]  ;;  %v23233_v3 = vpack.c.bf16 %v1373_v55, %v861_v54 }
 0x40a   : > { %v16410_v10 = vpop.f32.mrb[173].mxu1  ;;  %v23237_v5 = vpack.c.bf16 %v1375_v61, %v863_v60  ;;  %v862_v9 = vld [vmem:[%s23930_s11 + $0xeb0] sm:$0xff]  ;;  %v1383_v46 = vld [vmem:[%s23930_s11 + $0x1ef8] sm:$0x3] }
 0x40b   : > { %v16409_v16 = vadd.f32 %v16408_v4, %v16339_v8  ;;  %v3532_v4 = vcombine.high %v3530_v56, %v3530_v56  ;;  %v1372_v8 = vld [vmem:[%s23930_s11 + $0x1ea0] sm:$0x3]  ;;  %v1374_v10 = vld [vmem:[%s23930_s11 + $0x1eb0] sm:$0x3] }
 0x40c   : > { %v23239_v24 = vpack.c.bf16 %v1374_v10, %v862_v9 }
 0x40d   : > { %20117 = vmatmul.mubr.f32.vlgmr.msra.gmra.mrb[226].mxu0 %v3472_v42  ;;  %v3514_v42 = vcombine.high %v3506_v27, %v3506_v27 }
 0x40e   : > { %20187 = vmatmul.mubr.f32.vlgmr.msra.gmra.mrb[226].mxu1 %v3479_v47  ;;  %23212 = vmatpush1.bf16.xpose.msra.mxu0 %v23211_v14  ;;  %v856_v47 = vld [vmem:[%s23930_s11 + $0xe80] sm:$0xff]  ;;  %v865_v14 = vld [vmem:[%s23930_s11 + $0xec8] sm:$0xff] }
 0x40f   : > { %23216 = vmatpush1.bf16.xpose.msra.mxu1 %v23215_v15  ;;  %20256 = vmatprep.mubr.f32.mxu0 %v3497_v17  ;;  %v23227_v63 = vpack.c.bf16 %v1368_v48, %v856_v47  ;;  %v1377_v15 = vld [vmem:[%s23930_s11 + $0x1ec8] sm:$0x3]  ;;  %v383_v47 = vld [vmem:[%s23923_s5 + $0x3b8] sm:$0xff] }
 0x410   : > { %23218 = vmatprep.subr.bf16.mxu0 %v23217_v18  ;;  %v16478_v28 = vpop.f32.mrb[174].mxu0  ;;  %20326 = vmatprep.mubr.f32.mxu1 %v3498_v19  ;;  %v3567_v55 = vcombine.high %v383_v47, %v383_v47  ;;  %v3574_v60 = vrot.slane %v383_v47, %v23954_v25 }
 0x411   : > { %v16548_v29 = vpop.f32.mrb[174].mxu1  ;;  %23222 = vmatprep.subr.bf16.mxu1 %v23221_v20  ;;  %v16479_v33 = vadd.f32 %v16478_v28, %v16409_v16  ;;  %v16480_v34 = vpop.f32.mrb[175].mxu0  ;;  %v3547_v16 = vrot.slane %v3533_v6, %v23954_v25  ;;  %v867_v20 = vld [vmem:[%s23930_s11 + $0xed8] sm:$0xff]  ;;  %v23241_v28 = vpack.c.bf16 %v1377_v15, %v865_v14 }
 0x412   : > { %v16550_v35 = vpop.f32.mrb[175].mxu1  ;;  %v23245_v30 = vpack.c.bf16 %v1379_v21, %v867_v20  ;;  %v866_v34 = vld [vmem:[%s23930_s11 + $0xed0] sm:$0xff]  ;;  %v1387_v6 = vld [vmem:[%s23930_s11 + $0x1f18] sm:$0x3] }
 0x413   : > { %v16549_v41 = vadd.f32 %v16548_v29, %v16479_v33  ;;  %v3549_v29 = vcombine.high %v3547_v16, %v3547_v16  ;;  %v1376_v33 = vld [vmem:[%s23930_s11 + $0x1ec0] sm:$0x3]  ;;  %v1378_v35 = vld [vmem:[%s23930_s11 + $0x1ed0] sm:$0x3] }
 0x414   : > { %v23247_v49 = vpack.c.bf16 %v1378_v35, %v866_v34 }
 0x415   : > { %20257 = vmatmul.mubr.f32.vlgmr.msra.gmra.mrb[228].mxu0 %v3489_v2  ;;  %v3531_v2 = vcombine.high %v3523_v51, %v3523_v51 }
 0x416   : > { %20327 = vmatmul.mubr.f32.vlgmr.msra.gmra.mrb[228].mxu1 %v3496_v7  ;;  %23220 = vmatpush1.bf16.xpose.msra.mxu0 %v23219_v39  ;;  %v860_v7 = vld [vmem:[%s23930_s11 + $0xea0] sm:$0xff]  ;;  %v869_v39 = vld [vmem:[%s23930_s11 + $0xee8] sm:$0xff] }
 0x417   : > { %23224 = vmatpush1.bf16.xpose.msra.mxu1 %v23223_v40  ;;  %20396 = vmatprep.mubr.f32.mxu0 %v3514_v42  ;;  %v23235_v23 = vpack.c.bf16 %v1372_v8, %v860_v7  ;;  %v1381_v40 = vld [vmem:[%s23930_s11 + $0x1ee8] sm:$0x3]  ;;  %v384_v7 = vld [vmem:[%s23923_s5 + $0x3c0] sm:$0xff] }
 0x418   : > { %23226 = vmatprep.subr.bf16.mxu0 %v23225_v43  ;;  %v16618_v52 = vpop.f32.mrb[176].mxu0  ;;  %20466 = vmatprep.mubr.f32.mxu1 %v3515_v44  ;;  %v3584_v15 = vcombine.high %v384_v7, %v384_v7  ;;  %v3591_v20 = vrot.slane %v384_v7, %v23954_v25 }
 0x419   : > { %v16688_v53 = vpop.f32.mrb[176].mxu1  ;;  %23230 = vmatprep.subr.bf16.mxu1 %v23229_v45  ;;  %v16619_v57 = vadd.f32 %v16618_v52, %v16549_v41  ;;  %v16620_v58 = vpop.f32.mrb[177].mxu0  ;;  %v3564_v41 = vrot.slane %v3550_v31, %v23954_v25  ;;  %v871_v45 = vld [vmem:[%s23930_s11 + $0xef8] sm:$0xff]  ;;  %v23249_v52 = vpack.c.bf16 %v1381_v40, %v869_v39 }
 0x41a   : > { %v16690_v59 = vpop.f32.mrb[177].mxu1  ;;  %v23253_v54 = vpack.c.bf16 %v1383_v46, %v871_v45  ;;  %v870_v58 = vld [vmem:[%s23930_s11 + $0xef0] sm:$0xff]  ;;  %v1391_v31 = vld [vmem:[%s23930_s11 + $0x1f38] sm:$0x3] }
 0x41b   : > { %v16689_v1 = vadd.f32 %v16688_v53, %v16619_v57  ;;  %v3566_v53 = vcombine.high %v3564_v41, %v3564_v41  ;;  %v1380_v57 = vld [vmem:[%s23930_s11 + $0x1ee0] sm:$0x3]  ;;  %v1382_v59 = vld [vmem:[%s23930_s11 + $0x1ef0] sm:$0x3] }
 0x41c   : > { %v23255_v9 = vpack.c.bf16 %v1382_v59, %v870_v58 }
 0x41d   : > { %20397 = vmatmul.mubr.f32.vlgmr.msra.gmra.mrb[230].mxu0 %v3506_v27  ;;  %v3548_v27 = vcombine.high %v3540_v11, %v3540_v11 }
 0x41e   : > { %20467 = vmatmul.mubr.f32.vlgmr.msra.gmra.mrb[230].mxu1 %v3513_v32  ;;  %23228 = vmatpush1.bf16.xpose.msra.mxu0 %v23227_v63  ;;  %v864_v32 = vld [vmem:[%s23930_s11 + $0xec0] sm:$0xff]  ;;  %v873_v63 = vld [vmem:[%s23930_s11 + $0xf08] sm:$0xff] }
 0x41f   : > { %23232 = vmatpush1.bf16.xpose.msra.mxu1 %v23231_v0  ;;  %20536 = vmatprep.mubr.f32.mxu0 %v3531_v2  ;;  %v23243_v48 = vpack.c.bf16 %v1376_v33, %v864_v32  ;;  %v1385_v0 = vld [vmem:[%s23930_s11 + $0x1f08] sm:$0x3] }
 0x420   : > { %23234 = vmatprep.subr.bf16.mxu0 %v23233_v3  ;;  %v16758_v12 = vpop.f32.mrb[178].mxu0  ;;  %20606 = vmatprep.mubr.f32.mxu1 %v3532_v4  ;;  %v385_v32 = vld [vmem:[%s23923_s5 + $0x3c8] sm:$0xff] }
 0x421   : > { %v16828_v13 = vpop.f32.mrb[178].mxu1  ;;  %23238 = vmatprep.subr.bf16.mxu1 %v23237_v5  ;;  %v16759_v17 = vadd.f32 %v16758_v12, %v16689_v1  ;;  %v16760_v18 = vpop.f32.mrb[179].mxu0  ;;  %v3581_v1 = vrot.slane %v3567_v55, %v23954_v25  ;;  %v875_v5 = vld [vmem:[%s23930_s11 + $0xf18] sm:$0xff]  ;;  %v23257_v12 = vpack.c.bf16 %v1385_v0, %v873_v63  ;;  %v3601_v40 = vcombine.high %v385_v32, %v385_v32 }
 0x422   : > { %v16830_v19 = vpop.f32.mrb[179].mxu1  ;;  %v23261_v14 = vpack.c.bf16 %v1387_v6, %v875_v5  ;;  %v874_v18 = vld [vmem:[%s23930_s11 + $0xf10] sm:$0xff]  ;;  %v3608_v45 = vrot.slane %v385_v32, %v23954_v25  ;;  %v1395_v55 = vld [vmem:[%s23930_s11 + $0x1f58] sm:$0x3] }
 0x423   : > { %v16829_v26 = vadd.f32 %v16828_v13, %v16759_v17  ;;  %v3583_v13 = vcombine.high %v3581_v1, %v3581_v1  ;;  %v1384_v17 = vld [vmem:[%s23930_s11 + $0x1f00] sm:$0x3]  ;;  %v1386_v19 = vld [vmem:[%s23930_s11 + $0x1f10] sm:$0x3] }
 0x424   : > { %v23263_v34 = vpack.c.bf16 %v1386_v19, %v874_v18 }
 0x425   : > { %20537 = vmatmul.mubr.f32.vlgmr.msra.gmra.mrb[232].mxu0 %v3523_v51  ;;  %v3565_v51 = vcombine.high %v3557_v36, %v3557_v36 }
 0x426   : > { %20607 = vmatmul.mubr.f32.vlgmr.msra.gmra.mrb[232].mxu1 %v3530_v56  ;;  %23236 = vmatpush1.bf16.xpose.msra.mxu0 %v23235_v23  ;;  %v868_v56 = vld [vmem:[%s23930_s11 + $0xee0] sm:$0xff]  ;;  %v877_v23 = vld [vmem:[%s23930_s11 + $0xf28] sm:$0xff] }
 0x427   : > { %23240 = vmatpush1.bf16.xpose.msra.mxu1 %v23239_v24  ;;  %20676 = vmatprep.mubr.f32.mxu0 %v3548_v27  ;;  %v23251_v8 = vpack.c.bf16 %v1380_v57, %v868_v56  ;;  %v1389_v24 = vld [vmem:[%s23930_s11 + $0x1f28] sm:$0x3]  ;;  %v386_v56 = vld [vmem:[%s23923_s5 + $0x3d0] sm:$0xff] }
 0x428   : > { %23242 = vmatprep.subr.bf16.mxu0 %v23241_v28  ;;  %v16898_v37 = vpop.f32.mrb[180].mxu0  ;;  %20746 = vmatprep.mubr.f32.mxu1 %v3549_v29  ;;  %v3618_v0 = vcombine.high %v386_v56, %v386_v56  ;;  %v3625_v5 = vrot.slane %v386_v56, %v23954_v25 }
 0x429   : > { %v16968_v38 = vpop.f32.mrb[180].mxu1  ;;  %23246 = vmatprep.subr.bf16.mxu1 %v23245_v30  ;;  %v16899_v42 = vadd.f32 %v16898_v37, %v16829_v26  ;;  %v16900_v43 = vpop.f32.mrb[181].mxu0  ;;  %v3598_v26 = vrot.slane %v3584_v15, %v23954_v25  ;;  %v879_v30 = vld [vmem:[%s23930_s11 + $0xf38] sm:$0xff]  ;;  %v23265_v37 = vpack.c.bf16 %v1389_v24, %v877_v23 }
 0x42a   : > { %v16970_v44 = vpop.f32.mrb[181].mxu1  ;;  %v23269_v39 = vpack.c.bf16 %v1391_v31, %v879_v30  ;;  %v878_v43 = vld [vmem:[%s23930_s11 + $0xf30] sm:$0xff]  ;;  %v1399_v15 = vld [vmem:[%s23930_s11 + $0x1f78] sm:$0x3] }
 0x42b   : > { %v16969_v50 = vadd.f32 %v16968_v38, %v16899_v42  ;;  %v3600_v38 = vcombine.high %v3598_v26, %v3598_v26  ;;  %v1388_v42 = vld [vmem:[%s23930_s11 + $0x1f20] sm:$0x3]  ;;  %v1390_v44 = vld [vmem:[%s23930_s11 + $0x1f30] sm:$0x3] }
 0x42c   : > { %v23271_v58 = vpack.c.bf16 %v1390_v44, %v878_v43 }
 0x42d   : > { %20677 = vmatmul.mubr.f32.vlgmr.msra.gmra.mrb[234].mxu0 %v3540_v11  ;;  %v3582_v11 = vcombine.high %v3574_v60, %v3574_v60 }
 0x42e   : > { %20747 = vmatmul.mubr.f32.vlgmr.msra.gmra.mrb[234].mxu1 %v3547_v16  ;;  %23244 = vmatpush1.bf16.xpose.msra.mxu0 %v23243_v48  ;;  %v872_v16 = vld [vmem:[%s23930_s11 + $0xf00] sm:$0xff]  ;;  %v881_v48 = vld [vmem:[%s23930_s11 + $0xf48] sm:$0xff] }
 0x42f   : > { %23248 = vmatpush1.bf16.xpose.msra.mxu1 %v23247_v49  ;;  %20816 = vmatprep.mubr.f32.mxu0 %v3565_v51  ;;  %v23259_v33 = vpack.c.bf16 %v1384_v17, %v872_v16  ;;  %v1393_v49 = vld [vmem:[%s23930_s11 + $0x1f48] sm:$0x3]  ;;  %v387_v16 = vld [vmem:[%s23923_s5 + $0x3d8] sm:$0xff] }
 0x430   : > { %23250 = vmatprep.subr.bf16.mxu0 %v23249_v52  ;;  %v17038_v61 = vpop.f32.mrb[182].mxu0  ;;  %20886 = vmatprep.mubr.f32.mxu1 %v3566_v53  ;;  %v3635_v24 = vcombine.high %v387_v16, %v387_v16  ;;  %v3642_v30 = vrot.slane %v387_v16, %v23954_v25 }
 0x431   : > { %v17108_v62 = vpop.f32.mrb[182].mxu1  ;;  %23254 = vmatprep.subr.bf16.mxu1 %v23253_v54  ;;  %v17039_v2 = vadd.f32 %v17038_v61, %v16969_v50  ;;  %v17040_v3 = vpop.f32.mrb[183].mxu0  ;;  %v3615_v50 = vrot.slane %v3601_v40, %v23954_v25  ;;  %v883_v54 = vld [vmem:[%s23930_s11 + $0xf58] sm:$0xff]  ;;  %v23273_v61 = vpack.c.bf16 %v1393_v49, %v881_v48 }
 0x432   : > { %v17110_v4 = vpop.f32.mrb[183].mxu1  ;;  %v23277_v63 = vpack.c.bf16 %v1395_v55, %v883_v54  ;;  %v882_v3 = vld [vmem:[%s23930_s11 + $0xf50] sm:$0xff]  ;;  %v1403_v40 = vld [vmem:[%s23930_s11 + $0x1f98] sm:$0x3] }
 0x433   : > { %v17109_v10 = vadd.f32 %v17108_v62, %v17039_v2  ;;  %v3617_v62 = vcombine.high %v3615_v50, %v3615_v50  ;;  %v1392_v2 = vld [vmem:[%s23930_s11 + $0x1f40] sm:$0x3]  ;;  %v1394_v4 = vld [vmem:[%s23930_s11 + $0x1f50] sm:$0x3] }
 0x434   : > { %v23279_v18 = vpack.c.bf16 %v1394_v4, %v882_v3 }
 0x435   : > { %20817 = vmatmul.mubr.f32.vlgmr.msra.gmra.mrb[236].mxu0 %v3557_v36  ;;  %v3599_v36 = vcombine.high %v3591_v20, %v3591_v20 }
 0x436   : > { %20887 = vmatmul.mubr.f32.vlgmr.msra.gmra.mrb[236].mxu1 %v3564_v41  ;;  %23252 = vmatpush1.bf16.xpose.msra.mxu0 %v23251_v8  ;;  %v876_v41 = vld [vmem:[%s23930_s11 + $0xf20] sm:$0xff]  ;;  %v885_v8 = vld [vmem:[%s23930_s11 + $0xf68] sm:$0xff] }
 0x437   : > { %23256 = vmatpush1.bf16.xpose.msra.mxu1 %v23255_v9  ;;  %20956 = vmatprep.mubr.f32.mxu0 %v3582_v11  ;;  %v23267_v57 = vpack.c.bf16 %v1388_v42, %v876_v41  ;;  %v1397_v9 = vld [vmem:[%s23930_s11 + $0x1f68] sm:$0x3]  ;;  %v388_v41 = vld [vmem:[%s23923_s5 + $0x3e0] sm:$0xff] }
 0x438   : > { %23258 = vmatprep.subr.bf16.mxu0 %v23257_v12  ;;  %v17178_v21 = vpop.f32.mrb[184].mxu0  ;;  %21026 = vmatprep.mubr.f32.mxu1 %v3583_v13  ;;  %v3652_v49 = vcombine.high %v388_v41, %v388_v41  ;;  %v3659_v54 = vrot.slane %v388_v41, %v23954_v25 }
 0x439   : > { %v17248_v22 = vpop.f32.mrb[184].mxu1  ;;  %23262 = vmatprep.subr.bf16.mxu1 %v23261_v14  ;;  %v17179_v27 = vadd.f32 %v17178_v21, %v17109_v10  ;;  %v17180_v28 = vpop.f32.mrb[185].mxu0  ;;  %v3632_v10 = vrot.slane %v3618_v0, %v23954_v25  ;;  %v887_v14 = vld [vmem:[%s23930_s11 + $0xf78] sm:$0xff]  ;;  %v23281_v21 = vpack.c.bf16 %v1397_v9, %v885_v8 }
 0x43a   : > { %v17250_v29 = vpop.f32.mrb[185].mxu1  ;;  %v23285_v23 = vpack.c.bf16 %v1399_v15, %v887_v14  ;;  %v886_v28 = vld [vmem:[%s23930_s11 + $0xf70] sm:$0xff]  ;;  %v1407_v0 = vld [vmem:[%s23930_s11 + $0x1fb8] sm:$0x3] }
 0x43b   : > { %v17249_v35 = vadd.f32 %v17248_v22, %v17179_v27  ;;  %v3634_v22 = vcombine.high %v3632_v10, %v3632_v10  ;;  %v1396_v27 = vld [vmem:[%s23930_s11 + $0x1f60] sm:$0x3]  ;;  %v1398_v29 = vld [vmem:[%s23930_s11 + $0x1f70] sm:$0x3] }
 0x43c   : > { %v23287_v43 = vpack.c.bf16 %v1398_v29, %v886_v28 }
 0x43d   : > { %20957 = vmatmul.mubr.f32.vlgmr.msra.gmra.mrb[238].mxu0 %v3574_v60  ;;  %v3616_v60 = vcombine.high %v3608_v45, %v3608_v45 }
 0x43e   : > { %21027 = vmatmul.mubr.f32.vlgmr.msra.gmra.mrb[238].mxu1 %v3581_v1  ;;  %23260 = vmatpush1.bf16.xpose.msra.mxu0 %v23259_v33  ;;  %v880_v1 = vld [vmem:[%s23930_s11 + $0xf40] sm:$0xff]  ;;  %v889_v33 = vld [vmem:[%s23930_s11 + $0xf88] sm:$0xff] }
 0x43f   : > { %23264 = vmatpush1.bf16.xpose.msra.mxu1 %v23263_v34  ;;  %21096 = vmatprep.mubr.f32.mxu0 %v3599_v36  ;;  %v23275_v17 = vpack.c.bf16 %v1392_v2, %v880_v1  ;;  %v1401_v34 = vld [vmem:[%s23930_s11 + $0x1f88] sm:$0x3] }
 0x440   : > { %23266 = vmatprep.subr.bf16.mxu0 %v23265_v37  ;;  %v17318_v46 = vpop.f32.mrb[186].mxu0  ;;  %21166 = vmatprep.mubr.f32.mxu1 %v3600_v38  ;;  %v389_v1 = vld [vmem:[%s23923_s5 + $0x3e8] sm:$0xff] }
 0x441   : > { %v17388_v47 = vpop.f32.mrb[186].mxu1  ;;  %23270 = vmatprep.subr.bf16.mxu1 %v23269_v39  ;;  %v17319_v51 = vadd.f32 %v17318_v46, %v17249_v35  ;;  %v17320_v52 = vpop.f32.mrb[187].mxu0  ;;  %v3649_v35 = vrot.slane %v3635_v24, %v23954_v25  ;;  %v891_v39 = vld [vmem:[%s23930_s11 + $0xf98] sm:$0xff]  ;;  %v23289_v46 = vpack.c.bf16 %v1401_v34, %v889_v33  ;;  %v3669_v9 = vcombine.high %v389_v1, %v389_v1 }
 0x442   : > { %v17390_v53 = vpop.f32.mrb[187].mxu1  ;;  %v23293_v48 = vpack.c.bf16 %v1403_v40, %v891_v39  ;;  %v890_v52 = vld [vmem:[%s23930_s11 + $0xf90] sm:$0xff]  ;;  %v3676_v14 = vrot.slane %v389_v1, %v23954_v25  ;;  %v1411_v24 = vld [vmem:[%s23930_s11 + $0x1fd8] sm:$0x3] }
 0x443   : > { %v17389_v59 = vadd.f32 %v17388_v47, %v17319_v51  ;;  %v3651_v47 = vcombine.high %v3649_v35, %v3649_v35  ;;  %v1400_v51 = vld [vmem:[%s23930_s11 + $0x1f80] sm:$0x3]  ;;  %v1402_v53 = vld [vmem:[%s23930_s11 + $0x1f90] sm:$0x3] }
 0x444   : > { %v23295_v3 = vpack.c.bf16 %v1402_v53, %v890_v52 }
 0x445   : > { %21097 = vmatmul.mubr.f32.vlgmr.msra.gmra.mrb[240].mxu0 %v3591_v20  ;;  %v3633_v20 = vcombine.high %v3625_v5, %v3625_v5 }
 0x446   : > { %21167 = vmatmul.mubr.f32.vlgmr.msra.gmra.mrb[240].mxu1 %v3598_v26  ;;  %23268 = vmatpush1.bf16.xpose.msra.mxu0 %v23267_v57  ;;  %v884_v26 = vld [vmem:[%s23930_s11 + $0xf60] sm:$0xff]  ;;  %v893_v57 = vld [vmem:[%s23930_s11 + $0xfa8] sm:$0xff] }
 0x447   : > { %23272 = vmatpush1.bf16.xpose.msra.mxu1 %v23271_v58  ;;  %21236 = vmatprep.mubr.f32.mxu0 %v3616_v60  ;;  %v23283_v42 = vpack.c.bf16 %v1396_v27, %v884_v26  ;;  %v1405_v58 = vld [vmem:[%s23930_s11 + $0x1fa8] sm:$0x3]  ;;  %v390_v26 = vld [vmem:[%s23923_s5 + $0x3f0] sm:$0xff] }
 0x448   : > { %23274 = vmatprep.subr.bf16.mxu0 %v23273_v61  ;;  %v17458_v6 = vpop.f32.mrb[188].mxu0  ;;  %21306 = vmatprep.mubr.f32.mxu1 %v3617_v62  ;;  %v3686_v34 = vcombine.high %v390_v26, %v390_v26  ;;  %v3693_v39 = vrot.slane %v390_v26, %v23954_v25 }
 0x449   : > { %v17528_v7 = vpop.f32.mrb[188].mxu1  ;;  %23278 = vmatprep.subr.bf16.mxu1 %v23277_v63  ;;  %v17459_v11 = vadd.f32 %v17458_v6, %v17389_v59  ;;  %v17460_v12 = vpop.f32.mrb[189].mxu0  ;;  %v3666_v59 = vrot.slane %v3652_v49, %v23954_v25  ;;  %v895_v63 = vld [vmem:[%s23930_s11 + $0xfb8] sm:$0xff]  ;;  %v23297_v6 = vpack.c.bf16 %v1405_v58, %v893_v57 }
 0x44a   : > { %v17530_v13 = vpop.f32.mrb[189].mxu1  ;;  %v23301_v8 = vpack.c.bf16 %v1407_v0, %v895_v63  ;;  %v894_v12 = vld [vmem:[%s23930_s11 + $0xfb0] sm:$0xff]  ;;  %v903_v49 = vld [vmem:[%s23930_s11 + $0xff8] sm:$0xff] }
 0x44b   : > { %v17529_v19 = vadd.f32 %v17528_v7, %v17459_v11  ;;  %v3668_v7 = vcombine.high %v3666_v59, %v3666_v59  ;;  %v1404_v11 = vld [vmem:[%s23930_s11 + $0x1fa0] sm:$0x3]  ;;  %v1406_v13 = vld [vmem:[%s23930_s11 + $0x1fb0] sm:$0x3] }
 0x44c   : > { %v23303_v28 = vpack.c.bf16 %v1406_v13, %v894_v12 }
 0x44d   : > { %21237 = vmatmul.mubr.f32.vlgmr.msra.gmra.mrb[242].mxu0 %v3608_v45  ;;  %v3650_v45 = vcombine.high %v3642_v30, %v3642_v30 }
 0x44e   : > { %21307 = vmatmul.mubr.f32.vlgmr.msra.gmra.mrb[242].mxu1 %v3615_v50  ;;  %23276 = vmatpush1.bf16.xpose.msra.mxu0 %v23275_v17  ;;  %v888_v50 = vld [vmem:[%s23930_s11 + $0xf80] sm:$0xff]  ;;  %v897_v17 = vld [vmem:[%s23930_s11 + $0xfc8] sm:$0xff] }
 0x44f   : > { %23280 = vmatpush1.bf16.xpose.msra.mxu1 %v23279_v18  ;;  %21376 = vmatprep.mubr.f32.mxu0 %v3633_v20  ;;  %v23291_v2 = vpack.c.bf16 %v1400_v51, %v888_v50  ;;  %v1409_v18 = vld [vmem:[%s23930_s11 + $0x1fc8] sm:$0x3]  ;;  %v1415_v50 = vld [vmem:[%s23930_s11 + $0x1ff8] sm:$0x3] }
 0x450   : > { %23282 = vmatprep.subr.bf16.mxu0 %v23281_v21  ;;  %v17598_v31 = vpop.f32.mrb[190].mxu0  ;;  %21446 = vmatprep.mubr.f32.mxu1 %v3634_v22  ;;  %v23317_v58 = vpack.c.bf16 %v1415_v50, %v903_v49 }
 0x451   : > { %v17668_v32 = vpop.f32.mrb[190].mxu1  ;;  %23286 = vmatprep.subr.bf16.mxu1 %v23285_v23  ;;  %v17599_v36 = vadd.f32 %v17598_v31, %v17529_v19  ;;  %v17600_v37 = vpop.f32.mrb[191].mxu0  ;;  %v3683_v19 = vrot.slane %v3669_v9, %v23954_v25  ;;  %v899_v23 = vld [vmem:[%s23930_s11 + $0xfd8] sm:$0xff]  ;;  %v23305_v31 = vpack.c.bf16 %v1409_v18, %v897_v17 }
 0x452   : > { %v17670_v38 = vpop.f32.mrb[191].mxu1  ;;  %v23309_v33 = vpack.c.bf16 %v1411_v24, %v899_v23  ;;  %v898_v37 = vld [vmem:[%s23930_s11 + $0xfd0] sm:$0xff] }
 0x453   : > { %v17669_v44 = vadd.f32 %v17668_v32, %v17599_v36  ;;  %v3685_v32 = vcombine.high %v3683_v19, %v3683_v19  ;;  %v1408_v36 = vld [vmem:[%s23930_s11 + $0x1fc0] sm:$0x3]  ;;  %v1410_v38 = vld [vmem:[%s23930_s11 + $0x1fd0] sm:$0x3] }
 0x454   : > { %v23311_v52 = vpack.c.bf16 %v1410_v38, %v898_v37 }
 0x455   : > { %21377 = vmatmul.mubr.f32.vlgmr.msra.gmra.mrb[244].mxu0 %v3625_v5  ;;  %v3667_v5 = vcombine.high %v3659_v54, %v3659_v54 }
 0x456   : > { %21447 = vmatmul.mubr.f32.vlgmr.msra.gmra.mrb[244].mxu1 %v3632_v10  ;;  %23284 = vmatpush1.bf16.xpose.msra.mxu0 %v23283_v42  ;;  %v892_v10 = vld [vmem:[%s23930_s11 + $0xfa0] sm:$0xff]  ;;  %v901_v42 = vld [vmem:[%s23930_s11 + $0xfe8] sm:$0xff] }
 0x457   : > { %23288 = vmatpush1.bf16.xpose.msra.mxu1 %v23287_v43  ;;  %21516 = vmatprep.mubr.f32.mxu0 %v3650_v45  ;;  %v23299_v27 = vpack.c.bf16 %v1404_v11, %v892_v10  ;;  %v1413_v43 = vld [vmem:[%s23930_s11 + $0x1fe8] sm:$0x3]  ;;  %v391_v45 = vld [vmem:[%s23923_s5 + $0x3f8] sm:$0xff] }
 0x458   : > { %23290 = vmatprep.subr.bf16.mxu0 %v23289_v46  ;;  %v17738_v55 = vpop.f32.mrb[192].mxu0  ;;  %21586 = vmatprep.mubr.f32.mxu1 %v3651_v47  ;;  %v3710_v63 = vrot.slane %v391_v45, %v23954_v25 }
 0x459   : > { %v17808_v56 = vpop.f32.mrb[192].mxu1  ;;  %23294 = vmatprep.subr.bf16.mxu1 %v23293_v48  ;;  %v17739_v60 = vadd.f32 %v17738_v55, %v17669_v44  ;;  %v17740_v61 = vpop.f32.mrb[193].mxu0  ;;  %v3700_v44 = vrot.slane %v3686_v34, %v23954_v25  ;;  %v23313_v55 = vpack.c.bf16 %v1413_v43, %v901_v42 }
 0x45a   : > { %v17810_v62 = vpop.f32.mrb[193].mxu1  ;;  %v902_v61 = vld [vmem:[%s23930_s11 + $0xff0] sm:$0xff]  ;;  %v3718_v9 = vcombine.high %v3710_v63, %v3710_v63 }
 0x45b   : > { %v17809_v4 = vadd.f32 %v17808_v56, %v17739_v60  ;;  %v3703_v56 = vcombine.high %v391_v45, %v391_v45  ;;  %v3702_v57 = vcombine.high %v3700_v44, %v3700_v44  ;;  %v1412_v60 = vld [vmem:[%s23930_s11 + $0x1fe0] sm:$0x3]  ;;  %v1414_v62 = vld [vmem:[%s23930_s11 + $0x1ff0] sm:$0x3] }
 0x45d   : > { %21517 = vmatmul.mubr.f32.vlgmr.msra.gmra.mrb[246].mxu0 %v3642_v30  ;;  %v3684_v30 = vcombine.high %v3676_v14, %v3676_v14  ;;  %v3717_v0 = vrot.slane %v3703_v56, %v23954_v25 }
 0x45e   : > { %21587 = vmatmul.mubr.f32.vlgmr.msra.gmra.mrb[246].mxu1 %v3649_v35  ;;  %23292 = vmatpush1.bf16.xpose.msra.mxu0 %v23291_v2  ;;  %v896_v35 = vld [vmem:[%s23930_s11 + $0xfc0] sm:$0xff] }
 0x45f   : > { %23296 = vmatpush1.bf16.xpose.msra.mxu1 %v23295_v3  ;;  %21656 = vmatprep.mubr.f32.mxu0 %v3667_v5  ;;  %v23307_v51 = vpack.c.bf16 %v1408_v36, %v896_v35  ;;  %v3719_v10 = vcombine.high %v3717_v0, %v3717_v0 }
 0x460   : > { %23298 = vmatprep.subr.bf16.mxu0 %v23297_v6  ;;  %v17878_v15 = vpop.f32.mrb[194].mxu0  ;;  %21726 = vmatprep.mubr.f32.mxu1 %v3668_v7  ;;  %v23319_v7 = vpack.c.bf16 %v1414_v62, %v902_v61 }
 0x461   : > { %v17948_v16 = vpop.f32.mrb[194].mxu1  ;;  %23302 = vmatprep.subr.bf16.mxu1 %v23301_v8  ;;  %v17879_v20 = vadd.f32 %v17878_v15, %v17809_v4  ;;  %v17880_v21 = vpop.f32.mrb[195].mxu0 }
 0x462   : > { %v17950_v22 = vpop.f32.mrb[195].mxu1 }
 0x463   : > { %v17949_v29 = vadd.f32 %v17948_v16, %v17879_v20 }
 0x465   : > { %21657 = vmatmul.mubr.f32.vlgmr.msra.gmra.mrb[248].mxu0 %v3659_v54  ;;  %v3701_v54 = vcombine.high %v3693_v39, %v3693_v39 }
 0x466   : > { %21727 = vmatmul.mubr.f32.vlgmr.msra.gmra.mrb[248].mxu1 %v3666_v59  ;;  %23300 = vmatpush1.bf16.xpose.msra.mxu0 %v23299_v27  ;;  %v900_v59 = vld [vmem:[%s23930_s11 + $0xfe0] sm:$0xff] }
 0x467   : > { %23304 = vmatpush1.bf16.xpose.msra.mxu1 %v23303_v28  ;;  %21796 = vmatprep.mubr.f32.mxu0 %v3684_v30  ;;  %v23315_v6 = vpack.c.bf16 %v1412_v60, %v900_v59 }
 0x468   : > { %23306 = vmatprep.subr.bf16.mxu0 %v23305_v31  ;;  %v18018_v40 = vpop.f32.mrb[196].mxu0  ;;  %21866 = vmatprep.mubr.f32.mxu1 %v3685_v32 }
 0x469   : > { %v18088_v41 = vpop.f32.mrb[196].mxu1  ;;  %23310 = vmatprep.subr.bf16.mxu1 %v23309_v33  ;;  %v18019_v46 = vadd.f32 %v18018_v40, %v17949_v29  ;;  %v18020_v47 = vpop.f32.mrb[197].mxu0 }
 0x46a   : > { %v18090_v48 = vpop.f32.mrb[197].mxu1 }
 0x46b   : > { %v18089_v53 = vadd.f32 %v18088_v41, %v18019_v46 }
 0x46d   : > { %21797 = vmatmul.mubr.f32.vlgmr.msra.gmra.mrb[250].mxu0 %v3676_v14 }
 0x46e   : > { %21867 = vmatmul.mubr.f32.vlgmr.msra.gmra.mrb[250].mxu1 %v3683_v19  ;;  %23308 = vmatpush1.bf16.xpose.msra.mxu0 %v23307_v51 }
 0x46f   : > { %23312 = vmatpush1.bf16.xpose.msra.mxu1 %v23311_v52  ;;  %21936 = vmatprep.mubr.f32.mxu0 %v3701_v54 }
 0x470   : > { %23314 = vmatprep.subr.bf16.mxu0 %v23313_v55  ;;  %v18158_v1 = vpop.f32.mrb[198].mxu0  ;;  %22006 = vmatprep.mubr.f32.mxu1 %v3702_v57 }
 0x471   : > { %v18228_v2 = vpop.f32.mrb[198].mxu1  ;;  %23318 = vmatprep.subr.bf16.mxu1 %v23317_v58  ;;  %v18159_v3 = vadd.f32 %v18158_v1, %v18089_v53  ;;  %v18160_v4 = vpop.f32.mrb[199].mxu0 }
 0x472   : > { %v18230_v5 = vpop.f32.mrb[199].mxu1 }
 0x473   : > { %v18229_v8 = vadd.f32 %v18228_v2, %v18159_v3 }
 0x475   : > { %21937 = vmatmul.mubr.f32.vlgmr.msra.gmra.mrb[252].mxu0 %v3693_v39 }
 0x476   : > { %22007 = vmatmul.mubr.f32.vlgmr.msra.gmra.mrb[252].mxu1 %v3700_v44  ;;  %23316 = vmatpush1.bf16.xpose.msra.mxu0 %v23315_v6 }
 0x477   : > { %23320 = vmatpush1.bf16.xpose.msra.mxu1 %v23319_v7  ;;  %22076 = vmatprep.mubr.f32.mxu0 %v3718_v9 }
 0x478   : > { %22146 = vmatprep.mubr.f32.mxu1 %v3719_v10  ;;  %v18298_v11 = vpop.f32.mrb[200].mxu0 }
 0x479   : > { %v18368_v25 = vpop.f32.mrb[200].mxu1  ;;  %v18299_v12 = vadd.f32 %v18298_v11, %v18229_v8  ;;  %v18300_v13 = vpop.f32.mrb[201].mxu0 }
 0x47a   : > { %v18370_v14 = vpop.f32.mrb[201].mxu1 }
 0x47b   : > { %v18369_v15 = vadd.f32 %v18368_v25, %v18299_v12 }
 0x47d   : > { %22077 = vmatmul.mubr.f32.vlgmr.msra.gmra.mrb[254].mxu0 %v3710_v63 }
 0x47e   : > { %22147 = vmatmul.mubr.f32.vlgmr.msra.gmra.mrb[254].mxu1 %v3717_v0 }
 0x480   : > { %v18438_v16 = vpop.f32.mrb[202].mxu0 }
 0x481   : > { %v18508_v17 = vpop.f32.mrb[202].mxu1  ;;  %v18439_v18 = vadd.f32 %v18438_v16, %v18369_v15  ;;  %v18440_v19 = vpop.f32.mrb[203].mxu0 }
 0x482   : > { %v18510_v20 = vpop.f32.mrb[203].mxu1 }
 0x483   : > { %v18509_v21 = vadd.f32 %v18508_v17, %v18439_v18 }
 0x488   : > { %v18578_v22 = vpop.f32.mrb[204].mxu0 }
 0x489   : > { %v18648_v23 = vpop.f32.mrb[204].mxu1  ;;  %v18579_v24 = vadd.f32 %v18578_v22, %v18509_v21  ;;  %v18580_v26 = vpop.f32.mrb[205].mxu0 }
 0x48a   : > { %v18650_v27 = vpop.f32.mrb[205].mxu1 }
 0x48b   : > { %v18649_v28 = vadd.f32 %v18648_v23, %v18579_v24 }
 0x490   : > { %v18718_v29 = vpop.f32.mrb[206].mxu0 }
 0x491   : > { %v18788_v30 = vpop.f32.mrb[206].mxu1  ;;  %v18719_v31 = vadd.f32 %v18718_v29, %v18649_v28  ;;  %v18720_v32 = vpop.f32.mrb[207].mxu0 }
 0x492   : > { %v18790_v33 = vpop.f32.mrb[207].mxu1 }
 0x493   : > { %v18789_v34 = vadd.f32 %v18788_v30, %v18719_v31 }
 0x498   : > { %v18858_v35 = vpop.f32.mrb[208].mxu0 }
 0x499   : > { %v18928_v36 = vpop.f32.mrb[208].mxu1  ;;  %v18859_v37 = vadd.f32 %v18858_v35, %v18789_v34  ;;  %v18860_v38 = vpop.f32.mrb[209].mxu0 }
 0x49a   : > { %v18930_v39 = vpop.f32.mrb[209].mxu1 }
 0x49b   : > { %v18929_v40 = vadd.f32 %v18928_v36, %v18859_v37 }
 0x4a0   : > { %v18998_v41 = vpop.f32.mrb[210].mxu0 }
 0x4a1   : > { %v19068_v42 = vpop.f32.mrb[210].mxu1  ;;  %v18999_v43 = vadd.f32 %v18998_v41, %v18929_v40  ;;  %v19000_v44 = vpop.f32.mrb[211].mxu0 }
 0x4a2   : > { %v19070_v45 = vpop.f32.mrb[211].mxu1 }
 0x4a3   : > { %v19069_v46 = vadd.f32 %v19068_v42, %v18999_v43 }
 0x4a8   : > { %v19138_v47 = vpop.f32.mrb[212].mxu0 }
 0x4a9   : > { %v19208_v48 = vpop.f32.mrb[212].mxu1  ;;  %v19139_v49 = vadd.f32 %v19138_v47, %v19069_v46  ;;  %v19140_v50 = vpop.f32.mrb[213].mxu0 }
 0x4aa   : > { %v19210_v51 = vpop.f32.mrb[213].mxu1 }
 0x4ab   : > { %v19209_v52 = vadd.f32 %v19208_v48, %v19139_v49 }
 0x4b0   : > { %v19278_v53 = vpop.f32.mrb[214].mxu0 }
 0x4b1   : > { %v19348_v54 = vpop.f32.mrb[214].mxu1  ;;  %v19279_v55 = vadd.f32 %v19278_v53, %v19209_v52  ;;  %v19280_v56 = vpop.f32.mrb[215].mxu0 }
 0x4b2   : > { %v19350_v57 = vpop.f32.mrb[215].mxu1 }
 0x4b3   : > { %v19349_v58 = vadd.f32 %v19348_v54, %v19279_v55 }
 0x4b8   : > { %v19418_v59 = vpop.f32.mrb[216].mxu0 }
 0x4b9   : > { %v19488_v60 = vpop.f32.mrb[216].mxu1  ;;  %v19419_v61 = vadd.f32 %v19418_v59, %v19349_v58  ;;  %v19420_v62 = vpop.f32.mrb[217].mxu0 }
 0x4ba   : > { %v19490_v63 = vpop.f32.mrb[217].mxu1 }
 0x4bb   : > { %v19489_v0 = vadd.f32 %v19488_v60, %v19419_v61 }
 0x4c0   : > { %v19558_v1 = vpop.f32.mrb[218].mxu0 }
 0x4c1   : > { %v19628_v2 = vpop.f32.mrb[218].mxu1  ;;  %v19559_v3 = vadd.f32 %v19558_v1, %v19489_v0  ;;  %v19560_v4 = vpop.f32.mrb[219].mxu0 }
 0x4c2   : > { %v19630_v5 = vpop.f32.mrb[219].mxu1 }
 0x4c3   : > { %v19629_v6 = vadd.f32 %v19628_v2, %v19559_v3 }
 0x4c8   : > { %v19698_v7 = vpop.f32.mrb[220].mxu0 }
 0x4c9   : > { %v19768_v8 = vpop.f32.mrb[220].mxu1  ;;  %v19699_v9 = vadd.f32 %v19698_v7, %v19629_v6  ;;  %v19700_v10 = vpop.f32.mrb[221].mxu0 }
 0x4ca   : > { %v19770_v11 = vpop.f32.mrb[221].mxu1 }
 0x4cb   : > { %v19769_v25 = vadd.f32 %v19768_v8, %v19699_v9 }
 0x4d0   : > { %v19838_v12 = vpop.f32.mrb[222].mxu0 }
 0x4d1   : > { %v19908_v13 = vpop.f32.mrb[222].mxu1  ;;  %v19839_v14 = vadd.f32 %v19838_v12, %v19769_v25  ;;  %v19840_v15 = vpop.f32.mrb[223].mxu0 }
 0x4d2   : > { %v19910_v16 = vpop.f32.mrb[223].mxu1 }
 0x4d3   : > { %v19909_v17 = vadd.f32 %v19908_v13, %v19839_v14 }
 0x4d8   : > { %v19978_v18 = vpop.f32.mrb[224].mxu0 }
 0x4d9   : > { %v20048_v19 = vpop.f32.mrb[224].mxu1  ;;  %v19979_v20 = vadd.f32 %v19978_v18, %v19909_v17  ;;  %v19980_v21 = vpop.f32.mrb[225].mxu0 }
 0x4da   : > { %v20050_v22 = vpop.f32.mrb[225].mxu1 }
 0x4db   : > { %v20049_v23 = vadd.f32 %v20048_v19, %v19979_v20 }
 0x4e0   : > { %v20118_v24 = vpop.f32.mrb[226].mxu0 }
 0x4e1   : > { %v20188_v26 = vpop.f32.mrb[226].mxu1  ;;  %v20119_v27 = vadd.f32 %v20118_v24, %v20049_v23  ;;  %v20120_v28 = vpop.f32.mrb[227].mxu0 }
 0x4e2   : > { %v20190_v29 = vpop.f32.mrb[227].mxu1 }
 0x4e3   : > { %v20189_v30 = vadd.f32 %v20188_v26, %v20119_v27 }
 0x4e8   : > { %v20258_v31 = vpop.f32.mrb[228].mxu0 }
 0x4e9   : > { %v20328_v32 = vpop.f32.mrb[228].mxu1  ;;  %v20259_v33 = vadd.f32 %v20258_v31, %v20189_v30  ;;  %v20260_v34 = vpop.f32.mrb[229].mxu0 }
 0x4ea   : > { %v20330_v35 = vpop.f32.mrb[229].mxu1 }
 0x4eb   : > { %v20329_v36 = vadd.f32 %v20328_v32, %v20259_v33 }
 0x4f0   : > { %v20398_v37 = vpop.f32.mrb[230].mxu0 }
 0x4f1   : > { %v20468_v38 = vpop.f32.mrb[230].mxu1  ;;  %v20399_v39 = vadd.f32 %v20398_v37, %v20329_v36  ;;  %v20400_v40 = vpop.f32.mrb[231].mxu0 }
 0x4f2   : > { %v20470_v41 = vpop.f32.mrb[231].mxu1 }
 0x4f3   : > { %v20469_v42 = vadd.f32 %v20468_v38, %v20399_v39 }
 0x4f8   : > { %v20538_v43 = vpop.f32.mrb[232].mxu0 }
 0x4f9   : > { %v20608_v44 = vpop.f32.mrb[232].mxu1  ;;  %v20539_v45 = vadd.f32 %v20538_v43, %v20469_v42  ;;  %v20540_v46 = vpop.f32.mrb[233].mxu0 }
 0x4fa   : > { %v20610_v47 = vpop.f32.mrb[233].mxu1 }
 0x4fb   : > { %v20609_v48 = vadd.f32 %v20608_v44, %v20539_v45 }
 0x500   : > { %v20678_v49 = vpop.f32.mrb[234].mxu0 }
 0x501   : > { %v20748_v50 = vpop.f32.mrb[234].mxu1  ;;  %v20679_v51 = vadd.f32 %v20678_v49, %v20609_v48  ;;  %v20680_v52 = vpop.f32.mrb[235].mxu0 }
 0x502   : > { %v20750_v53 = vpop.f32.mrb[235].mxu1 }
 0x503   : > { %v20749_v54 = vadd.f32 %v20748_v50, %v20679_v51  ;;  %v263_v50 = vld [vmem:[#allocation8] sm:$0x3] }
 0x508   : > { %v20818_v55 = vpop.f32.mrb[236].mxu0 }
 0x509   : > { %v20888_v56 = vpop.f32.mrb[236].mxu1  ;;  %v20819_v57 = vadd.f32 %v20818_v55, %v20749_v54  ;;  %v20820_v58 = vpop.f32.mrb[237].mxu0  ;;  %v22289_v54 = vld [vmem:[#allocation7] ss:$0 sm:$0xff] (%p22155_p9) }
 0x50a   : > { %v20890_v59 = vpop.f32.mrb[237].mxu1 }
 0x50b   : > { %v20889_v60 = vadd.f32 %v20888_v56, %v20819_v57 }
 0x510   : > { %v20958_v61 = vpop.f32.mrb[238].mxu0 }
 0x511   : > { %v21028_v62 = vpop.f32.mrb[238].mxu1  ;;  %v20959_v63 = vadd.f32 %v20958_v61, %v20889_v60  ;;  %v20960_v0 = vpop.f32.mrb[239].mxu0 }
 0x512   : > { %v21030_v1 = vpop.f32.mrb[239].mxu1 }
 0x513   : > { %v21029_v2 = vadd.f32 %v21028_v62, %v20959_v63 }
 0x518   : > { %v21098_v3 = vpop.f32.mrb[240].mxu0 }
 0x519   : > { %v21168_v4 = vpop.f32.mrb[240].mxu1  ;;  %v21099_v5 = vadd.f32 %v21098_v3, %v21029_v2  ;;  %v21100_v6 = vpop.f32.mrb[241].mxu0 }
 0x51a   : > { %v21170_v7 = vpop.f32.mrb[241].mxu1 }
 0x51b   : > { %v21169_v8 = vadd.f32 %v21168_v4, %v21099_v5 }
 0x520   : > { %v21238_v9 = vpop.f32.mrb[242].mxu0 }
 0x521   : > { %v21308_v10 = vpop.f32.mrb[242].mxu1  ;;  %v21239_v11 = vadd.f32 %v21238_v9, %v21169_v8  ;;  %v21240_v25 = vpop.f32.mrb[243].mxu0 }
 0x522   : > { %v21310_v12 = vpop.f32.mrb[243].mxu1 }
 0x523   : > { %v21309_v13 = vadd.f32 %v21308_v10, %v21239_v11 }
 0x528   : > { %v21378_v14 = vpop.f32.mrb[244].mxu0 }
 0x529   : > { %v21448_v15 = vpop.f32.mrb[244].mxu1  ;;  %v21379_v16 = vadd.f32 %v21378_v14, %v21309_v13  ;;  %v21380_v17 = vpop.f32.mrb[245].mxu0 }
 0x52a   : > { %v21450_v18 = vpop.f32.mrb[245].mxu1 }
 0x52b   : > { %v21449_v19 = vadd.f32 %v21448_v15, %v21379_v16 }
 0x530   : > { %v21518_v20 = vpop.f32.mrb[246].mxu0 }
 0x531   : > { %v21588_v21 = vpop.f32.mrb[246].mxu1  ;;  %v21519_v22 = vadd.f32 %v21518_v20, %v21449_v19  ;;  %v21520_v23 = vpop.f32.mrb[247].mxu0 }
 0x532   : > { %v21590_v24 = vpop.f32.mrb[247].mxu1 }
 0x533   : > { %v21589_v26 = vadd.f32 %v21588_v21, %v21519_v22 }
 0x538   : > { %v21658_v27 = vpop.f32.mrb[248].mxu0 }
 0x539   : > { %v21728_v28 = vpop.f32.mrb[248].mxu1  ;;  %v21659_v29 = vadd.f32 %v21658_v27, %v21589_v26  ;;  %v21660_v30 = vpop.f32.mrb[249].mxu0 }
 0x53a   : > { %v21730_v31 = vpop.f32.mrb[249].mxu1 }
 0x53b   : > { %v21729_v32 = vadd.f32 %v21728_v28, %v21659_v29 }
 0x540   : > { %v21798_v33 = vpop.f32.mrb[250].mxu0 }
 0x541   : > { %v21868_v34 = vpop.f32.mrb[250].mxu1  ;;  %v21799_v35 = vadd.f32 %v21798_v33, %v21729_v32  ;;  %v21800_v36 = vpop.f32.mrb[251].mxu0 }
 0x542   : > { %v21870_v37 = vpop.f32.mrb[251].mxu1 }
 0x543   : > { %v21869_v38 = vadd.f32 %v21868_v34, %v21799_v35 }
 0x548   : > { %v21938_v39 = vpop.f32.mrb[252].mxu0 }
 0x549   : > { %v22008_v40 = vpop.f32.mrb[252].mxu1  ;;  %v21939_v41 = vadd.f32 %v21938_v39, %v21869_v38  ;;  %v21940_v42 = vpop.f32.mrb[253].mxu0 }
 0x54a   : > { %v22010_v43 = vpop.f32.mrb[253].mxu1 }
 0x54b   : > { %v22009_v44 = vadd.f32 %v22008_v40, %v21939_v41 }
 0x550   : > { %v22078_v45 = vpop.f32.mrb[254].mxu0 }
 0x551   : > { %v22148_v46 = vpop.f32.mrb[254].mxu1  ;;  %v22079_v47 = vadd.f32 %v22078_v45, %v22009_v44  ;;  %v22080_v48 = vpop.f32.mrb[255].mxu0  ;;  %22160 = sbr.rel (!%p22155_p9) target bundleno = 1378 (0x562), region = 52 }
 0x552   : > { %v22150_v49 = vpop.f32.mrb[255].mxu1 }
 0x553   : > { %v22149_v51 = vadd.f32 %v22148_v46, %v22079_v47 }
 0x555   : > { %v22152_v52 = vadd.f32 %v22149_v51, %v263_v50 }
 0x557   : > { %22154 = vst.msk [vmem:[#allocation8] sm:$0x3] %vm22153_vm1, %v22152_v52 }
 0x55e   : > { %v22161_v53 = vld [vmem:[#allocation8] sm:$0x3] }
 0x55f   : > { %v22169_v55 = vadd.f32 %v22289_v54, %v22161_v53 }
 0x561   : > { %22170 = vst.msk [vmem:[#allocation8] sm:$0x3] %vm22153_vm1, %v22169_v55 }
 0x562 PF: > { %p23347_p11 = scmp.eq.s32.totalorder %s23768_s18, 2  ;;  %s23718_s20 = smov [#allocation8]  }
 0x563   : > { %s22178_s21 = sshll.u32 %s23718_s20, 4  ;;  %s22179_s21 = int_to_ptr.vmem [resolvable:$true] %s22178_s21 }
 0x564   : > { %s23620_s24 = scalar_lea.vmem %s22179_s21, 32  ;;  %p23627_p1 = scmp.lt.s32.totalorder %s22179_s21, %s22179_s21 }
 0x565   : > { %p23621_p13 = scmp.ne.s32.totalorder %s22179_s21, %s23620_s24  ;;  %p23628_p0 = scmp.lt.s32.totalorder %s23620_s24, %s23620_s24 }
 0x567   : > { %p23622_p3 = pnand %p23621_p13, %p23347_p11  ;;  %p23629_p8 = por %p23628_p0, %p23627_p1 }
 0x569   : > { %p23623_p4 = pneg %p23622_p3 }
 0x56b   : > { %p23630_p2 = pnand %p23629_p8, %p23623_p4 }
 0x56d   : > { %23633 = shalt.err (!%p23630_p2)
}
 0x56e   : > { %s23634_s29 = scalar_lea.hbm %s25398_s3, 32 }
 0x56f   : > { %p23635_p12 = scmp.ne.s32.totalorder %s25398_s3, %s23634_s29  ;;  %p23640_p5 = scmp.lt.u32.totalorder %s23634_s29, %s25398_s3 }
 0x571   : > { %p23636_p7 = pnand %p23635_p12, %p23347_p11 }
 0x573   : > { %p23637_p10 = pneg %p23636_p7 }
 0x575   : > { %p23642_p6 = pnand %p23640_p5, %p23637_p10 }
 0x577   : > { %23645 = shalt.err (!%p23642_p6)
}
 0x578   : > { %23330 = dma.vmem_to_hbm [thread:$0]  (%p23347_p11), %s22179_s21, 32, %s25398_s3, [#allocation4]  }
 0x579   : > { %23683 = dma.done.wait (%p23347_p11), [#allocation4], 32  }
 0x57a   : > { %23685 = vsyncadd (%p23347_p11), [#allocation4], 4294967264 }
 0x57b PF: > { %s20_s17 = sadd.s32 1, %s23708_s17   ;;  %s25415_s12 = smov %s23692_s13 }
 0x57c   : > { %p17_p9 = scmp.ge.s32.totalorder %s20_s17, 5   ;;  %s25416_s13 = smov %s23696_s14 }
 0x57d   : > { %s25417_s14 = smov %s23844_s23  ;;  %s25418_s15 = smov %s23704_s16 }
 0x57e   : > { %s25419_s16 = smov %s25421_s25  ;;  %19 = sbr.rel (!%p17_p9) target bundleno = 7 (0x7), region = 94 }
 0x585   :  { %22191 = vsyncpa [#allocation3], 1 }
 0x586   :  { %22193 = vsyncpa [#allocation3 + $0x1], 1 }
 0x587   :  { %22194 = vsyncpa [#allocation6], 1 }
 0x588   :  { %22196 = vsyncpa [#allocation6 + $0x1], 1 }
 0x589   :  { %22197 = vsyncpa [#allocation4], 1 }
 0x58a   :  { %22199 = vsyncpa [#allocation4 + $0x1], 1 }

</bundles_post_ra>
